<compile_context>
chip_gen: v5e
topology: v5e:2x2
jax: 0.10.0
libtpu: 0.0.40
codegen_flags: <defaults>
</compile_context>

<pallas_src>
import functools

import jax
import jax.numpy as jnp
from jax.experimental import pallas as pl
from jax.experimental.pallas import tpu as pltpu

BN_EPS = 1e-5


# ----------------------------------------------------------------------------
# Helpers
# ----------------------------------------------------------------------------
def _round_up(x, m):
    return ((x + m - 1) // m) * m


def _pick_tile(dim, unit, max_tile):
    """Pad `dim` up to a multiple of `unit` only, then pick the largest tile
    <= max_tile (multiple of `unit`) that exactly divides the padded dim.
    Guarantees zero extra padding beyond `unit` alignment."""
    d = _round_up(max(dim, 1), unit)
    t = min(max_tile, d)
    t = (t // unit) * unit
    while d % t != 0:
        t -= unit
    return t, d


# ----------------------------------------------------------------------------
# Pallas kernels
# ----------------------------------------------------------------------------
def _make_mm_kernel(has_res: bool, do_relu: bool):
    """Fused (A @ B) + bias [+ residual] [relu] kernel; bf16 MXU, f32 accum."""

    def kernel(*refs):
        if has_res:
            a_ref, b_ref, c_ref, r_ref, o_ref, acc_ref = refs
        else:
            a_ref, b_ref, c_ref, o_ref, acc_ref = refs
            r_ref = None

        @pl.when(pl.program_id(2) == 0)
        def _init():
            acc_ref[...] = jnp.zeros_like(acc_ref)

        acc_ref[...] += jnp.dot(a_ref[...], b_ref[...],
                                preferred_element_type=jnp.float32)

        @pl.when(pl.program_id(2) == pl.num_programs(2) - 1)
        def _finalize():
            y = acc_ref[...] + c_ref[...]
            if r_ref is not None:
                y = y + r_ref[...].astype(jnp.float32)
            if do_relu:
                y = jnp.maximum(y, 0.0)
            o_ref[...] = y.astype(o_ref.dtype)

    return kernel


def _make_maxpool_kernel(ntaps: int):
    def kernel(*refs):
        o_ref = refs[ntaps]
        m = refs[0][...]
        for t in range(1, ntaps):
            m = jnp.maximum(m, refs[t][...])
        o_ref[...] = m

    return kernel


def _avgpool_kernel(x_ref, o_ref):
    # x: (1, H*W, C) -> mean over spatial axis (AdaptiveAvgPool2d((1,1)))
    o_ref[...] = jnp.mean(x_ref[...].astype(jnp.float32), axis=1, keepdims=True)


# ----------------------------------------------------------------------------
# Pallas wrappers
# ----------------------------------------------------------------------------
def fused_matmul(a, b, bias, residual=None, relu=True, out_dtype=jnp.bfloat16):
    """out = [relu]((a @ b) + bias [+ residual]); bf16 MXU inputs, f32 accumulation."""
    M, K = a.shape
    K2, N = b.shape
    assert K == K2

    tm, M_pad = _pick_tile(M, 16, 512)     # 16: bf16 sublane packing
    tk, K_pad = _pick_tile(K, 128, 1024)   # tk always divides K_pad exactly
    tn, N_pad = _pick_tile(N, 128, 256)

    a_p = a.astype(jnp.bfloat16)
    if (M_pad, K_pad) != (M, K):
        a_p = jnp.pad(a_p, ((0, M_pad - M), (0, K_pad - K)))
    b_p = b.astype(jnp.bfloat16)
    if (K_pad, N_pad) != (K, N):
        b_p = jnp.pad(b_p, ((0, K_pad - K), (0, N_pad - N)))
    c_p = bias.reshape(1, -1).astype(jnp.float32)
    if N_pad != N:
        c_p = jnp.pad(c_p, ((0, 0), (0, N_pad - N)))

    inputs = [a_p, b_p, c_p]
    in_specs = [
        pl.BlockSpec((tm, tk), lambda i, j, k: (i, k)),
        pl.BlockSpec((tk, tn), lambda i, j, k: (k, j)),
        pl.BlockSpec((1, tn), lambda i, j, k: (0, j)),
    ]
    if residual is not None:
        r_p = residual.astype(jnp.bfloat16)
        if (M_pad, N_pad) != (M, N):
            r_p = jnp.pad(r_p, ((0, M_pad - M), (0, N_pad - N)))
        inputs.append(r_p)
        in_specs.append(pl.BlockSpec((tm, tn), lambda i, j, k: (i, j)))

    kernel = _make_mm_kernel(residual is not None, relu)

    out = pl.pallas_call(
        kernel,
        out_shape=jax.ShapeDtypeStruct((M_pad, N_pad), out_dtype),
        grid_spec=pltpu.PrefetchScalarGridSpec(
            num_scalar_prefetch=0,
            grid=(M_pad // tm, N_pad // tn, K_pad // tk),
            in_specs=in_specs,
            out_specs=pl.BlockSpec((tm, tn), lambda i, j, k: (i, j)),
            scratch_shapes=[pltpu.VMEM((tm, tn), jnp.float32)],
        ),
        compiler_params=pltpu.CompilerParams(
            dimension_semantics=("parallel", "parallel", "arbitrary")),
    )(*inputs)
    if (M_pad, N_pad) != (M, N):
        out = out[:M, :N]
    return out


def _im2col(x_nhwc, kh, kw, stride, pad):
    """Extract conv patches in bf16 (plain-JAX glue). Returns ((N*Ho*Wo, kh*kw*C), dims)."""
    N, H, W, C = x_nhwc.shape
    x_p = jnp.pad(x_nhwc.astype(jnp.bfloat16),
                  ((0, 0), (pad, pad), (pad, pad), (0, 0)))
    Ho = (H + 2 * pad - kh) // stride + 1
    Wo = (W + 2 * pad - kw) // stride + 1
    cols = []
    for i in range(kh):
        for j in range(kw):
            patch = jax.lax.slice(
                x_p,
                (0, i, j, 0),
                (N, i + (Ho - 1) * stride + 1, j + (Wo - 1) * stride + 1, C),
                (1, stride, stride, 1),
            )  # (N, Ho, Wo, C)
            cols.append(patch)
    col = jnp.stack(cols, axis=3)                      # (N, Ho, Wo, kh*kw, C)
    return col.reshape(N * Ho * Wo, kh * kw * C), (N, Ho, Wo)


def conv_bn(x_nhwc, w, bn, stride, pad, relu, residual=None,
            out_dtype=jnp.bfloat16):
    """conv2d (bias=False) + BatchNorm (eval) [+ residual] [+ ReLU]."""
    gamma, beta = bn
    Cout, Cin, kh, kw = w.shape
    cols, (N, Ho, Wo) = _im2col(x_nhwc, kh, kw, stride, pad)
    # BN (eval, running_mean=0, running_var=1): scale folded into the weights,
    # only the bias is applied in the kernel epilogue.
    scale = gamma / jnp.sqrt(1.0 + BN_EPS)                      # (Cout,)
    wmat = jnp.transpose(w, (2, 3, 1, 0)).reshape(kh * kw * Cin, Cout)
    wmat = (wmat.astype(jnp.float32) * scale[None, :]).astype(jnp.bfloat16)
    bias = beta.astype(jnp.float32)
    res_flat = None if residual is None else residual.reshape(N * Ho * Wo, Cout)
    y = fused_matmul(cols, wmat, bias, residual=res_flat, relu=relu,
                     out_dtype=out_dtype)
    return y.reshape(N, Ho, Wo, Cout)


def maxpool_3x3_s2_p1(x_nhwc):
    N, H, W, C = x_nhwc.shape
    dt = x_nhwc.dtype
    neg = jnp.finfo(dt).min
    x_p = jnp.pad(x_nhwc, ((0, 0), (1, 1), (1, 1), (0, 0)), constant_values=neg)
    Ho = (H + 2 - 3) // 2 + 1
    Wo = (W + 2 - 3) // 2 + 1
    M = N * Ho * Wo
    taps = []
    for i in range(3):
        for j in range(3):
            s = jax.lax.slice(
                x_p,
                (0, i, j, 0),
                (N, i + (Ho - 1) * 2 + 1, j + (Wo - 1) * 2 + 1, C),
                (1, 2, 2, 1),
            )
            taps.append(s.reshape(M, C))

    tm, M_pad = _pick_tile(M, 16, 1024)
    if M_pad != M:
        taps = [jnp.pad(t, ((0, M_pad - M), (0, 0))) for t in taps]

    out = pl.pallas_call(
        _make_maxpool_kernel(9),
        out_shape=jax.ShapeDtypeStruct((M_pad, C), dt),
        grid_spec=pltpu.PrefetchScalarGridSpec(
            num_scalar_prefetch=0,
            grid=(M_pad // tm,),
            in_specs=[pl.BlockSpec((tm, C), lambda i: (i, 0)) for _ in range(9)],
            out_specs=pl.BlockSpec((tm, C), lambda i: (i, 0)),
        ),
        compiler_params=pltpu.CompilerParams(dimension_semantics=("parallel",)),
    )(*taps)
    if M_pad != M:
        out = out[:M]
    return out.reshape(N, Ho, Wo, C)


def adaptive_avgpool_1x1(x_nhwc):
    N, H, W, C = x_nhwc.shape
    x3 = x_nhwc.reshape(N, H * W, C)
    out = pl.pallas_call(
        _avgpool_kernel,
        out_shape=jax.ShapeDtypeStruct((N, 1, C), jnp.float32),
        grid_spec=pltpu.PrefetchScalarGridSpec(
            num_scalar_prefetch=0,
            grid=(N,),
            in_specs=[pl.BlockSpec((1, H * W, C), lambda i: (i, 0, 0))],
            out_specs=pl.BlockSpec((1, 1, C), lambda i: (i, 0, 0)),
        ),
        compiler_params=pltpu.CompilerParams(dimension_semantics=("parallel",)),
    )(x3)
    return out.reshape(N, C)


# ----------------------------------------------------------------------------
# ResNet (BasicBlock, expansion = 1)
# ----------------------------------------------------------------------------
def basic_block_forward(x, blk):
    identity = x
    out = conv_bn(x, blk["conv1_w"], blk["bn1"], stride=blk["stride"], pad=1,
                  relu=True)
    if "ds_w" in blk:
        identity = conv_bn(x, blk["ds_w"], blk["ds_bn"], stride=blk["stride"],
                           pad=0, relu=False)
    out = conv_bn(out, blk["conv2_w"], blk["bn2"], stride=1, pad=1, relu=True,
                  residual=identity)
    return out


def resnet_forward(params, x_nchw):
    x = jnp.transpose(x_nchw, (0, 2, 3, 1)).astype(jnp.bfloat16)   # NCHW -> NHWC
    x = conv_bn(x, params["conv1_w"], params["bn1"], stride=2, pad=3, relu=True)
    x = maxpool_3x3_s2_p1(x)
    for layer in params["layers"]:
        for blk in layer:
            x = basic_block_forward(x, blk)
    pooled = adaptive_avgpool_1x1(x)                               # (N, 512) == flatten
    logits = fused_matmul(pooled, params["fc_w"].T, params["fc_b"],
                          relu=False, out_dtype=jnp.float32)
    return logits


# ----------------------------------------------------------------------------
# Deterministic parameter init (shapes mirror the PyTorch __init__)
# ----------------------------------------------------------------------------
def _conv_init(key, cout, cin, k):
    std = (2.0 / (cin * k * k)) ** 0.5
    return std * jax.random.normal(key, (cout, cin, k, k), dtype=jnp.float32)


def _bn_init(key, c):
    k1, k2 = jax.random.split(key)
    gamma = 1.0 + 0.1 * jax.random.normal(k1, (c,), dtype=jnp.float32)
    beta = 0.1 * jax.random.normal(k2, (c,), dtype=jnp.float32)
    return gamma, beta


def init_params(key, blocks_num=(1, 1, 1, 1), num_classes=10):
    keys = iter(jax.random.split(key, 256))
    p = {}
    p["conv1_w"] = _conv_init(next(keys), 64, 3, 7)
    p["bn1"] = _bn_init(next(keys), 64)
    in_c = 64
    layers = []
    for channel, nblocks, stride in zip((64, 128, 256, 512), blocks_num, (1, 2, 2, 2)):
        blocks = []
        for b in range(nblocks):
            s = stride if b == 0 else 1
            blk = {"stride": s}
            blk["conv1_w"] = _conv_init(next(keys), channel, in_c, 3)
            blk["bn1"] = _bn_init(next(keys), channel)
            blk["conv2_w"] = _conv_init(next(keys), channel, channel, 3)
            blk["bn2"] = _bn_init(next(keys), channel)
            if b == 0 and (s != 1 or in_c != channel):
                blk["ds_w"] = _conv_init(next(keys), channel, in_c, 1)
                blk["ds_bn"] = _bn_init(next(keys), channel)
            blocks.append(blk)
            in_c = channel
        layers.append(blocks)
    p["layers"] = layers
    p["fc_w"] = 0.01 * jax.random.normal(next(keys), (num_classes, in_c),
                                         dtype=jnp.float32)
    p["fc_b"] = jnp.zeros((num_classes,), dtype=jnp.float32)
    return p


# ----------------------------------------------------------------------------
if __name__ == "__main__":
    key = jax.random.PRNGKey(0)
    pkey, xkey = jax.random.split(key)

    # Small synthetic config: BasicBlock, blocks_num=[1,1,1,1], num_classes=10.
    params = init_params(pkey, blocks_num=(1, 1, 1, 1), num_classes=10)
    x = jax.random.normal(xkey, (2, 3, 32, 32), dtype=jnp.float32)   # NCHW like PyTorch

    fwd = jax.jit(lambda xx: resnet_forward(params, xx))
    out = fwd(x)
    out = jax.block_until_ready(out)
    assert out.shape == (2, 10), out.shape
    assert bool(jnp.all(jnp.isfinite(out)))
    print("KERNEL_OK")
</pallas_src>

<mosaic_0001>
module attributes {stable_mosaic.version = 11 : i64} {
  func.func @kernel(%arg0: i32, %arg1: i32, %arg2: i32, %arg3: memref<512x256xbf16, #tpu.memory_space<vmem>>, %arg4: memref<256x128xbf16, #tpu.memory_space<vmem>>, %arg5: memref<1x128xf32, #tpu.memory_space<vmem>>, %arg6: memref<512x128xbf16, #tpu.memory_space<vmem>>, %arg7: memref<512x128xf32, #tpu.memory_space<vmem>>) attributes {dimension_semantics = [#tpu.dimension_semantics<parallel>, #tpu.dimension_semantics<parallel>, #tpu.dimension_semantics<arbitrary>], iteration_bounds = array<i64: 1, 1, 1>, scalar_prefetch = 0 : i64, scratch_operands = 1 : i64, tpu.core_type = #tpu.core_type<tc>, window_params = [{transform_indices = @transform_0, window_bounds = array<i64: 512, 256>}, {transform_indices = @transform_1, window_bounds = array<i64: 256, 128>}, {transform_indices = @transform_2, window_bounds = array<i64: 1, 128>}, {transform_indices = @transform_3, window_bounds = array<i64: 512, 128>}]} {
    %c0_i32 = arith.constant 0 : i32
    %0 = arith.cmpi eq, %arg2, %c0_i32 : i32
    %1 = arith.extui %0 : i1 to i32
    %c0_i32_0 = arith.constant 0 : i32
    %2 = arith.cmpi ne, %1, %c0_i32_0 : i32
    scf.if %2 {
      %cst_10 = arith.constant 0.000000e+00 : f32
      %12 = vector.broadcast %cst_10 : f32 to vector<512x128xf32>
      %c0_11 = arith.constant 0 : index
      %c0_12 = arith.constant 0 : index
      %13 = vector.load %arg7[%c0_11, %c0_12] : memref<512x128xf32, #tpu.memory_space<vmem>>, vector<512x128xf32>
      tpu.vector_store %arg7[%c0_11, %c0_12], %12 {strides = array<i32>} : memref<512x128xf32, #tpu.memory_space<vmem>>, vector<512x128xf32>,
    } else {
    }
    %c0 = arith.constant 0 : index
    %c0_1 = arith.constant 0 : index
    %3 = vector.load %arg7[%c0, %c0_1] : memref<512x128xf32, #tpu.memory_space<vmem>>, vector<512x128xf32>
    %c0_2 = arith.constant 0 : index
    %c0_3 = arith.constant 0 : index
    %4 = vector.load %arg3[%c0_2, %c0_3] : memref<512x256xbf16, #tpu.memory_space<vmem>>, vector<512x256xbf16>
    %c0_4 = arith.constant 0 : index
    %c0_5 = arith.constant 0 : index
    %5 = vector.load %arg4[%c0_4, %c0_5] : memref<256x128xbf16, #tpu.memory_space<vmem>>, vector<256x128xbf16>
    %cst = arith.constant dense<0.000000e+00> : vector<512x128xf32>
    %6 = tpu.matmul %4, %5, %cst {dimension_numbers = #tpu.dot_dimension_numbers<[1], [0], [0], [1], [0, 0, 1, 1], [], []>} : vector<512x256xbf16>, vector<256x128xbf16>, vector<512x128xf32> -> vector<512x128xf32>
    %7 = arith.addf %3, %6 : vector<512x128xf32>
    %c0_6 = arith.constant 0 : index
    %c0_7 = arith.constant 0 : index
    %8 = vector.load %arg7[%c0_6, %c0_7] : memref<512x128xf32, #tpu.memory_space<vmem>>, vector<512x128xf32>
    tpu.vector_store %arg7[%c0_6, %c0_7], %7 {strides = array<i32>} : memref<512x128xf32, #tpu.memory_space<vmem>>, vector<512x128xf32>,
    %c0_i32_8 = arith.constant 0 : i32
    %9 = arith.cmpi eq, %arg2, %c0_i32_8 : i32
    %10 = arith.extui %9 : i1 to i32
    %c0_i32_9 = arith.constant 0 : i32
    %11 = arith.cmpi ne, %10, %c0_i32_9 : i32
    scf.if %11 {
      %c0_10 = arith.constant 0 : index
      %c0_11 = arith.constant 0 : index
      %12 = vector.load %arg7[%c0_10, %c0_11] : memref<512x128xf32, #tpu.memory_space<vmem>>, vector<512x128xf32>
      %c0_12 = arith.constant 0 : index
      %c0_13 = arith.constant 0 : index
      %13 = vector.load %arg5[%c0_12, %c0_13] : memref<1x128xf32, #tpu.memory_space<vmem>>, vector<1x128xf32>
      %14 = vector.broadcast %13 : vector<1x128xf32> to vector<512x128xf32>
      %15 = arith.addf %12, %14 : vector<512x128xf32>
      %cst_14 = arith.constant 0.000000e+00 : f32
      %16 = vector.broadcast %cst_14 : f32 to vector<512x128xf32>
      %17 = arith.maximumf %15, %16 : vector<512x128xf32>
      %18 = arith.truncf %17 : vector<512x128xf32> to vector<512x128xbf16>
      %c0_15 = arith.constant 0 : index
      %c0_16 = arith.constant 0 : index
      %19 = vector.load %arg6[%c0_15, %c0_16] : memref<512x128xbf16, #tpu.memory_space<vmem>>, vector<512x128xbf16>
      tpu.vector_store %arg6[%c0_15, %c0_16], %18 {strides = array<i32>} : memref<512x128xbf16, #tpu.memory_space<vmem>>, vector<512x128xbf16>,
    } else {
    }
    return
  }
  func.func @transform_0(%arg0: i32, %arg1: i32, %arg2: i32) -> (i32, i32) {
    %c0_i32 = arith.constant 0 : i32
    return %arg0, %arg2 : i32, i32
  }
  func.func @transform_1(%arg0: i32, %arg1: i32, %arg2: i32) -> (i32, i32) {
    %c0_i32 = arith.constant 0 : i32
    return %arg2, %arg1 : i32, i32
  }
  func.func @transform_2(%arg0: i32, %arg1: i32, %arg2: i32) -> (i32, i32) {
    %c0_i32 = arith.constant 0 : i32
    %c0_i32_0 = arith.constant 0 : i32
    return %c0_i32, %arg1 : i32, i32
  }
  func.func @transform_3(%arg0: i32, %arg1: i32, %arg2: i32) -> (i32, i32) {
    %c0_i32 = arith.constant 0 : i32
    return %arg0, %arg1 : i32, i32
  }
}

module attributes {stable_mosaic.version = 11 : i64} {
  func.func @kernel(%arg0: i32, %arg1: memref<128x64xbf16, #tpu.memory_space<vmem>>, %arg2: memref<128x64xbf16, #tpu.memory_space<vmem>>, %arg3: memref<128x64xbf16, #tpu.memory_space<vmem>>, %arg4: memref<128x64xbf16, #tpu.memory_space<vmem>>, %arg5: memref<128x64xbf16, #tpu.memory_space<vmem>>, %arg6: memref<128x64xbf16, #tpu.memory_space<vmem>>, %arg7: memref<128x64xbf16, #tpu.memory_space<vmem>>, %arg8: memref<128x64xbf16, #tpu.memory_space<vmem>>, %arg9: memref<128x64xbf16, #tpu.memory_space<vmem>>, %arg10: memref<128x64xbf16, #tpu.memory_space<vmem>>) attributes {dimension_semantics = [#tpu.dimension_semantics<parallel>], iteration_bounds = array<i64: 1>, scalar_prefetch = 0 : i64, scratch_operands = 0 : i64, tpu.core_type = #tpu.core_type<tc>, window_params = [{transform_indices = @transform_0, window_bounds = array<i64: 128, 64>}, {transform_indices = @transform_1, window_bounds = array<i64: 128, 64>}, {transform_indices = @transform_2, window_bounds = array<i64: 128, 64>}, {transform_indices = @transform_3, window_bounds = array<i64: 128, 64>}, {transform_indices = @transform_4, window_bounds = array<i64: 128, 64>}, {transform_indices = @transform_5, window_bounds = array<i64: 128, 64>}, {transform_indices = @transform_6, window_bounds = array<i64: 128, 64>}, {transform_indices = @transform_7, window_bounds = array<i64: 128, 64>}, {transform_indices = @transform_8, window_bounds = array<i64: 128, 64>}, {transform_indices = @transform_9, window_bounds = array<i64: 128, 64>}]} {
    %c0 = arith.constant 0 : index
    %c0_0 = arith.constant 0 : index
    %0 = vector.load %arg1[%c0, %c0_0] : memref<128x64xbf16, #tpu.memory_space<vmem>>, vector<128x64xbf16>
    %c0_1 = arith.constant 0 : index
    %c0_2 = arith.constant 0 : index
    %1 = vector.load %arg2[%c0_1, %c0_2] : memref<128x64xbf16, #tpu.memory_space<vmem>>, vector<128x64xbf16>
    %2 = arith.maximumf %0, %1 : vector<128x64xbf16>
    %c0_3 = arith.constant 0 : index
    %c0_4 = arith.constant 0 : index
    %3 = vector.load %arg3[%c0_3, %c0_4] : memref<128x64xbf16, #tpu.memory_space<vmem>>, vector<128x64xbf16>
    %4 = arith.maximumf %2, %3 : vector<128x64xbf16>
    %c0_5 = arith.constant 0 : index
    %c0_6 = arith.constant 0 : index
    %5 = vector.load %arg4[%c0_5, %c0_6] : memref<128x64xbf16, #tpu.memory_space<vmem>>, vector<128x64xbf16>
    %6 = arith.maximumf %4, %5 : vector<128x64xbf16>
    %c0_7 = arith.constant 0 : index
    %c0_8 = arith.constant 0 : index
    %7 = vector.load %arg5[%c0_7, %c0_8] : memref<128x64xbf16, #tpu.memory_space<vmem>>, vector<128x64xbf16>
    %8 = arith.maximumf %6, %7 : vector<128x64xbf16>
    %c0_9 = arith.constant 0 : index
    %c0_10 = arith.constant 0 : index
    %9 = vector.load %arg6[%c0_9, %c0_10] : memref<128x64xbf16, #tpu.memory_space<vmem>>, vector<128x64xbf16>
    %10 = arith.maximumf %8, %9 : vector<128x64xbf16>
    %c0_11 = arith.constant 0 : index
    %c0_12 = arith.constant 0 : index
    %11 = vector.load %arg7[%c0_11, %c0_12] : memref<128x64xbf16, #tpu.memory_space<vmem>>, vector<128x64xbf16>
    %12 = arith.maximumf %10, %11 : vector<128x64xbf16>
    %c0_13 = arith.constant 0 : index
    %c0_14 = arith.constant 0 : index
    %13 = vector.load %arg8[%c0_13, %c0_14] : memref<128x64xbf16, #tpu.memory_space<vmem>>, vector<128x64xbf16>
    %14 = arith.maximumf %12, %13 : vector<128x64xbf16>
    %c0_15 = arith.constant 0 : index
    %c0_16 = arith.constant 0 : index
    %15 = vector.load %arg9[%c0_15, %c0_16] : memref<128x64xbf16, #tpu.memory_space<vmem>>, vector<128x64xbf16>
    %16 = arith.maximumf %14, %15 : vector<128x64xbf16>
    %c0_17 = arith.constant 0 : index
    %c0_18 = arith.constant 0 : index
    %17 = vector.load %arg10[%c0_17, %c0_18] : memref<128x64xbf16, #tpu.memory_space<vmem>>, vector<128x64xbf16>
    tpu.vector_store %arg10[%c0_17, %c0_18], %16 {strides = array<i32>} : memref<128x64xbf16, #tpu.memory_space<vmem>>, vector<128x64xbf16>,
    return
  }
  func.func @transform_0(%arg0: i32) -> (i32, i32) {
    %c0_i32 = arith.constant 0 : i32
    %c0_i32_0 = arith.constant 0 : i32
    return %arg0, %c0_i32 : i32, i32
  }
  func.func @transform_1(%arg0: i32) -> (i32, i32) {
    %c0_i32 = arith.constant 0 : i32
    %c0_i32_0 = arith.constant 0 : i32
    return %arg0, %c0_i32 : i32, i32
  }
  func.func @transform_2(%arg0: i32) -> (i32, i32) {
    %c0_i32 = arith.constant 0 : i32
    %c0_i32_0 = arith.constant 0 : i32
    return %arg0, %c0_i32 : i32, i32
  }
  func.func @transform_3(%arg0: i32) -> (i32, i32) {
    %c0_i32 = arith.constant 0 : i32
    %c0_i32_0 = arith.constant 0 : i32
    return %arg0, %c0_i32 : i32, i32
  }
  func.func @transform_4(%arg0: i32) -> (i32, i32) {
    %c0_i32 = arith.constant 0 : i32
    %c0_i32_0 = arith.constant 0 : i32
    return %arg0, %c0_i32 : i32, i32
  }
  func.func @transform_5(%arg0: i32) -> (i32, i32) {
    %c0_i32 = arith.constant 0 : i32
    %c0_i32_0 = arith.constant 0 : i32
    return %arg0, %c0_i32 : i32, i32
  }
  func.func @transform_6(%arg0: i32) -> (i32, i32) {
    %c0_i32 = arith.constant 0 : i32
    %c0_i32_0 = arith.constant 0 : i32
    return %arg0, %c0_i32 : i32, i32
  }
  func.func @transform_7(%arg0: i32) -> (i32, i32) {
    %c0_i32 = arith.constant 0 : i32
    %c0_i32_0 = arith.constant 0 : i32
    return %arg0, %c0_i32 : i32, i32
  }
  func.func @transform_8(%arg0: i32) -> (i32, i32) {
    %c0_i32 = arith.constant 0 : i32
    %c0_i32_0 = arith.constant 0 : i32
    return %arg0, %c0_i32 : i32, i32
  }
  func.func @transform_9(%arg0: i32) -> (i32, i32) {
    %c0_i32 = arith.constant 0 : i32
    %c0_i32_0 = arith.constant 0 : i32
    return %arg0, %c0_i32 : i32, i32
  }
}

module attributes {stable_mosaic.version = 11 : i64} {
  func.func @kernel(%arg0: i32, %arg1: i32, %arg2: i32, %arg3: memref<128x640xbf16, #tpu.memory_space<vmem>>, %arg4: memref<640x128xbf16, #tpu.memory_space<vmem>>, %arg5: memref<1x128xf32, #tpu.memory_space<vmem>>, %arg6: memref<128x128xbf16, #tpu.memory_space<vmem>>, %arg7: memref<128x128xf32, #tpu.memory_space<vmem>>) attributes {dimension_semantics = [#tpu.dimension_semantics<parallel>, #tpu.dimension_semantics<parallel>, #tpu.dimension_semantics<arbitrary>], iteration_bounds = array<i64: 1, 1, 1>, scalar_prefetch = 0 : i64, scratch_operands = 1 : i64, tpu.core_type = #tpu.core_type<tc>, window_params = [{transform_indices = @transform_0, window_bounds = array<i64: 128, 640>}, {transform_indices = @transform_1, window_bounds = array<i64: 640, 128>}, {transform_indices = @transform_2, window_bounds = array<i64: 1, 128>}, {transform_indices = @transform_3, window_bounds = array<i64: 128, 128>}]} {
    %c0_i32 = arith.constant 0 : i32
    %0 = arith.cmpi eq, %arg2, %c0_i32 : i32
    %1 = arith.extui %0 : i1 to i32
    %c0_i32_0 = arith.constant 0 : i32
    %2 = arith.cmpi ne, %1, %c0_i32_0 : i32
    scf.if %2 {
      %cst_10 = arith.constant 0.000000e+00 : f32
      %12 = vector.broadcast %cst_10 : f32 to vector<128x128xf32>
      %c0_11 = arith.constant 0 : index
      %c0_12 = arith.constant 0 : index
      %13 = vector.load %arg7[%c0_11, %c0_12] : memref<128x128xf32, #tpu.memory_space<vmem>>, vector<128x128xf32>
      tpu.vector_store %arg7[%c0_11, %c0_12], %12 {strides = array<i32>} : memref<128x128xf32, #tpu.memory_space<vmem>>, vector<128x128xf32>,
    } else {
    }
    %c0 = arith.constant 0 : index
    %c0_1 = arith.constant 0 : index
    %3 = vector.load %arg7[%c0, %c0_1] : memref<128x128xf32, #tpu.memory_space<vmem>>, vector<128x128xf32>
    %c0_2 = arith.constant 0 : index
    %c0_3 = arith.constant 0 : index
    %4 = vector.load %arg3[%c0_2, %c0_3] : memref<128x640xbf16, #tpu.memory_space<vmem>>, vector<128x640xbf16>
    %c0_4 = arith.constant 0 : index
    %c0_5 = arith.constant 0 : index
    %5 = vector.load %arg4[%c0_4, %c0_5] : memref<640x128xbf16, #tpu.memory_space<vmem>>, vector<640x128xbf16>
    %cst = arith.constant dense<0.000000e+00> : vector<128x128xf32>
    %6 = tpu.matmul %4, %5, %cst {dimension_numbers = #tpu.dot_dimension_numbers<[1], [0], [0], [1], [0, 0, 1, 1], [], []>} : vector<128x640xbf16>, vector<640x128xbf16>, vector<128x128xf32> -> vector<128x128xf32>
    %7 = arith.addf %3, %6 : vector<128x128xf32>
    %c0_6 = arith.constant 0 : index
    %c0_7 = arith.constant 0 : index
    %8 = vector.load %arg7[%c0_6, %c0_7] : memref<128x128xf32, #tpu.memory_space<vmem>>, vector<128x128xf32>
    tpu.vector_store %arg7[%c0_6, %c0_7], %7 {strides = array<i32>} : memref<128x128xf32, #tpu.memory_space<vmem>>, vector<128x128xf32>,
    %c0_i32_8 = arith.constant 0 : i32
    %9 = arith.cmpi eq, %arg2, %c0_i32_8 : i32
    %10 = arith.extui %9 : i1 to i32
    %c0_i32_9 = arith.constant 0 : i32
    %11 = arith.cmpi ne, %10, %c0_i32_9 : i32
    scf.if %11 {
      %c0_10 = arith.constant 0 : index
      %c0_11 = arith.constant 0 : index
      %12 = vector.load %arg7[%c0_10, %c0_11] : memref<128x128xf32, #tpu.memory_space<vmem>>, vector<128x128xf32>
      %c0_12 = arith.constant 0 : index
      %c0_13 = arith.constant 0 : index
      %13 = vector.load %arg5[%c0_12, %c0_13] : memref<1x128xf32, #tpu.memory_space<vmem>>, vector<1x128xf32>
      %14 = vector.broadcast %13 : vector<1x128xf32> to vector<128x128xf32>
      %15 = arith.addf %12, %14 : vector<128x128xf32>
      %cst_14 = arith.constant 0.000000e+00 : f32
      %16 = vector.broadcast %cst_14 : f32 to vector<128x128xf32>
      %17 = arith.maximumf %15, %16 : vector<128x128xf32>
      %18 = arith.truncf %17 : vector<128x128xf32> to vector<128x128xbf16>
      %c0_15 = arith.constant 0 : index
      %c0_16 = arith.constant 0 : index
      %19 = vector.load %arg6[%c0_15, %c0_16] : memref<128x128xbf16, #tpu.memory_space<vmem>>, vector<128x128xbf16>
      tpu.vector_store %arg6[%c0_15, %c0_16], %18 {strides = array<i32>} : memref<128x128xbf16, #tpu.memory_space<vmem>>, vector<128x128xbf16>,
    } else {
    }
    return
  }
  func.func @transform_0(%arg0: i32, %arg1: i32, %arg2: i32) -> (i32, i32) {
    %c0_i32 = arith.constant 0 : i32
    return %arg0, %arg2 : i32, i32
  }
  func.func @transform_1(%arg0: i32, %arg1: i32, %arg2: i32) -> (i32, i32) {
    %c0_i32 = arith.constant 0 : i32
    return %arg2, %arg1 : i32, i32
  }
  func.func @transform_2(%arg0: i32, %arg1: i32, %arg2: i32) -> (i32, i32) {
    %c0_i32 = arith.constant 0 : i32
    %c0_i32_0 = arith.constant 0 : i32
    return %c0_i32, %arg1 : i32, i32
  }
  func.func @transform_3(%arg0: i32, %arg1: i32, %arg2: i32) -> (i32, i32) {
    %c0_i32 = arith.constant 0 : i32
    return %arg0, %arg1 : i32, i32
  }
}

module attributes {stable_mosaic.version = 11 : i64} {
  func.func @kernel(%arg0: i32, %arg1: i32, %arg2: i32, %arg3: memref<128x640xbf16, #tpu.memory_space<vmem>>, %arg4: memref<640x128xbf16, #tpu.memory_space<vmem>>, %arg5: memref<1x128xf32, #tpu.memory_space<vmem>>, %arg6: memref<128x128xbf16, #tpu.memory_space<vmem>>, %arg7: memref<128x128xbf16, #tpu.memory_space<vmem>>, %arg8: memref<128x128xf32, #tpu.memory_space<vmem>>) attributes {dimension_semantics = [#tpu.dimension_semantics<parallel>, #tpu.dimension_semantics<parallel>, #tpu.dimension_semantics<arbitrary>], iteration_bounds = array<i64: 1, 1, 1>, scalar_prefetch = 0 : i64, scratch_operands = 1 : i64, tpu.core_type = #tpu.core_type<tc>, window_params = [{transform_indices = @transform_0, window_bounds = array<i64: 128, 640>}, {transform_indices = @transform_1, window_bounds = array<i64: 640, 128>}, {transform_indices = @transform_2, window_bounds = array<i64: 1, 128>}, {transform_indices = @transform_3, window_bounds = array<i64: 128, 128>}, {transform_indices = @transform_4, window_bounds = array<i64: 128, 128>}]} {
    %c0_i32 = arith.constant 0 : i32
    %0 = arith.cmpi eq, %arg2, %c0_i32 : i32
    %1 = arith.extui %0 : i1 to i32
    %c0_i32_0 = arith.constant 0 : i32
    %2 = arith.cmpi ne, %1, %c0_i32_0 : i32
    scf.if %2 {
      %cst_10 = arith.constant 0.000000e+00 : f32
      %12 = vector.broadcast %cst_10 : f32 to vector<128x128xf32>
      %c0_11 = arith.constant 0 : index
      %c0_12 = arith.constant 0 : index
      %13 = vector.load %arg8[%c0_11, %c0_12] : memref<128x128xf32, #tpu.memory_space<vmem>>, vector<128x128xf32>
      tpu.vector_store %arg8[%c0_11, %c0_12], %12 {strides = array<i32>} : memref<128x128xf32, #tpu.memory_space<vmem>>, vector<128x128xf32>,
    } else {
    }
    %c0 = arith.constant 0 : index
    %c0_1 = arith.constant 0 : index
    %3 = vector.load %arg8[%c0, %c0_1] : memref<128x128xf32, #tpu.memory_space<vmem>>, vector<128x128xf32>
    %c0_2 = arith.constant 0 : index
    %c0_3 = arith.constant 0 : index
    %4 = vector.load %arg3[%c0_2, %c0_3] : memref<128x640xbf16, #tpu.memory_space<vmem>>, vector<128x640xbf16>
    %c0_4 = arith.constant 0 : index
    %c0_5 = arith.constant 0 : index
    %5 = vector.load %arg4[%c0_4, %c0_5] : memref<640x128xbf16, #tpu.memory_space<vmem>>, vector<640x128xbf16>
    %cst = arith.constant dense<0.000000e+00> : vector<128x128xf32>
    %6 = tpu.matmul %4, %5, %cst {dimension_numbers = #tpu.dot_dimension_numbers<[1], [0], [0], [1], [0, 0, 1, 1], [], []>} : vector<128x640xbf16>, vector<640x128xbf16>, vector<128x128xf32> -> vector<128x128xf32>
    %7 = arith.addf %3, %6 : vector<128x128xf32>
    %c0_6 = arith.constant 0 : index
    %c0_7 = arith.constant 0 : index
    %8 = vector.load %arg8[%c0_6, %c0_7] : memref<128x128xf32, #tpu.memory_space<vmem>>, vector<128x128xf32>
    tpu.vector_store %arg8[%c0_6, %c0_7], %7 {strides = array<i32>} : memref<128x128xf32, #tpu.memory_space<vmem>>, vector<128x128xf32>,
    %c0_i32_8 = arith.constant 0 : i32
    %9 = arith.cmpi eq, %arg2, %c0_i32_8 : i32
    %10 = arith.extui %9 : i1 to i32
    %c0_i32_9 = arith.constant 0 : i32
    %11 = arith.cmpi ne, %10, %c0_i32_9 : i32
    scf.if %11 {
      %c0_10 = arith.constant 0 : index
      %c0_11 = arith.constant 0 : index
      %12 = vector.load %arg8[%c0_10, %c0_11] : memref<128x128xf32, #tpu.memory_space<vmem>>, vector<128x128xf32>
      %c0_12 = arith.constant 0 : index
      %c0_13 = arith.constant 0 : index
      %13 = vector.load %arg5[%c0_12, %c0_13] : memref<1x128xf32, #tpu.memory_space<vmem>>, vector<1x128xf32>
      %14 = vector.broadcast %13 : vector<1x128xf32> to vector<128x128xf32>
      %15 = arith.addf %12, %14 : vector<128x128xf32>
      %c0_14 = arith.constant 0 : index
      %c0_15 = arith.constant 0 : index
      %16 = vector.load %arg6[%c0_14, %c0_15] : memref<128x128xbf16, #tpu.memory_space<vmem>>, vector<128x128xbf16>
      %17 = arith.extf %16 : vector<128x128xbf16> to vector<128x128xf32>
      %18 = arith.addf %15, %17 : vector<128x128xf32>
      %cst_16 = arith.constant 0.000000e+00 : f32
      %19 = vector.broadcast %cst_16 : f32 to vector<128x128xf32>
      %20 = arith.maximumf %18, %19 : vector<128x128xf32>
      %21 = arith.truncf %20 : vector<128x128xf32> to vector<128x128xbf16>
      %c0_17 = arith.constant 0 : index
      %c0_18 = arith.constant 0 : index
      %22 = vector.load %arg7[%c0_17, %c0_18] : memref<128x128xbf16, #tpu.memory_space<vmem>>, vector<128x128xbf16>
      tpu.vector_store %arg7[%c0_17, %c0_18], %21 {strides = array<i32>} : memref<128x128xbf16, #tpu.memory_space<vmem>>, vector<128x128xbf16>,
    } else {
    }
    return
  }
  func.func @transform_0(%arg0: i32, %arg1: i32, %arg2: i32) -> (i32, i32) {
    %c0_i32 = arith.constant 0 : i32
    return %arg0, %arg2 : i32, i32
  }
  func.func @transform_1(%arg0: i32, %arg1: i32, %arg2: i32) -> (i32, i32) {
    %c0_i32 = arith.constant 0 : i32
    return %arg2, %arg1 : i32, i32
  }
  func.func @transform_2(%arg0: i32, %arg1: i32, %arg2: i32) -> (i32, i32) {
    %c0_i32 = arith.constant 0 : i32
    %c0_i32_0 = arith.constant 0 : i32
    return %c0_i32, %arg1 : i32, i32
  }
  func.func @transform_3(%arg0: i32, %arg1: i32, %arg2: i32) -> (i32, i32) {
    %c0_i32 = arith.constant 0 : i32
    return %arg0, %arg1 : i32, i32
  }
  func.func @transform_4(%arg0: i32, %arg1: i32, %arg2: i32) -> (i32, i32) {
    %c0_i32 = arith.constant 0 : i32
    return %arg0, %arg1 : i32, i32
  }
}

module attributes {stable_mosaic.version = 11 : i64} {
  func.func @kernel(%arg0: i32, %arg1: i32, %arg2: i32, %arg3: memref<32x640xbf16, #tpu.memory_space<vmem>>, %arg4: memref<640x128xbf16, #tpu.memory_space<vmem>>, %arg5: memref<1x128xf32, #tpu.memory_space<vmem>>, %arg6: memref<32x128xbf16, #tpu.memory_space<vmem>>, %arg7: memref<32x128xf32, #tpu.memory_space<vmem>>) attributes {dimension_semantics = [#tpu.dimension_semantics<parallel>, #tpu.dimension_semantics<parallel>, #tpu.dimension_semantics<arbitrary>], iteration_bounds = array<i64: 1, 1, 1>, scalar_prefetch = 0 : i64, scratch_operands = 1 : i64, tpu.core_type = #tpu.core_type<tc>, window_params = [{transform_indices = @transform_0, window_bounds = array<i64: 32, 640>}, {transform_indices = @transform_1, window_bounds = array<i64: 640, 128>}, {transform_indices = @transform_2, window_bounds = array<i64: 1, 128>}, {transform_indices = @transform_3, window_bounds = array<i64: 32, 128>}]} {
    %c0_i32 = arith.constant 0 : i32
    %0 = arith.cmpi eq, %arg2, %c0_i32 : i32
    %1 = arith.extui %0 : i1 to i32
    %c0_i32_0 = arith.constant 0 : i32
    %2 = arith.cmpi ne, %1, %c0_i32_0 : i32
    scf.if %2 {
      %cst_10 = arith.constant 0.000000e+00 : f32
      %12 = vector.broadcast %cst_10 : f32 to vector<32x128xf32>
      %c0_11 = arith.constant 0 : index
      %c0_12 = arith.constant 0 : index
      %13 = vector.load %arg7[%c0_11, %c0_12] : memref<32x128xf32, #tpu.memory_space<vmem>>, vector<32x128xf32>
      tpu.vector_store %arg7[%c0_11, %c0_12], %12 {strides = array<i32>} : memref<32x128xf32, #tpu.memory_space<vmem>>, vector<32x128xf32>,
    } else {
    }
    %c0 = arith.constant 0 : index
    %c0_1 = arith.constant 0 : index
    %3 = vector.load %arg7[%c0, %c0_1] : memref<32x128xf32, #tpu.memory_space<vmem>>, vector<32x128xf32>
    %c0_2 = arith.constant 0 : index
    %c0_3 = arith.constant 0 : index
    %4 = vector.load %arg3[%c0_2, %c0_3] : memref<32x640xbf16, #tpu.memory_space<vmem>>, vector<32x640xbf16>
    %c0_4 = arith.constant 0 : index
    %c0_5 = arith.constant 0 : index
    %5 = vector.load %arg4[%c0_4, %c0_5] : memref<640x128xbf16, #tpu.memory_space<vmem>>, vector<640x128xbf16>
    %cst = arith.constant dense<0.000000e+00> : vector<32x128xf32>
    %6 = tpu.matmul %4, %5, %cst {dimension_numbers = #tpu.dot_dimension_numbers<[1], [0], [0], [1], [0, 0, 1, 1], [], []>} : vector<32x640xbf16>, vector<640x128xbf16>, vector<32x128xf32> -> vector<32x128xf32>
    %7 = arith.addf %3, %6 : vector<32x128xf32>
    %c0_6 = arith.constant 0 : index
    %c0_7 = arith.constant 0 : index
    %8 = vector.load %arg7[%c0_6, %c0_7] : memref<32x128xf32, #tpu.memory_space<vmem>>, vector<32x128xf32>
    tpu.vector_store %arg7[%c0_6, %c0_7], %7 {strides = array<i32>} : memref<32x128xf32, #tpu.memory_space<vmem>>, vector<32x128xf32>,
    %c0_i32_8 = arith.constant 0 : i32
    %9 = arith.cmpi eq, %arg2, %c0_i32_8 : i32
    %10 = arith.extui %9 : i1 to i32
    %c0_i32_9 = arith.constant 0 : i32
    %11 = arith.cmpi ne, %10, %c0_i32_9 : i32
    scf.if %11 {
      %c0_10 = arith.constant 0 : index
      %c0_11 = arith.constant 0 : index
      %12 = vector.load %arg7[%c0_10, %c0_11] : memref<32x128xf32, #tpu.memory_space<vmem>>, vector<32x128xf32>
      %c0_12 = arith.constant 0 : index
      %c0_13 = arith.constant 0 : index
      %13 = vector.load %arg5[%c0_12, %c0_13] : memref<1x128xf32, #tpu.memory_space<vmem>>, vector<1x128xf32>
      %14 = vector.broadcast %13 : vector<1x128xf32> to vector<32x128xf32>
      %15 = arith.addf %12, %14 : vector<32x128xf32>
      %cst_14 = arith.constant 0.000000e+00 : f32
      %16 = vector.broadcast %cst_14 : f32 to vector<32x128xf32>
      %17 = arith.maximumf %15, %16 : vector<32x128xf32>
      %18 = arith.truncf %17 : vector<32x128xf32> to vector<32x128xbf16>
      %c0_15 = arith.constant 0 : index
      %c0_16 = arith.constant 0 : index
      %19 = vector.load %arg6[%c0_15, %c0_16] : memref<32x128xbf16, #tpu.memory_space<vmem>>, vector<32x128xbf16>
      tpu.vector_store %arg6[%c0_15, %c0_16], %18 {strides = array<i32>} : memref<32x128xbf16, #tpu.memory_space<vmem>>, vector<32x128xbf16>,
    } else {
    }
    return
  }
  func.func @transform_0(%arg0: i32, %arg1: i32, %arg2: i32) -> (i32, i32) {
    %c0_i32 = arith.constant 0 : i32
    return %arg0, %arg2 : i32, i32
  }
  func.func @transform_1(%arg0: i32, %arg1: i32, %arg2: i32) -> (i32, i32) {
    %c0_i32 = arith.constant 0 : i32
    return %arg2, %arg1 : i32, i32
  }
  func.func @transform_2(%arg0: i32, %arg1: i32, %arg2: i32) -> (i32, i32) {
    %c0_i32 = arith.constant 0 : i32
    %c0_i32_0 = arith.constant 0 : i32
    return %c0_i32, %arg1 : i32, i32
  }
  func.func @transform_3(%arg0: i32, %arg1: i32, %arg2: i32) -> (i32, i32) {
    %c0_i32 = arith.constant 0 : i32
    return %arg0, %arg1 : i32, i32
  }
}

module attributes {stable_mosaic.version = 11 : i64} {
  func.func @kernel(%arg0: i32, %arg1: i32, %arg2: i32, %arg3: memref<32x128xbf16, #tpu.memory_space<vmem>>, %arg4: memref<128x128xbf16, #tpu.memory_space<vmem>>, %arg5: memref<1x128xf32, #tpu.memory_space<vmem>>, %arg6: memref<32x128xbf16, #tpu.memory_space<vmem>>, %arg7: memref<32x128xf32, #tpu.memory_space<vmem>>) attributes {dimension_semantics = [#tpu.dimension_semantics<parallel>, #tpu.dimension_semantics<parallel>, #tpu.dimension_semantics<arbitrary>], iteration_bounds = array<i64: 1, 1, 1>, scalar_prefetch = 0 : i64, scratch_operands = 1 : i64, tpu.core_type = #tpu.core_type<tc>, window_params = [{transform_indices = @transform_0, window_bounds = array<i64: 32, 128>}, {transform_indices = @transform_1, window_bounds = array<i64: 128, 128>}, {transform_indices = @transform_2, window_bounds = array<i64: 1, 128>}, {transform_indices = @transform_3, window_bounds = array<i64: 32, 128>}]} {
    %c0_i32 = arith.constant 0 : i32
    %0 = arith.cmpi eq, %arg2, %c0_i32 : i32
    %1 = arith.extui %0 : i1 to i32
    %c0_i32_0 = arith.constant 0 : i32
    %2 = arith.cmpi ne, %1, %c0_i32_0 : i32
    scf.if %2 {
      %cst_10 = arith.constant 0.000000e+00 : f32
      %12 = vector.broadcast %cst_10 : f32 to vector<32x128xf32>
      %c0_11 = arith.constant 0 : index
      %c0_12 = arith.constant 0 : index
      %13 = vector.load %arg7[%c0_11, %c0_12] : memref<32x128xf32, #tpu.memory_space<vmem>>, vector<32x128xf32>
      tpu.vector_store %arg7[%c0_11, %c0_12], %12 {strides = array<i32>} : memref<32x128xf32, #tpu.memory_space<vmem>>, vector<32x128xf32>,
    } else {
    }
    %c0 = arith.constant 0 : index
    %c0_1 = arith.constant 0 : index
    %3 = vector.load %arg7[%c0, %c0_1] : memref<32x128xf32, #tpu.memory_space<vmem>>, vector<32x128xf32>
    %c0_2 = arith.constant 0 : index
    %c0_3 = arith.constant 0 : index
    %4 = vector.load %arg3[%c0_2, %c0_3] : memref<32x128xbf16, #tpu.memory_space<vmem>>, vector<32x128xbf16>
    %c0_4 = arith.constant 0 : index
    %c0_5 = arith.constant 0 : index
    %5 = vector.load %arg4[%c0_4, %c0_5] : memref<128x128xbf16, #tpu.memory_space<vmem>>, vector<128x128xbf16>
    %cst = arith.constant dense<0.000000e+00> : vector<32x128xf32>
    %6 = tpu.matmul %4, %5, %cst {dimension_numbers = #tpu.dot_dimension_numbers<[1], [0], [0], [1], [0, 0, 1, 1], [], []>} : vector<32x128xbf16>, vector<128x128xbf16>, vector<32x128xf32> -> vector<32x128xf32>
    %7 = arith.addf %3, %6 : vector<32x128xf32>
    %c0_6 = arith.constant 0 : index
    %c0_7 = arith.constant 0 : index
    %8 = vector.load %arg7[%c0_6, %c0_7] : memref<32x128xf32, #tpu.memory_space<vmem>>, vector<32x128xf32>
    tpu.vector_store %arg7[%c0_6, %c0_7], %7 {strides = array<i32>} : memref<32x128xf32, #tpu.memory_space<vmem>>, vector<32x128xf32>,
    %c0_i32_8 = arith.constant 0 : i32
    %9 = arith.cmpi eq, %arg2, %c0_i32_8 : i32
    %10 = arith.extui %9 : i1 to i32
    %c0_i32_9 = arith.constant 0 : i32
    %11 = arith.cmpi ne, %10, %c0_i32_9 : i32
    scf.if %11 {
      %c0_10 = arith.constant 0 : index
      %c0_11 = arith.constant 0 : index
      %12 = vector.load %arg7[%c0_10, %c0_11] : memref<32x128xf32, #tpu.memory_space<vmem>>, vector<32x128xf32>
      %c0_12 = arith.constant 0 : index
      %c0_13 = arith.constant 0 : index
      %13 = vector.load %arg5[%c0_12, %c0_13] : memref<1x128xf32, #tpu.memory_space<vmem>>, vector<1x128xf32>
      %14 = vector.broadcast %13 : vector<1x128xf32> to vector<32x128xf32>
      %15 = arith.addf %12, %14 : vector<32x128xf32>
      %16 = arith.truncf %15 : vector<32x128xf32> to vector<32x128xbf16>
      %c0_14 = arith.constant 0 : index
      %c0_15 = arith.constant 0 : index
      %17 = vector.load %arg6[%c0_14, %c0_15] : memref<32x128xbf16, #tpu.memory_space<vmem>>, vector<32x128xbf16>
      tpu.vector_store %arg6[%c0_14, %c0_15], %16 {strides = array<i32>} : memref<32x128xbf16, #tpu.memory_space<vmem>>, vector<32x128xbf16>,
    } else {
    }
    return
  }
  func.func @transform_0(%arg0: i32, %arg1: i32, %arg2: i32) -> (i32, i32) {
    %c0_i32 = arith.constant 0 : i32
    return %arg0, %arg2 : i32, i32
  }
  func.func @transform_1(%arg0: i32, %arg1: i32, %arg2: i32) -> (i32, i32) {
    %c0_i32 = arith.constant 0 : i32
    return %arg2, %arg1 : i32, i32
  }
  func.func @transform_2(%arg0: i32, %arg1: i32, %arg2: i32) -> (i32, i32) {
    %c0_i32 = arith.constant 0 : i32
    %c0_i32_0 = arith.constant 0 : i32
    return %c0_i32, %arg1 : i32, i32
  }
  func.func @transform_3(%arg0: i32, %arg1: i32, %arg2: i32) -> (i32, i32) {
    %c0_i32 = arith.constant 0 : i32
    return %arg0, %arg1 : i32, i32
  }
}

module attributes {stable_mosaic.version = 11 : i64} {
  func.func @kernel(%arg0: i32, %arg1: i32, %arg2: i32, %arg3: memref<32x384xbf16, #tpu.memory_space<vmem>>, %arg4: memref<384x128xbf16, #tpu.memory_space<vmem>>, %arg5: memref<1x128xf32, #tpu.memory_space<vmem>>, %arg6: memref<32x128xbf16, #tpu.memory_space<vmem>>, %arg7: memref<32x128xbf16, #tpu.memory_space<vmem>>, %arg8: memref<32x128xf32, #tpu.memory_space<vmem>>) attributes {dimension_semantics = [#tpu.dimension_semantics<parallel>, #tpu.dimension_semantics<parallel>, #tpu.dimension_semantics<arbitrary>], iteration_bounds = array<i64: 1, 1, 3>, scalar_prefetch = 0 : i64, scratch_operands = 1 : i64, tpu.core_type = #tpu.core_type<tc>, window_params = [{transform_indices = @transform_0, window_bounds = array<i64: 32, 384>}, {transform_indices = @transform_1, window_bounds = array<i64: 384, 128>}, {transform_indices = @transform_2, window_bounds = array<i64: 1, 128>}, {transform_indices = @transform_3, window_bounds = array<i64: 32, 128>}, {transform_indices = @transform_4, window_bounds = array<i64: 32, 128>}]} {
    %c0_i32 = arith.constant 0 : i32
    %0 = arith.cmpi eq, %arg2, %c0_i32 : i32
    %1 = arith.extui %0 : i1 to i32
    %c0_i32_0 = arith.constant 0 : i32
    %2 = arith.cmpi ne, %1, %c0_i32_0 : i32
    scf.if %2 {
      %cst_9 = arith.constant 0.000000e+00 : f32
      %12 = vector.broadcast %cst_9 : f32 to vector<32x128xf32>
      %c0_10 = arith.constant 0 : index
      %c0_11 = arith.constant 0 : index
      %13 = vector.load %arg8[%c0_10, %c0_11] : memref<32x128xf32, #tpu.memory_space<vmem>>, vector<32x128xf32>
      tpu.vector_store %arg8[%c0_10, %c0_11], %12 {strides = array<i32>} : memref<32x128xf32, #tpu.memory_space<vmem>>, vector<32x128xf32>,
    } else {
    }
    %c0 = arith.constant 0 : index
    %c0_1 = arith.constant 0 : index
    %3 = vector.load %arg8[%c0, %c0_1] : memref<32x128xf32, #tpu.memory_space<vmem>>, vector<32x128xf32>
    %c0_2 = arith.constant 0 : index
    %c0_3 = arith.constant 0 : index
    %4 = vector.load %arg3[%c0_2, %c0_3] : memref<32x384xbf16, #tpu.memory_space<vmem>>, vector<32x384xbf16>
    %c0_4 = arith.constant 0 : index
    %c0_5 = arith.constant 0 : index
    %5 = vector.load %arg4[%c0_4, %c0_5] : memref<384x128xbf16, #tpu.memory_space<vmem>>, vector<384x128xbf16>
    %cst = arith.constant dense<0.000000e+00> : vector<32x128xf32>
    %6 = tpu.matmul %4, %5, %cst {dimension_numbers = #tpu.dot_dimension_numbers<[1], [0], [0], [1], [0, 0, 1, 1], [], []>} : vector<32x384xbf16>, vector<384x128xbf16>, vector<32x128xf32> -> vector<32x128xf32>
    %7 = arith.addf %3, %6 : vector<32x128xf32>
    %c0_6 = arith.constant 0 : index
    %c0_7 = arith.constant 0 : index
    %8 = vector.load %arg8[%c0_6, %c0_7] : memref<32x128xf32, #tpu.memory_space<vmem>>, vector<32x128xf32>
    tpu.vector_store %arg8[%c0_6, %c0_7], %7 {strides = array<i32>} : memref<32x128xf32, #tpu.memory_space<vmem>>, vector<32x128xf32>,
    %c2_i32 = arith.constant 2 : i32
    %9 = arith.cmpi eq, %arg2, %c2_i32 : i32
    %10 = arith.extui %9 : i1 to i32
    %c0_i32_8 = arith.constant 0 : i32
    %11 = arith.cmpi ne, %10, %c0_i32_8 : i32
    scf.if %11 {
      %c0_9 = arith.constant 0 : index
      %c0_10 = arith.constant 0 : index
      %12 = vector.load %arg8[%c0_9, %c0_10] : memref<32x128xf32, #tpu.memory_space<vmem>>, vector<32x128xf32>
      %c0_11 = arith.constant 0 : index
      %c0_12 = arith.constant 0 : index
      %13 = vector.load %arg5[%c0_11, %c0_12] : memref<1x128xf32, #tpu.memory_space<vmem>>, vector<1x128xf32>
      %14 = vector.broadcast %13 : vector<1x128xf32> to vector<32x128xf32>
      %15 = arith.addf %12, %14 : vector<32x128xf32>
      %c0_13 = arith.constant 0 : index
      %c0_14 = arith.constant 0 : index
      %16 = vector.load %arg6[%c0_13, %c0_14] : memref<32x128xbf16, #tpu.memory_space<vmem>>, vector<32x128xbf16>
      %17 = arith.extf %16 : vector<32x128xbf16> to vector<32x128xf32>
      %18 = arith.addf %15, %17 : vector<32x128xf32>
      %cst_15 = arith.constant 0.000000e+00 : f32
      %19 = vector.broadcast %cst_15 : f32 to vector<32x128xf32>
      %20 = arith.maximumf %18, %19 : vector<32x128xf32>
      %21 = arith.truncf %20 : vector<32x128xf32> to vector<32x128xbf16>
      %c0_16 = arith.constant 0 : index
      %c0_17 = arith.constant 0 : index
      %22 = vector.load %arg7[%c0_16, %c0_17] : memref<32x128xbf16, #tpu.memory_space<vmem>>, vector<32x128xbf16>
      tpu.vector_store %arg7[%c0_16, %c0_17], %21 {strides = array<i32>} : memref<32x128xbf16, #tpu.memory_space<vmem>>, vector<32x128xbf16>,
    } else {
    }
    return
  }
  func.func @transform_0(%arg0: i32, %arg1: i32, %arg2: i32) -> (i32, i32) {
    %c0_i32 = arith.constant 0 : i32
    return %arg0, %arg2 : i32, i32
  }
  func.func @transform_1(%arg0: i32, %arg1: i32, %arg2: i32) -> (i32, i32) {
    %c0_i32 = arith.constant 0 : i32
    return %arg2, %arg1 : i32, i32
  }
  func.func @transform_2(%arg0: i32, %arg1: i32, %arg2: i32) -> (i32, i32) {
    %c0_i32 = arith.constant 0 : i32
    %c0_i32_0 = arith.constant 0 : i32
    return %c0_i32, %arg1 : i32, i32
  }
  func.func @transform_3(%arg0: i32, %arg1: i32, %arg2: i32) -> (i32, i32) {
    %c0_i32 = arith.constant 0 : i32
    return %arg0, %arg1 : i32, i32
  }
  func.func @transform_4(%arg0: i32, %arg1: i32, %arg2: i32) -> (i32, i32) {
    %c0_i32 = arith.constant 0 : i32
    return %arg0, %arg1 : i32, i32
  }
}

module attributes {stable_mosaic.version = 11 : i64} {
  func.func @kernel(%arg0: i32, %arg1: i32, %arg2: i32, %arg3: memref<16x384xbf16, #tpu.memory_space<vmem>>, %arg4: memref<384x256xbf16, #tpu.memory_space<vmem>>, %arg5: memref<1x256xf32, #tpu.memory_space<vmem>>, %arg6: memref<16x256xbf16, #tpu.memory_space<vmem>>, %arg7: memref<16x256xf32, #tpu.memory_space<vmem>>) attributes {dimension_semantics = [#tpu.dimension_semantics<parallel>, #tpu.dimension_semantics<parallel>, #tpu.dimension_semantics<arbitrary>], iteration_bounds = array<i64: 1, 1, 3>, scalar_prefetch = 0 : i64, scratch_operands = 1 : i64, tpu.core_type = #tpu.core_type<tc>, window_params = [{transform_indices = @transform_0, window_bounds = array<i64: 16, 384>}, {transform_indices = @transform_1, window_bounds = array<i64: 384, 256>}, {transform_indices = @transform_2, window_bounds = array<i64: 1, 256>}, {transform_indices = @transform_3, window_bounds = array<i64: 16, 256>}]} {
    %c0_i32 = arith.constant 0 : i32
    %0 = arith.cmpi eq, %arg2, %c0_i32 : i32
    %1 = arith.extui %0 : i1 to i32
    %c0_i32_0 = arith.constant 0 : i32
    %2 = arith.cmpi ne, %1, %c0_i32_0 : i32
    scf.if %2 {
      %cst_9 = arith.constant 0.000000e+00 : f32
      %12 = vector.broadcast %cst_9 : f32 to vector<16x256xf32>
      %c0_10 = arith.constant 0 : index
      %c0_11 = arith.constant 0 : index
      %13 = vector.load %arg7[%c0_10, %c0_11] : memref<16x256xf32, #tpu.memory_space<vmem>>, vector<16x256xf32>
      tpu.vector_store %arg7[%c0_10, %c0_11], %12 {strides = array<i32>} : memref<16x256xf32, #tpu.memory_space<vmem>>, vector<16x256xf32>,
    } else {
    }
    %c0 = arith.constant 0 : index
    %c0_1 = arith.constant 0 : index
    %3 = vector.load %arg7[%c0, %c0_1] : memref<16x256xf32, #tpu.memory_space<vmem>>, vector<16x256xf32>
    %c0_2 = arith.constant 0 : index
    %c0_3 = arith.constant 0 : index
    %4 = vector.load %arg3[%c0_2, %c0_3] : memref<16x384xbf16, #tpu.memory_space<vmem>>, vector<16x384xbf16>
    %c0_4 = arith.constant 0 : index
    %c0_5 = arith.constant 0 : index
    %5 = vector.load %arg4[%c0_4, %c0_5] : memref<384x256xbf16, #tpu.memory_space<vmem>>, vector<384x256xbf16>
    %cst = arith.constant dense<0.000000e+00> : vector<16x256xf32>
    %6 = tpu.matmul %4, %5, %cst {dimension_numbers = #tpu.dot_dimension_numbers<[1], [0], [0], [1], [0, 0, 1, 1], [], []>} : vector<16x384xbf16>, vector<384x256xbf16>, vector<16x256xf32> -> vector<16x256xf32>
    %7 = arith.addf %3, %6 : vector<16x256xf32>
    %c0_6 = arith.constant 0 : index
    %c0_7 = arith.constant 0 : index
    %8 = vector.load %arg7[%c0_6, %c0_7] : memref<16x256xf32, #tpu.memory_space<vmem>>, vector<16x256xf32>
    tpu.vector_store %arg7[%c0_6, %c0_7], %7 {strides = array<i32>} : memref<16x256xf32, #tpu.memory_space<vmem>>, vector<16x256xf32>,
    %c2_i32 = arith.constant 2 : i32
    %9 = arith.cmpi eq, %arg2, %c2_i32 : i32
    %10 = arith.extui %9 : i1 to i32
    %c0_i32_8 = arith.constant 0 : i32
    %11 = arith.cmpi ne, %10, %c0_i32_8 : i32
    scf.if %11 {
      %c0_9 = arith.constant 0 : index
      %c0_10 = arith.constant 0 : index
      %12 = vector.load %arg7[%c0_9, %c0_10] : memref<16x256xf32, #tpu.memory_space<vmem>>, vector<16x256xf32>
      %c0_11 = arith.constant 0 : index
      %c0_12 = arith.constant 0 : index
      %13 = vector.load %arg5[%c0_11, %c0_12] : memref<1x256xf32, #tpu.memory_space<vmem>>, vector<1x256xf32>
      %14 = vector.broadcast %13 : vector<1x256xf32> to vector<16x256xf32>
      %15 = arith.addf %12, %14 : vector<16x256xf32>
      %cst_13 = arith.constant 0.000000e+00 : f32
      %16 = vector.broadcast %cst_13 : f32 to vector<16x256xf32>
      %17 = arith.maximumf %15, %16 : vector<16x256xf32>
      %18 = arith.truncf %17 : vector<16x256xf32> to vector<16x256xbf16>
      %c0_14 = arith.constant 0 : index
      %c0_15 = arith.constant 0 : index
      %19 = vector.load %arg6[%c0_14, %c0_15] : memref<16x256xbf16, #tpu.memory_space<vmem>>, vector<16x256xbf16>
      tpu.vector_store %arg6[%c0_14, %c0_15], %18 {strides = array<i32>} : memref<16x256xbf16, #tpu.memory_space<vmem>>, vector<16x256xbf16>,
    } else {
    }
    return
  }
  func.func @transform_0(%arg0: i32, %arg1: i32, %arg2: i32) -> (i32, i32) {
    %c0_i32 = arith.constant 0 : i32
    return %arg0, %arg2 : i32, i32
  }
  func.func @transform_1(%arg0: i32, %arg1: i32, %arg2: i32) -> (i32, i32) {
    %c0_i32 = arith.constant 0 : i32
    return %arg2, %arg1 : i32, i32
  }
  func.func @transform_2(%arg0: i32, %arg1: i32, %arg2: i32) -> (i32, i32) {
    %c0_i32 = arith.constant 0 : i32
    %c0_i32_0 = arith.constant 0 : i32
    return %c0_i32, %arg1 : i32, i32
  }
  func.func @transform_3(%arg0: i32, %arg1: i32, %arg2: i32) -> (i32, i32) {
    %c0_i32 = arith.constant 0 : i32
    return %arg0, %arg1 : i32, i32
  }
}

module attributes {stable_mosaic.version = 11 : i64} {
  func.func @kernel(%arg0: i32, %arg1: i32, %arg2: i32, %arg3: memref<16x768xbf16, #tpu.memory_space<vmem>>, %arg4: memref<768x256xbf16, #tpu.memory_space<vmem>>, %arg5: memref<1x256xf32, #tpu.memory_space<vmem>>, %arg6: memref<16x256xbf16, #tpu.memory_space<vmem>>, %arg7: memref<16x256xbf16, #tpu.memory_space<vmem>>, %arg8: memref<16x256xf32, #tpu.memory_space<vmem>>) attributes {dimension_semantics = [#tpu.dimension_semantics<parallel>, #tpu.dimension_semantics<parallel>, #tpu.dimension_semantics<arbitrary>], iteration_bounds = array<i64: 1, 1, 3>, scalar_prefetch = 0 : i64, scratch_operands = 1 : i64, tpu.core_type = #tpu.core_type<tc>, window_params = [{transform_indices = @transform_0, window_bounds = array<i64: 16, 768>}, {transform_indices = @transform_1, window_bounds = array<i64: 768, 256>}, {transform_indices = @transform_2, window_bounds = array<i64: 1, 256>}, {transform_indices = @transform_3, window_bounds = array<i64: 16, 256>}, {transform_indices = @transform_4, window_bounds = array<i64: 16, 256>}]} {
    %c0_i32 = arith.constant 0 : i32
    %0 = arith.cmpi eq, %arg2, %c0_i32 : i32
    %1 = arith.extui %0 : i1 to i32
    %c0_i32_0 = arith.constant 0 : i32
    %2 = arith.cmpi ne, %1, %c0_i32_0 : i32
    scf.if %2 {
      %cst_9 = arith.constant 0.000000e+00 : f32
      %12 = vector.broadcast %cst_9 : f32 to vector<16x256xf32>
      %c0_10 = arith.constant 0 : index
      %c0_11 = arith.constant 0 : index
      %13 = vector.load %arg8[%c0_10, %c0_11] : memref<16x256xf32, #tpu.memory_space<vmem>>, vector<16x256xf32>
      tpu.vector_store %arg8[%c0_10, %c0_11], %12 {strides = array<i32>} : memref<16x256xf32, #tpu.memory_space<vmem>>, vector<16x256xf32>,
    } else {
    }
    %c0 = arith.constant 0 : index
    %c0_1 = arith.constant 0 : index
    %3 = vector.load %arg8[%c0, %c0_1] : memref<16x256xf32, #tpu.memory_space<vmem>>, vector<16x256xf32>
    %c0_2 = arith.constant 0 : index
    %c0_3 = arith.constant 0 : index
    %4 = vector.load %arg3[%c0_2, %c0_3] : memref<16x768xbf16, #tpu.memory_space<vmem>>, vector<16x768xbf16>
    %c0_4 = arith.constant 0 : index
    %c0_5 = arith.constant 0 : index
    %5 = vector.load %arg4[%c0_4, %c0_5] : memref<768x256xbf16, #tpu.memory_space<vmem>>, vector<768x256xbf16>
    %cst = arith.constant dense<0.000000e+00> : vector<16x256xf32>
    %6 = tpu.matmul %4, %5, %cst {dimension_numbers = #tpu.dot_dimension_numbers<[1], [0], [0], [1], [0, 0, 1, 1], [], []>} : vector<16x768xbf16>, vector<768x256xbf16>, vector<16x256xf32> -> vector<16x256xf32>
    %7 = arith.addf %3, %6 : vector<16x256xf32>
    %c0_6 = arith.constant 0 : index
    %c0_7 = arith.constant 0 : index
    %8 = vector.load %arg8[%c0_6, %c0_7] : memref<16x256xf32, #tpu.memory_space<vmem>>, vector<16x256xf32>
    tpu.vector_store %arg8[%c0_6, %c0_7], %7 {strides = array<i32>} : memref<16x256xf32, #tpu.memory_space<vmem>>, vector<16x256xf32>,
    %c2_i32 = arith.constant 2 : i32
    %9 = arith.cmpi eq, %arg2, %c2_i32 : i32
    %10 = arith.extui %9 : i1 to i32
    %c0_i32_8 = arith.constant 0 : i32
    %11 = arith.cmpi ne, %10, %c0_i32_8 : i32
    scf.if %11 {
      %c0_9 = arith.constant 0 : index
      %c0_10 = arith.constant 0 : index
      %12 = vector.load %arg8[%c0_9, %c0_10] : memref<16x256xf32, #tpu.memory_space<vmem>>, vector<16x256xf32>
      %c0_11 = arith.constant 0 : index
      %c0_12 = arith.constant 0 : index
      %13 = vector.load %arg5[%c0_11, %c0_12] : memref<1x256xf32, #tpu.memory_space<vmem>>, vector<1x256xf32>
      %14 = vector.broadcast %13 : vector<1x256xf32> to vector<16x256xf32>
      %15 = arith.addf %12, %14 : vector<16x256xf32>
      %c0_13 = arith.constant 0 : index
      %c0_14 = arith.constant 0 : index
      %16 = vector.load %arg6[%c0_13, %c0_14] : memref<16x256xbf16, #tpu.memory_space<vmem>>, vector<16x256xbf16>
      %17 = arith.extf %16 : vector<16x256xbf16> to vector<16x256xf32>
      %18 = arith.addf %15, %17 : vector<16x256xf32>
      %cst_15 = arith.constant 0.000000e+00 : f32
      %19 = vector.broadcast %cst_15 : f32 to vector<16x256xf32>
      %20 = arith.maximumf %18, %19 : vector<16x256xf32>
      %21 = arith.truncf %20 : vector<16x256xf32> to vector<16x256xbf16>
      %c0_16 = arith.constant 0 : index
      %c0_17 = arith.constant 0 : index
      %22 = vector.load %arg7[%c0_16, %c0_17] : memref<16x256xbf16, #tpu.memory_space<vmem>>, vector<16x256xbf16>
      tpu.vector_store %arg7[%c0_16, %c0_17], %21 {strides = array<i32>} : memref<16x256xbf16, #tpu.memory_space<vmem>>, vector<16x256xbf16>,
    } else {
    }
    return
  }
  func.func @transform_0(%arg0: i32, %arg1: i32, %arg2: i32) -> (i32, i32) {
    %c0_i32 = arith.constant 0 : i32
    return %arg0, %arg2 : i32, i32
  }
  func.func @transform_1(%arg0: i32, %arg1: i32, %arg2: i32) -> (i32, i32) {
    %c0_i32 = arith.constant 0 : i32
    return %arg2, %arg1 : i32, i32
  }
  func.func @transform_2(%arg0: i32, %arg1: i32, %arg2: i32) -> (i32, i32) {
    %c0_i32 = arith.constant 0 : i32
    %c0_i32_0 = arith.constant 0 : i32
    return %c0_i32, %arg1 : i32, i32
  }
  func.func @transform_3(%arg0: i32, %arg1: i32, %arg2: i32) -> (i32, i32) {
    %c0_i32 = arith.constant 0 : i32
    return %arg0, %arg1 : i32, i32
  }
  func.func @transform_4(%arg0: i32, %arg1: i32, %arg2: i32) -> (i32, i32) {
    %c0_i32 = arith.constant 0 : i32
    return %arg0, %arg1 : i32, i32
  }
}

module attributes {stable_mosaic.version = 11 : i64} {
  func.func @kernel(%arg0: i32, %arg1: i32, %arg2: i32, %arg3: memref<16x128xbf16, #tpu.memory_space<vmem>>, %arg4: memref<128x256xbf16, #tpu.memory_space<vmem>>, %arg5: memref<1x256xf32, #tpu.memory_space<vmem>>, %arg6: memref<16x256xbf16, #tpu.memory_space<vmem>>, %arg7: memref<16x256xf32, #tpu.memory_space<vmem>>) attributes {dimension_semantics = [#tpu.dimension_semantics<parallel>, #tpu.dimension_semantics<parallel>, #tpu.dimension_semantics<arbitrary>], iteration_bounds = array<i64: 1, 1, 1>, scalar_prefetch = 0 : i64, scratch_operands = 1 : i64, tpu.core_type = #tpu.core_type<tc>, window_params = [{transform_indices = @transform_0, window_bounds = array<i64: 16, 128>}, {transform_indices = @transform_1, window_bounds = array<i64: 128, 256>}, {transform_indices = @transform_2, window_bounds = array<i64: 1, 256>}, {transform_indices = @transform_3, window_bounds = array<i64: 16, 256>}]} {
    %c0_i32 = arith.constant 0 : i32
    %0 = arith.cmpi eq, %arg2, %c0_i32 : i32
    %1 = arith.extui %0 : i1 to i32
    %c0_i32_0 = arith.constant 0 : i32
    %2 = arith.cmpi ne, %1, %c0_i32_0 : i32
    scf.if %2 {
      %cst_10 = arith.constant 0.000000e+00 : f32
      %12 = vector.broadcast %cst_10 : f32 to vector<16x256xf32>
      %c0_11 = arith.constant 0 : index
      %c0_12 = arith.constant 0 : index
      %13 = vector.load %arg7[%c0_11, %c0_12] : memref<16x256xf32, #tpu.memory_space<vmem>>, vector<16x256xf32>
      tpu.vector_store %arg7[%c0_11, %c0_12], %12 {strides = array<i32>} : memref<16x256xf32, #tpu.memory_space<vmem>>, vector<16x256xf32>,
    } else {
    }
    %c0 = arith.constant 0 : index
    %c0_1 = arith.constant 0 : index
    %3 = vector.load %arg7[%c0, %c0_1] : memref<16x256xf32, #tpu.memory_space<vmem>>, vector<16x256xf32>
    %c0_2 = arith.constant 0 : index
    %c0_3 = arith.constant 0 : index
    %4 = vector.load %arg3[%c0_2, %c0_3] : memref<16x128xbf16, #tpu.memory_space<vmem>>, vector<16x128xbf16>
    %c0_4 = arith.constant 0 : index
    %c0_5 = arith.constant 0 : index
    %5 = vector.load %arg4[%c0_4, %c0_5] : memref<128x256xbf16, #tpu.memory_space<vmem>>, vector<128x256xbf16>
    %cst = arith.constant dense<0.000000e+00> : vector<16x256xf32>
    %6 = tpu.matmul %4, %5, %cst {dimension_numbers = #tpu.dot_dimension_numbers<[1], [0], [0], [1], [0, 0, 1, 1], [], []>} : vector<16x128xbf16>, vector<128x256xbf16>, vector<16x256xf32> -> vector<16x256xf32>
    %7 = arith.addf %3, %6 : vector<16x256xf32>
    %c0_6 = arith.constant 0 : index
    %c0_7 = arith.constant 0 : index
    %8 = vector.load %arg7[%c0_6, %c0_7] : memref<16x256xf32, #tpu.memory_space<vmem>>, vector<16x256xf32>
    tpu.vector_store %arg7[%c0_6, %c0_7], %7 {strides = array<i32>} : memref<16x256xf32, #tpu.memory_space<vmem>>, vector<16x256xf32>,
    %c0_i32_8 = arith.constant 0 : i32
    %9 = arith.cmpi eq, %arg2, %c0_i32_8 : i32
    %10 = arith.extui %9 : i1 to i32
    %c0_i32_9 = arith.constant 0 : i32
    %11 = arith.cmpi ne, %10, %c0_i32_9 : i32
    scf.if %11 {
      %c0_10 = arith.constant 0 : index
      %c0_11 = arith.constant 0 : index
      %12 = vector.load %arg7[%c0_10, %c0_11] : memref<16x256xf32, #tpu.memory_space<vmem>>, vector<16x256xf32>
      %c0_12 = arith.constant 0 : index
      %c0_13 = arith.constant 0 : index
      %13 = vector.load %arg5[%c0_12, %c0_13] : memref<1x256xf32, #tpu.memory_space<vmem>>, vector<1x256xf32>
      %14 = vector.broadcast %13 : vector<1x256xf32> to vector<16x256xf32>
      %15 = arith.addf %12, %14 : vector<16x256xf32>
      %16 = arith.truncf %15 : vector<16x256xf32> to vector<16x256xbf16>
      %c0_14 = arith.constant 0 : index
      %c0_15 = arith.constant 0 : index
      %17 = vector.load %arg6[%c0_14, %c0_15] : memref<16x256xbf16, #tpu.memory_space<vmem>>, vector<16x256xbf16>
      tpu.vector_store %arg6[%c0_14, %c0_15], %16 {strides = array<i32>} : memref<16x256xbf16, #tpu.memory_space<vmem>>, vector<16x256xbf16>,
    } else {
    }
    return
  }
  func.func @transform_0(%arg0: i32, %arg1: i32, %arg2: i32) -> (i32, i32) {
    %c0_i32 = arith.constant 0 : i32
    return %arg0, %arg2 : i32, i32
  }
  func.func @transform_1(%arg0: i32, %arg1: i32, %arg2: i32) -> (i32, i32) {
    %c0_i32 = arith.constant 0 : i32
    return %arg2, %arg1 : i32, i32
  }
  func.func @transform_2(%arg0: i32, %arg1: i32, %arg2: i32) -> (i32, i32) {
    %c0_i32 = arith.constant 0 : i32
    %c0_i32_0 = arith.constant 0 : i32
    return %c0_i32, %arg1 : i32, i32
  }
  func.func @transform_3(%arg0: i32, %arg1: i32, %arg2: i32) -> (i32, i32) {
    %c0_i32 = arith.constant 0 : i32
    return %arg0, %arg1 : i32, i32
  }
}

module attributes {stable_mosaic.version = 11 : i64} {
  func.func @kernel(%arg0: i32, %arg1: i32, %arg2: i32, %arg3: memref<16x768xbf16, #tpu.memory_space<vmem>>, %arg4: memref<768x256xbf16, #tpu.memory_space<vmem>>, %arg5: memref<1x256xf32, #tpu.memory_space<vmem>>, %arg6: memref<16x256xbf16, #tpu.memory_space<vmem>>, %arg7: memref<16x256xf32, #tpu.memory_space<vmem>>) attributes {dimension_semantics = [#tpu.dimension_semantics<parallel>, #tpu.dimension_semantics<parallel>, #tpu.dimension_semantics<arbitrary>], iteration_bounds = array<i64: 1, 2, 3>, scalar_prefetch = 0 : i64, scratch_operands = 1 : i64, tpu.core_type = #tpu.core_type<tc>, window_params = [{transform_indices = @transform_0, window_bounds = array<i64: 16, 768>}, {transform_indices = @transform_1, window_bounds = array<i64: 768, 256>}, {transform_indices = @transform_2, window_bounds = array<i64: 1, 256>}, {transform_indices = @transform_3, window_bounds = array<i64: 16, 256>}]} {
    %c0_i32 = arith.constant 0 : i32
    %0 = arith.cmpi eq, %arg2, %c0_i32 : i32
    %1 = arith.extui %0 : i1 to i32
    %c0_i32_0 = arith.constant 0 : i32
    %2 = arith.cmpi ne, %1, %c0_i32_0 : i32
    scf.if %2 {
      %cst_9 = arith.constant 0.000000e+00 : f32
      %12 = vector.broadcast %cst_9 : f32 to vector<16x256xf32>
      %c0_10 = arith.constant 0 : index
      %c0_11 = arith.constant 0 : index
      %13 = vector.load %arg7[%c0_10, %c0_11] : memref<16x256xf32, #tpu.memory_space<vmem>>, vector<16x256xf32>
      tpu.vector_store %arg7[%c0_10, %c0_11], %12 {strides = array<i32>} : memref<16x256xf32, #tpu.memory_space<vmem>>, vector<16x256xf32>,
    } else {
    }
    %c0 = arith.constant 0 : index
    %c0_1 = arith.constant 0 : index
    %3 = vector.load %arg7[%c0, %c0_1] : memref<16x256xf32, #tpu.memory_space<vmem>>, vector<16x256xf32>
    %c0_2 = arith.constant 0 : index
    %c0_3 = arith.constant 0 : index
    %4 = vector.load %arg3[%c0_2, %c0_3] : memref<16x768xbf16, #tpu.memory_space<vmem>>, vector<16x768xbf16>
    %c0_4 = arith.constant 0 : index
    %c0_5 = arith.constant 0 : index
    %5 = vector.load %arg4[%c0_4, %c0_5] : memref<768x256xbf16, #tpu.memory_space<vmem>>, vector<768x256xbf16>
    %cst = arith.constant dense<0.000000e+00> : vector<16x256xf32>
    %6 = tpu.matmul %4, %5, %cst {dimension_numbers = #tpu.dot_dimension_numbers<[1], [0], [0], [1], [0, 0, 1, 1], [], []>} : vector<16x768xbf16>, vector<768x256xbf16>, vector<16x256xf32> -> vector<16x256xf32>
    %7 = arith.addf %3, %6 : vector<16x256xf32>
    %c0_6 = arith.constant 0 : index
    %c0_7 = arith.constant 0 : index
    %8 = vector.load %arg7[%c0_6, %c0_7] : memref<16x256xf32, #tpu.memory_space<vmem>>, vector<16x256xf32>
    tpu.vector_store %arg7[%c0_6, %c0_7], %7 {strides = array<i32>} : memref<16x256xf32, #tpu.memory_space<vmem>>, vector<16x256xf32>,
    %c2_i32 = arith.constant 2 : i32
    %9 = arith.cmpi eq, %arg2, %c2_i32 : i32
    %10 = arith.extui %9 : i1 to i32
    %c0_i32_8 = arith.constant 0 : i32
    %11 = arith.cmpi ne, %10, %c0_i32_8 : i32
    scf.if %11 {
      %c0_9 = arith.constant 0 : index
      %c0_10 = arith.constant 0 : index
      %12 = vector.load %arg7[%c0_9, %c0_10] : memref<16x256xf32, #tpu.memory_space<vmem>>, vector<16x256xf32>
      %c0_11 = arith.constant 0 : index
      %c0_12 = arith.constant 0 : index
      %13 = vector.load %arg5[%c0_11, %c0_12] : memref<1x256xf32, #tpu.memory_space<vmem>>, vector<1x256xf32>
      %14 = vector.broadcast %13 : vector<1x256xf32> to vector<16x256xf32>
      %15 = arith.addf %12, %14 : vector<16x256xf32>
      %cst_13 = arith.constant 0.000000e+00 : f32
      %16 = vector.broadcast %cst_13 : f32 to vector<16x256xf32>
      %17 = arith.maximumf %15, %16 : vector<16x256xf32>
      %18 = arith.truncf %17 : vector<16x256xf32> to vector<16x256xbf16>
      %c0_14 = arith.constant 0 : index
      %c0_15 = arith.constant 0 : index
      %19 = vector.load %arg6[%c0_14, %c0_15] : memref<16x256xbf16, #tpu.memory_space<vmem>>, vector<16x256xbf16>
      tpu.vector_store %arg6[%c0_14, %c0_15], %18 {strides = array<i32>} : memref<16x256xbf16, #tpu.memory_space<vmem>>, vector<16x256xbf16>,
    } else {
    }
    return
  }
  func.func @transform_0(%arg0: i32, %arg1: i32, %arg2: i32) -> (i32, i32) {
    %c0_i32 = arith.constant 0 : i32
    return %arg0, %arg2 : i32, i32
  }
  func.func @transform_1(%arg0: i32, %arg1: i32, %arg2: i32) -> (i32, i32) {
    %c0_i32 = arith.constant 0 : i32
    return %arg2, %arg1 : i32, i32
  }
  func.func @transform_2(%arg0: i32, %arg1: i32, %arg2: i32) -> (i32, i32) {
    %c0_i32 = arith.constant 0 : i32
    %c0_i32_0 = arith.constant 0 : i32
    return %c0_i32, %arg1 : i32, i32
  }
  func.func @transform_3(%arg0: i32, %arg1: i32, %arg2: i32) -> (i32, i32) {
    %c0_i32 = arith.constant 0 : i32
    return %arg0, %arg1 : i32, i32
  }
}

module attributes {stable_mosaic.version = 11 : i64} {
  func.func @kernel(%arg0: i32, %arg1: i32, %arg2: i32, %arg3: memref<16x256xbf16, #tpu.memory_space<vmem>>, %arg4: memref<256x256xbf16, #tpu.memory_space<vmem>>, %arg5: memref<1x256xf32, #tpu.memory_space<vmem>>, %arg6: memref<16x256xbf16, #tpu.memory_space<vmem>>, %arg7: memref<16x256xf32, #tpu.memory_space<vmem>>) attributes {dimension_semantics = [#tpu.dimension_semantics<parallel>, #tpu.dimension_semantics<parallel>, #tpu.dimension_semantics<arbitrary>], iteration_bounds = array<i64: 1, 2, 1>, scalar_prefetch = 0 : i64, scratch_operands = 1 : i64, tpu.core_type = #tpu.core_type<tc>, window_params = [{transform_indices = @transform_0, window_bounds = array<i64: 16, 256>}, {transform_indices = @transform_1, window_bounds = array<i64: 256, 256>}, {transform_indices = @transform_2, window_bounds = array<i64: 1, 256>}, {transform_indices = @transform_3, window_bounds = array<i64: 16, 256>}]} {
    %c0_i32 = arith.constant 0 : i32
    %0 = arith.cmpi eq, %arg2, %c0_i32 : i32
    %1 = arith.extui %0 : i1 to i32
    %c0_i32_0 = arith.constant 0 : i32
    %2 = arith.cmpi ne, %1, %c0_i32_0 : i32
    scf.if %2 {
      %cst_10 = arith.constant 0.000000e+00 : f32
      %12 = vector.broadcast %cst_10 : f32 to vector<16x256xf32>
      %c0_11 = arith.constant 0 : index
      %c0_12 = arith.constant 0 : index
      %13 = vector.load %arg7[%c0_11, %c0_12] : memref<16x256xf32, #tpu.memory_space<vmem>>, vector<16x256xf32>
      tpu.vector_store %arg7[%c0_11, %c0_12], %12 {strides = array<i32>} : memref<16x256xf32, #tpu.memory_space<vmem>>, vector<16x256xf32>,
    } else {
    }
    %c0 = arith.constant 0 : index
    %c0_1 = arith.constant 0 : index
    %3 = vector.load %arg7[%c0, %c0_1] : memref<16x256xf32, #tpu.memory_space<vmem>>, vector<16x256xf32>
    %c0_2 = arith.constant 0 : index
    %c0_3 = arith.constant 0 : index
    %4 = vector.load %arg3[%c0_2, %c0_3] : memref<16x256xbf16, #tpu.memory_space<vmem>>, vector<16x256xbf16>
    %c0_4 = arith.constant 0 : index
    %c0_5 = arith.constant 0 : index
    %5 = vector.load %arg4[%c0_4, %c0_5] : memref<256x256xbf16, #tpu.memory_space<vmem>>, vector<256x256xbf16>
    %cst = arith.constant dense<0.000000e+00> : vector<16x256xf32>
    %6 = tpu.matmul %4, %5, %cst {dimension_numbers = #tpu.dot_dimension_numbers<[1], [0], [0], [1], [0, 0, 1, 1], [], []>} : vector<16x256xbf16>, vector<256x256xbf16>, vector<16x256xf32> -> vector<16x256xf32>
    %7 = arith.addf %3, %6 : vector<16x256xf32>
    %c0_6 = arith.constant 0 : index
    %c0_7 = arith.constant 0 : index
    %8 = vector.load %arg7[%c0_6, %c0_7] : memref<16x256xf32, #tpu.memory_space<vmem>>, vector<16x256xf32>
    tpu.vector_store %arg7[%c0_6, %c0_7], %7 {strides = array<i32>} : memref<16x256xf32, #tpu.memory_space<vmem>>, vector<16x256xf32>,
    %c0_i32_8 = arith.constant 0 : i32
    %9 = arith.cmpi eq, %arg2, %c0_i32_8 : i32
    %10 = arith.extui %9 : i1 to i32
    %c0_i32_9 = arith.constant 0 : i32
    %11 = arith.cmpi ne, %10, %c0_i32_9 : i32
    scf.if %11 {
      %c0_10 = arith.constant 0 : index
      %c0_11 = arith.constant 0 : index
      %12 = vector.load %arg7[%c0_10, %c0_11] : memref<16x256xf32, #tpu.memory_space<vmem>>, vector<16x256xf32>
      %c0_12 = arith.constant 0 : index
      %c0_13 = arith.constant 0 : index
      %13 = vector.load %arg5[%c0_12, %c0_13] : memref<1x256xf32, #tpu.memory_space<vmem>>, vector<1x256xf32>
      %14 = vector.broadcast %13 : vector<1x256xf32> to vector<16x256xf32>
      %15 = arith.addf %12, %14 : vector<16x256xf32>
      %16 = arith.truncf %15 : vector<16x256xf32> to vector<16x256xbf16>
      %c0_14 = arith.constant 0 : index
      %c0_15 = arith.constant 0 : index
      %17 = vector.load %arg6[%c0_14, %c0_15] : memref<16x256xbf16, #tpu.memory_space<vmem>>, vector<16x256xbf16>
      tpu.vector_store %arg6[%c0_14, %c0_15], %16 {strides = array<i32>} : memref<16x256xbf16, #tpu.memory_space<vmem>>, vector<16x256xbf16>,
    } else {
    }
    return
  }
  func.func @transform_0(%arg0: i32, %arg1: i32, %arg2: i32) -> (i32, i32) {
    %c0_i32 = arith.constant 0 : i32
    return %arg0, %arg2 : i32, i32
  }
  func.func @transform_1(%arg0: i32, %arg1: i32, %arg2: i32) -> (i32, i32) {
    %c0_i32 = arith.constant 0 : i32
    return %arg2, %arg1 : i32, i32
  }
  func.func @transform_2(%arg0: i32, %arg1: i32, %arg2: i32) -> (i32, i32) {
    %c0_i32 = arith.constant 0 : i32
    %c0_i32_0 = arith.constant 0 : i32
    return %c0_i32, %arg1 : i32, i32
  }
  func.func @transform_3(%arg0: i32, %arg1: i32, %arg2: i32) -> (i32, i32) {
    %c0_i32 = arith.constant 0 : i32
    return %arg0, %arg1 : i32, i32
  }
}

module attributes {stable_mosaic.version = 11 : i64} {
  func.func @kernel(%arg0: i32, %arg1: i32, %arg2: i32, %arg3: memref<16x768xbf16, #tpu.memory_space<vmem>>, %arg4: memref<768x256xbf16, #tpu.memory_space<vmem>>, %arg5: memref<1x256xf32, #tpu.memory_space<vmem>>, %arg6: memref<16x256xbf16, #tpu.memory_space<vmem>>, %arg7: memref<16x256xbf16, #tpu.memory_space<vmem>>, %arg8: memref<16x256xf32, #tpu.memory_space<vmem>>) attributes {dimension_semantics = [#tpu.dimension_semantics<parallel>, #tpu.dimension_semantics<parallel>, #tpu.dimension_semantics<arbitrary>], iteration_bounds = array<i64: 1, 2, 6>, scalar_prefetch = 0 : i64, scratch_operands = 1 : i64, tpu.core_type = #tpu.core_type<tc>, window_params = [{transform_indices = @transform_0, window_bounds = array<i64: 16, 768>}, {transform_indices = @transform_1, window_bounds = array<i64: 768, 256>}, {transform_indices = @transform_2, window_bounds = array<i64: 1, 256>}, {transform_indices = @transform_3, window_bounds = array<i64: 16, 256>}, {transform_indices = @transform_4, window_bounds = array<i64: 16, 256>}]} {
    %c0_i32 = arith.constant 0 : i32
    %0 = arith.cmpi eq, %arg2, %c0_i32 : i32
    %1 = arith.extui %0 : i1 to i32
    %c0_i32_0 = arith.constant 0 : i32
    %2 = arith.cmpi ne, %1, %c0_i32_0 : i32
    scf.if %2 {
      %cst_9 = arith.constant 0.000000e+00 : f32
      %12 = vector.broadcast %cst_9 : f32 to vector<16x256xf32>
      %c0_10 = arith.constant 0 : index
      %c0_11 = arith.constant 0 : index
      %13 = vector.load %arg8[%c0_10, %c0_11] : memref<16x256xf32, #tpu.memory_space<vmem>>, vector<16x256xf32>
      tpu.vector_store %arg8[%c0_10, %c0_11], %12 {strides = array<i32>} : memref<16x256xf32, #tpu.memory_space<vmem>>, vector<16x256xf32>,
    } else {
    }
    %c0 = arith.constant 0 : index
    %c0_1 = arith.constant 0 : index
    %3 = vector.load %arg8[%c0, %c0_1] : memref<16x256xf32, #tpu.memory_space<vmem>>, vector<16x256xf32>
    %c0_2 = arith.constant 0 : index
    %c0_3 = arith.constant 0 : index
    %4 = vector.load %arg3[%c0_2, %c0_3] : memref<16x768xbf16, #tpu.memory_space<vmem>>, vector<16x768xbf16>
    %c0_4 = arith.constant 0 : index
    %c0_5 = arith.constant 0 : index
    %5 = vector.load %arg4[%c0_4, %c0_5] : memref<768x256xbf16, #tpu.memory_space<vmem>>, vector<768x256xbf16>
    %cst = arith.constant dense<0.000000e+00> : vector<16x256xf32>
    %6 = tpu.matmul %4, %5, %cst {dimension_numbers = #tpu.dot_dimension_numbers<[1], [0], [0], [1], [0, 0, 1, 1], [], []>} : vector<16x768xbf16>, vector<768x256xbf16>, vector<16x256xf32> -> vector<16x256xf32>
    %7 = arith.addf %3, %6 : vector<16x256xf32>
    %c0_6 = arith.constant 0 : index
    %c0_7 = arith.constant 0 : index
    %8 = vector.load %arg8[%c0_6, %c0_7] : memref<16x256xf32, #tpu.memory_space<vmem>>, vector<16x256xf32>
    tpu.vector_store %arg8[%c0_6, %c0_7], %7 {strides = array<i32>} : memref<16x256xf32, #tpu.memory_space<vmem>>, vector<16x256xf32>,
    %c5_i32 = arith.constant 5 : i32
    %9 = arith.cmpi eq, %arg2, %c5_i32 : i32
    %10 = arith.extui %9 : i1 to i32
    %c0_i32_8 = arith.constant 0 : i32
    %11 = arith.cmpi ne, %10, %c0_i32_8 : i32
    scf.if %11 {
      %c0_9 = arith.constant 0 : index
      %c0_10 = arith.constant 0 : index
      %12 = vector.load %arg8[%c0_9, %c0_10] : memref<16x256xf32, #tpu.memory_space<vmem>>, vector<16x256xf32>
      %c0_11 = arith.constant 0 : index
      %c0_12 = arith.constant 0 : index
      %13 = vector.load %arg5[%c0_11, %c0_12] : memref<1x256xf32, #tpu.memory_space<vmem>>, vector<1x256xf32>
      %14 = vector.broadcast %13 : vector<1x256xf32> to vector<16x256xf32>
      %15 = arith.addf %12, %14 : vector<16x256xf32>
      %c0_13 = arith.constant 0 : index
      %c0_14 = arith.constant 0 : index
      %16 = vector.load %arg6[%c0_13, %c0_14] : memref<16x256xbf16, #tpu.memory_space<vmem>>, vector<16x256xbf16>
      %17 = arith.extf %16 : vector<16x256xbf16> to vector<16x256xf32>
      %18 = arith.addf %15, %17 : vector<16x256xf32>
      %cst_15 = arith.constant 0.000000e+00 : f32
      %19 = vector.broadcast %cst_15 : f32 to vector<16x256xf32>
      %20 = arith.maximumf %18, %19 : vector<16x256xf32>
      %21 = arith.truncf %20 : vector<16x256xf32> to vector<16x256xbf16>
      %c0_16 = arith.constant 0 : index
      %c0_17 = arith.constant 0 : index
      %22 = vector.load %arg7[%c0_16, %c0_17] : memref<16x256xbf16, #tpu.memory_space<vmem>>, vector<16x256xbf16>
      tpu.vector_store %arg7[%c0_16, %c0_17], %21 {strides = array<i32>} : memref<16x256xbf16, #tpu.memory_space<vmem>>, vector<16x256xbf16>,
    } else {
    }
    return
  }
  func.func @transform_0(%arg0: i32, %arg1: i32, %arg2: i32) -> (i32, i32) {
    %c0_i32 = arith.constant 0 : i32
    return %arg0, %arg2 : i32, i32
  }
  func.func @transform_1(%arg0: i32, %arg1: i32, %arg2: i32) -> (i32, i32) {
    %c0_i32 = arith.constant 0 : i32
    return %arg2, %arg1 : i32, i32
  }
  func.func @transform_2(%arg0: i32, %arg1: i32, %arg2: i32) -> (i32, i32) {
    %c0_i32 = arith.constant 0 : i32
    %c0_i32_0 = arith.constant 0 : i32
    return %c0_i32, %arg1 : i32, i32
  }
  func.func @transform_3(%arg0: i32, %arg1: i32, %arg2: i32) -> (i32, i32) {
    %c0_i32 = arith.constant 0 : i32
    return %arg0, %arg1 : i32, i32
  }
  func.func @transform_4(%arg0: i32, %arg1: i32, %arg2: i32) -> (i32, i32) {
    %c0_i32 = arith.constant 0 : i32
    return %arg0, %arg1 : i32, i32
  }
}

module attributes {stable_mosaic.version = 11 : i64} {
  func.func @_avgpool_kernel(%arg0: i32, %arg1: memref<1x1x512xbf16, #tpu.memory_space<vmem>>, %arg2: memref<1x1x512xf32, #tpu.memory_space<vmem>>) attributes {dimension_semantics = [#tpu.dimension_semantics<parallel>], iteration_bounds = array<i64: 2>, scalar_prefetch = 0 : i64, scratch_operands = 0 : i64, tpu.core_type = #tpu.core_type<tc>, window_params = [{transform_indices = @transform_0, window_bounds = array<i64: 1, 1, 512>}, {transform_indices = @transform_1, window_bounds = array<i64: 1, 1, 512>}]} {
    %c0 = arith.constant 0 : index
    %c0_0 = arith.constant 0 : index
    %c0_1 = arith.constant 0 : index
    %0 = vector.load %arg1[%c0, %c0_0, %c0_1] : memref<1x1x512xbf16, #tpu.memory_space<vmem>>, vector<1x1x512xbf16>
    %1 = arith.extf %0 : vector<1x1x512xbf16> to vector<1x1x512xf32>
    %cst = arith.constant dense<0.000000e+00> : vector<1x512xf32>
    %2 = vector.multi_reduction <add>, %1, %cst [1] : vector<1x1x512xf32> to vector<1x512xf32>
    %3 = vector.shape_cast %2 : vector<1x512xf32> to vector<1x1x512xf32>
    %cst_2 = arith.constant 1.000000e+00 : f32
    %4 = vector.broadcast %cst_2 : f32 to vector<1x1x512xf32>
    %5 = arith.divf %3, %4 : vector<1x1x512xf32>
    %c0_3 = arith.constant 0 : index
    %c0_4 = arith.constant 0 : index
    %c0_5 = arith.constant 0 : index
    %6 = vector.load %arg2[%c0_3, %c0_4, %c0_5] : memref<1x1x512xf32, #tpu.memory_space<vmem>>, vector<1x1x512xf32>
    tpu.vector_store %arg2[%c0_3, %c0_4, %c0_5], %5 {strides = array<i32>} : memref<1x1x512xf32, #tpu.memory_space<vmem>>, vector<1x1x512xf32>,
    return
  }
  func.func @transform_0(%arg0: i32) -> (i32, i32, i32) {
    %c0_i32 = arith.constant 0 : i32
    %c0_i32_0 = arith.constant 0 : i32
    %c0_i32_1 = arith.constant 0 : i32
    return %arg0, %c0_i32, %c0_i32_0 : i32, i32, i32
  }
  func.func @transform_1(%arg0: i32) -> (i32, i32, i32) {
    %c0_i32 = arith.constant 0 : i32
    %c0_i32_0 = arith.constant 0 : i32
    %c0_i32_1 = arith.constant 0 : i32
    return %arg0, %c0_i32, %c0_i32_0 : i32, i32, i32
  }
}

module attributes {stable_mosaic.version = 11 : i64} {
  func.func @kernel(%arg0: i32, %arg1: i32, %arg2: i32, %arg3: memref<16x512xbf16, #tpu.memory_space<vmem>>, %arg4: memref<512x128xbf16, #tpu.memory_space<vmem>>, %arg5: memref<1x128xf32, #tpu.memory_space<vmem>>, %arg6: memref<16x128xf32, #tpu.memory_space<vmem>>, %arg7: memref<16x128xf32, #tpu.memory_space<vmem>>) attributes {dimension_semantics = [#tpu.dimension_semantics<parallel>, #tpu.dimension_semantics<parallel>, #tpu.dimension_semantics<arbitrary>], iteration_bounds = array<i64: 1, 1, 1>, scalar_prefetch = 0 : i64, scratch_operands = 1 : i64, tpu.core_type = #tpu.core_type<tc>, window_params = [{transform_indices = @transform_0, window_bounds = array<i64: 16, 512>}, {transform_indices = @transform_1, window_bounds = array<i64: 512, 128>}, {transform_indices = @transform_2, window_bounds = array<i64: 1, 128>}, {transform_indices = @transform_3, window_bounds = array<i64: 16, 128>}]} {
    %c0_i32 = arith.constant 0 : i32
    %0 = arith.cmpi eq, %arg2, %c0_i32 : i32
    %1 = arith.extui %0 : i1 to i32
    %c0_i32_0 = arith.constant 0 : i32
    %2 = arith.cmpi ne, %1, %c0_i32_0 : i32
    scf.if %2 {
      %cst_10 = arith.constant 0.000000e+00 : f32
      %12 = vector.broadcast %cst_10 : f32 to vector<16x128xf32>
      %c0_11 = arith.constant 0 : index
      %c0_12 = arith.constant 0 : index
      %13 = vector.load %arg7[%c0_11, %c0_12] : memref<16x128xf32, #tpu.memory_space<vmem>>, vector<16x128xf32>
      tpu.vector_store %arg7[%c0_11, %c0_12], %12 {strides = array<i32>} : memref<16x128xf32, #tpu.memory_space<vmem>>, vector<16x128xf32>,
    } else {
    }
    %c0 = arith.constant 0 : index
    %c0_1 = arith.constant 0 : index
    %3 = vector.load %arg7[%c0, %c0_1] : memref<16x128xf32, #tpu.memory_space<vmem>>, vector<16x128xf32>
    %c0_2 = arith.constant 0 : index
    %c0_3 = arith.constant 0 : index
    %4 = vector.load %arg3[%c0_2, %c0_3] : memref<16x512xbf16, #tpu.memory_space<vmem>>, vector<16x512xbf16>
    %c0_4 = arith.constant 0 : index
    %c0_5 = arith.constant 0 : index
    %5 = vector.load %arg4[%c0_4, %c0_5] : memref<512x128xbf16, #tpu.memory_space<vmem>>, vector<512x128xbf16>
    %cst = arith.constant dense<0.000000e+00> : vector<16x128xf32>
    %6 = tpu.matmul %4, %5, %cst {dimension_numbers = #tpu.dot_dimension_numbers<[1], [0], [0], [1], [0, 0, 1, 1], [], []>} : vector<16x512xbf16>, vector<512x128xbf16>, vector<16x128xf32> -> vector<16x128xf32>
    %7 = arith.addf %3, %6 : vector<16x128xf32>
    %c0_6 = arith.constant 0 : index
    %c0_7 = arith.constant 0 : index
    %8 = vector.load %arg7[%c0_6, %c0_7] : memref<16x128xf32, #tpu.memory_space<vmem>>, vector<16x128xf32>
    tpu.vector_store %arg7[%c0_6, %c0_7], %7 {strides = array<i32>} : memref<16x128xf32, #tpu.memory_space<vmem>>, vector<16x128xf32>,
    %c0_i32_8 = arith.constant 0 : i32
    %9 = arith.cmpi eq, %arg2, %c0_i32_8 : i32
    %10 = arith.extui %9 : i1 to i32
    %c0_i32_9 = arith.constant 0 : i32
    %11 = arith.cmpi ne, %10, %c0_i32_9 : i32
    scf.if %11 {
      %c0_10 = arith.constant 0 : index
      %c0_11 = arith.constant 0 : index
      %12 = vector.load %arg7[%c0_10, %c0_11] : memref<16x128xf32, #tpu.memory_space<vmem>>, vector<16x128xf32>
      %c0_12 = arith.constant 0 : index
      %c0_13 = arith.constant 0 : index
      %13 = vector.load %arg5[%c0_12, %c0_13] : memref<1x128xf32, #tpu.memory_space<vmem>>, vector<1x128xf32>
      %14 = vector.broadcast %13 : vector<1x128xf32> to vector<16x128xf32>
      %15 = arith.addf %12, %14 : vector<16x128xf32>
      %c0_14 = arith.constant 0 : index
      %c0_15 = arith.constant 0 : index
      %16 = vector.load %arg6[%c0_14, %c0_15] : memref<16x128xf32, #tpu.memory_space<vmem>>, vector<16x128xf32>
      tpu.vector_store %arg6[%c0_14, %c0_15], %15 {strides = array<i32>} : memref<16x128xf32, #tpu.memory_space<vmem>>, vector<16x128xf32>,
    } else {
    }
    return
  }
  func.func @transform_0(%arg0: i32, %arg1: i32, %arg2: i32) -> (i32, i32) {
    %c0_i32 = arith.constant 0 : i32
    return %arg0, %arg2 : i32, i32
  }
  func.func @transform_1(%arg0: i32, %arg1: i32, %arg2: i32) -> (i32, i32) {
    %c0_i32 = arith.constant 0 : i32
    return %arg2, %arg1 : i32, i32
  }
  func.func @transform_2(%arg0: i32, %arg1: i32, %arg2: i32) -> (i32, i32) {
    %c0_i32 = arith.constant 0 : i32
    %c0_i32_0 = arith.constant 0 : i32
    return %c0_i32, %arg1 : i32, i32
  }
  func.func @transform_3(%arg0: i32, %arg1: i32, %arg2: i32) -> (i32, i32) {
    %c0_i32 = arith.constant 0 : i32
    return %arg0, %arg1 : i32, i32
  }
}

</mosaic_0001>

<bundles_post_ra>
// kernel: _lambda_.15
= control target key start
LH: loop header
LB: loop body
LE: loop exit
PB: predicated region body
PF: predicated region fallthrough
CT: control target
= control target key end

     0   :  { %s2680_s1 = inlined_call_operand.vmem [shape: bf16[256,128], index: 1, kind: input, shape index: {}]   ;;  %s2681_s0 = inlined_call_operand.vmem [shape: bf16[512,256], index: 0, kind: input, shape index: {}]   ;;  %s2682_s2 = inlined_call_operand.vmem [shape: f32[1,128], index: 2, kind: input, shape index: {}]   ;;  %s2683_s3 = inlined_call_operand.vmem [shape: bf16[512,128], index: 3, kind: output, shape index: {}]  }
   0x1   :  { %v1846_v0 = vld [vmem:[%s2680_s1 + $0x38] sm:$0xff]  ;;  %v1845_v2 = vld [vmem:[%s2680_s1 + $0x30] sm:$0xff]  ;;  %v1844_v4 = vld [vmem:[%s2680_s1 + $0x28] sm:$0xff] }
   0x2   :  { %v1854_v1 = vld [vmem:[%s2680_s1 + $0x78] sm:$0xff]  ;;  %658 = vmatpush.bf16.msra.mxu0 %v1846_v0  ;;  %2046 = vmatpush.bf16.msra.mxu2 %v1846_v0  ;;  %v1853_v3 = vld [vmem:[%s2680_s1 + $0x70] sm:$0xff]  ;;  %v1852_v5 = vld [vmem:[%s2680_s1 + $0x68] sm:$0xff] }
   0x3   :  { %827 = vmatpush.bf16.msra.mxu1 %v1854_v1  ;;  %2054 = vmatpush.bf16.msra.mxu3 %v1854_v1  ;;  %v1843_v6 = vld [vmem:[%s2680_s1 + $0x20] sm:$0xff]  ;;  %v1842_v8 = vld [vmem:[%s2680_s1 + $0x18] sm:$0xff]  ;;  %v1841_v10 = vld [vmem:[%s2680_s1 + $0x10] sm:$0xff] }
   0x4   :  { %v1851_v7 = vld [vmem:[%s2680_s1 + $0x60] sm:$0xff]  ;;  %v1850_v9 = vld [vmem:[%s2680_s1 + $0x58] sm:$0xff]  ;;  %v1849_v11 = vld [vmem:[%s2680_s1 + $0x50] sm:$0xff] }
   0x5   :  { %v1840_v12 = vld [vmem:[%s2680_s1 + $0x8] sm:$0xff]  ;;  %v1839_v14 = vld [vmem:[%s2680_s1] sm:$0xff]  ;;  %v1465_v28 = vld [vmem:[%s2681_s0 + $0x10] sm:$0xf] }
   0x6   :  { %659 = vmatpush.bf16.msra.mxu0 %v1845_v2  ;;  %2047 = vmatpush.bf16.msra.mxu2 %v1845_v2  ;;  %v1848_v13 = vld [vmem:[%s2680_s1 + $0x48] sm:$0xff]  ;;  %v1847_v15 = vld [vmem:[%s2680_s1 + $0x40] sm:$0xff]  ;;  %v1778_v29 = vld [vmem:[%s2681_s0 + $0x14] sm:$0xf0] }
   0x7   :  { %828 = vmatpush.bf16.msra.mxu1 %v1853_v3  ;;  %2055 = vmatpush.bf16.msra.mxu3 %v1853_v3  ;;  %v1457_v16 = vld [vmem:[%s2681_s0] sm:$0xf]  ;;  %v1776_v17 = vld [vmem:[%s2681_s0 + $0x4] sm:$0xf0]  ;;  %v1775_v20 = vld [vmem:[%s2681_s0 + $0x4] sm:$0xf]  ;;  %v1466_v36 = vor.u32 %v1778_v29, %v1465_v28 }
   0x8   :  { %v1585_v18 = vld [vmem:[%s2681_s0 + $0x100] sm:$0xf]  ;;  %v1808_v19 = vld [vmem:[%s2681_s0 + $0x104] sm:$0xf0]  ;;  %v1459_v21 = vld [vmem:[%s2681_s0 + $0x8] sm:$0xf0]  ;;  %v1458_v24 = vor.u32 %v1776_v17, %v1457_v16 }
   0x9   :  { %v1807_v22 = vld [vmem:[%s2681_s0 + $0x104] sm:$0xf]  ;;  %v1587_v23 = vld [vmem:[%s2681_s0 + $0x108] sm:$0xf0]  ;;  %v1586_v25 = vor.u32 %v1808_v19, %v1585_v18  ;;  %v1462_v26 = vor.u32 %v1775_v20, %v1459_v21  ;;  %v1593_v30 = vld [vmem:[%s2681_s0 + $0x110] sm:$0xf] }
   0xa   :  { %660 = vmatpush.bf16.msra.mxu0 %v1844_v4  ;;  %2048 = vmatpush.bf16.msra.mxu2 %v1844_v4  ;;  %v1590_v27 = vor.u32 %v1807_v22, %v1587_v23  ;;  %v1810_v31 = vld [vmem:[%s2681_s0 + $0x114] sm:$0xf0]  ;;  %v1777_v32 = vld [vmem:[%s2681_s0 + $0x14] sm:$0xf]  ;;  %v1467_v33 = vld [vmem:[%s2681_s0 + $0x18] sm:$0xf0] }
   0xb   :  { %829 = vmatpush.bf16.msra.mxu1 %v1852_v5  ;;  %2056 = vmatpush.bf16.msra.mxu3 %v1852_v5  ;;  %v1809_v34 = vld [vmem:[%s2681_s0 + $0x114] sm:$0xf]  ;;  %v1595_v35 = vld [vmem:[%s2681_s0 + $0x118] sm:$0xf0]  ;;  %v1594_v37 = vor.u32 %v1810_v31, %v1593_v30  ;;  %v1470_v38 = vor.u32 %v1777_v32, %v1467_v33  ;;  %v1473_v40 = vld [vmem:[%s2681_s0 + $0x20] sm:$0xf] }
   0xc   :  { %v1598_v39 = vor.u32 %v1809_v34, %v1595_v35  ;;  %v1780_v41 = vld [vmem:[%s2681_s0 + $0x24] sm:$0xf0]  ;;  %v1601_v42 = vld [vmem:[%s2681_s0 + $0x120] sm:$0xf]  ;;  %v1779_v44 = vld [vmem:[%s2681_s0 + $0x24] sm:$0xf] }
   0xd   :  { %v1812_v43 = vld [vmem:[%s2681_s0 + $0x124] sm:$0xf0]  ;;  %v1475_v45 = vld [vmem:[%s2681_s0 + $0x28] sm:$0xf0]  ;;  %v1811_v46 = vld [vmem:[%s2681_s0 + $0x124] sm:$0xf]  ;;  %v1474_v48 = vor.u32 %v1780_v41, %v1473_v40 }
   0xe   :  { %661 = vmatpush.bf16.msra.mxu0 %v1843_v6  ;;  %2049 = vmatpush.bf16.msra.mxu2 %v1843_v6  ;;  %v1603_v47 = vld [vmem:[%s2681_s0 + $0x128] sm:$0xf0]  ;;  %v1602_v49 = vor.u32 %v1812_v43, %v1601_v42  ;;  %v1478_v50 = vor.u32 %v1779_v44, %v1475_v45  ;;  %v1481_v52 = vld [vmem:[%s2681_s0 + $0x30] sm:$0xf]  ;;  %v1782_v53 = vld [vmem:[%s2681_s0 + $0x34] sm:$0xf0] }
   0xf   :  { %830 = vmatpush.bf16.msra.mxu1 %v1851_v7  ;;  %2057 = vmatpush.bf16.msra.mxu3 %v1851_v7  ;;  %v1606_v51 = vor.u32 %v1811_v46, %v1603_v47  ;;  %v1609_v54 = vld [vmem:[%s2681_s0 + $0x130] sm:$0xf]  ;;  %v1814_v55 = vld [vmem:[%s2681_s0 + $0x134] sm:$0xf0]  ;;  %v1781_v56 = vld [vmem:[%s2681_s0 + $0x34] sm:$0xf]  ;;  %v1482_v60 = vor.u32 %v1782_v53, %v1481_v52 }
  0x10   :  { %v1483_v57 = vld [vmem:[%s2681_s0 + $0x38] sm:$0xf0]  ;;  %v1813_v58 = vld [vmem:[%s2681_s0 + $0x134] sm:$0xf]  ;;  %v1610_v61 = vor.u32 %v1814_v55, %v1609_v54  ;;  %v1489_v0 = vld [vmem:[%s2681_s0 + $0x40] sm:$0xf] }
  0x11   :  { %v1611_v59 = vld [vmem:[%s2681_s0 + $0x138] sm:$0xf0]  ;;  %v1486_v62 = vor.u32 %v1781_v56, %v1483_v57  ;;  %v1784_v1 = vld [vmem:[%s2681_s0 + $0x44] sm:$0xf0]  ;;  %v1617_v2 = vld [vmem:[%s2681_s0 + $0x140] sm:$0xf] }
  0x12   :  { %662 = vmatpush.bf16.msra.mxu0 %v1842_v8  ;;  %2050 = vmatpush.bf16.msra.mxu2 %v1842_v8  ;;  %v1614_v63 = vor.u32 %v1813_v58, %v1611_v59  ;;  %v1816_v3 = vld [vmem:[%s2681_s0 + $0x144] sm:$0xf0]  ;;  %v1783_v4 = vld [vmem:[%s2681_s0 + $0x44] sm:$0xf]  ;;  %v1491_v5 = vld [vmem:[%s2681_s0 + $0x48] sm:$0xf0]  ;;  %v1490_v8 = vor.u32 %v1784_v1, %v1489_v0 }
  0x13   :  { %831 = vmatpush.bf16.msra.mxu1 %v1850_v9  ;;  %2058 = vmatpush.bf16.msra.mxu3 %v1850_v9  ;;  %v1815_v6 = vld [vmem:[%s2681_s0 + $0x144] sm:$0xf]  ;;  %v1619_v7 = vld [vmem:[%s2681_s0 + $0x148] sm:$0xf0]  ;;  %v1618_v9 = vor.u32 %v1816_v3, %v1617_v2  ;;  %v1785_v16 = vld [vmem:[%s2681_s0 + $0x54] sm:$0xf] }
  0x14   :  { %v1499_v17 = vld [vmem:[%s2681_s0 + $0x58] sm:$0xf0]  ;;  %v1817_v18 = vld [vmem:[%s2681_s0 + $0x154] sm:$0xf]  ;;  %v1787_v28 = vld [vmem:[%s2681_s0 + $0x64] sm:$0xf] }
  0x15   :  { %v1627_v19 = vld [vmem:[%s2681_s0 + $0x158] sm:$0xf0]  ;;  %v1502_v22 = vor.u32 %v1785_v16, %v1499_v17  ;;  %v1507_v29 = vld [vmem:[%s2681_s0 + $0x68] sm:$0xf0]  ;;  %v1819_v30 = vld [vmem:[%s2681_s0 + $0x164] sm:$0xf] }
  0x16   :  { %663 = vmatpush.bf16.msra.mxu0 %v1841_v10  ;;  %2051 = vmatpush.bf16.msra.mxu2 %v1841_v10  ;;  %v1494_v10 = vor.u32 %v1783_v4, %v1491_v5  ;;  %v1630_v23 = vor.u32 %v1817_v18, %v1627_v19  ;;  %v1635_v31 = vld [vmem:[%s2681_s0 + $0x168] sm:$0xf0]  ;;  %v1510_v34 = vor.u32 %v1787_v28, %v1507_v29  ;;  %v1789_v40 = vld [vmem:[%s2681_s0 + $0x74] sm:$0xf]  ;;  %v1515_v41 = vld [vmem:[%s2681_s0 + $0x78] sm:$0xf0] }
  0x17   :  { %832 = vmatpush.bf16.msra.mxu1 %v1849_v11  ;;  %2059 = vmatpush.bf16.msra.mxu3 %v1849_v11  ;;  %v1622_v11 = vor.u32 %v1815_v6, %v1619_v7  ;;  %v1638_v35 = vor.u32 %v1819_v30, %v1635_v31  ;;  %v1821_v42 = vld [vmem:[%s2681_s0 + $0x174] sm:$0xf]  ;;  %v1643_v43 = vld [vmem:[%s2681_s0 + $0x178] sm:$0xf0]  ;;  %v1518_v46 = vor.u32 %v1789_v40, %v1515_v41  ;;  %v1791_v52 = vld [vmem:[%s2681_s0 + $0x84] sm:$0xf] }
  0x18   :  { %v1646_v47 = vor.u32 %v1821_v42, %v1643_v43  ;;  %v1523_v53 = vld [vmem:[%s2681_s0 + $0x88] sm:$0xf0]  ;;  %v1823_v54 = vld [vmem:[%s2681_s0 + $0x184] sm:$0xf]  ;;  %v1529_v6 = vld [vmem:[%s2681_s0 + $0x90] sm:$0xf] }
  0x19   :  { %v1651_v55 = vld [vmem:[%s2681_s0 + $0x188] sm:$0xf0]  ;;  %v1526_v59 = vor.u32 %v1791_v52, %v1523_v53  ;;  %v1794_v7 = vld [vmem:[%s2681_s0 + $0x94] sm:$0xf0]  ;;  %v1537_v40 = vld [vmem:[%s2681_s0 + $0xa0] sm:$0xf] }
  0x1a   :  { %664 = vmatpush.bf16.msra.mxu0 %v1840_v12  ;;  %2052 = vmatpush.bf16.msra.mxu2 %v1840_v12  ;;  %v1497_v12 = vld [vmem:[%s2681_s0 + $0x50] sm:$0xf]  ;;  %v1796_v41 = vld [vmem:[%s2681_s0 + $0xa4] sm:$0xf0]  ;;  %v1665_v42 = vld [vmem:[%s2681_s0 + $0x1a0] sm:$0xf] }
  0x1b   :  { %833 = vmatpush.bf16.msra.mxu1 %v1848_v13  ;;  %2060 = vmatpush.bf16.msra.mxu3 %v1848_v13  ;;  %v1786_v13 = vld [vmem:[%s2681_s0 + $0x54] sm:$0xf0] }
  0x1c   :  { %v1498_v20 = vor.u32 %v1786_v13, %v1497_v12  ;;  %v1793_v12 = vld [vmem:[%s2681_s0 + $0x94] sm:$0xf]  ;;  %v1531_v13 = vld [vmem:[%s2681_s0 + $0x98] sm:$0xf0] }
  0x1e   :  { %665 = vmatpush.bf16.msra.mxu0 %v1839_v14  ;;  %2053 = vmatpush.bf16.msra.mxu2 %v1839_v14  ;;  %v1625_v14 = vld [vmem:[%s2681_s0 + $0x150] sm:$0xf] }
  0x1f   :  { %834 = vmatpush.bf16.msra.mxu1 %v1847_v15  ;;  %2061 = vmatpush.bf16.msra.mxu3 %v1847_v15  ;;  %v1818_v15 = vld [vmem:[%s2681_s0 + $0x154] sm:$0xf0] }
  0x20   :  { %v1626_v21 = vor.u32 %v1818_v15, %v1625_v14  ;;  %v1825_v14 = vld [vmem:[%s2681_s0 + $0x194] sm:$0xf]  ;;  %v1659_v15 = vld [vmem:[%s2681_s0 + $0x198] sm:$0xf0] }
  0x21   :  { %666 = vmatmul.bf16.vlgmr.msra.gmra.mxu0 %v1458_v24  ;;  %746 = vmatmul.bf16.vlgmr.msra.gmra.mxu2 %v1586_v25  ;;  %v1505_v24 = vld [vmem:[%s2681_s0 + $0x60] sm:$0xf]  ;;  %v1788_v25 = vld [vmem:[%s2681_s0 + $0x64] sm:$0xf0] }
  0x22   :  { %835 = vmatmul.bf16.vlgmr.msra.gmra.mxu1 %v1462_v26  ;;  %915 = vmatmul.bf16.vlgmr.msra.gmra.mxu3 %v1590_v27  ;;  %v1633_v26 = vld [vmem:[%s2681_s0 + $0x160] sm:$0xf]  ;;  %v1820_v27 = vld [vmem:[%s2681_s0 + $0x164] sm:$0xf0]  ;;  %v1506_v32 = vor.u32 %v1788_v25, %v1505_v24 }
  0x23   :  { %v1634_v33 = vor.u32 %v1820_v27, %v1633_v26  ;;  %v1662_v27 = vor.u32 %v1825_v14, %v1659_v15 }
  0x31   :  { %671 = vmatmul.bf16.gmra.mxu0 %v1466_v36  ;;  %751 = vmatmul.bf16.gmra.mxu2 %v1594_v37  ;;  %v1513_v36 = vld [vmem:[%s2681_s0 + $0x70] sm:$0xf]  ;;  %v1790_v37 = vld [vmem:[%s2681_s0 + $0x74] sm:$0xf0] }
  0x32   :  { %840 = vmatmul.bf16.gmra.mxu1 %v1470_v38  ;;  %920 = vmatmul.bf16.gmra.mxu3 %v1598_v39  ;;  %v1641_v38 = vld [vmem:[%s2681_s0 + $0x170] sm:$0xf]  ;;  %v1822_v39 = vld [vmem:[%s2681_s0 + $0x174] sm:$0xf0]  ;;  %v1514_v44 = vor.u32 %v1790_v37, %v1513_v36 }
  0x33   :  { %v1642_v45 = vor.u32 %v1822_v39, %v1641_v38 }
  0x41   :  { %676 = vmatmul.bf16.gmra.mxu0 %v1474_v48  ;;  %756 = vmatmul.bf16.gmra.mxu2 %v1602_v49  ;;  %v1521_v48 = vld [vmem:[%s2681_s0 + $0x80] sm:$0xf]  ;;  %v1792_v49 = vld [vmem:[%s2681_s0 + $0x84] sm:$0xf0] }
  0x42   :  { %845 = vmatmul.bf16.gmra.mxu1 %v1478_v50  ;;  %925 = vmatmul.bf16.gmra.mxu3 %v1606_v51  ;;  %v1649_v50 = vld [vmem:[%s2681_s0 + $0x180] sm:$0xf]  ;;  %v1824_v51 = vld [vmem:[%s2681_s0 + $0x184] sm:$0xf0]  ;;  %v1522_v56 = vor.u32 %v1792_v49, %v1521_v48  ;;  %v1827_v48 = vld [vmem:[%s2681_s0 + $0x1a4] sm:$0xf] }
  0x43   :  { %v1650_v57 = vor.u32 %v1824_v51, %v1649_v50  ;;  %v1667_v49 = vld [vmem:[%s2681_s0 + $0x1a8] sm:$0xf0] }
  0x51   :  { %681 = vmatmul.bf16.gmra.mxu0 %v1482_v60  ;;  %761 = vmatmul.bf16.gmra.mxu2 %v1610_v61  ;;  %v1654_v60 = vor.u32 %v1823_v54, %v1651_v55  ;;  %v1538_v54 = vor.u32 %v1796_v41, %v1537_v40 }
  0x52   :  { %850 = vmatmul.bf16.gmra.mxu1 %v1486_v62  ;;  %930 = vmatmul.bf16.gmra.mxu3 %v1614_v63  ;;  %v2350_v63 = vld [vmem:[%s2682_s2] ss:$0 sm:$0xff] }
  0x61   :  { %686 = vmatmul.bf16.gmra.mxu0 %v1490_v8  ;;  %766 = vmatmul.bf16.gmra.mxu2 %v1618_v9  ;;  %v1657_v8 = vld [vmem:[%s2681_s0 + $0x190] sm:$0xf] }
  0x62   :  { %855 = vmatmul.bf16.gmra.mxu1 %v1494_v10  ;;  %935 = vmatmul.bf16.gmra.mxu3 %v1622_v11  ;;  %v1826_v11 = vld [vmem:[%s2681_s0 + $0x194] sm:$0xf0] }
  0x71   :  { %691 = vmatmul.bf16.gmra.mxu0 %v1498_v20  ;;  %771 = vmatmul.bf16.gmra.mxu2 %v1626_v21  ;;  %v1530_v20 = vor.u32 %v1794_v7, %v1529_v6  ;;  %v1658_v21 = vor.u32 %v1826_v11, %v1657_v8  ;;  %v1545_v11 = vld [vmem:[%s2681_s0 + $0xb0] sm:$0xf] }
  0x72   :  { %860 = vmatmul.bf16.gmra.mxu1 %v1502_v22  ;;  %940 = vmatmul.bf16.gmra.mxu3 %v1630_v23  ;;  %v1534_v22 = vor.u32 %v1793_v12, %v1531_v13  ;;  %v1798_v12 = vld [vmem:[%s2681_s0 + $0xb4] sm:$0xf0]  ;;  %v1673_v13 = vld [vmem:[%s2681_s0 + $0x1b0] sm:$0xf] }
  0x81   :  { %696 = vmatmul.bf16.gmra.mxu0 %v1506_v32  ;;  %776 = vmatmul.bf16.gmra.mxu2 %v1634_v33 }
  0x82   :  { %865 = vmatmul.bf16.gmra.mxu1 %v1510_v34  ;;  %945 = vmatmul.bf16.gmra.mxu3 %v1638_v35 }
  0x91   :  { %701 = vmatmul.bf16.gmra.mxu0 %v1514_v44  ;;  %781 = vmatmul.bf16.gmra.mxu2 %v1642_v45  ;;  %v1828_v45 = vld [vmem:[%s2681_s0 + $0x1a4] sm:$0xf0] }
  0x92   :  { %870 = vmatmul.bf16.gmra.mxu1 %v1518_v46  ;;  %950 = vmatmul.bf16.gmra.mxu3 %v1646_v47  ;;  %v1795_v46 = vld [vmem:[%s2681_s0 + $0xa4] sm:$0xf]  ;;  %v1539_v47 = vld [vmem:[%s2681_s0 + $0xa8] sm:$0xf0]  ;;  %v1666_v55 = vor.u32 %v1828_v45, %v1665_v42  ;;  %v1553_v45 = vld [vmem:[%s2681_s0 + $0xc0] sm:$0xf] }
  0x9e   :  { %v667_v58 = vpop.f32.mrf.mxu0 }
  0x9f   :  { %v836_v61 = vpop.f32.mrf.mxu1 }
  0xa0   :  { %v837_v62 = vadd.f32 %v836_v61, %v667_v58  ;;  %v1670_v61 = vor.u32 %v1827_v48, %v1667_v49 }
  0xa1   :  { %706 = vmatmul.bf16.gmra.mxu0 %v1522_v56  ;;  %786 = vmatmul.bf16.gmra.mxu2 %v1650_v57  ;;  %v1542_v56 = vor.u32 %v1795_v46, %v1539_v47  ;;  %v1800_v46 = vld [vmem:[%s2681_s0 + $0xc4] sm:$0xf0]  ;;  %v1681_v47 = vld [vmem:[%s2681_s0 + $0x1c0] sm:$0xf] }
  0xa2   :  { %875 = vmatmul.bf16.gmra.mxu1 %v1526_v59  ;;  %955 = vmatmul.bf16.gmra.mxu3 %v1654_v60  ;;  %v1195_v4 = vadd.f32 %v2350_v63, %v837_v62 }
  0xa4   :  { %v747_v0 = vpop.f32.mrf.mxu2  ;;  %v1259_v16 = vmax.f32 %v1195_v4, 0.0 }
  0xa5   :  { %v916_v1 = vpop.f32.mrf.mxu3 }
  0xa6   :  { %v669_v2 = vpop.f32.mrf.mxu0  ;;  %v917_v9 = vadd.f32 %v916_v1, %v747_v0 }
  0xa7   :  { %v838_v3 = vpop.f32.mrf.mxu1 }
  0xa8   :  { %v839_v5 = vadd.f32 %v838_v3, %v669_v2  ;;  %v1227_v23 = vadd.f32 %v2350_v63, %v917_v9 }
  0xaa   :  { %v1196_v10 = vadd.f32 %v2350_v63, %v839_v5  ;;  %v1291_v30 = vmax.f32 %v1227_v23, 0.0 }
  0xac   :  { %v1260_v17 = vmax.f32 %v1196_v10, 0.0  ;;  %v749_v18 = vpop.f32.mrf.mxu2 }
  0xad   :  { %v918_v19 = vpop.f32.mrf.mxu3 }
  0xae   :  { %v1858_v24 = vpack.c.bf16 %v1260_v17, %v1259_v16  ;;  %v919_v25 = vadd.f32 %v918_v19, %v749_v18  ;;  %v672_v26 = vpop.f32.mrf.mxu0  ;;  %v1830_v16 = vld [vmem:[%s2681_s0 + $0x1b4] sm:$0xf0]  ;;  %v1797_v17 = vld [vmem:[%s2681_s0 + $0xb4] sm:$0xf]  ;;  %v1547_v18 = vld [vmem:[%s2681_s0 + $0xb8] sm:$0xf0] }
  0xaf   :  { %v841_v28 = vpop.f32.mrf.mxu1  ;;  %v1829_v19 = vld [vmem:[%s2681_s0 + $0x1b4] sm:$0xf] }
  0xb0   :  { %1859 = vst [vmem:[%s2683_s3] sm:$0xff] %v1858_v24   ;;  %v1228_v29 = vadd.f32 %v2350_v63, %v919_v25  ;;  %v842_v33 = vadd.f32 %v841_v28, %v672_v26  ;;  %v1546_v25 = vor.u32 %v1798_v12, %v1545_v11  ;;  %v1674_v26 = vor.u32 %v1830_v16, %v1673_v13  ;;  %v1561_v16 = vld [vmem:[%s2681_s0 + $0xd0] sm:$0xf] }
  0xb1   :  { %711 = vmatmul.bf16.gmra.mxu0 %v1530_v20  ;;  %791 = vmatmul.bf16.gmra.mxu2 %v1658_v21  ;;  %v1675_v20 = vld [vmem:[%s2681_s0 + $0x1b8] sm:$0xf0] }
  0xb2   :  { %v1292_v31 = vmax.f32 %v1228_v29, 0.0  ;;  %880 = vmatmul.bf16.gmra.mxu1 %v1534_v22  ;;  %960 = vmatmul.bf16.gmra.mxu3 %v1662_v27  ;;  %v1197_v38 = vadd.f32 %v2350_v63, %v842_v33  ;;  %v1550_v27 = vor.u32 %v1797_v17, %v1547_v18  ;;  %v1802_v17 = vld [vmem:[%s2681_s0 + $0xd4] sm:$0xf0]  ;;  %v1689_v18 = vld [vmem:[%s2681_s0 + $0x1d0] sm:$0xf] }
  0xb4   :  { %v1938_v32 = vpack.c.bf16 %v1292_v31, %v1291_v30  ;;  %v752_v34 = vpop.f32.mrf.mxu2  ;;  %v1261_v50 = vmax.f32 %v1197_v38, 0.0 }
  0xb5   :  { %v921_v35 = vpop.f32.mrf.mxu3 }
  0xb6   :  { %2030 = vst [vmem:[%s2683_s3 + $0x80] sm:$0xff] %v1938_v32   ;;  %v674_v36 = vpop.f32.mrf.mxu0  ;;  %v922_v43 = vadd.f32 %v921_v35, %v752_v34  ;;  %v1678_v32 = vor.u32 %v1829_v19, %v1675_v20 }
  0xb7   :  { %v843_v37 = vpop.f32.mrf.mxu1 }
  0xb8   :  { %v844_v39 = vadd.f32 %v843_v37, %v674_v36  ;;  %v1229_v57 = vadd.f32 %v2350_v63, %v922_v43 }
  0xba   :  { %v1198_v44 = vadd.f32 %v2350_v63, %v844_v39  ;;  %v1293_v1 = vmax.f32 %v1229_v57, 0.0 }
  0xbc   :  { %v1262_v51 = vmax.f32 %v1198_v44, 0.0  ;;  %v754_v52 = vpop.f32.mrf.mxu2 }
  0xbd   :  { %v923_v53 = vpop.f32.mrf.mxu3 }
  0xbe   :  { %v1863_v58 = vpack.c.bf16 %v1262_v51, %v1261_v50  ;;  %v924_v59 = vadd.f32 %v923_v53, %v754_v52  ;;  %v677_v60 = vpop.f32.mrf.mxu0  ;;  %v1832_v50 = vld [vmem:[%s2681_s0 + $0x1c4] sm:$0xf0]  ;;  %v1799_v51 = vld [vmem:[%s2681_s0 + $0xc4] sm:$0xf]  ;;  %v1555_v52 = vld [vmem:[%s2681_s0 + $0xc8] sm:$0xf0] }
  0xbf   :  { %v846_v62 = vpop.f32.mrf.mxu1  ;;  %v1831_v53 = vld [vmem:[%s2681_s0 + $0x1c4] sm:$0xf] }
  0xc0   :  { %2015 = vst [vmem:[%s2683_s3 + $0x8] sm:$0xff] %v1863_v58   ;;  %v1230_v0 = vadd.f32 %v2350_v63, %v924_v59  ;;  %v847_v4 = vadd.f32 %v846_v62, %v677_v60  ;;  %v1554_v59 = vor.u32 %v1800_v46, %v1553_v45  ;;  %v1682_v60 = vor.u32 %v1832_v50, %v1681_v47  ;;  %v1569_v50 = vld [vmem:[%s2681_s0 + $0xe0] sm:$0xf] }
  0xc1   :  { %716 = vmatmul.bf16.gmra.mxu0 %v1538_v54  ;;  %796 = vmatmul.bf16.gmra.mxu2 %v1666_v55  ;;  %v1683_v54 = vld [vmem:[%s2681_s0 + $0x1c8] sm:$0xf0] }
  0xc2   :  { %v1294_v2 = vmax.f32 %v1230_v0, 0.0  ;;  %885 = vmatmul.bf16.gmra.mxu1 %v1542_v56  ;;  %965 = vmatmul.bf16.gmra.mxu3 %v1670_v61  ;;  %v1199_v9 = vadd.f32 %v2350_v63, %v847_v4  ;;  %v1558_v61 = vor.u32 %v1799_v51, %v1555_v52  ;;  %v1804_v51 = vld [vmem:[%s2681_s0 + $0xe4] sm:$0xf0]  ;;  %v1697_v52 = vld [vmem:[%s2681_s0 + $0x1e0] sm:$0xf] }
  0xc4   :  { %v1943_v3 = vpack.c.bf16 %v1294_v2, %v1293_v1  ;;  %v757_v5 = vpop.f32.mrf.mxu2  ;;  %v1263_v21 = vmax.f32 %v1199_v9, 0.0 }
  0xc5   :  { %v926_v6 = vpop.f32.mrf.mxu3 }
  0xc6   :  { %2031 = vst [vmem:[%s2683_s3 + $0x88] sm:$0xff] %v1943_v3   ;;  %v679_v7 = vpop.f32.mrf.mxu0  ;;  %v927_v14 = vadd.f32 %v926_v6, %v757_v5  ;;  %v1686_v3 = vor.u32 %v1831_v53, %v1683_v54 }
  0xc7   :  { %v848_v8 = vpop.f32.mrf.mxu1 }
  0xc8   :  { %v849_v10 = vadd.f32 %v848_v8, %v679_v7  ;;  %v1231_v28 = vadd.f32 %v2350_v63, %v927_v14 }
  0xca   :  { %v1200_v15 = vadd.f32 %v2350_v63, %v849_v10  ;;  %v1295_v35 = vmax.f32 %v1231_v28, 0.0 }
  0xcc   :  { %v1264_v22 = vmax.f32 %v1200_v15, 0.0  ;;  %v759_v23 = vpop.f32.mrf.mxu2 }
  0xcd   :  { %v928_v24 = vpop.f32.mrf.mxu3 }
  0xce   :  { %v1868_v29 = vpack.c.bf16 %v1264_v22, %v1263_v21  ;;  %v929_v30 = vadd.f32 %v928_v24, %v759_v23  ;;  %v682_v31 = vpop.f32.mrf.mxu0  ;;  %v1834_v21 = vld [vmem:[%s2681_s0 + $0x1d4] sm:$0xf0]  ;;  %v1801_v22 = vld [vmem:[%s2681_s0 + $0xd4] sm:$0xf]  ;;  %v1563_v23 = vld [vmem:[%s2681_s0 + $0xd8] sm:$0xf0] }
  0xcf   :  { %v851_v33 = vpop.f32.mrf.mxu1  ;;  %v1833_v24 = vld [vmem:[%s2681_s0 + $0x1d4] sm:$0xf] }
  0xd0   :  { %2016 = vst [vmem:[%s2683_s3 + $0x10] sm:$0xff] %v1868_v29   ;;  %v1232_v34 = vadd.f32 %v2350_v63, %v929_v30  ;;  %v852_v38 = vadd.f32 %v851_v33, %v682_v31  ;;  %v1562_v30 = vor.u32 %v1802_v17, %v1561_v16  ;;  %v1690_v31 = vor.u32 %v1834_v21, %v1689_v18  ;;  %v1577_v21 = vld [vmem:[%s2681_s0 + $0xf0] sm:$0xf] }
  0xd1   :  { %721 = vmatmul.bf16.gmra.mxu0 %v1546_v25  ;;  %801 = vmatmul.bf16.gmra.mxu2 %v1674_v26  ;;  %v1691_v25 = vld [vmem:[%s2681_s0 + $0x1d8] sm:$0xf0] }
  0xd2   :  { %v1296_v36 = vmax.f32 %v1232_v34, 0.0  ;;  %890 = vmatmul.bf16.gmra.mxu1 %v1550_v27  ;;  %970 = vmatmul.bf16.gmra.mxu3 %v1678_v32  ;;  %v1201_v43 = vadd.f32 %v2350_v63, %v852_v38  ;;  %v1566_v32 = vor.u32 %v1801_v22, %v1563_v23  ;;  %v1806_v22 = vld [vmem:[%s2681_s0 + $0xf4] sm:$0xf0]  ;;  %v1705_v23 = vld [vmem:[%s2681_s0 + $0x1f0] sm:$0xf] }
  0xd4   :  { %v1948_v37 = vpack.c.bf16 %v1296_v36, %v1295_v35  ;;  %v762_v39 = vpop.f32.mrf.mxu2  ;;  %v1265_v55 = vmax.f32 %v1201_v43, 0.0 }
  0xd5   :  { %v931_v40 = vpop.f32.mrf.mxu3 }
  0xd6   :  { %2032 = vst [vmem:[%s2683_s3 + $0x90] sm:$0xff] %v1948_v37   ;;  %v684_v41 = vpop.f32.mrf.mxu0  ;;  %v932_v48 = vadd.f32 %v931_v40, %v762_v39  ;;  %v1694_v37 = vor.u32 %v1833_v24, %v1691_v25 }
  0xd7   :  { %v853_v42 = vpop.f32.mrf.mxu1 }
  0xd8   :  { %v854_v44 = vadd.f32 %v853_v42, %v684_v41  ;;  %v1233_v62 = vadd.f32 %v2350_v63, %v932_v48 }
  0xda   :  { %v1202_v49 = vadd.f32 %v2350_v63, %v854_v44  ;;  %v1297_v6 = vmax.f32 %v1233_v62, 0.0 }
  0xdc   :  { %v1266_v56 = vmax.f32 %v1202_v49, 0.0  ;;  %v764_v57 = vpop.f32.mrf.mxu2 }
  0xdd   :  { %v933_v58 = vpop.f32.mrf.mxu3 }
  0xde   :  { %v1873_v0 = vpack.c.bf16 %v1266_v56, %v1265_v55  ;;  %v934_v1 = vadd.f32 %v933_v58, %v764_v57  ;;  %v687_v2 = vpop.f32.mrf.mxu0  ;;  %v1836_v55 = vld [vmem:[%s2681_s0 + $0x1e4] sm:$0xf0]  ;;  %v1803_v56 = vld [vmem:[%s2681_s0 + $0xe4] sm:$0xf]  ;;  %v1571_v57 = vld [vmem:[%s2681_s0 + $0xe8] sm:$0xf0] }
  0xdf   :  { %v856_v4 = vpop.f32.mrf.mxu1  ;;  %v1835_v58 = vld [vmem:[%s2681_s0 + $0x1e4] sm:$0xf] }
  0xe0   :  { %2017 = vst [vmem:[%s2683_s3 + $0x18] sm:$0xff] %v1873_v0   ;;  %v1234_v5 = vadd.f32 %v2350_v63, %v934_v1  ;;  %v857_v9 = vadd.f32 %v856_v4, %v687_v2  ;;  %v1570_v1 = vor.u32 %v1804_v51, %v1569_v50  ;;  %v1698_v2 = vor.u32 %v1836_v55, %v1697_v52 }
  0xe1   :  { %726 = vmatmul.bf16.gmra.mxu0 %v1554_v59  ;;  %806 = vmatmul.bf16.gmra.mxu2 %v1682_v60  ;;  %v1699_v59 = vld [vmem:[%s2681_s0 + $0x1e8] sm:$0xf0] }
  0xe2   :  { %v1298_v7 = vmax.f32 %v1234_v5, 0.0  ;;  %895 = vmatmul.bf16.gmra.mxu1 %v1558_v61  ;;  %975 = vmatmul.bf16.gmra.mxu3 %v1686_v3  ;;  %v1203_v14 = vadd.f32 %v2350_v63, %v857_v9  ;;  %v1574_v3 = vor.u32 %v1803_v56, %v1571_v57 }
  0xe4   :  { %v1953_v8 = vpack.c.bf16 %v1298_v7, %v1297_v6  ;;  %v767_v10 = vpop.f32.mrf.mxu2  ;;  %v1267_v26 = vmax.f32 %v1203_v14, 0.0 }
  0xe5   :  { %v936_v11 = vpop.f32.mrf.mxu3 }
  0xe6   :  { %2033 = vst [vmem:[%s2683_s3 + $0x98] sm:$0xff] %v1953_v8   ;;  %v689_v12 = vpop.f32.mrf.mxu0  ;;  %v937_v19 = vadd.f32 %v936_v11, %v767_v10  ;;  %v1702_v8 = vor.u32 %v1835_v58, %v1699_v59 }
  0xe7   :  { %v858_v13 = vpop.f32.mrf.mxu1 }
  0xe8   :  { %v859_v15 = vadd.f32 %v858_v13, %v689_v12  ;;  %v1235_v33 = vadd.f32 %v2350_v63, %v937_v19 }
  0xea   :  { %v1204_v20 = vadd.f32 %v2350_v63, %v859_v15  ;;  %v1299_v40 = vmax.f32 %v1235_v33, 0.0 }
  0xec   :  { %v1268_v27 = vmax.f32 %v1204_v20, 0.0  ;;  %v769_v28 = vpop.f32.mrf.mxu2 }
  0xed   :  { %v938_v29 = vpop.f32.mrf.mxu3 }
  0xee   :  { %v1878_v34 = vpack.c.bf16 %v1268_v27, %v1267_v26  ;;  %v939_v35 = vadd.f32 %v938_v29, %v769_v28  ;;  %v692_v36 = vpop.f32.mrf.mxu0  ;;  %v1838_v26 = vld [vmem:[%s2681_s0 + $0x1f4] sm:$0xf0]  ;;  %v1805_v27 = vld [vmem:[%s2681_s0 + $0xf4] sm:$0xf]  ;;  %v1579_v28 = vld [vmem:[%s2681_s0 + $0xf8] sm:$0xf0] }
  0xef   :  { %v861_v38 = vpop.f32.mrf.mxu1  ;;  %v1837_v29 = vld [vmem:[%s2681_s0 + $0x1f4] sm:$0xf] }
  0xf0   :  { %2018 = vst [vmem:[%s2683_s3 + $0x20] sm:$0xff] %v1878_v34   ;;  %v1236_v39 = vadd.f32 %v2350_v63, %v939_v35  ;;  %v862_v43 = vadd.f32 %v861_v38, %v692_v36  ;;  %v1578_v35 = vor.u32 %v1806_v22, %v1577_v21  ;;  %v1706_v36 = vor.u32 %v1838_v26, %v1705_v23 }
  0xf1   :  { %731 = vmatmul.bf16.gmra.mxu0 %v1562_v30  ;;  %811 = vmatmul.bf16.gmra.mxu2 %v1690_v31  ;;  %v1707_v30 = vld [vmem:[%s2681_s0 + $0x1f8] sm:$0xf0] }
  0xf2   :  { %v1300_v41 = vmax.f32 %v1236_v39, 0.0  ;;  %900 = vmatmul.bf16.gmra.mxu1 %v1566_v32  ;;  %980 = vmatmul.bf16.gmra.mxu3 %v1694_v37  ;;  %v1205_v48 = vadd.f32 %v2350_v63, %v862_v43  ;;  %v1582_v37 = vor.u32 %v1805_v27, %v1579_v28 }
  0xf4   :  { %v1958_v42 = vpack.c.bf16 %v1300_v41, %v1299_v40  ;;  %v772_v44 = vpop.f32.mrf.mxu2  ;;  %v1269_v60 = vmax.f32 %v1205_v48, 0.0 }
  0xf5   :  { %v941_v45 = vpop.f32.mrf.mxu3 }
  0xf6   :  { %2034 = vst [vmem:[%s2683_s3 + $0xa0] sm:$0xff] %v1958_v42   ;;  %v694_v46 = vpop.f32.mrf.mxu0  ;;  %v942_v53 = vadd.f32 %v941_v45, %v772_v44  ;;  %v1710_v42 = vor.u32 %v1837_v29, %v1707_v30 }
  0xf7   :  { %v863_v47 = vpop.f32.mrf.mxu1 }
  0xf8   :  { %v864_v49 = vadd.f32 %v863_v47, %v694_v46  ;;  %v1237_v4 = vadd.f32 %v2350_v63, %v942_v53 }
  0xfa   :  { %v1206_v54 = vadd.f32 %v2350_v63, %v864_v49  ;;  %v1301_v11 = vmax.f32 %v1237_v4, 0.0 }
  0xfc   :  { %v1270_v61 = vmax.f32 %v1206_v54, 0.0  ;;  %v774_v62 = vpop.f32.mrf.mxu2 }
  0xfd   :  { %v943_v0 = vpop.f32.mrf.mxu3 }
  0xfe   :  { %v1883_v5 = vpack.c.bf16 %v1270_v61, %v1269_v60  ;;  %v944_v6 = vadd.f32 %v943_v0, %v774_v62  ;;  %v697_v7 = vpop.f32.mrf.mxu0 }
  0xff   :  { %v866_v9 = vpop.f32.mrf.mxu1 }
 0x100   :  { %2019 = vst [vmem:[%s2683_s3 + $0x28] sm:$0xff] %v1883_v5   ;;  %v1238_v10 = vadd.f32 %v2350_v63, %v944_v6  ;;  %v867_v14 = vadd.f32 %v866_v9, %v697_v7 }
 0x101   :  { %736 = vmatmul.bf16.gmra.mxu0 %v1570_v1  ;;  %816 = vmatmul.bf16.gmra.mxu2 %v1698_v2 }
 0x102   :  { %v1302_v12 = vmax.f32 %v1238_v10, 0.0  ;;  %905 = vmatmul.bf16.gmra.mxu1 %v1574_v3  ;;  %985 = vmatmul.bf16.gmra.mxu3 %v1702_v8  ;;  %v1207_v19 = vadd.f32 %v2350_v63, %v867_v14 }
 0x104   :  { %v1963_v13 = vpack.c.bf16 %v1302_v12, %v1301_v11  ;;  %v777_v15 = vpop.f32.mrf.mxu2  ;;  %v1271_v31 = vmax.f32 %v1207_v19, 0.0 }
 0x105   :  { %v946_v16 = vpop.f32.mrf.mxu3 }
 0x106   :  { %2035 = vst [vmem:[%s2683_s3 + $0xa8] sm:$0xff] %v1963_v13   ;;  %v699_v17 = vpop.f32.mrf.mxu0  ;;  %v947_v24 = vadd.f32 %v946_v16, %v777_v15 }
 0x107   :  { %v868_v18 = vpop.f32.mrf.mxu1 }
 0x108   :  { %v869_v20 = vadd.f32 %v868_v18, %v699_v17  ;;  %v1239_v38 = vadd.f32 %v2350_v63, %v947_v24 }
 0x10a   :  { %v1208_v25 = vadd.f32 %v2350_v63, %v869_v20  ;;  %v1303_v45 = vmax.f32 %v1239_v38, 0.0 }
 0x10c   :  { %v1272_v32 = vmax.f32 %v1208_v25, 0.0  ;;  %v779_v33 = vpop.f32.mrf.mxu2 }
 0x10d   :  { %v948_v34 = vpop.f32.mrf.mxu3 }
 0x10e   :  { %v1888_v39 = vpack.c.bf16 %v1272_v32, %v1271_v31  ;;  %v949_v40 = vadd.f32 %v948_v34, %v779_v33  ;;  %v702_v41 = vpop.f32.mrf.mxu0 }
 0x10f   :  { %v871_v43 = vpop.f32.mrf.mxu1 }
 0x110   :  { %2020 = vst [vmem:[%s2683_s3 + $0x30] sm:$0xff] %v1888_v39   ;;  %v1240_v44 = vadd.f32 %v2350_v63, %v949_v40  ;;  %v872_v48 = vadd.f32 %v871_v43, %v702_v41 }
 0x111   :  { %741 = vmatmul.bf16.gmra.mxu0 %v1578_v35  ;;  %821 = vmatmul.bf16.gmra.mxu2 %v1706_v36 }
 0x112   :  { %v1304_v46 = vmax.f32 %v1240_v44, 0.0  ;;  %910 = vmatmul.bf16.gmra.mxu1 %v1582_v37  ;;  %990 = vmatmul.bf16.gmra.mxu3 %v1710_v42  ;;  %v1209_v53 = vadd.f32 %v2350_v63, %v872_v48 }
 0x114   :  { %v1968_v47 = vpack.c.bf16 %v1304_v46, %v1303_v45  ;;  %v782_v49 = vpop.f32.mrf.mxu2  ;;  %v1273_v57 = vmax.f32 %v1209_v53, 0.0 }
 0x115   :  { %v951_v50 = vpop.f32.mrf.mxu3 }
 0x116   :  { %2036 = vst [vmem:[%s2683_s3 + $0xb0] sm:$0xff] %v1968_v47   ;;  %v704_v51 = vpop.f32.mrf.mxu0  ;;  %v952_v55 = vadd.f32 %v951_v50, %v782_v49 }
 0x117   :  { %v873_v52 = vpop.f32.mrf.mxu1 }
 0x118   :  { %v874_v54 = vadd.f32 %v873_v52, %v704_v51  ;;  %v1241_v61 = vadd.f32 %v2350_v63, %v952_v55 }
 0x11a   :  { %v1210_v56 = vadd.f32 %v2350_v63, %v874_v54  ;;  %v1305_v4 = vmax.f32 %v1241_v61, 0.0 }
 0x11c   :  { %v1274_v58 = vmax.f32 %v1210_v56, 0.0  ;;  %v784_v59 = vpop.f32.mrf.mxu2 }
 0x11d   :  { %v953_v60 = vpop.f32.mrf.mxu3 }
 0x11e   :  { %v1893_v62 = vpack.c.bf16 %v1274_v58, %v1273_v57  ;;  %v954_v0 = vadd.f32 %v953_v60, %v784_v59  ;;  %v707_v1 = vpop.f32.mrf.mxu0 }
 0x11f   :  { %v876_v2 = vpop.f32.mrf.mxu1 }
 0x120   :  { %2021 = vst [vmem:[%s2683_s3 + $0x38] sm:$0xff] %v1893_v62   ;;  %v1242_v3 = vadd.f32 %v2350_v63, %v954_v0  ;;  %v877_v7 = vadd.f32 %v876_v2, %v707_v1 }
 0x122   :  { %v1306_v5 = vmax.f32 %v1242_v3, 0.0  ;;  %v1211_v12 = vadd.f32 %v2350_v63, %v877_v7 }
 0x124   :  { %v1973_v6 = vpack.c.bf16 %v1306_v5, %v1305_v4  ;;  %v787_v8 = vpop.f32.mrf.mxu2  ;;  %v1275_v16 = vmax.f32 %v1211_v12, 0.0 }
 0x125   :  { %v956_v9 = vpop.f32.mrf.mxu3 }
 0x126   :  { %2037 = vst [vmem:[%s2683_s3 + $0xb8] sm:$0xff] %v1973_v6   ;;  %v709_v10 = vpop.f32.mrf.mxu0  ;;  %v957_v14 = vadd.f32 %v956_v9, %v787_v8 }
 0x127   :  { %v878_v11 = vpop.f32.mrf.mxu1 }
 0x128   :  { %v879_v13 = vadd.f32 %v878_v11, %v709_v10  ;;  %v1243_v20 = vadd.f32 %v2350_v63, %v957_v14 }
 0x12a   :  { %v1212_v15 = vadd.f32 %v2350_v63, %v879_v13  ;;  %v1307_v26 = vmax.f32 %v1243_v20, 0.0 }
 0x12c   :  { %v1276_v17 = vmax.f32 %v1212_v15, 0.0  ;;  %v789_v18 = vpop.f32.mrf.mxu2 }
 0x12d   :  { %v958_v19 = vpop.f32.mrf.mxu3 }
 0x12e   :  { %v1898_v21 = vpack.c.bf16 %v1276_v17, %v1275_v16  ;;  %v959_v22 = vadd.f32 %v958_v19, %v789_v18  ;;  %v712_v23 = vpop.f32.mrf.mxu0 }
 0x12f   :  { %v881_v24 = vpop.f32.mrf.mxu1 }
 0x130   :  { %2022 = vst [vmem:[%s2683_s3 + $0x40] sm:$0xff] %v1898_v21   ;;  %v1244_v25 = vadd.f32 %v2350_v63, %v959_v22  ;;  %v882_v29 = vadd.f32 %v881_v24, %v712_v23 }
 0x132   :  { %v1308_v27 = vmax.f32 %v1244_v25, 0.0  ;;  %v1213_v34 = vadd.f32 %v2350_v63, %v882_v29 }
 0x134   :  { %v1978_v28 = vpack.c.bf16 %v1308_v27, %v1307_v26  ;;  %v792_v30 = vpop.f32.mrf.mxu2  ;;  %v1277_v38 = vmax.f32 %v1213_v34, 0.0 }
 0x135   :  { %v961_v31 = vpop.f32.mrf.mxu3 }
 0x136   :  { %2038 = vst [vmem:[%s2683_s3 + $0xc0] sm:$0xff] %v1978_v28   ;;  %v714_v32 = vpop.f32.mrf.mxu0  ;;  %v962_v36 = vadd.f32 %v961_v31, %v792_v30 }
 0x137   :  { %v883_v33 = vpop.f32.mrf.mxu1 }
 0x138   :  { %v884_v35 = vadd.f32 %v883_v33, %v714_v32  ;;  %v1245_v42 = vadd.f32 %v2350_v63, %v962_v36 }
 0x13a   :  { %v1214_v37 = vadd.f32 %v2350_v63, %v884_v35  ;;  %v1309_v48 = vmax.f32 %v1245_v42, 0.0 }
 0x13c   :  { %v1278_v39 = vmax.f32 %v1214_v37, 0.0  ;;  %v794_v40 = vpop.f32.mrf.mxu2 }
 0x13d   :  { %v963_v41 = vpop.f32.mrf.mxu3 }
 0x13e   :  { %v1903_v43 = vpack.c.bf16 %v1278_v39, %v1277_v38  ;;  %v964_v44 = vadd.f32 %v963_v41, %v794_v40  ;;  %v717_v45 = vpop.f32.mrf.mxu0 }
 0x13f   :  { %v886_v46 = vpop.f32.mrf.mxu1 }
 0x140   :  { %2023 = vst [vmem:[%s2683_s3 + $0x48] sm:$0xff] %v1903_v43   ;;  %v1246_v47 = vadd.f32 %v2350_v63, %v964_v44  ;;  %v887_v51 = vadd.f32 %v886_v46, %v717_v45 }
 0x142   :  { %v1310_v49 = vmax.f32 %v1246_v47, 0.0  ;;  %v1215_v56 = vadd.f32 %v2350_v63, %v887_v51 }
 0x144   :  { %v1983_v50 = vpack.c.bf16 %v1310_v49, %v1309_v48  ;;  %v797_v52 = vpop.f32.mrf.mxu2  ;;  %v1279_v60 = vmax.f32 %v1215_v56, 0.0 }
 0x145   :  { %v966_v53 = vpop.f32.mrf.mxu3 }
 0x146   :  { %2039 = vst [vmem:[%s2683_s3 + $0xc8] sm:$0xff] %v1983_v50   ;;  %v719_v54 = vpop.f32.mrf.mxu0  ;;  %v967_v58 = vadd.f32 %v966_v53, %v797_v52 }
 0x147   :  { %v888_v55 = vpop.f32.mrf.mxu1 }
 0x148   :  { %v889_v57 = vadd.f32 %v888_v55, %v719_v54  ;;  %v1247_v1 = vadd.f32 %v2350_v63, %v967_v58 }
 0x14a   :  { %v1216_v59 = vadd.f32 %v2350_v63, %v889_v57  ;;  %v1311_v7 = vmax.f32 %v1247_v1, 0.0 }
 0x14c   :  { %v1280_v61 = vmax.f32 %v1216_v59, 0.0  ;;  %v799_v62 = vpop.f32.mrf.mxu2 }
 0x14d   :  { %v968_v0 = vpop.f32.mrf.mxu3 }
 0x14e   :  { %v1908_v2 = vpack.c.bf16 %v1280_v61, %v1279_v60  ;;  %v969_v3 = vadd.f32 %v968_v0, %v799_v62  ;;  %v722_v4 = vpop.f32.mrf.mxu0 }
 0x14f   :  { %v891_v5 = vpop.f32.mrf.mxu1 }
 0x150   :  { %2024 = vst [vmem:[%s2683_s3 + $0x50] sm:$0xff] %v1908_v2   ;;  %v1248_v6 = vadd.f32 %v2350_v63, %v969_v3  ;;  %v892_v10 = vadd.f32 %v891_v5, %v722_v4 }
 0x152   :  { %v1312_v8 = vmax.f32 %v1248_v6, 0.0  ;;  %v1217_v15 = vadd.f32 %v2350_v63, %v892_v10 }
 0x154   :  { %v1988_v9 = vpack.c.bf16 %v1312_v8, %v1311_v7  ;;  %v802_v11 = vpop.f32.mrf.mxu2  ;;  %v1281_v19 = vmax.f32 %v1217_v15, 0.0 }
 0x155   :  { %v971_v12 = vpop.f32.mrf.mxu3 }
 0x156   :  { %2040 = vst [vmem:[%s2683_s3 + $0xd0] sm:$0xff] %v1988_v9   ;;  %v724_v13 = vpop.f32.mrf.mxu0  ;;  %v972_v17 = vadd.f32 %v971_v12, %v802_v11 }
 0x157   :  { %v893_v14 = vpop.f32.mrf.mxu1 }
 0x158   :  { %v894_v16 = vadd.f32 %v893_v14, %v724_v13  ;;  %v1249_v23 = vadd.f32 %v2350_v63, %v972_v17 }
 0x15a   :  { %v1218_v18 = vadd.f32 %v2350_v63, %v894_v16  ;;  %v1313_v29 = vmax.f32 %v1249_v23, 0.0 }
 0x15c   :  { %v1282_v20 = vmax.f32 %v1218_v18, 0.0  ;;  %v804_v21 = vpop.f32.mrf.mxu2 }
 0x15d   :  { %v973_v22 = vpop.f32.mrf.mxu3 }
 0x15e   :  { %v1913_v24 = vpack.c.bf16 %v1282_v20, %v1281_v19  ;;  %v974_v25 = vadd.f32 %v973_v22, %v804_v21  ;;  %v727_v26 = vpop.f32.mrf.mxu0 }
 0x15f   :  { %v896_v27 = vpop.f32.mrf.mxu1 }
 0x160   :  { %2025 = vst [vmem:[%s2683_s3 + $0x58] sm:$0xff] %v1913_v24   ;;  %v1250_v28 = vadd.f32 %v2350_v63, %v974_v25  ;;  %v897_v32 = vadd.f32 %v896_v27, %v727_v26 }
 0x162   :  { %v1314_v30 = vmax.f32 %v1250_v28, 0.0  ;;  %v1219_v37 = vadd.f32 %v2350_v63, %v897_v32 }
 0x164   :  { %v1993_v31 = vpack.c.bf16 %v1314_v30, %v1313_v29  ;;  %v807_v33 = vpop.f32.mrf.mxu2  ;;  %v1283_v41 = vmax.f32 %v1219_v37, 0.0 }
 0x165   :  { %v976_v34 = vpop.f32.mrf.mxu3 }
 0x166   :  { %2041 = vst [vmem:[%s2683_s3 + $0xd8] sm:$0xff] %v1993_v31   ;;  %v729_v35 = vpop.f32.mrf.mxu0  ;;  %v977_v39 = vadd.f32 %v976_v34, %v807_v33 }
 0x167   :  { %v898_v36 = vpop.f32.mrf.mxu1 }
 0x168   :  { %v899_v38 = vadd.f32 %v898_v36, %v729_v35  ;;  %v1251_v45 = vadd.f32 %v2350_v63, %v977_v39 }
 0x16a   :  { %v1220_v40 = vadd.f32 %v2350_v63, %v899_v38  ;;  %v1315_v51 = vmax.f32 %v1251_v45, 0.0 }
 0x16c   :  { %v1284_v42 = vmax.f32 %v1220_v40, 0.0  ;;  %v809_v43 = vpop.f32.mrf.mxu2 }
 0x16d   :  { %v978_v44 = vpop.f32.mrf.mxu3 }
 0x16e   :  { %v1918_v46 = vpack.c.bf16 %v1284_v42, %v1283_v41  ;;  %v979_v47 = vadd.f32 %v978_v44, %v809_v43  ;;  %v732_v48 = vpop.f32.mrf.mxu0 }
 0x16f   :  { %v901_v49 = vpop.f32.mrf.mxu1 }
 0x170   :  { %2026 = vst [vmem:[%s2683_s3 + $0x60] sm:$0xff] %v1918_v46   ;;  %v1252_v50 = vadd.f32 %v2350_v63, %v979_v47  ;;  %v902_v54 = vadd.f32 %v901_v49, %v732_v48 }
 0x172   :  { %v1316_v52 = vmax.f32 %v1252_v50, 0.0  ;;  %v1221_v59 = vadd.f32 %v2350_v63, %v902_v54 }
 0x174   :  { %v1998_v53 = vpack.c.bf16 %v1316_v52, %v1315_v51  ;;  %v812_v55 = vpop.f32.mrf.mxu2  ;;  %v1285_v0 = vmax.f32 %v1221_v59, 0.0 }
 0x175   :  { %v981_v56 = vpop.f32.mrf.mxu3 }
 0x176   :  { %2042 = vst [vmem:[%s2683_s3 + $0xe0] sm:$0xff] %v1998_v53   ;;  %v734_v57 = vpop.f32.mrf.mxu0  ;;  %v982_v61 = vadd.f32 %v981_v56, %v812_v55 }
 0x177   :  { %v903_v58 = vpop.f32.mrf.mxu1 }
 0x178   :  { %v904_v60 = vadd.f32 %v903_v58, %v734_v57  ;;  %v1253_v4 = vadd.f32 %v2350_v63, %v982_v61 }
 0x17a   :  { %v1222_v62 = vadd.f32 %v2350_v63, %v904_v60  ;;  %v1317_v10 = vmax.f32 %v1253_v4, 0.0 }
 0x17c   :  { %v1286_v1 = vmax.f32 %v1222_v62, 0.0  ;;  %v814_v2 = vpop.f32.mrf.mxu2 }
 0x17d   :  { %v983_v3 = vpop.f32.mrf.mxu3 }
 0x17e   :  { %v1923_v5 = vpack.c.bf16 %v1286_v1, %v1285_v0  ;;  %v984_v6 = vadd.f32 %v983_v3, %v814_v2  ;;  %v737_v7 = vpop.f32.mrf.mxu0 }
 0x17f   :  { %v906_v8 = vpop.f32.mrf.mxu1 }
 0x180   :  { %2027 = vst [vmem:[%s2683_s3 + $0x68] sm:$0xff] %v1923_v5   ;;  %v1254_v9 = vadd.f32 %v2350_v63, %v984_v6  ;;  %v907_v13 = vadd.f32 %v906_v8, %v737_v7 }
 0x182   :  { %v1318_v11 = vmax.f32 %v1254_v9, 0.0  ;;  %v1223_v18 = vadd.f32 %v2350_v63, %v907_v13 }
 0x184   :  { %v2003_v12 = vpack.c.bf16 %v1318_v11, %v1317_v10  ;;  %v817_v14 = vpop.f32.mrf.mxu2  ;;  %v1287_v22 = vmax.f32 %v1223_v18, 0.0 }
 0x185   :  { %v986_v15 = vpop.f32.mrf.mxu3 }
 0x186   :  { %2043 = vst [vmem:[%s2683_s3 + $0xe8] sm:$0xff] %v2003_v12   ;;  %v739_v16 = vpop.f32.mrf.mxu0  ;;  %v987_v20 = vadd.f32 %v986_v15, %v817_v14 }
 0x187   :  { %v908_v17 = vpop.f32.mrf.mxu1 }
 0x188   :  { %v909_v19 = vadd.f32 %v908_v17, %v739_v16  ;;  %v1255_v26 = vadd.f32 %v2350_v63, %v987_v20 }
 0x18a   :  { %v1224_v21 = vadd.f32 %v2350_v63, %v909_v19  ;;  %v1319_v32 = vmax.f32 %v1255_v26, 0.0 }
 0x18c   :  { %v1288_v23 = vmax.f32 %v1224_v21, 0.0  ;;  %v819_v24 = vpop.f32.mrf.mxu2 }
 0x18d   :  { %v988_v25 = vpop.f32.mrf.mxu3 }
 0x18e   :  { %v1928_v27 = vpack.c.bf16 %v1288_v23, %v1287_v22  ;;  %v989_v28 = vadd.f32 %v988_v25, %v819_v24  ;;  %v742_v29 = vpop.f32.mrf.mxu0 }
 0x18f   :  { %v911_v30 = vpop.f32.mrf.mxu1 }
 0x190   :  { %2028 = vst [vmem:[%s2683_s3 + $0x70] sm:$0xff] %v1928_v27   ;;  %v1256_v31 = vadd.f32 %v2350_v63, %v989_v28  ;;  %v912_v35 = vadd.f32 %v911_v30, %v742_v29 }
 0x192   :  { %v1320_v33 = vmax.f32 %v1256_v31, 0.0  ;;  %v1225_v40 = vadd.f32 %v2350_v63, %v912_v35 }
 0x194   :  { %v2008_v34 = vpack.c.bf16 %v1320_v33, %v1319_v32  ;;  %v822_v36 = vpop.f32.mrf.mxu2  ;;  %v1289_v44 = vmax.f32 %v1225_v40, 0.0 }
 0x195   :  { %v991_v37 = vpop.f32.mrf.mxu3 }
 0x196   :  { %2044 = vst [vmem:[%s2683_s3 + $0xf0] sm:$0xff] %v2008_v34   ;;  %v744_v38 = vpop.f32.mrf.mxu0  ;;  %v992_v42 = vadd.f32 %v991_v37, %v822_v36 }
 0x197   :  { %v913_v39 = vpop.f32.mrf.mxu1 }
 0x198   :  { %v914_v41 = vadd.f32 %v913_v39, %v744_v38  ;;  %v1257_v48 = vadd.f32 %v2350_v63, %v992_v42 }
 0x19a   :  { %v1226_v43 = vadd.f32 %v2350_v63, %v914_v41  ;;  %v1321_v52 = vmax.f32 %v1257_v48, 0.0 }
 0x19c   :  { %v1290_v45 = vmax.f32 %v1226_v43, 0.0  ;;  %v824_v46 = vpop.f32.mrf.mxu2 }
 0x19d   :  { %v993_v47 = vpop.f32.mrf.mxu3 }
 0x19e   :  { %v1933_v49 = vpack.c.bf16 %v1290_v45, %v1289_v44  ;;  %v994_v50 = vadd.f32 %v993_v47, %v824_v46 }
 0x1a0   :  { %2029 = vst [vmem:[%s2683_s3 + $0x78] sm:$0xff] %v1933_v49   ;;  %v1258_v51 = vadd.f32 %v2350_v63, %v994_v50 }
 0x1a2   :  { %v1322_v53 = vmax.f32 %v1258_v51, 0.0 }
 0x1a4   :  { %v2013_v54 = vpack.c.bf16 %v1322_v53, %v1321_v52 }
 0x1a6   :  { %2045 = vst [vmem:[%s2683_s3 + $0xf8] sm:$0xff] %v2013_v54  }

// kernel: _lambda_.16
= control target key start
LH: loop header
LB: loop body
LE: loop exit
PB: predicated region body
PF: predicated region fallthrough
CT: control target
= control target key end

     0   :  { %vm688_vm0 = vcmask 519168   ;;  %s1466_s0 = inlined_call_operand.vmem [shape: bf16[128,64], index: 0, kind: input, shape index: {}]   ;;  %s1467_s1 = inlined_call_operand.vmem [shape: bf16[128,64], index: 1, kind: input, shape index: {}]   ;;  %s1468_s2 = inlined_call_operand.vmem [shape: bf16[128,64], index: 2, kind: input, shape index: {}]   ;;  %s1469_s3 = inlined_call_operand.vmem [shape: bf16[128,64], index: 3, kind: input, shape index: {}]   ;;  %s1470_s4 = inlined_call_operand.vmem [shape: bf16[128,64], index: 4, kind: input, shape index: {}]   ;;  %s1471_s5 = inlined_call_operand.vmem [shape: bf16[128,64], index: 5, kind: input, shape index: {}]   ;;  %s1472_s6 = inlined_call_operand.vmem [shape: bf16[128,64], index: 6, kind: input, shape index: {}]   ;;  %s1473_s7 = inlined_call_operand.vmem [shape: bf16[128,64], index: 7, kind: input, shape index: {}]   ;;  %s1474_s8 = inlined_call_operand.vmem [shape: bf16[128,64], index: 8, kind: input, shape index: {}]   ;;  %s1475_s9 = inlined_call_operand.vmem [shape: bf16[128,64], index: 9, kind: output, shape index: {}]  }
   0x1   :  { %v710_v0 = vld [vmem:[%s1466_s0] sm:$0xff]   ;;  %v997_v17 = vld [vmem:[%s1466_s0 + $0x8] sm:$0xff]   ;;  %v998_v54 = vld [vmem:[%s1466_s0 + $0x10] sm:$0xff]  }
   0x2   :  { %v742_v1 = vld [vmem:[%s1467_s1] sm:$0xff]   ;;  %v711_v3 = vunpack.c.l.bf16 %v710_v0  ;;  %v712_v9 = vunpack.c.h.bf16 %v710_v0  ;;  %v1004_v18 = vld [vmem:[%s1467_s1 + $0x8] sm:$0xff]   ;;  %v715_v31 = vunpack.c.l.bf16 %v997_v17  ;;  %v716_v48 = vunpack.c.h.bf16 %v997_v17  ;;  %v1005_v59 = vld [vmem:[%s1467_s1 + $0x10] sm:$0xff]  }
   0x3   :  { %v774_v2 = vld [vmem:[%s1468_s2] sm:$0xff]   ;;  %v743_v4 = vunpack.c.l.bf16 %v742_v1  ;;  %v744_v13 = vunpack.c.h.bf16 %v742_v1  ;;  %v1011_v23 = vld [vmem:[%s1468_s2 + $0x8] sm:$0xff]   ;;  %v747_v32 = vunpack.c.l.bf16 %v1004_v18  ;;  %v748_v52 = vunpack.c.h.bf16 %v1004_v18  ;;  %v1012_v0 = vld [vmem:[%s1468_s2 + $0x10] sm:$0xff]  }
   0x4   :  { %v775_v5 = vunpack.c.l.bf16 %v774_v2  ;;  %v806_v6 = vld [vmem:[%s1469_s3] sm:$0xff]   ;;  %v776_v21 = vunpack.c.h.bf16 %v774_v2  ;;  %v1018_v28 = vld [vmem:[%s1469_s3 + $0x8] sm:$0xff]   ;;  %v779_v37 = vunpack.c.l.bf16 %v1011_v23  ;;  %v780_v53 = vunpack.c.h.bf16 %v1011_v23  ;;  %v1019_v1 = vld [vmem:[%s1469_s3 + $0x10] sm:$0xff]  }
   0x5   :  { %v838_v7 = vld [vmem:[%s1470_s4] sm:$0xff]   ;;  %v96_v14 = vmax.f32 %v711_v3, %v743_v4  ;;  %v807_v15 = vunpack.c.l.bf16 %v806_v6  ;;  %v97_v20 = vmax.f32 %v712_v9, %v744_v13  ;;  %v808_v22 = vunpack.c.h.bf16 %v806_v6  ;;  %v1025_v33 = vld [vmem:[%s1470_s4 + $0x8] sm:$0xff]  }
   0x6   :  { %v870_v8 = vld [vmem:[%s1471_s5] sm:$0xff]   ;;  %v839_v16 = vunpack.c.l.bf16 %v838_v7  ;;  %v840_v30 = vunpack.c.h.bf16 %v838_v7  ;;  %v98_v40 = vmax.f32 %v715_v31, %v747_v32  ;;  %v811_v41 = vunpack.c.l.bf16 %v1018_v28  ;;  %v1032_v42 = vld [vmem:[%s1471_s5 + $0x8] sm:$0xff]   ;;  %v1207_v31 = vld [vmem:[%s1472_s6 + $0x10] sm:$0xff]  }
   0x7   :  { %v902_v10 = vld [vmem:[%s1472_s6] sm:$0xff]   ;;  %v871_v19 = vunpack.c.l.bf16 %v870_v8  ;;  %v176_v24 = vmax.f32 %v96_v14, %v775_v5  ;;  %v177_v29 = vmax.f32 %v97_v20, %v776_v21  ;;  %v872_v35 = vunpack.c.h.bf16 %v870_v8  ;;  %v1165_v43 = vld [vmem:[%s1472_s6 + $0x8] sm:$0xff]  }
   0x8   :  { %v1134_v11 = vld [vmem:[%s1473_s7] sm:$0xff]   ;;  %v903_v25 = vunpack.c.l.bf16 %v902_v10  ;;  %v904_v36 = vunpack.c.h.bf16 %v902_v10  ;;  %v1170_v44 = vld [vmem:[%s1473_s7 + $0x8] sm:$0xff]   ;;  %v843_v47 = vunpack.c.l.bf16 %v1025_v33  ;;  %v178_v50 = vmax.f32 %v98_v40, %v779_v37  ;;  %v1026_v10 = vld [vmem:[%s1470_s4 + $0x10] sm:$0xff]  }
   0x9   :  { %v1139_v12 = vld [vmem:[%s1474_s8] sm:$0xff]   ;;  %v935_v26 = vunpack.c.l.bf16 %v1134_v11  ;;  %v256_v34 = vmax.f32 %v176_v24, %v807_v15  ;;  %v257_v38 = vmax.f32 %v177_v29, %v808_v22  ;;  %v936_v39 = vunpack.c.h.bf16 %v1134_v11  ;;  %v1176_v51 = vld [vmem:[%s1474_s8 + $0x8] sm:$0xff]   ;;  %v1212_v37 = vld [vmem:[%s1473_s7 + $0x10] sm:$0xff]  }
   0xa   :  { %v967_v27 = vunpack.c.l.bf16 %v1139_v12  ;;  %v968_v46 = vunpack.c.h.bf16 %v1139_v12  ;;  %v875_v56 = vunpack.c.l.bf16 %v1032_v42  ;;  %v907_v57 = vunpack.c.l.bf16 %v1165_v43 }
   0xb   :  { %v336_v45 = vmax.f32 %v256_v34, %v839_v16  ;;  %v337_v49 = vmax.f32 %v257_v38, %v840_v30  ;;  %v939_v58 = vunpack.c.l.bf16 %v1170_v44  ;;  %v258_v61 = vmax.f32 %v178_v50, %v811_v41  ;;  %v1054_v50 = vld [vmem:[%s1474_s8 + $0x10] sm:$0xff]  }
   0xc   :  { %v99_v62 = vmax.f32 %v716_v48, %v748_v52  ;;  %v812_v63 = vunpack.c.h.bf16 %v1018_v28  ;;  %v971_v3 = vunpack.c.l.bf16 %v1176_v51  ;;  %v844_v4 = vunpack.c.h.bf16 %v1025_v33  ;;  %v1013_v48 = vld [vmem:[%s1468_s2 + $0x18] sm:$0xff]  }
   0xd   :  { %v416_v55 = vmax.f32 %v336_v45, %v871_v19  ;;  %v417_v60 = vmax.f32 %v337_v49, %v872_v35  ;;  %v719_v5 = vunpack.c.l.bf16 %v998_v54  ;;  %v338_v7 = vmax.f32 %v258_v61, %v843_v47  ;;  %v1199_v19 = vld [vmem:[%s1471_s5 + $0x10] sm:$0xff]   ;;  %v1006_v47 = vld [vmem:[%s1467_s1 + $0x18] sm:$0xff]  }
   0xe   :  { %v179_v8 = vmax.f32 %v99_v62, %v780_v53  ;;  %v751_v9 = vunpack.c.l.bf16 %v1005_v59  ;;  %v876_v12 = vunpack.c.h.bf16 %v1032_v42  ;;  %v783_v13 = vunpack.c.l.bf16 %v1012_v0  ;;  %v999_v42 = vld [vmem:[%s1466_s0 + $0x18] sm:$0xff]  }
   0xf   :  { %v496_v2 = vmax.f32 %v416_v55, %v903_v25  ;;  %v497_v6 = vmax.f32 %v417_v60, %v904_v36  ;;  %v815_v14 = vunpack.c.l.bf16 %v1019_v1  ;;  %v418_v16 = vmax.f32 %v338_v7, %v875_v56  ;;  %v1027_v62 = vld [vmem:[%s1470_s4 + $0x18] sm:$0xff]  }
  0x10   :  { %v259_v17 = vmax.f32 %v179_v8, %v812_v63  ;;  %v100_v18 = vmax.f32 %v719_v5, %v751_v9  ;;  %v908_v21 = vunpack.c.h.bf16 %v1165_v43  ;;  %v940_v22 = vunpack.c.h.bf16 %v1170_v44  ;;  %v1253_v7 = vld [vmem:[%s1471_s5 + $0x18] sm:$0xff]  }
  0x11   :  { %v576_v11 = vmax.f32 %v496_v2, %v935_v26  ;;  %v577_v15 = vmax.f32 %v497_v6, %v936_v39  ;;  %v847_v23 = vunpack.c.l.bf16 %v1026_v10  ;;  %v498_v25 = vmax.f32 %v418_v16, %v907_v57  ;;  %v1020_v57 = vld [vmem:[%s1469_s3 + $0x18] sm:$0xff]  }
  0x12   :  { %v339_v26 = vmax.f32 %v259_v17, %v844_v4  ;;  %v180_v28 = vmax.f32 %v100_v18, %v783_v13  ;;  %v879_v30 = vunpack.c.l.bf16 %v1199_v19  ;;  %v720_v32 = vunpack.c.h.bf16 %v998_v54  ;;  %v1258_v8 = vld [vmem:[%s1472_s6 + $0x18] sm:$0xff]   ;;  %v1000_v18 = vld [vmem:[%s1466_s0 + $0x20] sm:$0xff]  }
  0x13   :  { %v656_v20 = vmax.f32 %v576_v11, %v967_v27  ;;  %v657_v24 = vmax.f32 %v577_v15, %v968_v46  ;;  %v752_v33 = vunpack.c.h.bf16 %v1005_v59  ;;  %v578_v34 = vmax.f32 %v498_v25, %v939_v58  ;;  %v1263_v15 = vld [vmem:[%s1473_s7 + $0x18] sm:$0xff]  }
  0x14   :  { %v419_v35 = vmax.f32 %v339_v26, %v876_v12  ;;  %v260_v36 = vmax.f32 %v180_v28, %v815_v14  ;;  %v972_v38 = vunpack.c.h.bf16 %v1176_v51  ;;  %v784_v40 = vunpack.c.h.bf16 %v1012_v0  ;;  %v1280_v26 = vld [vmem:[%s1474_s8 + $0x18] sm:$0xff]  }
  0x15   :  { %v672_v29 = vpack.c.bf16 %v656_v20, %v656_v20  ;;  %v673_v27 = vpack.c.bf16 %v657_v24, %v657_v24  ;;  %v101_v39 = vmax.f32 %v720_v32, %v752_v33  ;;  %v816_v41 = vunpack.c.h.bf16 %v1019_v1 }
  0x16   :  { %v658_v43 = vmax.f32 %v578_v34, %v971_v3  ;;  %v499_v44 = vmax.f32 %v419_v35, %v908_v21  ;;  %v340_v45 = vmax.f32 %v260_v36, %v847_v23  ;;  %v911_v46 = vunpack.c.l.bf16 %v1207_v31  ;;  %v1007_v23 = vld [vmem:[%s1467_s1 + $0x20] sm:$0xff]  }
  0x17   :  { %689 = vst.msk [vmem:[%s1475_s9] sm:$0xf] %vm688_vm0, %v672_v29  ;;  %v943_v49 = vunpack.c.l.bf16 %v1212_v37  ;;  %v181_v51 = vmax.f32 %v101_v39, %v784_v40  ;;  %v848_v52 = vunpack.c.h.bf16 %v1026_v10  ;;  %v723_v56 = vunpack.c.l.bf16 %v999_v42  ;;  %v1292_v39 = vld [vmem:[%s1470_s4 + $0x20] sm:$0xff]  }
  0x18   :  { %690 = vst.msk [vmem:[%s1475_s9 + $0x4] sm:$0xf] %vm688_vm0, %v673_v27  ;;  %v674_v53 = vpack.c.bf16 %v658_v43, %v658_v43  ;;  %v579_v54 = vmax.f32 %v499_v44, %v940_v22  ;;  %v420_v55 = vmax.f32 %v340_v45, %v879_v30  ;;  %v880_v59 = vunpack.c.h.bf16 %v1199_v19  ;;  %v1014_v30 = vld [vmem:[%s1468_s2 + $0x20] sm:$0xff]  }
  0x19   :  { %v261_v58 = vmax.f32 %v181_v51, %v816_v41  ;;  %v755_v60 = vunpack.c.l.bf16 %v1006_v47  ;;  %v787_v61 = vunpack.c.l.bf16 %v1013_v48  ;;  %v975_v1 = vunpack.c.l.bf16 %v1054_v50 }
  0x1a   :  { %691 = vst.msk [vmem:[%s1475_s9 + $0x8] sm:$0xf] %vm688_vm0, %v674_v53  ;;  %v659_v63 = vmax.f32 %v579_v54, %v972_v38  ;;  %v500_v0 = vmax.f32 %v420_v55, %v911_v46  ;;  %v912_v2 = vunpack.c.h.bf16 %v1207_v31  ;;  %v944_v4 = vunpack.c.h.bf16 %v1212_v37  ;;  %v1021_v31 = vld [vmem:[%s1469_s3 + $0x20] sm:$0xff]  }
  0x1b   :  { %v341_v3 = vmax.f32 %v261_v58, %v848_v52  ;;  %v102_v5 = vmax.f32 %v723_v56, %v755_v60  ;;  %v819_v6 = vunpack.c.l.bf16 %v1020_v57  ;;  %v851_v11 = vunpack.c.l.bf16 %v1027_v62  ;;  %v1311_v52 = vld [vmem:[%s1472_s6 + $0x20] sm:$0xff]  }
  0x1c   :  { %v675_v9 = vpack.c.bf16 %v659_v63, %v659_v63  ;;  %v580_v10 = vmax.f32 %v500_v0, %v943_v49  ;;  %v724_v12 = vunpack.c.h.bf16 %v999_v42  ;;  %v756_v16 = vunpack.c.h.bf16 %v1006_v47  ;;  %v1316_v58 = vld [vmem:[%s1473_s7 + $0x20] sm:$0xff]   ;;  %v1001_v0 = vld [vmem:[%s1466_s0 + $0x28] sm:$0xff]  }
  0x1d   :  { %v421_v13 = vmax.f32 %v341_v3, %v880_v59  ;;  %v182_v14 = vmax.f32 %v102_v5, %v787_v61  ;;  %v788_v17 = vunpack.c.h.bf16 %v1013_v48  ;;  %v976_v20 = vunpack.c.h.bf16 %v1054_v50  ;;  %v1303_v48 = vld [vmem:[%s1471_s5 + $0x20] sm:$0xff]   ;;  %v1008_v5 = vld [vmem:[%s1467_s1 + $0x28] sm:$0xff]  }
  0x1e   :  { %692 = vst.msk [vmem:[%s1475_s9 + $0xc] sm:$0xf] %vm688_vm0, %v675_v9  ;;  %v660_v19 = vmax.f32 %v580_v10, %v975_v1  ;;  %v883_v21 = vunpack.c.l.bf16 %v1253_v7  ;;  %v915_v22 = vunpack.c.l.bf16 %v1258_v8  ;;  %v103_v28 = vmax.f32 %v724_v12, %v756_v16  ;;  %v1321_v59 = vld [vmem:[%s1474_s8 + $0x20] sm:$0xff]  }
  0x1f   :  { %v501_v24 = vmax.f32 %v421_v13, %v912_v2  ;;  %v262_v25 = vmax.f32 %v182_v14, %v819_v6  ;;  %v820_v29 = vunpack.c.h.bf16 %v1020_v57  ;;  %v947_v33 = vunpack.c.l.bf16 %v1263_v15  ;;  %v1015_v6 = vld [vmem:[%s1468_s2 + $0x28] sm:$0xff]  }
  0x20   :  { %v676_v32 = vpack.c.bf16 %v660_v19, %v660_v19  ;;  %v852_v27 = vunpack.c.h.bf16 %v1027_v62  ;;  %v727_v34 = vunpack.c.l.bf16 %v1000_v18  ;;  %v183_v37 = vmax.f32 %v103_v28, %v788_v17 }
  0x21   :  { %v581_v35 = vmax.f32 %v501_v24, %v944_v4  ;;  %v342_v36 = vmax.f32 %v262_v25, %v851_v11  ;;  %v759_v38 = vunpack.c.l.bf16 %v1007_v23  ;;  %v979_v40 = vunpack.c.l.bf16 %v1280_v26 }
  0x22   :  { %693 = vst.msk [vmem:[%s1475_s9 + $0x10] sm:$0xf] %vm688_vm0, %v676_v32  ;;  %v884_v41 = vunpack.c.h.bf16 %v1253_v7  ;;  %v791_v42 = vunpack.c.l.bf16 %v1014_v30  ;;  %v823_v43 = vunpack.c.l.bf16 %v1021_v31  ;;  %v263_v46 = vmax.f32 %v183_v37, %v820_v29  ;;  %v1366_v37 = vld [vmem:[%s1473_s7 + $0x28] sm:$0xff]  }
  0x23   :  { %v661_v44 = vmax.f32 %v581_v35, %v976_v20  ;;  %v422_v45 = vmax.f32 %v342_v36, %v883_v21  ;;  %v104_v47 = vmax.f32 %v727_v34, %v759_v38  ;;  %v916_v49 = vunpack.c.h.bf16 %v1258_v8  ;;  %v1029_v20 = vld [vmem:[%s1470_s4 + $0x28] sm:$0xff]  }
  0x24   :  { %v948_v50 = vunpack.c.h.bf16 %v1263_v15  ;;  %v855_v51 = vunpack.c.l.bf16 %v1292_v39  ;;  %v728_v53 = vunpack.c.h.bf16 %v1000_v18  ;;  %v343_v56 = vmax.f32 %v263_v46, %v852_v27  ;;  %v1022_v15 = vld [vmem:[%s1469_s3 + $0x28] sm:$0xff]  }
  0x25   :  { %v677_v54 = vpack.c.bf16 %v661_v44, %v661_v44  ;;  %v502_v55 = vmax.f32 %v422_v45, %v915_v22  ;;  %v184_v57 = vmax.f32 %v104_v47, %v791_v42  ;;  %v980_v60 = vunpack.c.h.bf16 %v1280_v26  ;;  %v1361_v36 = vld [vmem:[%s1472_s6 + $0x28] sm:$0xff]  }
  0x26   :  { %v887_v61 = vunpack.c.l.bf16 %v1303_v48  ;;  %v760_v62 = vunpack.c.h.bf16 %v1007_v23  ;;  %v792_v63 = vunpack.c.h.bf16 %v1014_v30  ;;  %v423_v2 = vmax.f32 %v343_v56, %v884_v41  ;;  %v1036_v30 = vld [vmem:[%s1471_s5 + $0x28] sm:$0xff]  }
  0x27   :  { %694 = vst.msk [vmem:[%s1475_s9 + $0x14] sm:$0xf] %vm688_vm0, %v677_v54  ;;  %v582_v1 = vmax.f32 %v502_v55, %v947_v33  ;;  %v264_v3 = vmax.f32 %v184_v57, %v823_v43  ;;  %v919_v4 = vunpack.c.l.bf16 %v1311_v52  ;;  %v951_v7 = vunpack.c.l.bf16 %v1316_v58  ;;  %v1057_v57 = vld [vmem:[%s1474_s8 + $0x28] sm:$0xff]  }
  0x28   :  { %v983_v8 = vunpack.c.l.bf16 %v1321_v59  ;;  %v105_v9 = vmax.f32 %v728_v53, %v760_v62  ;;  %v824_v10 = vunpack.c.h.bf16 %v1021_v31  ;;  %v503_v12 = vmax.f32 %v423_v2, %v916_v49  ;;  %v1009_v49 = vld [vmem:[%s1467_s1 + $0x30] sm:$0xff]  }
  0x29   :  { %v662_v11 = vmax.f32 %v582_v1, %v979_v40  ;;  %v344_v13 = vmax.f32 %v264_v3, %v855_v51  ;;  %v731_v14 = vunpack.c.l.bf16 %v1001_v0  ;;  %v856_v17 = vunpack.c.h.bf16 %v1292_v39 }
  0x2a   :  { %v185_v16 = vmax.f32 %v105_v9, %v792_v63  ;;  %v763_v18 = vunpack.c.l.bf16 %v1008_v5  ;;  %v795_v19 = vunpack.c.l.bf16 %v1015_v6  ;;  %v583_v22 = vmax.f32 %v503_v12, %v948_v50  ;;  %v1016_v50 = vld [vmem:[%s1468_s2 + $0x30] sm:$0xff]  }
  0x2b   :  { %v678_v21 = vpack.c.bf16 %v662_v11, %v662_v11  ;;  %v424_v23 = vmax.f32 %v344_v13, %v887_v61  ;;  %v888_v24 = vunpack.c.h.bf16 %v1303_v48  ;;  %v920_v26 = vunpack.c.h.bf16 %v1311_v52  ;;  %v1002_v48 = vld [vmem:[%s1466_s0 + $0x30] sm:$0xff]  }
  0x2c   :  { %v265_v25 = vmax.f32 %v185_v16, %v824_v10  ;;  %v106_v28 = vmax.f32 %v731_v14, %v763_v18  ;;  %v827_v29 = vunpack.c.l.bf16 %v1022_v15  ;;  %v663_v31 = vmax.f32 %v583_v22, %v980_v60  ;;  %v1023_v61 = vld [vmem:[%s1469_s3 + $0x30] sm:$0xff]  }
  0x2d   :  { %695 = vst.msk [vmem:[%s1475_s9 + $0x18] sm:$0xf] %vm688_vm0, %v678_v21  ;;  %v504_v32 = vmax.f32 %v424_v23, %v919_v4  ;;  %v952_v33 = vunpack.c.h.bf16 %v1316_v58  ;;  %v859_v27 = vunpack.c.l.bf16 %v1029_v20  ;;  %v732_v38 = vunpack.c.h.bf16 %v1001_v0  ;;  %v1037_v14 = vld [vmem:[%s1471_s5 + $0x30] sm:$0xff]  }
  0x2e   :  { %v345_v34 = vmax.f32 %v265_v25, %v856_v17  ;;  %v186_v35 = vmax.f32 %v106_v28, %v795_v19  ;;  %v764_v39 = vunpack.c.h.bf16 %v1008_v5  ;;  %v679_v40 = vpack.c.bf16 %v663_v31, %v663_v31  ;;  %v1030_v5 = vld [vmem:[%s1470_s4 + $0x30] sm:$0xff]   ;;  %v1010_v31 = vld [vmem:[%s1467_s1 + $0x38] sm:$0xff]  }
  0x2f   :  { %v584_v41 = vmax.f32 %v504_v32, %v951_v7  ;;  %v891_v42 = vunpack.c.l.bf16 %v1036_v30  ;;  %v796_v43 = vunpack.c.h.bf16 %v1015_v6  ;;  %v828_v47 = vunpack.c.h.bf16 %v1022_v15  ;;  %v1044_v17 = vld [vmem:[%s1472_s6 + $0x30] sm:$0xff]  }
  0x30   :  { %v425_v44 = vmax.f32 %v345_v34, %v888_v24  ;;  %v266_v45 = vmax.f32 %v186_v35, %v827_v29  ;;  %v107_v46 = vmax.f32 %v732_v38, %v764_v39  ;;  %696 = vst.msk [vmem:[%s1475_s9 + $0x1c] sm:$0xf] %vm688_vm0, %v679_v40  ;;  %v984_v52 = vunpack.c.h.bf16 %v1321_v59  ;;  %v1051_v23 = vld [vmem:[%s1473_s7 + $0x30] sm:$0xff]   ;;  %v1017_v35 = vld [vmem:[%s1468_s2 + $0x38] sm:$0xff]  }
  0x31   :  { %v664_v51 = vmax.f32 %v584_v41, %v983_v8  ;;  %v923_v53 = vunpack.c.l.bf16 %v1361_v36  ;;  %v955_v54 = vunpack.c.l.bf16 %v1366_v37  ;;  %v860_v60 = vunpack.c.h.bf16 %v1029_v20  ;;  %v1058_v38 = vld [vmem:[%s1474_s8 + $0x30] sm:$0xff]   ;;  %v1024_v41 = vld [vmem:[%s1469_s3 + $0x38] sm:$0xff]  }
  0x32   :  { %v505_v55 = vmax.f32 %v425_v44, %v920_v26  ;;  %v346_v56 = vmax.f32 %v266_v45, %v859_v27  ;;  %v187_v58 = vmax.f32 %v107_v46, %v796_v43  ;;  %v735_v63 = vunpack.c.l.bf16 %v1002_v48 }
  0x33   :  { %v680_v62 = vpack.c.bf16 %v664_v51, %v664_v51  ;;  %v767_v0 = vunpack.c.l.bf16 %v1009_v49  ;;  %v799_v59 = vunpack.c.l.bf16 %v1016_v50  ;;  %v892_v4 = vunpack.c.h.bf16 %v1036_v30  ;;  %v1003_v30 = vld [vmem:[%s1466_s0 + $0x38] sm:$0xff]  }
  0x34   :  { %v585_v1 = vmax.f32 %v505_v55, %v952_v33  ;;  %v426_v2 = vmax.f32 %v346_v56, %v891_v42  ;;  %v267_v3 = vmax.f32 %v187_v58, %v828_v47  ;;  %v987_v6 = vunpack.c.l.bf16 %v1057_v57 }
  0x35   :  { %697 = vst.msk [vmem:[%s1475_s9 + $0x20] sm:$0xf] %vm688_vm0, %v680_v62  ;;  %v924_v7 = vunpack.c.h.bf16 %v1361_v36  ;;  %v108_v8 = vmax.f32 %v735_v63, %v767_v0  ;;  %v831_v9 = vunpack.c.l.bf16 %v1023_v61  ;;  %v956_v13 = vunpack.c.h.bf16 %v1366_v37 }
  0x36   :  { %v665_v10 = vmax.f32 %v585_v1, %v984_v52  ;;  %v506_v11 = vmax.f32 %v426_v2, %v923_v53  ;;  %v347_v12 = vmax.f32 %v267_v3, %v860_v60  ;;  %v863_v16 = vunpack.c.l.bf16 %v1030_v5  ;;  %v1038_v60 = vld [vmem:[%s1471_s5 + $0x38] sm:$0xff]  }
  0x37   :  { %v188_v15 = vmax.f32 %v108_v8, %v799_v59  ;;  %v736_v18 = vunpack.c.h.bf16 %v1002_v48  ;;  %v768_v19 = vunpack.c.h.bf16 %v1009_v49  ;;  %v800_v24 = vunpack.c.h.bf16 %v1016_v50  ;;  %v1031_v50 = vld [vmem:[%s1470_s4 + $0x38] sm:$0xff]  }
  0x38   :  { %v681_v20 = vpack.c.bf16 %v665_v10, %v665_v10  ;;  %v586_v21 = vmax.f32 %v506_v11, %v955_v54  ;;  %v427_v22 = vmax.f32 %v347_v12, %v892_v4  ;;  %v895_v26 = vunpack.c.l.bf16 %v1037_v14  ;;  %v1045_v2 = vld [vmem:[%s1472_s6 + $0x38] sm:$0xff]  }
  0x39   :  { %v268_v25 = vmax.f32 %v188_v15, %v831_v9  ;;  %v109_v28 = vmax.f32 %v736_v18, %v768_v19  ;;  %v832_v29 = vunpack.c.h.bf16 %v1023_v61  ;;  %v988_v27 = vunpack.c.h.bf16 %v1057_v57  ;;  %v1052_v10 = vld [vmem:[%s1473_s7 + $0x38] sm:$0xff]  }
  0x3a   :  { %698 = vst.msk [vmem:[%s1475_s9 + $0x24] sm:$0xf] %vm688_vm0, %v681_v20  ;;  %v666_v32 = vmax.f32 %v586_v21, %v987_v6  ;;  %v507_v33 = vmax.f32 %v427_v22, %v924_v7  ;;  %v927_v34 = vunpack.c.l.bf16 %v1044_v17  ;;  %v959_v37 = vunpack.c.l.bf16 %v1051_v23 }
  0x3b   :  { %v348_v36 = vmax.f32 %v268_v25, %v863_v16  ;;  %v189_v39 = vmax.f32 %v109_v28, %v800_v24  ;;  %v864_v40 = vunpack.c.h.bf16 %v1030_v5  ;;  %v739_v44 = vunpack.c.l.bf16 %v1003_v30 }
  0x3c   :  { %v682_v42 = vpack.c.bf16 %v666_v32, %v666_v32  ;;  %v587_v43 = vmax.f32 %v507_v33, %v956_v13  ;;  %v771_v45 = vunpack.c.l.bf16 %v1010_v31  ;;  %v896_v48 = vunpack.c.h.bf16 %v1037_v14 }
  0x3d   :  { %v428_v46 = vmax.f32 %v348_v36, %v895_v26  ;;  %v269_v47 = vmax.f32 %v189_v39, %v832_v29  ;;  %v803_v49 = vunpack.c.l.bf16 %v1017_v35  ;;  %v991_v52 = vunpack.c.l.bf16 %v1058_v38 }
  0x3e   :  { %699 = vst.msk [vmem:[%s1475_s9 + $0x28] sm:$0xf] %vm688_vm0, %v682_v42  ;;  %v667_v51 = vmax.f32 %v587_v43, %v988_v27  ;;  %v110_v53 = vmax.f32 %v739_v44, %v771_v45  ;;  %v835_v54 = vunpack.c.l.bf16 %v1024_v41  ;;  %v928_v57 = vunpack.c.h.bf16 %v1044_v17  ;;  %v1059_v17 = vld [vmem:[%s1474_s8 + $0x38] sm:$0xff]  }
  0x3f   :  { %v508_v55 = vmax.f32 %v428_v46, %v927_v34  ;;  %v349_v56 = vmax.f32 %v269_v47, %v864_v40  ;;  %v960_v58 = vunpack.c.h.bf16 %v1051_v23  ;;  %v867_v63 = vunpack.c.l.bf16 %v1031_v50 }
  0x40   :  { %v683_v61 = vpack.c.bf16 %v667_v51, %v667_v51  ;;  %v190_v62 = vmax.f32 %v110_v53, %v803_v49  ;;  %v740_v0 = vunpack.c.h.bf16 %v1003_v30  ;;  %v772_v3 = vunpack.c.h.bf16 %v1010_v31 }
  0x41   :  { %v588_v59 = vmax.f32 %v508_v55, %v959_v37  ;;  %v429_v1 = vmax.f32 %v349_v56, %v896_v48  ;;  %v804_v4 = vunpack.c.h.bf16 %v1017_v35  ;;  %v992_v5 = vunpack.c.h.bf16 %v1058_v38 }
  0x42   :  { %700 = vst.msk [vmem:[%s1475_s9 + $0x2c] sm:$0xf] %vm688_vm0, %v683_v61  ;;  %v270_v6 = vmax.f32 %v190_v62, %v835_v54  ;;  %v899_v7 = vunpack.c.l.bf16 %v1038_v60  ;;  %v111_v11 = vmax.f32 %v740_v0, %v772_v3  ;;  %v836_v12 = vunpack.c.h.bf16 %v1024_v41 }
  0x43   :  { %v668_v8 = vmax.f32 %v588_v59, %v991_v52  ;;  %v509_v9 = vmax.f32 %v429_v1, %v928_v57  ;;  %v931_v14 = vunpack.c.l.bf16 %v1045_v2  ;;  %v868_v19 = vunpack.c.h.bf16 %v1031_v50 }
  0x44   :  { %v350_v13 = vmax.f32 %v270_v6, %v867_v63  ;;  %v191_v18 = vmax.f32 %v111_v11, %v804_v4  ;;  %v963_v21 = vunpack.c.l.bf16 %v1052_v10  ;;  %v900_v24 = vunpack.c.h.bf16 %v1038_v60 }
  0x45   :  { %v684_v15 = vpack.c.bf16 %v668_v8, %v668_v8  ;;  %v589_v16 = vmax.f32 %v509_v9, %v960_v58  ;;  %v995_v26 = vunpack.c.l.bf16 %v1059_v17  ;;  %v932_v30 = vunpack.c.h.bf16 %v1045_v2 }
  0x46   :  { %v430_v20 = vmax.f32 %v350_v13, %v899_v7  ;;  %v271_v23 = vmax.f32 %v191_v18, %v836_v12  ;;  %v964_v33 = vunpack.c.h.bf16 %v1052_v10  ;;  %v996_v35 = vunpack.c.h.bf16 %v1059_v17 }
  0x47   :  { %701 = vst.msk [vmem:[%s1475_s9 + $0x30] sm:$0xf] %vm688_vm0, %v684_v15  ;;  %v669_v22 = vmax.f32 %v589_v16, %v992_v5 }
  0x48   :  { %v510_v25 = vmax.f32 %v430_v20, %v931_v14  ;;  %v351_v29 = vmax.f32 %v271_v23, %v868_v19 }
  0x49   :  { %v685_v28 = vpack.c.bf16 %v669_v22, %v669_v22 }
  0x4a   :  { %v590_v31 = vmax.f32 %v510_v25, %v963_v21  ;;  %v431_v32 = vmax.f32 %v351_v29, %v900_v24 }
  0x4b   :  { %702 = vst.msk [vmem:[%s1475_s9 + $0x34] sm:$0xf] %vm688_vm0, %v685_v28 }
  0x4c   :  { %v670_v27 = vmax.f32 %v590_v31, %v995_v26  ;;  %v511_v34 = vmax.f32 %v431_v32, %v932_v30 }
  0x4e   :  { %v686_v36 = vpack.c.bf16 %v670_v27, %v670_v27  ;;  %v591_v37 = vmax.f32 %v511_v34, %v964_v33 }
  0x50   :  { %703 = vst.msk [vmem:[%s1475_s9 + $0x38] sm:$0xf] %vm688_vm0, %v686_v36  ;;  %v671_v38 = vmax.f32 %v591_v37, %v996_v35 }
  0x52   :  { %v687_v39 = vpack.c.bf16 %v671_v38, %v671_v38 }
  0x54   :  { %704 = vst.msk [vmem:[%s1475_s9 + $0x3c] sm:$0xf] %vm688_vm0, %v687_v39 }

// kernel: _lambda_.17
= control target key start
LH: loop header
LB: loop body
LE: loop exit
PB: predicated region body
PF: predicated region fallthrough
CT: control target
= control target key end

     0   :  { %s1927_s1 = inlined_call_operand.vmem [shape: bf16[640,128], index: 1, kind: input, shape index: {}]   ;;  %s1928_s0 = inlined_call_operand.vmem [shape: bf16[128,640], index: 0, kind: input, shape index: {}]   ;;  %s1929_s2 = inlined_call_operand.vmem [shape: f32[1,128], index: 2, kind: input, shape index: {}]   ;;  %s1930_s3 = inlined_call_operand.vmem [shape: bf16[128,128], index: 3, kind: output, shape index: {}]  }
   0x1   :  { %v1361_v0 = vld [vmem:[%s1927_s1 + $0x38] sm:$0xff]  ;;  %v1360_v1 = vld [vmem:[%s1927_s1 + $0x30] sm:$0xff]  ;;  %v1359_v2 = vld [vmem:[%s1927_s1 + $0x28] sm:$0xff] }
   0x2   :  { %1441 = vmatpush.bf16.msra.mxu1 %v1361_v0  ;;  %1442 = vmatpush.bf16.msra.mxu2 %v1361_v0  ;;  %v1358_v3 = vld [vmem:[%s1927_s1 + $0x20] sm:$0xff]  ;;  %v1357_v4 = vld [vmem:[%s1927_s1 + $0x18] sm:$0xff]  ;;  %v1356_v5 = vld [vmem:[%s1927_s1 + $0x10] sm:$0xff] }
   0x3   :  { %1443 = vmatpush.bf16.msra.mxu3 %v1361_v0  ;;  %626 = vmatpush.bf16.msra.mxu0 %v1361_v0  ;;  %v1355_v6 = vld [vmem:[%s1927_s1 + $0x8] sm:$0xff]  ;;  %v1354_v7 = vld [vmem:[%s1927_s1] sm:$0xff]  ;;  %v1036_v8 = vld [vmem:[%s1928_s0 + $0x50] sm:$0xf] }
   0x4   :  { %v1326_v9 = vld [vmem:[%s1928_s0 + $0x60] sm:$0xf0]  ;;  %v1076_v10 = vld [vmem:[%s1928_s0 + $0xa0] sm:$0xf]  ;;  %v1336_v11 = vld [vmem:[%s1928_s0 + $0xb0] sm:$0xf0] }
   0x5   :  { %v1116_v12 = vld [vmem:[%s1928_s0 + $0xf0] sm:$0xf]  ;;  %v1346_v13 = vld [vmem:[%s1928_s0 + $0x100] sm:$0xf0]  ;;  %v996_v14 = vld [vmem:[%s1928_s0] sm:$0xf]  ;;  %v1037_v18 = vor.u32 %v1326_v9, %v1036_v8  ;;  %v1077_v19 = vor.u32 %v1336_v11, %v1076_v10 }
   0x6   :  { %1444 = vmatpush.bf16.msra.mxu1 %v1360_v1  ;;  %1445 = vmatpush.bf16.msra.mxu2 %v1360_v1  ;;  %v1316_v15 = vld [vmem:[%s1928_s0 + $0x10] sm:$0xf0]  ;;  %v1377_v16 = vld [vmem:[%s1927_s1 + $0xb8] sm:$0xff]  ;;  %v1117_v20 = vor.u32 %v1346_v13, %v1116_v12  ;;  %v1375_v28 = vld [vmem:[%s1927_s1 + $0xa8] sm:$0xff] }
   0x7   :  { %1446 = vmatpush.bf16.msra.mxu3 %v1360_v1  ;;  %627 = vmatpush.bf16.msra.mxu0 %v1360_v1  ;;  %v1369_v17 = vld [vmem:[%s1927_s1 + $0x78] sm:$0xff]  ;;  %v997_v21 = vor.u32 %v1316_v15, %v996_v14  ;;  %v1376_v24 = vld [vmem:[%s1927_s1 + $0xb0] sm:$0xff]  ;;  %v1367_v29 = vld [vmem:[%s1927_s1 + $0x68] sm:$0xff] }
   0x8   :  { %v1385_v22 = vld [vmem:[%s1927_s1 + $0xf8] sm:$0xff]  ;;  %v1368_v25 = vld [vmem:[%s1927_s1 + $0x70] sm:$0xff]  ;;  %v1383_v30 = vld [vmem:[%s1927_s1 + $0xe8] sm:$0xff] }
   0x9   :  { %v1393_v23 = vld [vmem:[%s1927_s1 + $0x138] sm:$0xff]  ;;  %v1384_v26 = vld [vmem:[%s1927_s1 + $0xf0] sm:$0xff]  ;;  %v1391_v31 = vld [vmem:[%s1927_s1 + $0x128] sm:$0xff] }
   0xa   :  { %1447 = vmatpush.bf16.msra.mxu1 %v1359_v2  ;;  %1448 = vmatpush.bf16.msra.mxu2 %v1359_v2  ;;  %v1392_v27 = vld [vmem:[%s1927_s1 + $0x130] sm:$0xff]  ;;  %v1374_v32 = vld [vmem:[%s1927_s1 + $0xa0] sm:$0xff]  ;;  %v1056_v36 = vld [vmem:[%s1928_s0 + $0x78] sm:$0xf] }
   0xb   :  { %1449 = vmatpush.bf16.msra.mxu3 %v1359_v2  ;;  %628 = vmatpush.bf16.msra.mxu0 %v1359_v2  ;;  %v1366_v33 = vld [vmem:[%s1927_s1 + $0x60] sm:$0xff]  ;;  %v1331_v37 = vld [vmem:[%s1928_s0 + $0x88] sm:$0xf0]  ;;  %v1096_v38 = vld [vmem:[%s1928_s0 + $0xc8] sm:$0xf] }
   0xc   :  { %v1382_v34 = vld [vmem:[%s1927_s1 + $0xe0] sm:$0xff]  ;;  %v1341_v39 = vld [vmem:[%s1928_s0 + $0xd8] sm:$0xf0]  ;;  %v1136_v40 = vld [vmem:[%s1928_s0 + $0x118] sm:$0xf]  ;;  %v1057_v46 = vor.u32 %v1331_v37, %v1056_v36 }
   0xd   :  { %v1390_v35 = vld [vmem:[%s1927_s1 + $0x120] sm:$0xff]  ;;  %v1351_v41 = vld [vmem:[%s1928_s0 + $0x128] sm:$0xf0]  ;;  %v1016_v42 = vld [vmem:[%s1928_s0 + $0x28] sm:$0xf]  ;;  %v1097_v47 = vor.u32 %v1341_v39, %v1096_v38 }
   0xe   :  { %1450 = vmatpush.bf16.msra.mxu1 %v1358_v3  ;;  %1451 = vmatpush.bf16.msra.mxu2 %v1358_v3  ;;  %v1321_v43 = vld [vmem:[%s1928_s0 + $0x38] sm:$0xf0]  ;;  %v1137_v48 = vor.u32 %v1351_v41, %v1136_v40  ;;  %v1372_v52 = vld [vmem:[%s1927_s1 + $0x90] sm:$0xff]  ;;  %v1371_v56 = vld [vmem:[%s1927_s1 + $0x88] sm:$0xff] }
   0xf   :  { %1452 = vmatpush.bf16.msra.mxu3 %v1358_v3  ;;  %629 = vmatpush.bf16.msra.mxu0 %v1358_v3  ;;  %v1373_v44 = vld [vmem:[%s1927_s1 + $0x98] sm:$0xff]  ;;  %v1017_v49 = vor.u32 %v1321_v43, %v1016_v42  ;;  %v1364_v53 = vld [vmem:[%s1927_s1 + $0x50] sm:$0xff]  ;;  %v1363_v57 = vld [vmem:[%s1927_s1 + $0x48] sm:$0xff] }
  0x10   :  { %v1365_v45 = vld [vmem:[%s1927_s1 + $0x58] sm:$0xff]  ;;  %v1380_v54 = vld [vmem:[%s1927_s1 + $0xd0] sm:$0xff]  ;;  %v1379_v58 = vld [vmem:[%s1927_s1 + $0xc8] sm:$0xff] }
  0x11   :  { %v1381_v50 = vld [vmem:[%s1927_s1 + $0xd8] sm:$0xff]  ;;  %v1388_v55 = vld [vmem:[%s1927_s1 + $0x110] sm:$0xff]  ;;  %v1387_v59 = vld [vmem:[%s1927_s1 + $0x108] sm:$0xff] }
  0x12   :  { %1453 = vmatpush.bf16.msra.mxu1 %v1357_v4  ;;  %1454 = vmatpush.bf16.msra.mxu2 %v1357_v4  ;;  %v1389_v51 = vld [vmem:[%s1927_s1 + $0x118] sm:$0xff]  ;;  %v1370_v60 = vld [vmem:[%s1927_s1 + $0x80] sm:$0xff]  ;;  %v1004_v2 = vld [vmem:[%s1928_s0 + $0x8] sm:$0xf] }
  0x13   :  { %1455 = vmatpush.bf16.msra.mxu3 %v1357_v4  ;;  %630 = vmatpush.bf16.msra.mxu0 %v1357_v4  ;;  %v1362_v61 = vld [vmem:[%s1927_s1 + $0x40] sm:$0xff]  ;;  %v998_v1 = vld [vmem:[%s1928_s0 + $0x14] sm:$0xf0]  ;;  %v1317_v3 = vld [vmem:[%s1928_s0 + $0x18] sm:$0xf0] }
  0x14   :  { %v1378_v62 = vld [vmem:[%s1927_s1 + $0xc0] sm:$0xff]  ;;  %v1315_v4 = vld [vmem:[%s1928_s0 + $0xc] sm:$0xf]  ;;  %v1005_v9 = vor.u32 %v1317_v3, %v1004_v2  ;;  %v1024_v14 = vld [vmem:[%s1928_s0 + $0x30] sm:$0xf] }
  0x15   :  { %v1386_v63 = vld [vmem:[%s1927_s1 + $0x100] sm:$0xff]  ;;  %v1319_v12 = vld [vmem:[%s1928_s0 + $0x2c] sm:$0xf]  ;;  %v1329_v36 = vld [vmem:[%s1928_s0 + $0x7c] sm:$0xf] }
  0x16   :  { %1456 = vmatpush.bf16.msra.mxu1 %v1356_v5  ;;  %1457 = vmatpush.bf16.msra.mxu2 %v1356_v5  ;;  %v1314_v0 = vld [vmem:[%s1928_s0 + $0x4] sm:$0xf]  ;;  %v1018_v13 = vld [vmem:[%s1928_s0 + $0x3c] sm:$0xf0]  ;;  %v1058_v37 = vld [vmem:[%s1928_s0 + $0x8c] sm:$0xf0] }
  0x17   :  { %1458 = vmatpush.bf16.msra.mxu3 %v1356_v5  ;;  %631 = vmatpush.bf16.msra.mxu0 %v1356_v5  ;;  %v1006_v5 = vld [vmem:[%s1928_s0 + $0x1c] sm:$0xf0]  ;;  %v1001_v8 = vor.u32 %v1314_v0, %v998_v1  ;;  %v1322_v15 = vld [vmem:[%s1928_s0 + $0x40] sm:$0xf0]  ;;  %v1332_v39 = vld [vmem:[%s1928_s0 + $0x90] sm:$0xf0] }
  0x18   :  { %v1009_v10 = vor.u32 %v1315_v4, %v1006_v5  ;;  %v1064_v38 = vld [vmem:[%s1928_s0 + $0x80] sm:$0xf]  ;;  %v1330_v40 = vld [vmem:[%s1928_s0 + $0x84] sm:$0xf]  ;;  %v1066_v41 = vld [vmem:[%s1928_s0 + $0x94] sm:$0xf0] }
  0x19   :  { %v1072_v42 = vld [vmem:[%s1928_s0 + $0x88] sm:$0xf]  ;;  %v1333_v43 = vld [vmem:[%s1928_s0 + $0x98] sm:$0xf0]  ;;  %v1340_v0 = vld [vmem:[%s1928_s0 + $0xd4] sm:$0xf] }
  0x1a   :  { %1459 = vmatpush.bf16.msra.mxu1 %v1355_v6  ;;  %1460 = vmatpush.bf16.msra.mxu2 %v1355_v6  ;;  %v1106_v1 = vld [vmem:[%s1928_s0 + $0xe4] sm:$0xf0]  ;;  %v1112_v2 = vld [vmem:[%s1928_s0 + $0xd8] sm:$0xf]  ;;  %v1343_v3 = vld [vmem:[%s1928_s0 + $0xe8] sm:$0xf0] }
  0x1b   :  { %1461 = vmatpush.bf16.msra.mxu3 %v1355_v6  ;;  %632 = vmatpush.bf16.msra.mxu0 %v1355_v6  ;;  %v1012_v6 = vld [vmem:[%s1928_s0 + $0x10] sm:$0xf] }
  0x1e   :  { %1462 = vmatpush.bf16.msra.mxu1 %v1354_v7  ;;  %1463 = vmatpush.bf16.msra.mxu2 %v1354_v7 }
  0x1f   :  { %1464 = vmatpush.bf16.msra.mxu3 %v1354_v7  ;;  %633 = vmatpush.bf16.msra.mxu0 %v1354_v7  ;;  %v1318_v7 = vld [vmem:[%s1928_s0 + $0x20] sm:$0xf0] }
  0x20   :  { %v1013_v11 = vor.u32 %v1318_v7, %v1012_v6  ;;  %v1109_v6 = vor.u32 %v1340_v0, %v1106_v1  ;;  %v1113_v7 = vor.u32 %v1343_v3, %v1112_v2 }
  0x21   :  { %644 = vmatmul.bf16.vlgmr.msra.gmra.mxu1 %v1037_v18  ;;  %654 = vmatmul.bf16.vlgmr.msra.gmra.mxu2 %v1077_v19  ;;  %v1032_v18 = vld [vmem:[%s1928_s0 + $0x38] sm:$0xf]  ;;  %v1323_v19 = vld [vmem:[%s1928_s0 + $0x48] sm:$0xf0] }
  0x22   :  { %724 = vmatpush.bf16.msrb.mxu2 %v1377_v16  ;;  %675 = vmatpush.bf16.msrb.mxu1 %v1369_v17  ;;  %v1320_v16 = vld [vmem:[%s1928_s0 + $0x34] sm:$0xf]  ;;  %v1026_v17 = vld [vmem:[%s1928_s0 + $0x44] sm:$0xf0] }
  0x23   :  { %664 = vmatmul.bf16.vlgmr.msra.gmra.mxu3 %v1117_v20  ;;  %634 = vmatmul.bf16.vlgmr.msra.gmra.mxu0 %v997_v21  ;;  %v1021_v20 = vor.u32 %v1319_v12, %v1018_v13  ;;  %v1025_v21 = vor.u32 %v1322_v15, %v1024_v14  ;;  %v1345_v12 = vld [vmem:[%s1928_s0 + $0xfc] sm:$0xf]  ;;  %v1126_v13 = vld [vmem:[%s1928_s0 + $0x10c] sm:$0xf0]  ;;  %v1132_v14 = vld [vmem:[%s1928_s0 + $0x100] sm:$0xf] }
  0x24   :  { %773 = vmatpush.bf16.msrb.mxu3 %v1385_v22  ;;  %822 = vmatpush.bf16.msrb.mxu0 %v1393_v23  ;;  %v1029_v22 = vor.u32 %v1320_v16, %v1026_v17  ;;  %v1033_v23 = vor.u32 %v1323_v19, %v1032_v18  ;;  %v1348_v15 = vld [vmem:[%s1928_s0 + $0x110] sm:$0xf0]  ;;  %v1129_v19 = vor.u32 %v1345_v12, %v1126_v13 }
  0x26   :  { %725 = vmatpush.bf16.msrb.mxu2 %v1376_v24  ;;  %676 = vmatpush.bf16.msrb.mxu1 %v1368_v25  ;;  %v1324_v24 = vld [vmem:[%s1928_s0 + $0x54] sm:$0xf]  ;;  %v1038_v25 = vld [vmem:[%s1928_s0 + $0x64] sm:$0xf0] }
  0x28   :  { %774 = vmatpush.bf16.msrb.mxu3 %v1384_v26  ;;  %823 = vmatpush.bf16.msrb.mxu0 %v1392_v27  ;;  %v1044_v26 = vld [vmem:[%s1928_s0 + $0x58] sm:$0xf]  ;;  %v1327_v27 = vld [vmem:[%s1928_s0 + $0x68] sm:$0xf0] }
  0x2a   :  { %726 = vmatpush.bf16.msrb.mxu2 %v1375_v28  ;;  %677 = vmatpush.bf16.msrb.mxu1 %v1367_v29  ;;  %v1325_v28 = vld [vmem:[%s1928_s0 + $0x5c] sm:$0xf]  ;;  %v1046_v29 = vld [vmem:[%s1928_s0 + $0x6c] sm:$0xf0] }
  0x2c   :  { %775 = vmatpush.bf16.msrb.mxu3 %v1383_v30  ;;  %824 = vmatpush.bf16.msrb.mxu0 %v1391_v31  ;;  %v1052_v30 = vld [vmem:[%s1928_s0 + $0x60] sm:$0xf]  ;;  %v1328_v31 = vld [vmem:[%s1928_s0 + $0x70] sm:$0xf0] }
  0x2e   :  { %727 = vmatpush.bf16.msrb.mxu2 %v1374_v32  ;;  %678 = vmatpush.bf16.msrb.mxu1 %v1366_v33  ;;  %v1041_v32 = vor.u32 %v1324_v24, %v1038_v25  ;;  %v1045_v33 = vor.u32 %v1327_v27, %v1044_v26  ;;  %v1349_v26 = vld [vmem:[%s1928_s0 + $0x11c] sm:$0xf]  ;;  %v1138_v27 = vld [vmem:[%s1928_s0 + $0x12c] sm:$0xf0] }
  0x30   :  { %776 = vmatpush.bf16.msrb.mxu3 %v1382_v34  ;;  %825 = vmatpush.bf16.msrb.mxu0 %v1390_v35  ;;  %v1049_v34 = vor.u32 %v1325_v28, %v1046_v29  ;;  %v1053_v35 = vor.u32 %v1328_v31, %v1052_v30  ;;  %v1144_v28 = vld [vmem:[%s1928_s0 + $0x120] sm:$0xf]  ;;  %v1352_v29 = vld [vmem:[%s1928_s0 + $0x130] sm:$0xf0]  ;;  %v1350_v30 = vld [vmem:[%s1928_s0 + $0x124] sm:$0xf] }
  0x31   :  { %649 = vmatmul.bf16.gmra.mxu1 %v1057_v46  ;;  %659 = vmatmul.bf16.gmra.mxu2 %v1097_v47  ;;  %v1069_v46 = vor.u32 %v1330_v40, %v1066_v41  ;;  %v1073_v47 = vor.u32 %v1333_v43, %v1072_v42  ;;  %v1146_v31 = vld [vmem:[%s1928_s0 + $0x134] sm:$0xf0] }
  0x32   :  { %728 = vmatpush.bf16.msrb.mxu2 %v1373_v44  ;;  %679 = vmatpush.bf16.msrb.mxu1 %v1365_v45  ;;  %v1061_v44 = vor.u32 %v1329_v36, %v1058_v37  ;;  %v1065_v45 = vor.u32 %v1332_v39, %v1064_v38  ;;  %v1141_v36 = vor.u32 %v1349_v26, %v1138_v27 }
  0x33   :  { %669 = vmatmul.bf16.gmra.mxu3 %v1137_v48  ;;  %639 = vmatmul.bf16.gmra.mxu0 %v1017_v49  ;;  %v1334_v48 = vld [vmem:[%s1928_s0 + $0xa4] sm:$0xf]  ;;  %v1078_v49 = vld [vmem:[%s1928_s0 + $0xb4] sm:$0xf0]  ;;  %v1145_v37 = vor.u32 %v1352_v29, %v1144_v28  ;;  %v1149_v39 = vor.u32 %v1350_v30, %v1146_v31 }
  0x34   :  { %777 = vmatpush.bf16.msrb.mxu3 %v1381_v50  ;;  %826 = vmatpush.bf16.msrb.mxu0 %v1389_v51  ;;  %v1084_v50 = vld [vmem:[%s1928_s0 + $0xa8] sm:$0xf]  ;;  %v1337_v51 = vld [vmem:[%s1928_s0 + $0xb8] sm:$0xf0] }
  0x36   :  { %729 = vmatpush.bf16.msrb.mxu2 %v1372_v52  ;;  %680 = vmatpush.bf16.msrb.mxu1 %v1364_v53  ;;  %v1335_v52 = vld [vmem:[%s1928_s0 + $0xac] sm:$0xf]  ;;  %v1086_v53 = vld [vmem:[%s1928_s0 + $0xbc] sm:$0xf0] }
  0x38   :  { %778 = vmatpush.bf16.msrb.mxu3 %v1380_v54  ;;  %827 = vmatpush.bf16.msrb.mxu0 %v1388_v55  ;;  %v1092_v54 = vld [vmem:[%s1928_s0 + $0xb0] sm:$0xf]  ;;  %v1338_v55 = vld [vmem:[%s1928_s0 + $0xc0] sm:$0xf0] }
  0x3a   :  { %730 = vmatpush.bf16.msrb.mxu2 %v1371_v56  ;;  %681 = vmatpush.bf16.msrb.mxu1 %v1363_v57  ;;  %v1081_v56 = vor.u32 %v1334_v48, %v1078_v49  ;;  %v1085_v57 = vor.u32 %v1337_v51, %v1084_v50 }
  0x3c   :  { %779 = vmatpush.bf16.msrb.mxu3 %v1379_v58  ;;  %828 = vmatpush.bf16.msrb.mxu0 %v1387_v59  ;;  %v1089_v58 = vor.u32 %v1335_v52, %v1086_v53  ;;  %v1093_v59 = vor.u32 %v1338_v55, %v1092_v54 }
  0x3e   :  { %731 = vmatpush.bf16.msrb.mxu2 %v1370_v60  ;;  %682 = vmatpush.bf16.msrb.mxu1 %v1362_v61  ;;  %v1339_v60 = vld [vmem:[%s1928_s0 + $0xcc] sm:$0xf]  ;;  %v1098_v61 = vld [vmem:[%s1928_s0 + $0xdc] sm:$0xf0] }
  0x3f   :  { %v1101_v4 = vor.u32 %v1339_v60, %v1098_v61  ;;  %v1873_v60 = vld [vmem:[%s1929_s2] ss:$0 sm:$0xff] }
  0x40   :  { %780 = vmatpush.bf16.msrb.mxu3 %v1378_v62  ;;  %829 = vmatpush.bf16.msrb.mxu0 %v1386_v63  ;;  %v1104_v62 = vld [vmem:[%s1928_s0 + $0xd0] sm:$0xf]  ;;  %v1342_v63 = vld [vmem:[%s1928_s0 + $0xe0] sm:$0xf0] }
  0x41   :  { %683 = vmatmul.bf16.vlgmr.msrb.gmra.mxu1 %v1001_v8  ;;  %732 = vmatmul.bf16.vlgmr.msrb.gmra.mxu2 %v1005_v9  ;;  %v1105_v5 = vor.u32 %v1342_v63, %v1104_v62  ;;  %v1344_v8 = vld [vmem:[%s1928_s0 + $0xf4] sm:$0xf]  ;;  %v1118_v9 = vld [vmem:[%s1928_s0 + $0x104] sm:$0xf0] }
  0x42   :  { %v1121_v16 = vor.u32 %v1344_v8, %v1118_v9 }
  0x43   :  { %781 = vmatmul.bf16.vlgmr.msrb.gmra.mxu3 %v1009_v10  ;;  %830 = vmatmul.bf16.vlgmr.msrb.gmra.mxu0 %v1013_v11  ;;  %v1124_v10 = vld [vmem:[%s1928_s0 + $0xf8] sm:$0xf]  ;;  %v1347_v11 = vld [vmem:[%s1928_s0 + $0x108] sm:$0xf0] }
  0x44   :  { %v1125_v17 = vor.u32 %v1347_v11, %v1124_v10 }
  0x51   :  { %688 = vmatmul.bf16.gmra.mxu1 %v1021_v20  ;;  %737 = vmatmul.bf16.gmra.mxu2 %v1025_v21  ;;  %v1133_v20 = vor.u32 %v1348_v15, %v1132_v14 }
  0x53   :  { %786 = vmatmul.bf16.gmra.mxu3 %v1029_v22  ;;  %835 = vmatmul.bf16.gmra.mxu0 %v1033_v23 }
  0x61   :  { %693 = vmatmul.bf16.gmra.mxu1 %v1041_v32  ;;  %742 = vmatmul.bf16.gmra.mxu2 %v1045_v33  ;;  %v1152_v32 = vld [vmem:[%s1928_s0 + $0x128] sm:$0xf]  ;;  %v1353_v33 = vld [vmem:[%s1928_s0 + $0x138] sm:$0xf0] }
  0x62   :  { %v1153_v40 = vor.u32 %v1353_v33, %v1152_v32 }
  0x63   :  { %791 = vmatmul.bf16.gmra.mxu3 %v1049_v34  ;;  %840 = vmatmul.bf16.gmra.mxu0 %v1053_v35 }
  0x71   :  { %698 = vmatmul.bf16.gmra.mxu1 %v1061_v44  ;;  %747 = vmatmul.bf16.gmra.mxu2 %v1065_v45 }
  0x73   :  { %796 = vmatmul.bf16.gmra.mxu3 %v1069_v46  ;;  %845 = vmatmul.bf16.gmra.mxu0 %v1073_v47 }
  0x81   :  { %703 = vmatmul.bf16.gmra.mxu1 %v1081_v56  ;;  %752 = vmatmul.bf16.gmra.mxu2 %v1085_v57 }
  0x83   :  { %801 = vmatmul.bf16.gmra.mxu3 %v1089_v58  ;;  %850 = vmatmul.bf16.gmra.mxu0 %v1093_v59 }
  0x91   :  { %708 = vmatmul.bf16.gmra.mxu1 %v1101_v4  ;;  %757 = vmatmul.bf16.gmra.mxu2 %v1105_v5 }
  0x93   :  { %806 = vmatmul.bf16.gmra.mxu3 %v1109_v6  ;;  %855 = vmatmul.bf16.gmra.mxu0 %v1113_v7 }
  0x9e   :  { %v1822_v18 = vpop.f32.mrf.mxu1 }
  0xa0   :  { %v635_v21 = vpop.f32.mrf.mxu0 }
  0xa1   :  { %713 = vmatmul.bf16.gmra.mxu1 %v1121_v16  ;;  %762 = vmatmul.bf16.gmra.mxu2 %v1125_v17 }
  0xa3   :  { %811 = vmatmul.bf16.gmra.mxu3 %v1129_v19  ;;  %860 = vmatmul.bf16.gmra.mxu0 %v1133_v20 }
  0xa4   :  { %v1824_v22 = vpop.f32.mrf.mxu2 }
  0xa6   :  { %v1826_v23 = vpop.f32.mrf.mxu3  ;;  %v1828_v24 = vpop.f32.mrf.mxu1 }
  0xa8   :  { %v637_v25 = vpop.f32.mrf.mxu0 }
  0xac   :  { %v1854_v34 = vpop.f32.mrf.mxu2 }
  0xae   :  { %v1856_v35 = vpop.f32.mrf.mxu3  ;;  %v1858_v38 = vpop.f32.mrf.mxu1 }
  0xb0   :  { %v640_v41 = vpop.f32.mrf.mxu0 }
  0xb1   :  { %718 = vmatmul.bf16.gmra.mxu1 %v1141_v36  ;;  %767 = vmatmul.bf16.gmra.mxu2 %v1145_v37 }
  0xb3   :  { %816 = vmatmul.bf16.gmra.mxu3 %v1149_v39  ;;  %865 = vmatmul.bf16.gmra.mxu0 %v1153_v40 }
  0xb4   :  { %v1860_v42 = vpop.f32.mrf.mxu2 }
  0xb6   :  { %v1862_v43 = vpop.f32.mrf.mxu3  ;;  %v1864_v44 = vpop.f32.mrf.mxu1 }
  0xb8   :  { %v642_v45 = vpop.f32.mrf.mxu0 }
  0xbc   :  { %v1866_v46 = vpop.f32.mrf.mxu2 }
  0xbe   :  { %v1868_v47 = vpop.f32.mrf.mxu3  ;;  %v684_v48 = vpop.f32.mrf.mxu1 }
  0xbf   :  { %v685_v50 = vadd.f32 %v684_v48, %v635_v21 }
  0xc0   :  { %v831_v49 = vpop.f32.mrf.mxu0 }
  0xc4   :  { %v733_v51 = vpop.f32.mrf.mxu2 }
  0xc5   :  { %v734_v52 = vadd.f32 %v733_v51, %v685_v50 }
  0xc6   :  { %v782_v53 = vpop.f32.mrf.mxu3  ;;  %v686_v54 = vpop.f32.mrf.mxu1 }
  0xc7   :  { %v783_v56 = vadd.f32 %v782_v53, %v734_v52  ;;  %v687_v57 = vadd.f32 %v686_v54, %v637_v25 }
  0xc8   :  { %v833_v55 = vpop.f32.mrf.mxu0 }
  0xc9   :  { %v832_v59 = vadd.f32 %v831_v49, %v783_v56 }
  0xcb   :  { %v926_v2 = vadd.f32 %v1873_v60, %v832_v59 }
  0xcc   :  { %v735_v58 = vpop.f32.mrf.mxu2 }
  0xcd   :  { %v736_v61 = vadd.f32 %v735_v58, %v687_v57  ;;  %v942_v7 = vmax.f32 %v926_v2, 0.0 }
  0xce   :  { %v784_v62 = vpop.f32.mrf.mxu3  ;;  %v689_v63 = vpop.f32.mrf.mxu1 }
  0xcf   :  { %v785_v0 = vadd.f32 %v784_v62, %v736_v61  ;;  %v690_v5 = vadd.f32 %v689_v63, %v640_v41 }
  0xd0   :  { %v836_v1 = vpop.f32.mrf.mxu0 }
  0xd1   :  { %v834_v3 = vadd.f32 %v833_v55, %v785_v0 }
  0xd3   :  { %v927_v4 = vadd.f32 %v1873_v60, %v834_v3 }
  0xd4   :  { %v738_v6 = vpop.f32.mrf.mxu2 }
  0xd5   :  { %v943_v8 = vmax.f32 %v927_v4, 0.0  ;;  %v739_v9 = vadd.f32 %v738_v6, %v690_v5 }
  0xd6   :  { %v787_v10 = vpop.f32.mrf.mxu3  ;;  %v691_v11 = vpop.f32.mrf.mxu1 }
  0xd7   :  { %v1397_v12 = vpack.c.bf16 %v943_v8, %v942_v7  ;;  %v788_v14 = vadd.f32 %v787_v10, %v739_v9  ;;  %v692_v15 = vadd.f32 %v691_v11, %v642_v45 }
  0xd8   :  { %v838_v13 = vpop.f32.mrf.mxu0 }
  0xd9   :  { %1398 = vst [vmem:[%s1930_s3] sm:$0xff] %v1397_v12   ;;  %v837_v17 = vadd.f32 %v836_v1, %v788_v14 }
  0xdb   :  { %v928_v27 = vadd.f32 %v1873_v60, %v837_v17 }
  0xdc   :  { %v740_v16 = vpop.f32.mrf.mxu2 }
  0xdd   :  { %v741_v19 = vadd.f32 %v740_v16, %v692_v15  ;;  %v944_v32 = vmax.f32 %v928_v27, 0.0 }
  0xde   :  { %v789_v20 = vpop.f32.mrf.mxu3  ;;  %v694_v21 = vpop.f32.mrf.mxu1 }
  0xdf   :  { %v790_v25 = vadd.f32 %v789_v20, %v741_v19  ;;  %v695_v30 = vadd.f32 %v694_v21, %v1822_v18 }
  0xe0   :  { %v841_v26 = vpop.f32.mrf.mxu0 }
  0xe1   :  { %v839_v28 = vadd.f32 %v838_v13, %v790_v25 }
  0xe3   :  { %v929_v29 = vadd.f32 %v1873_v60, %v839_v28 }
  0xe4   :  { %v743_v31 = vpop.f32.mrf.mxu2 }
  0xe5   :  { %v945_v33 = vmax.f32 %v929_v29, 0.0  ;;  %v744_v36 = vadd.f32 %v743_v31, %v695_v30 }
  0xe6   :  { %v792_v37 = vpop.f32.mrf.mxu3  ;;  %v696_v39 = vpop.f32.mrf.mxu1 }
  0xe7   :  { %v1402_v40 = vpack.c.bf16 %v945_v33, %v944_v32  ;;  %v793_v45 = vadd.f32 %v792_v37, %v744_v36  ;;  %v697_v48 = vadd.f32 %v696_v39, %v1828_v24 }
  0xe8   :  { %v843_v41 = vpop.f32.mrf.mxu0 }
  0xe9   :  { %1434 = vst [vmem:[%s1930_s3 + $0x8] sm:$0xff] %v1402_v40   ;;  %v842_v50 = vadd.f32 %v841_v26, %v793_v45 }
  0xeb   :  { %v930_v55 = vadd.f32 %v1873_v60, %v842_v50 }
  0xec   :  { %v745_v49 = vpop.f32.mrf.mxu2 }
  0xed   :  { %v746_v51 = vadd.f32 %v745_v49, %v697_v48  ;;  %v946_v61 = vmax.f32 %v930_v55, 0.0 }
  0xee   :  { %v794_v52 = vpop.f32.mrf.mxu3  ;;  %v699_v18 = vpop.f32.mrf.mxu1 }
  0xef   :  { %v795_v53 = vadd.f32 %v794_v52, %v746_v51  ;;  %v700_v58 = vadd.f32 %v699_v18, %v1858_v38 }
  0xf0   :  { %v846_v54 = vpop.f32.mrf.mxu0 }
  0xf1   :  { %v844_v56 = vadd.f32 %v843_v41, %v795_v53 }
  0xf3   :  { %v931_v57 = vadd.f32 %v1873_v60, %v844_v56 }
  0xf4   :  { %v748_v59 = vpop.f32.mrf.mxu2 }
  0xf5   :  { %v947_v62 = vmax.f32 %v931_v57, 0.0  ;;  %v749_v63 = vadd.f32 %v748_v59, %v700_v58 }
  0xf6   :  { %v797_v0 = vpop.f32.mrf.mxu3  ;;  %v701_v24 = vpop.f32.mrf.mxu1 }
  0xf7   :  { %v1407_v1 = vpack.c.bf16 %v947_v62, %v946_v61  ;;  %v798_v3 = vadd.f32 %v797_v0, %v749_v63  ;;  %v702_v4 = vadd.f32 %v701_v24, %v1864_v44 }
  0xf8   :  { %v848_v2 = vpop.f32.mrf.mxu0 }
  0xf9   :  { %1435 = vst [vmem:[%s1930_s3 + $0x10] sm:$0xff] %v1407_v1   ;;  %v847_v6 = vadd.f32 %v846_v54, %v798_v3 }
  0xfb   :  { %v932_v11 = vadd.f32 %v1873_v60, %v847_v6 }
  0xfc   :  { %v750_v5 = vpop.f32.mrf.mxu2 }
  0xfd   :  { %v751_v7 = vadd.f32 %v750_v5, %v702_v4  ;;  %v948_v16 = vmax.f32 %v932_v11, 0.0 }
  0xfe   :  { %v799_v8 = vpop.f32.mrf.mxu3  ;;  %v704_v38 = vpop.f32.mrf.mxu1 }
  0xff   :  { %v800_v9 = vadd.f32 %v799_v8, %v751_v7  ;;  %v705_v14 = vadd.f32 %v704_v38, %v1824_v22 }
 0x100   :  { %v851_v10 = vpop.f32.mrf.mxu0 }
 0x101   :  { %v849_v12 = vadd.f32 %v848_v2, %v800_v9 }
 0x103   :  { %v933_v13 = vadd.f32 %v1873_v60, %v849_v12 }
 0x104   :  { %v753_v15 = vpop.f32.mrf.mxu2 }
 0x105   :  { %v949_v17 = vmax.f32 %v933_v13, 0.0  ;;  %v754_v19 = vadd.f32 %v753_v15, %v705_v14 }
 0x106   :  { %v802_v20 = vpop.f32.mrf.mxu3  ;;  %v706_v44 = vpop.f32.mrf.mxu1 }
 0x107   :  { %v1412_v21 = vpack.c.bf16 %v949_v17, %v948_v16  ;;  %v803_v26 = vadd.f32 %v802_v20, %v754_v19  ;;  %v707_v27 = vadd.f32 %v706_v44, %v1854_v34 }
 0x108   :  { %v853_v25 = vpop.f32.mrf.mxu0 }
 0x109   :  { %1436 = vst [vmem:[%s1930_s3 + $0x18] sm:$0xff] %v1412_v21   ;;  %v852_v29 = vadd.f32 %v851_v10, %v803_v26 }
 0x10b   :  { %v934_v36 = vadd.f32 %v1873_v60, %v852_v29 }
 0x10c   :  { %v755_v28 = vpop.f32.mrf.mxu2 }
 0x10d   :  { %v756_v30 = vadd.f32 %v755_v28, %v707_v27  ;;  %v950_v45 = vmax.f32 %v934_v36, 0.0 }
 0x10e   :  { %v804_v31 = vpop.f32.mrf.mxu3  ;;  %v709_v22 = vpop.f32.mrf.mxu1 }
 0x10f   :  { %v805_v32 = vadd.f32 %v804_v31, %v756_v30  ;;  %v710_v40 = vadd.f32 %v709_v22, %v1860_v42 }
 0x110   :  { %v856_v33 = vpop.f32.mrf.mxu0 }
 0x111   :  { %v854_v37 = vadd.f32 %v853_v25, %v805_v32 }
 0x113   :  { %v935_v39 = vadd.f32 %v1873_v60, %v854_v37 }
 0x114   :  { %v758_v41 = vpop.f32.mrf.mxu2 }
 0x115   :  { %v951_v48 = vmax.f32 %v935_v39, 0.0  ;;  %v759_v49 = vadd.f32 %v758_v41, %v710_v40 }
 0x116   :  { %v807_v50 = vpop.f32.mrf.mxu3  ;;  %v711_v34 = vpop.f32.mrf.mxu1 }
 0x117   :  { %v1417_v51 = vpack.c.bf16 %v951_v48, %v950_v45  ;;  %v808_v18 = vadd.f32 %v807_v50, %v759_v49  ;;  %v712_v53 = vadd.f32 %v711_v34, %v1866_v46 }
 0x118   :  { %v858_v52 = vpop.f32.mrf.mxu0 }
 0x119   :  { %1437 = vst [vmem:[%s1930_s3 + $0x20] sm:$0xff] %v1417_v51   ;;  %v857_v55 = vadd.f32 %v856_v33, %v808_v18 }
 0x11b   :  { %v936_v59 = vadd.f32 %v1873_v60, %v857_v55 }
 0x11c   :  { %v760_v54 = vpop.f32.mrf.mxu2 }
 0x11d   :  { %v761_v56 = vadd.f32 %v760_v54, %v712_v53  ;;  %v952_v1 = vmax.f32 %v936_v59, 0.0 }
 0x11e   :  { %v809_v57 = vpop.f32.mrf.mxu3  ;;  %v714_v42 = vpop.f32.mrf.mxu1 }
 0x11f   :  { %v810_v58 = vadd.f32 %v809_v57, %v761_v56  ;;  %v715_v0 = vadd.f32 %v714_v42, %v1826_v23 }
 0x120   :  { %v861_v62 = vpop.f32.mrf.mxu0 }
 0x121   :  { %v859_v61 = vadd.f32 %v858_v52, %v810_v58 }
 0x123   :  { %v937_v63 = vadd.f32 %v1873_v60, %v859_v61 }
 0x124   :  { %v763_v24 = vpop.f32.mrf.mxu2 }
 0x125   :  { %v953_v2 = vmax.f32 %v937_v63, 0.0  ;;  %v764_v3 = vadd.f32 %v763_v24, %v715_v0 }
 0x126   :  { %v812_v4 = vpop.f32.mrf.mxu3  ;;  %v716_v46 = vpop.f32.mrf.mxu1 }
 0x127   :  { %v1422_v5 = vpack.c.bf16 %v953_v2, %v952_v1  ;;  %v813_v6 = vadd.f32 %v812_v4, %v764_v3  ;;  %v717_v7 = vadd.f32 %v716_v46, %v1856_v35 }
 0x128   :  { %v863_v8 = vpop.f32.mrf.mxu0 }
 0x129   :  { %1438 = vst [vmem:[%s1930_s3 + $0x28] sm:$0xff] %v1422_v5   ;;  %v862_v9 = vadd.f32 %v861_v62, %v813_v6 }
 0x12b   :  { %v938_v13 = vadd.f32 %v1873_v60, %v862_v9 }
 0x12c   :  { %v765_v38 = vpop.f32.mrf.mxu2 }
 0x12d   :  { %v766_v10 = vadd.f32 %v765_v38, %v717_v7  ;;  %v954_v19 = vmax.f32 %v938_v13, 0.0 }
 0x12e   :  { %v814_v11 = vpop.f32.mrf.mxu3  ;;  %v719_v23 = vpop.f32.mrf.mxu1 }
 0x12f   :  { %v815_v12 = vadd.f32 %v814_v11, %v766_v10  ;;  %v720_v16 = vadd.f32 %v719_v23, %v1862_v43 }
 0x130   :  { %v866_v35 = vpop.f32.mrf.mxu0 }
 0x131   :  { %v864_v14 = vadd.f32 %v863_v8, %v815_v12 }
 0x133   :  { %v939_v15 = vadd.f32 %v1873_v60, %v864_v14 }
 0x134   :  { %v768_v17 = vpop.f32.mrf.mxu2 }
 0x135   :  { %v955_v20 = vmax.f32 %v939_v15, 0.0  ;;  %v769_v44 = vadd.f32 %v768_v17, %v720_v16 }
 0x136   :  { %v817_v21 = vpop.f32.mrf.mxu3  ;;  %v721_v26 = vpop.f32.mrf.mxu1 }
 0x137   :  { %v1427_v25 = vpack.c.bf16 %v955_v20, %v954_v19  ;;  %v818_v27 = vadd.f32 %v817_v21, %v769_v44  ;;  %v722_v28 = vadd.f32 %v721_v26, %v1868_v47 }
 0x138   :  { %v868_v32 = vpop.f32.mrf.mxu0 }
 0x139   :  { %1439 = vst [vmem:[%s1930_s3 + $0x30] sm:$0xff] %v1427_v25   ;;  %v867_v30 = vadd.f32 %v866_v35, %v818_v27 }
 0x13b   :  { %v940_v33 = vadd.f32 %v1873_v60, %v867_v30 }
 0x13c   :  { %v770_v29 = vpop.f32.mrf.mxu2 }
 0x13d   :  { %v771_v31 = vadd.f32 %v770_v29, %v722_v28  ;;  %v956_v39 = vmax.f32 %v940_v33, 0.0 }
 0x13e   :  { %v819_v22 = vpop.f32.mrf.mxu3 }
 0x13f   :  { %v820_v43 = vadd.f32 %v819_v22, %v771_v31 }
 0x141   :  { %v869_v36 = vadd.f32 %v868_v32, %v820_v43 }
 0x143   :  { %v941_v37 = vadd.f32 %v1873_v60, %v869_v36 }
 0x145   :  { %v957_v40 = vmax.f32 %v941_v37, 0.0 }
 0x147   :  { %v1432_v41 = vpack.c.bf16 %v957_v40, %v956_v39 }
 0x149   :  { %1440 = vst [vmem:[%s1930_s3 + $0x38] sm:$0xff] %v1432_v41  }

// kernel: _lambda_.18
= control target key start
LH: loop header
LB: loop body
LE: loop exit
PB: predicated region body
PF: predicated region fallthrough
CT: control target
= control target key end

     0   :  { %s2046_s1 = inlined_call_operand.vmem [shape: bf16[640,128], index: 1, kind: input, shape index: {}]   ;;  %s2047_s0 = inlined_call_operand.vmem [shape: bf16[128,640], index: 0, kind: input, shape index: {}]   ;;  %s2048_s2 = inlined_call_operand.vmem [shape: f32[1,128], index: 2, kind: input, shape index: {}]   ;;  %s2049_s3 = inlined_call_operand.vmem [shape: bf16[128,128], index: 3, kind: input, shape index: {}]   ;;  %s2050_s4 = inlined_call_operand.vmem [shape: bf16[128,128], index: 4, kind: output, shape index: {}]  }
   0x1   :  { %v1412_v0 = vld [vmem:[%s2046_s1 + $0x38] sm:$0xff]  ;;  %v1411_v1 = vld [vmem:[%s2046_s1 + $0x30] sm:$0xff]  ;;  %v1410_v2 = vld [vmem:[%s2046_s1 + $0x28] sm:$0xff] }
   0x2   :  { %1531 = vmatpush.bf16.msra.mxu1 %v1412_v0  ;;  %1532 = vmatpush.bf16.msra.mxu2 %v1412_v0  ;;  %v1409_v3 = vld [vmem:[%s2046_s1 + $0x20] sm:$0xff]  ;;  %v1408_v4 = vld [vmem:[%s2046_s1 + $0x18] sm:$0xff]  ;;  %v1407_v5 = vld [vmem:[%s2046_s1 + $0x10] sm:$0xff] }
   0x3   :  { %1533 = vmatpush.bf16.msra.mxu3 %v1412_v0  ;;  %629 = vmatpush.bf16.msra.mxu0 %v1412_v0  ;;  %v1406_v6 = vld [vmem:[%s2046_s1 + $0x8] sm:$0xff]  ;;  %v1405_v7 = vld [vmem:[%s2046_s1] sm:$0xff]  ;;  %v1087_v8 = vld [vmem:[%s2047_s0 + $0x50] sm:$0xf] }
   0x4   :  { %v1377_v9 = vld [vmem:[%s2047_s0 + $0x60] sm:$0xf0]  ;;  %v1127_v10 = vld [vmem:[%s2047_s0 + $0xa0] sm:$0xf]  ;;  %v1387_v11 = vld [vmem:[%s2047_s0 + $0xb0] sm:$0xf0] }
   0x5   :  { %v1167_v12 = vld [vmem:[%s2047_s0 + $0xf0] sm:$0xf]  ;;  %v1397_v13 = vld [vmem:[%s2047_s0 + $0x100] sm:$0xf0]  ;;  %v1047_v14 = vld [vmem:[%s2047_s0] sm:$0xf]  ;;  %v1088_v18 = vor.u32 %v1377_v9, %v1087_v8  ;;  %v1128_v19 = vor.u32 %v1387_v11, %v1127_v10 }
   0x6   :  { %1534 = vmatpush.bf16.msra.mxu1 %v1411_v1  ;;  %1535 = vmatpush.bf16.msra.mxu2 %v1411_v1  ;;  %v1367_v15 = vld [vmem:[%s2047_s0 + $0x10] sm:$0xf0]  ;;  %v1428_v16 = vld [vmem:[%s2046_s1 + $0xb8] sm:$0xff]  ;;  %v1168_v20 = vor.u32 %v1397_v13, %v1167_v12  ;;  %v1426_v28 = vld [vmem:[%s2046_s1 + $0xa8] sm:$0xff] }
   0x7   :  { %1536 = vmatpush.bf16.msra.mxu3 %v1411_v1  ;;  %630 = vmatpush.bf16.msra.mxu0 %v1411_v1  ;;  %v1420_v17 = vld [vmem:[%s2046_s1 + $0x78] sm:$0xff]  ;;  %v1048_v21 = vor.u32 %v1367_v15, %v1047_v14  ;;  %v1427_v24 = vld [vmem:[%s2046_s1 + $0xb0] sm:$0xff]  ;;  %v1418_v29 = vld [vmem:[%s2046_s1 + $0x68] sm:$0xff] }
   0x8   :  { %v1436_v22 = vld [vmem:[%s2046_s1 + $0xf8] sm:$0xff]  ;;  %v1419_v25 = vld [vmem:[%s2046_s1 + $0x70] sm:$0xff]  ;;  %v1434_v30 = vld [vmem:[%s2046_s1 + $0xe8] sm:$0xff] }
   0x9   :  { %v1444_v23 = vld [vmem:[%s2046_s1 + $0x138] sm:$0xff]  ;;  %v1435_v26 = vld [vmem:[%s2046_s1 + $0xf0] sm:$0xff]  ;;  %v1442_v31 = vld [vmem:[%s2046_s1 + $0x128] sm:$0xff] }
   0xa   :  { %1537 = vmatpush.bf16.msra.mxu1 %v1410_v2  ;;  %1538 = vmatpush.bf16.msra.mxu2 %v1410_v2  ;;  %v1443_v27 = vld [vmem:[%s2046_s1 + $0x130] sm:$0xff]  ;;  %v1425_v32 = vld [vmem:[%s2046_s1 + $0xa0] sm:$0xff]  ;;  %v1107_v36 = vld [vmem:[%s2047_s0 + $0x78] sm:$0xf] }
   0xb   :  { %1539 = vmatpush.bf16.msra.mxu3 %v1410_v2  ;;  %631 = vmatpush.bf16.msra.mxu0 %v1410_v2  ;;  %v1417_v33 = vld [vmem:[%s2046_s1 + $0x60] sm:$0xff]  ;;  %v1382_v37 = vld [vmem:[%s2047_s0 + $0x88] sm:$0xf0]  ;;  %v1147_v38 = vld [vmem:[%s2047_s0 + $0xc8] sm:$0xf] }
   0xc   :  { %v1433_v34 = vld [vmem:[%s2046_s1 + $0xe0] sm:$0xff]  ;;  %v1392_v39 = vld [vmem:[%s2047_s0 + $0xd8] sm:$0xf0]  ;;  %v1187_v40 = vld [vmem:[%s2047_s0 + $0x118] sm:$0xf]  ;;  %v1108_v46 = vor.u32 %v1382_v37, %v1107_v36 }
   0xd   :  { %v1441_v35 = vld [vmem:[%s2046_s1 + $0x120] sm:$0xff]  ;;  %v1402_v41 = vld [vmem:[%s2047_s0 + $0x128] sm:$0xf0]  ;;  %v1067_v42 = vld [vmem:[%s2047_s0 + $0x28] sm:$0xf]  ;;  %v1148_v47 = vor.u32 %v1392_v39, %v1147_v38 }
   0xe   :  { %1540 = vmatpush.bf16.msra.mxu1 %v1409_v3  ;;  %1541 = vmatpush.bf16.msra.mxu2 %v1409_v3  ;;  %v1372_v43 = vld [vmem:[%s2047_s0 + $0x38] sm:$0xf0]  ;;  %v1188_v48 = vor.u32 %v1402_v41, %v1187_v40  ;;  %v1423_v52 = vld [vmem:[%s2046_s1 + $0x90] sm:$0xff]  ;;  %v1422_v56 = vld [vmem:[%s2046_s1 + $0x88] sm:$0xff] }
   0xf   :  { %1542 = vmatpush.bf16.msra.mxu3 %v1409_v3  ;;  %632 = vmatpush.bf16.msra.mxu0 %v1409_v3  ;;  %v1424_v44 = vld [vmem:[%s2046_s1 + $0x98] sm:$0xff]  ;;  %v1068_v49 = vor.u32 %v1372_v43, %v1067_v42  ;;  %v1415_v53 = vld [vmem:[%s2046_s1 + $0x50] sm:$0xff]  ;;  %v1414_v57 = vld [vmem:[%s2046_s1 + $0x48] sm:$0xff] }
  0x10   :  { %v1416_v45 = vld [vmem:[%s2046_s1 + $0x58] sm:$0xff]  ;;  %v1431_v54 = vld [vmem:[%s2046_s1 + $0xd0] sm:$0xff]  ;;  %v1430_v58 = vld [vmem:[%s2046_s1 + $0xc8] sm:$0xff] }
  0x11   :  { %v1432_v50 = vld [vmem:[%s2046_s1 + $0xd8] sm:$0xff]  ;;  %v1439_v55 = vld [vmem:[%s2046_s1 + $0x110] sm:$0xff]  ;;  %v1438_v59 = vld [vmem:[%s2046_s1 + $0x108] sm:$0xff] }
  0x12   :  { %1543 = vmatpush.bf16.msra.mxu1 %v1408_v4  ;;  %1544 = vmatpush.bf16.msra.mxu2 %v1408_v4  ;;  %v1440_v51 = vld [vmem:[%s2046_s1 + $0x118] sm:$0xff]  ;;  %v1421_v60 = vld [vmem:[%s2046_s1 + $0x80] sm:$0xff]  ;;  %v1055_v2 = vld [vmem:[%s2047_s0 + $0x8] sm:$0xf] }
  0x13   :  { %1545 = vmatpush.bf16.msra.mxu3 %v1408_v4  ;;  %633 = vmatpush.bf16.msra.mxu0 %v1408_v4  ;;  %v1413_v61 = vld [vmem:[%s2046_s1 + $0x40] sm:$0xff]  ;;  %v1049_v1 = vld [vmem:[%s2047_s0 + $0x14] sm:$0xf0]  ;;  %v1368_v3 = vld [vmem:[%s2047_s0 + $0x18] sm:$0xf0] }
  0x14   :  { %v1429_v62 = vld [vmem:[%s2046_s1 + $0xc0] sm:$0xff]  ;;  %v1366_v4 = vld [vmem:[%s2047_s0 + $0xc] sm:$0xf]  ;;  %v1056_v9 = vor.u32 %v1368_v3, %v1055_v2  ;;  %v1075_v14 = vld [vmem:[%s2047_s0 + $0x30] sm:$0xf] }
  0x15   :  { %v1437_v63 = vld [vmem:[%s2046_s1 + $0x100] sm:$0xff]  ;;  %v1370_v12 = vld [vmem:[%s2047_s0 + $0x2c] sm:$0xf]  ;;  %v1380_v36 = vld [vmem:[%s2047_s0 + $0x7c] sm:$0xf] }
  0x16   :  { %1546 = vmatpush.bf16.msra.mxu1 %v1407_v5  ;;  %1547 = vmatpush.bf16.msra.mxu2 %v1407_v5  ;;  %v1365_v0 = vld [vmem:[%s2047_s0 + $0x4] sm:$0xf]  ;;  %v1069_v13 = vld [vmem:[%s2047_s0 + $0x3c] sm:$0xf0]  ;;  %v1109_v37 = vld [vmem:[%s2047_s0 + $0x8c] sm:$0xf0] }
  0x17   :  { %1548 = vmatpush.bf16.msra.mxu3 %v1407_v5  ;;  %634 = vmatpush.bf16.msra.mxu0 %v1407_v5  ;;  %v1057_v5 = vld [vmem:[%s2047_s0 + $0x1c] sm:$0xf0]  ;;  %v1052_v8 = vor.u32 %v1365_v0, %v1049_v1  ;;  %v1373_v15 = vld [vmem:[%s2047_s0 + $0x40] sm:$0xf0]  ;;  %v1383_v39 = vld [vmem:[%s2047_s0 + $0x90] sm:$0xf0] }
  0x18   :  { %v1060_v10 = vor.u32 %v1366_v4, %v1057_v5  ;;  %v1115_v38 = vld [vmem:[%s2047_s0 + $0x80] sm:$0xf]  ;;  %v1381_v40 = vld [vmem:[%s2047_s0 + $0x84] sm:$0xf]  ;;  %v1117_v41 = vld [vmem:[%s2047_s0 + $0x94] sm:$0xf0] }
  0x19   :  { %v1123_v42 = vld [vmem:[%s2047_s0 + $0x88] sm:$0xf]  ;;  %v1384_v43 = vld [vmem:[%s2047_s0 + $0x98] sm:$0xf0]  ;;  %v1391_v0 = vld [vmem:[%s2047_s0 + $0xd4] sm:$0xf] }
  0x1a   :  { %1549 = vmatpush.bf16.msra.mxu1 %v1406_v6  ;;  %1550 = vmatpush.bf16.msra.mxu2 %v1406_v6  ;;  %v1157_v1 = vld [vmem:[%s2047_s0 + $0xe4] sm:$0xf0]  ;;  %v1163_v2 = vld [vmem:[%s2047_s0 + $0xd8] sm:$0xf]  ;;  %v1394_v3 = vld [vmem:[%s2047_s0 + $0xe8] sm:$0xf0] }
  0x1b   :  { %1551 = vmatpush.bf16.msra.mxu3 %v1406_v6  ;;  %635 = vmatpush.bf16.msra.mxu0 %v1406_v6  ;;  %v1063_v6 = vld [vmem:[%s2047_s0 + $0x10] sm:$0xf] }
  0x1e   :  { %1552 = vmatpush.bf16.msra.mxu1 %v1405_v7  ;;  %1553 = vmatpush.bf16.msra.mxu2 %v1405_v7 }
  0x1f   :  { %1554 = vmatpush.bf16.msra.mxu3 %v1405_v7  ;;  %636 = vmatpush.bf16.msra.mxu0 %v1405_v7  ;;  %v1369_v7 = vld [vmem:[%s2047_s0 + $0x20] sm:$0xf0] }
  0x20   :  { %v1064_v11 = vor.u32 %v1369_v7, %v1063_v6  ;;  %v1160_v6 = vor.u32 %v1391_v0, %v1157_v1  ;;  %v1164_v7 = vor.u32 %v1394_v3, %v1163_v2 }
  0x21   :  { %647 = vmatmul.bf16.vlgmr.msra.gmra.mxu1 %v1088_v18  ;;  %657 = vmatmul.bf16.vlgmr.msra.gmra.mxu2 %v1128_v19  ;;  %v1083_v18 = vld [vmem:[%s2047_s0 + $0x38] sm:$0xf]  ;;  %v1374_v19 = vld [vmem:[%s2047_s0 + $0x48] sm:$0xf0] }
  0x22   :  { %727 = vmatpush.bf16.msrb.mxu2 %v1428_v16  ;;  %678 = vmatpush.bf16.msrb.mxu1 %v1420_v17  ;;  %v1371_v16 = vld [vmem:[%s2047_s0 + $0x34] sm:$0xf]  ;;  %v1077_v17 = vld [vmem:[%s2047_s0 + $0x44] sm:$0xf0] }
  0x23   :  { %667 = vmatmul.bf16.vlgmr.msra.gmra.mxu3 %v1168_v20  ;;  %637 = vmatmul.bf16.vlgmr.msra.gmra.mxu0 %v1048_v21  ;;  %v1072_v20 = vor.u32 %v1370_v12, %v1069_v13  ;;  %v1076_v21 = vor.u32 %v1373_v15, %v1075_v14  ;;  %v1396_v12 = vld [vmem:[%s2047_s0 + $0xfc] sm:$0xf]  ;;  %v1177_v13 = vld [vmem:[%s2047_s0 + $0x10c] sm:$0xf0]  ;;  %v1183_v14 = vld [vmem:[%s2047_s0 + $0x100] sm:$0xf] }
  0x24   :  { %776 = vmatpush.bf16.msrb.mxu3 %v1436_v22  ;;  %825 = vmatpush.bf16.msrb.mxu0 %v1444_v23  ;;  %v1080_v22 = vor.u32 %v1371_v16, %v1077_v17  ;;  %v1084_v23 = vor.u32 %v1374_v19, %v1083_v18  ;;  %v1399_v15 = vld [vmem:[%s2047_s0 + $0x110] sm:$0xf0]  ;;  %v1180_v19 = vor.u32 %v1396_v12, %v1177_v13 }
  0x26   :  { %728 = vmatpush.bf16.msrb.mxu2 %v1427_v24  ;;  %679 = vmatpush.bf16.msrb.mxu1 %v1419_v25  ;;  %v1375_v24 = vld [vmem:[%s2047_s0 + $0x54] sm:$0xf]  ;;  %v1089_v25 = vld [vmem:[%s2047_s0 + $0x64] sm:$0xf0] }
  0x28   :  { %777 = vmatpush.bf16.msrb.mxu3 %v1435_v26  ;;  %826 = vmatpush.bf16.msrb.mxu0 %v1443_v27  ;;  %v1095_v26 = vld [vmem:[%s2047_s0 + $0x58] sm:$0xf]  ;;  %v1378_v27 = vld [vmem:[%s2047_s0 + $0x68] sm:$0xf0] }
  0x2a   :  { %729 = vmatpush.bf16.msrb.mxu2 %v1426_v28  ;;  %680 = vmatpush.bf16.msrb.mxu1 %v1418_v29  ;;  %v1376_v28 = vld [vmem:[%s2047_s0 + $0x5c] sm:$0xf]  ;;  %v1097_v29 = vld [vmem:[%s2047_s0 + $0x6c] sm:$0xf0] }
  0x2c   :  { %778 = vmatpush.bf16.msrb.mxu3 %v1434_v30  ;;  %827 = vmatpush.bf16.msrb.mxu0 %v1442_v31  ;;  %v1103_v30 = vld [vmem:[%s2047_s0 + $0x60] sm:$0xf]  ;;  %v1379_v31 = vld [vmem:[%s2047_s0 + $0x70] sm:$0xf0] }
  0x2e   :  { %730 = vmatpush.bf16.msrb.mxu2 %v1425_v32  ;;  %681 = vmatpush.bf16.msrb.mxu1 %v1417_v33  ;;  %v1092_v32 = vor.u32 %v1375_v24, %v1089_v25  ;;  %v1096_v33 = vor.u32 %v1378_v27, %v1095_v26  ;;  %v1400_v26 = vld [vmem:[%s2047_s0 + $0x11c] sm:$0xf]  ;;  %v1189_v27 = vld [vmem:[%s2047_s0 + $0x12c] sm:$0xf0] }
  0x30   :  { %779 = vmatpush.bf16.msrb.mxu3 %v1433_v34  ;;  %828 = vmatpush.bf16.msrb.mxu0 %v1441_v35  ;;  %v1100_v34 = vor.u32 %v1376_v28, %v1097_v29  ;;  %v1104_v35 = vor.u32 %v1379_v31, %v1103_v30  ;;  %v1195_v28 = vld [vmem:[%s2047_s0 + $0x120] sm:$0xf]  ;;  %v1403_v29 = vld [vmem:[%s2047_s0 + $0x130] sm:$0xf0]  ;;  %v1401_v30 = vld [vmem:[%s2047_s0 + $0x124] sm:$0xf] }
  0x31   :  { %652 = vmatmul.bf16.gmra.mxu1 %v1108_v46  ;;  %662 = vmatmul.bf16.gmra.mxu2 %v1148_v47  ;;  %v1120_v46 = vor.u32 %v1381_v40, %v1117_v41  ;;  %v1124_v47 = vor.u32 %v1384_v43, %v1123_v42  ;;  %v1197_v31 = vld [vmem:[%s2047_s0 + $0x134] sm:$0xf0] }
  0x32   :  { %731 = vmatpush.bf16.msrb.mxu2 %v1424_v44  ;;  %682 = vmatpush.bf16.msrb.mxu1 %v1416_v45  ;;  %v1112_v44 = vor.u32 %v1380_v36, %v1109_v37  ;;  %v1116_v45 = vor.u32 %v1383_v39, %v1115_v38  ;;  %v1192_v36 = vor.u32 %v1400_v26, %v1189_v27  ;;  %v1517_v26 = vld [vmem:[%s2049_s3 + $0x8] sm:$0xff]  }
  0x33   :  { %672 = vmatmul.bf16.gmra.mxu3 %v1188_v48  ;;  %642 = vmatmul.bf16.gmra.mxu0 %v1068_v49  ;;  %v1385_v48 = vld [vmem:[%s2047_s0 + $0xa4] sm:$0xf]  ;;  %v1129_v49 = vld [vmem:[%s2047_s0 + $0xb4] sm:$0xf0]  ;;  %v1196_v37 = vor.u32 %v1403_v29, %v1195_v28  ;;  %v1200_v39 = vor.u32 %v1401_v30, %v1197_v31 }
  0x34   :  { %780 = vmatpush.bf16.msrb.mxu3 %v1432_v50  ;;  %829 = vmatpush.bf16.msrb.mxu0 %v1440_v51  ;;  %v1135_v50 = vld [vmem:[%s2047_s0 + $0xa8] sm:$0xf]  ;;  %v1388_v51 = vld [vmem:[%s2047_s0 + $0xb8] sm:$0xf0] }
  0x36   :  { %732 = vmatpush.bf16.msrb.mxu2 %v1423_v52  ;;  %683 = vmatpush.bf16.msrb.mxu1 %v1415_v53  ;;  %v1386_v52 = vld [vmem:[%s2047_s0 + $0xac] sm:$0xf]  ;;  %v1137_v53 = vld [vmem:[%s2047_s0 + $0xbc] sm:$0xf0] }
  0x38   :  { %781 = vmatpush.bf16.msrb.mxu3 %v1431_v54  ;;  %830 = vmatpush.bf16.msrb.mxu0 %v1439_v55  ;;  %v1143_v54 = vld [vmem:[%s2047_s0 + $0xb0] sm:$0xf]  ;;  %v1389_v55 = vld [vmem:[%s2047_s0 + $0xc0] sm:$0xf0] }
  0x3a   :  { %733 = vmatpush.bf16.msrb.mxu2 %v1422_v56  ;;  %684 = vmatpush.bf16.msrb.mxu1 %v1414_v57  ;;  %v1132_v56 = vor.u32 %v1385_v48, %v1129_v49  ;;  %v1136_v57 = vor.u32 %v1388_v51, %v1135_v50 }
  0x3c   :  { %782 = vmatpush.bf16.msrb.mxu3 %v1430_v58  ;;  %831 = vmatpush.bf16.msrb.mxu0 %v1438_v59  ;;  %v1140_v58 = vor.u32 %v1386_v52, %v1137_v53  ;;  %v1144_v59 = vor.u32 %v1389_v55, %v1143_v54 }
  0x3e   :  { %734 = vmatpush.bf16.msrb.mxu2 %v1421_v60  ;;  %685 = vmatpush.bf16.msrb.mxu1 %v1413_v61  ;;  %v1390_v60 = vld [vmem:[%s2047_s0 + $0xcc] sm:$0xf]  ;;  %v1149_v61 = vld [vmem:[%s2047_s0 + $0xdc] sm:$0xf0] }
  0x3f   :  { %v1152_v4 = vor.u32 %v1390_v60, %v1149_v61  ;;  %v1446_v60 = vld [vmem:[%s2049_s3] sm:$0xff]  }
  0x40   :  { %783 = vmatpush.bf16.msrb.mxu3 %v1429_v62  ;;  %832 = vmatpush.bf16.msrb.mxu0 %v1437_v63  ;;  %v1155_v62 = vld [vmem:[%s2047_s0 + $0xd0] sm:$0xf]  ;;  %v1393_v63 = vld [vmem:[%s2047_s0 + $0xe0] sm:$0xf0]  ;;  %v1447_v2 = vunpack.c.l.bf16 %v1446_v60 }
  0x41   :  { %686 = vmatmul.bf16.vlgmr.msrb.gmra.mxu1 %v1052_v8  ;;  %735 = vmatmul.bf16.vlgmr.msrb.gmra.mxu2 %v1056_v9  ;;  %v1156_v5 = vor.u32 %v1393_v63, %v1155_v62  ;;  %v1395_v8 = vld [vmem:[%s2047_s0 + $0xf4] sm:$0xf]  ;;  %v1169_v9 = vld [vmem:[%s2047_s0 + $0x104] sm:$0xf0] }
  0x42   :  { %v1172_v16 = vor.u32 %v1395_v8, %v1169_v9 }
  0x43   :  { %784 = vmatmul.bf16.vlgmr.msrb.gmra.mxu3 %v1060_v10  ;;  %833 = vmatmul.bf16.vlgmr.msrb.gmra.mxu0 %v1064_v11  ;;  %v1175_v10 = vld [vmem:[%s2047_s0 + $0xf8] sm:$0xf]  ;;  %v1398_v11 = vld [vmem:[%s2047_s0 + $0x108] sm:$0xf0] }
  0x44   :  { %v1176_v17 = vor.u32 %v1398_v11, %v1175_v10 }
  0x51   :  { %691 = vmatmul.bf16.gmra.mxu1 %v1072_v20  ;;  %740 = vmatmul.bf16.gmra.mxu2 %v1076_v21  ;;  %v1184_v20 = vor.u32 %v1399_v15, %v1183_v14 }
  0x53   :  { %789 = vmatmul.bf16.gmra.mxu3 %v1080_v22  ;;  %838 = vmatmul.bf16.gmra.mxu0 %v1084_v23 }
  0x61   :  { %696 = vmatmul.bf16.gmra.mxu1 %v1092_v32  ;;  %745 = vmatmul.bf16.gmra.mxu2 %v1096_v33  ;;  %v1203_v32 = vld [vmem:[%s2047_s0 + $0x128] sm:$0xf]  ;;  %v1404_v33 = vld [vmem:[%s2047_s0 + $0x138] sm:$0xf0] }
  0x62   :  { %v1204_v40 = vor.u32 %v1404_v33, %v1203_v32  ;;  %v1451_v32 = vunpack.c.l.bf16 %v1517_v26 }
  0x63   :  { %794 = vmatmul.bf16.gmra.mxu3 %v1100_v34  ;;  %843 = vmatmul.bf16.gmra.mxu0 %v1104_v35 }
  0x71   :  { %701 = vmatmul.bf16.gmra.mxu1 %v1112_v44  ;;  %750 = vmatmul.bf16.gmra.mxu2 %v1116_v45 }
  0x73   :  { %799 = vmatmul.bf16.gmra.mxu3 %v1120_v46  ;;  %848 = vmatmul.bf16.gmra.mxu0 %v1124_v47 }
  0x81   :  { %706 = vmatmul.bf16.gmra.mxu1 %v1132_v56  ;;  %755 = vmatmul.bf16.gmra.mxu2 %v1136_v57 }
  0x83   :  { %804 = vmatmul.bf16.gmra.mxu3 %v1140_v58  ;;  %853 = vmatmul.bf16.gmra.mxu0 %v1144_v59  ;;  %v1968_v58 = vld [vmem:[%s2048_s2] ss:$0 sm:$0xff] }
  0x91   :  { %711 = vmatmul.bf16.gmra.mxu1 %v1152_v4  ;;  %760 = vmatmul.bf16.gmra.mxu2 %v1156_v5 }
  0x93   :  { %809 = vmatmul.bf16.gmra.mxu3 %v1160_v6  ;;  %858 = vmatmul.bf16.gmra.mxu0 %v1164_v7  ;;  %v1448_v6 = vunpack.c.h.bf16 %v1446_v60 }
  0x9e   :  { %v1917_v18 = vpop.f32.mrf.mxu1 }
  0xa0   :  { %v638_v21 = vpop.f32.mrf.mxu0 }
  0xa1   :  { %716 = vmatmul.bf16.gmra.mxu1 %v1172_v16  ;;  %765 = vmatmul.bf16.gmra.mxu2 %v1176_v17 }
  0xa3   :  { %814 = vmatmul.bf16.gmra.mxu3 %v1180_v19  ;;  %863 = vmatmul.bf16.gmra.mxu0 %v1184_v20 }
  0xa4   :  { %v1919_v22 = vpop.f32.mrf.mxu2 }
  0xa6   :  { %v1921_v23 = vpop.f32.mrf.mxu3  ;;  %v1923_v24 = vpop.f32.mrf.mxu1 }
  0xa8   :  { %v640_v25 = vpop.f32.mrf.mxu0 }
  0xac   :  { %v1949_v34 = vpop.f32.mrf.mxu2 }
  0xae   :  { %v1951_v35 = vpop.f32.mrf.mxu3  ;;  %v1953_v38 = vpop.f32.mrf.mxu1 }
  0xb0   :  { %v643_v41 = vpop.f32.mrf.mxu0 }
  0xb1   :  { %721 = vmatmul.bf16.gmra.mxu1 %v1192_v36  ;;  %770 = vmatmul.bf16.gmra.mxu2 %v1196_v37 }
  0xb3   :  { %819 = vmatmul.bf16.gmra.mxu3 %v1200_v39  ;;  %868 = vmatmul.bf16.gmra.mxu0 %v1204_v40  ;;  %v1452_v39 = vunpack.c.h.bf16 %v1517_v26 }
  0xb4   :  { %v1955_v42 = vpop.f32.mrf.mxu2 }
  0xb6   :  { %v1957_v43 = vpop.f32.mrf.mxu3  ;;  %v1959_v44 = vpop.f32.mrf.mxu1 }
  0xb8   :  { %v645_v45 = vpop.f32.mrf.mxu0 }
  0xbc   :  { %v1961_v46 = vpop.f32.mrf.mxu2 }
  0xbe   :  { %v1963_v47 = vpop.f32.mrf.mxu3  ;;  %v687_v48 = vpop.f32.mrf.mxu1 }
  0xbf   :  { %v688_v50 = vadd.f32 %v687_v48, %v638_v21 }
  0xc0   :  { %v834_v49 = vpop.f32.mrf.mxu0 }
  0xc4   :  { %v736_v51 = vpop.f32.mrf.mxu2 }
  0xc5   :  { %v737_v52 = vadd.f32 %v736_v51, %v688_v50 }
  0xc6   :  { %v785_v53 = vpop.f32.mrf.mxu3  ;;  %v689_v54 = vpop.f32.mrf.mxu1 }
  0xc7   :  { %v786_v55 = vadd.f32 %v785_v53, %v737_v52  ;;  %v690_v59 = vadd.f32 %v689_v54, %v640_v25 }
  0xc8   :  { %v836_v56 = vpop.f32.mrf.mxu0 }
  0xc9   :  { %v835_v57 = vadd.f32 %v834_v49, %v786_v55 }
  0xcb   :  { %v929_v1 = vadd.f32 %v1968_v58, %v835_v57 }
  0xcc   :  { %v738_v61 = vpop.f32.mrf.mxu2 }
  0xcd   :  { %v739_v62 = vadd.f32 %v738_v61, %v690_v59  ;;  %v977_v7 = vadd.f32 %v1447_v2, %v929_v1 }
  0xce   :  { %v787_v63 = vpop.f32.mrf.mxu3  ;;  %v692_v0 = vpop.f32.mrf.mxu1 }
  0xcf   :  { %v788_v3 = vadd.f32 %v787_v63, %v739_v62  ;;  %v693_v9 = vadd.f32 %v692_v0, %v643_v41  ;;  %v993_v15 = vmax.f32 %v977_v7, 0.0 }
  0xd0   :  { %v839_v4 = vpop.f32.mrf.mxu0 }
  0xd1   :  { %v837_v5 = vadd.f32 %v836_v56, %v788_v3 }
  0xd3   :  { %v930_v8 = vadd.f32 %v1968_v58, %v837_v5 }
  0xd4   :  { %v741_v10 = vpop.f32.mrf.mxu2 }
  0xd5   :  { %v978_v11 = vadd.f32 %v1448_v6, %v930_v8  ;;  %v742_v12 = vadd.f32 %v741_v10, %v693_v9 }
  0xd6   :  { %v790_v13 = vpop.f32.mrf.mxu3  ;;  %v694_v14 = vpop.f32.mrf.mxu1 }
  0xd7   :  { %v994_v16 = vmax.f32 %v978_v11, 0.0  ;;  %v791_v17 = vadd.f32 %v790_v13, %v742_v12  ;;  %v695_v25 = vadd.f32 %v694_v14, %v645_v45 }
  0xd8   :  { %v841_v19 = vpop.f32.mrf.mxu0 }
  0xd9   :  { %v1480_v20 = vpack.c.bf16 %v994_v16, %v993_v15  ;;  %v840_v21 = vadd.f32 %v839_v4, %v791_v17 }
  0xdb   :  { %1481 = vst [vmem:[%s2050_s4] sm:$0xff] %v1480_v20   ;;  %v931_v31 = vadd.f32 %v1968_v58, %v840_v21 }
  0xdc   :  { %v743_v27 = vpop.f32.mrf.mxu2 }
  0xdd   :  { %v744_v28 = vadd.f32 %v743_v27, %v695_v25  ;;  %v979_v40 = vadd.f32 %v1451_v32, %v931_v31 }
  0xde   :  { %v792_v29 = vpop.f32.mrf.mxu3  ;;  %v697_v30 = vpop.f32.mrf.mxu1 }
  0xdf   :  { %v793_v33 = vadd.f32 %v792_v29, %v744_v28  ;;  %v698_v45 = vadd.f32 %v697_v30, %v1917_v18  ;;  %v995_v53 = vmax.f32 %v979_v40, 0.0  ;;  %v1518_v18 = vld [vmem:[%s2049_s3 + $0x10] sm:$0xff]  }
  0xe0   :  { %v844_v36 = vpop.f32.mrf.mxu0  ;;  %v1455_v2 = vunpack.c.l.bf16 %v1518_v18  ;;  %v1456_v6 = vunpack.c.h.bf16 %v1518_v18 }
  0xe1   :  { %v842_v37 = vadd.f32 %v841_v19, %v793_v33 }
  0xe3   :  { %v932_v41 = vadd.f32 %v1968_v58, %v842_v37 }
  0xe4   :  { %v746_v48 = vpop.f32.mrf.mxu2 }
  0xe5   :  { %v980_v49 = vadd.f32 %v1452_v39, %v932_v41  ;;  %v747_v50 = vadd.f32 %v746_v48, %v698_v45 }
  0xe6   :  { %v795_v51 = vpop.f32.mrf.mxu3  ;;  %v699_v52 = vpop.f32.mrf.mxu1 }
  0xe7   :  { %v996_v54 = vmax.f32 %v980_v49, 0.0  ;;  %v796_v55 = vadd.f32 %v795_v51, %v747_v50  ;;  %v700_v60 = vadd.f32 %v699_v52, %v1923_v24 }
  0xe8   :  { %v846_v56 = vpop.f32.mrf.mxu0 }
  0xe9   :  { %v1485_v57 = vpack.c.bf16 %v996_v54, %v995_v53  ;;  %v845_v59 = vadd.f32 %v844_v36, %v796_v55 }
  0xeb   :  { %1524 = vst [vmem:[%s2050_s4 + $0x8] sm:$0xff] %v1485_v57   ;;  %v933_v1 = vadd.f32 %v1968_v58, %v845_v59 }
  0xec   :  { %v748_v61 = vpop.f32.mrf.mxu2 }
  0xed   :  { %v749_v62 = vadd.f32 %v748_v61, %v700_v60  ;;  %v981_v7 = vadd.f32 %v1455_v2, %v933_v1 }
  0xee   :  { %v797_v63 = vpop.f32.mrf.mxu3  ;;  %v702_v0 = vpop.f32.mrf.mxu1 }
  0xef   :  { %v798_v3 = vadd.f32 %v797_v63, %v749_v62  ;;  %v703_v24 = vadd.f32 %v702_v0, %v1953_v38  ;;  %v997_v14 = vmax.f32 %v981_v7, 0.0  ;;  %v1519_v38 = vld [vmem:[%s2049_s3 + $0x18] sm:$0xff]  }
  0xf0   :  { %v849_v4 = vpop.f32.mrf.mxu0  ;;  %v1459_v30 = vunpack.c.l.bf16 %v1519_v38  ;;  %v1460_v36 = vunpack.c.h.bf16 %v1519_v38 }
  0xf1   :  { %v847_v5 = vadd.f32 %v846_v56, %v798_v3 }
  0xf3   :  { %v934_v8 = vadd.f32 %v1968_v58, %v847_v5 }
  0xf4   :  { %v751_v9 = vpop.f32.mrf.mxu2 }
  0xf5   :  { %v982_v10 = vadd.f32 %v1456_v6, %v934_v8  ;;  %v752_v11 = vadd.f32 %v751_v9, %v703_v24 }
  0xf6   :  { %v800_v12 = vpop.f32.mrf.mxu3  ;;  %v704_v13 = vpop.f32.mrf.mxu1 }
  0xf7   :  { %v998_v15 = vmax.f32 %v982_v10, 0.0  ;;  %v801_v16 = vadd.f32 %v800_v12, %v752_v11  ;;  %v705_v21 = vadd.f32 %v704_v13, %v1959_v44 }
  0xf8   :  { %v851_v17 = vpop.f32.mrf.mxu0 }
  0xf9   :  { %v1490_v19 = vpack.c.bf16 %v998_v15, %v997_v14  ;;  %v850_v20 = vadd.f32 %v849_v4, %v801_v16 }
  0xfb   :  { %1525 = vst [vmem:[%s2050_s4 + $0x10] sm:$0xff] %v1490_v19   ;;  %v935_v29 = vadd.f32 %v1968_v58, %v850_v20 }
  0xfc   :  { %v753_v25 = vpop.f32.mrf.mxu2 }
  0xfd   :  { %v754_v26 = vadd.f32 %v753_v25, %v705_v21  ;;  %v983_v37 = vadd.f32 %v1459_v30, %v935_v29 }
  0xfe   :  { %v802_v27 = vpop.f32.mrf.mxu3  ;;  %v707_v28 = vpop.f32.mrf.mxu1 }
  0xff   :  { %v803_v31 = vadd.f32 %v802_v27, %v754_v26  ;;  %v708_v44 = vadd.f32 %v707_v28, %v1919_v22  ;;  %v999_v50 = vmax.f32 %v983_v37, 0.0  ;;  %v1520_v22 = vld [vmem:[%s2049_s3 + $0x20] sm:$0xff]  }
 0x100   :  { %v854_v32 = vpop.f32.mrf.mxu0  ;;  %v1463_v62 = vunpack.c.l.bf16 %v1520_v22  ;;  %v1464_v2 = vunpack.c.h.bf16 %v1520_v22 }
 0x101   :  { %v852_v33 = vadd.f32 %v851_v17, %v803_v31 }
 0x103   :  { %v936_v39 = vadd.f32 %v1968_v58, %v852_v33 }
 0x104   :  { %v756_v40 = vpop.f32.mrf.mxu2 }
 0x105   :  { %v984_v41 = vadd.f32 %v1460_v36, %v936_v39  ;;  %v757_v45 = vadd.f32 %v756_v40, %v708_v44 }
 0x106   :  { %v805_v48 = vpop.f32.mrf.mxu3  ;;  %v709_v49 = vpop.f32.mrf.mxu1 }
 0x107   :  { %v1000_v51 = vmax.f32 %v984_v41, 0.0  ;;  %v806_v52 = vadd.f32 %v805_v48, %v757_v45  ;;  %v710_v56 = vadd.f32 %v709_v49, %v1949_v34 }
 0x108   :  { %v856_v53 = vpop.f32.mrf.mxu0 }
 0x109   :  { %v1495_v54 = vpack.c.bf16 %v1000_v51, %v999_v50  ;;  %v855_v55 = vadd.f32 %v854_v32, %v806_v52 }
 0x10b   :  { %1526 = vst [vmem:[%s2050_s4 + $0x18] sm:$0xff] %v1495_v54   ;;  %v937_v61 = vadd.f32 %v1968_v58, %v855_v55 }
 0x10c   :  { %v758_v57 = vpop.f32.mrf.mxu2 }
 0x10d   :  { %v759_v59 = vadd.f32 %v758_v57, %v710_v56  ;;  %v985_v3 = vadd.f32 %v1463_v62, %v937_v61 }
 0x10e   :  { %v807_v60 = vpop.f32.mrf.mxu3  ;;  %v712_v18 = vpop.f32.mrf.mxu1 }
 0x10f   :  { %v808_v63 = vadd.f32 %v807_v60, %v759_v59  ;;  %v713_v34 = vadd.f32 %v712_v18, %v1955_v42  ;;  %v1001_v9 = vmax.f32 %v985_v3, 0.0  ;;  %v1521_v42 = vld [vmem:[%s2049_s3 + $0x28] sm:$0xff]  }
 0x110   :  { %v859_v0 = vpop.f32.mrf.mxu0  ;;  %v1467_v38 = vunpack.c.l.bf16 %v1521_v42  ;;  %v1468_v27 = vunpack.c.h.bf16 %v1521_v42 }
 0x111   :  { %v857_v1 = vadd.f32 %v856_v53, %v808_v63 }
 0x113   :  { %v938_v4 = vadd.f32 %v1968_v58, %v857_v1 }
 0x114   :  { %v761_v5 = vpop.f32.mrf.mxu2 }
 0x115   :  { %v986_v6 = vadd.f32 %v1464_v2, %v938_v4  ;;  %v762_v7 = vadd.f32 %v761_v5, %v713_v34 }
 0x116   :  { %v810_v8 = vpop.f32.mrf.mxu3  ;;  %v714_v24 = vpop.f32.mrf.mxu1 }
 0x117   :  { %v1002_v10 = vmax.f32 %v986_v6, 0.0  ;;  %v811_v11 = vadd.f32 %v810_v8, %v762_v7  ;;  %v715_v15 = vadd.f32 %v714_v24, %v1961_v46 }
 0x118   :  { %v861_v12 = vpop.f32.mrf.mxu0 }
 0x119   :  { %v1500_v13 = vpack.c.bf16 %v1002_v10, %v1001_v9  ;;  %v860_v14 = vadd.f32 %v859_v0, %v811_v11 }
 0x11b   :  { %1527 = vst [vmem:[%s2050_s4 + $0x20] sm:$0xff] %v1500_v13   ;;  %v939_v21 = vadd.f32 %v1968_v58, %v860_v14 }
 0x11c   :  { %v763_v16 = vpop.f32.mrf.mxu2 }
 0x11d   :  { %v764_v17 = vadd.f32 %v763_v16, %v715_v15  ;;  %v987_v29 = vadd.f32 %v1467_v38, %v939_v21 }
 0x11e   :  { %v812_v19 = vpop.f32.mrf.mxu3  ;;  %v717_v20 = vpop.f32.mrf.mxu1 }
 0x11f   :  { %v813_v25 = vadd.f32 %v812_v19, %v764_v17  ;;  %v718_v46 = vadd.f32 %v717_v20, %v1921_v23  ;;  %v1003_v39 = vmax.f32 %v987_v29, 0.0  ;;  %v1522_v23 = vld [vmem:[%s2049_s3 + $0x30] sm:$0xff]  }
 0x120   :  { %v864_v28 = vpop.f32.mrf.mxu0  ;;  %v1471_v55 = vunpack.c.l.bf16 %v1522_v23  ;;  %v1472_v57 = vunpack.c.h.bf16 %v1522_v23 }
 0x121   :  { %v862_v26 = vadd.f32 %v861_v12, %v813_v25 }
 0x123   :  { %v940_v30 = vadd.f32 %v1968_v58, %v862_v26 }
 0x124   :  { %v766_v31 = vpop.f32.mrf.mxu2 }
 0x125   :  { %v988_v32 = vadd.f32 %v1468_v27, %v940_v30  ;;  %v767_v33 = vadd.f32 %v766_v31, %v718_v46 }
 0x126   :  { %v815_v36 = vpop.f32.mrf.mxu3  ;;  %v719_v37 = vpop.f32.mrf.mxu1 }
 0x127   :  { %v1004_v44 = vmax.f32 %v988_v32, 0.0  ;;  %v816_v40 = vadd.f32 %v815_v36, %v767_v33  ;;  %v720_v48 = vadd.f32 %v719_v37, %v1951_v35 }
 0x128   :  { %v866_v49 = vpop.f32.mrf.mxu0 }
 0x129   :  { %v1505_v41 = vpack.c.bf16 %v1004_v44, %v1003_v39  ;;  %v865_v45 = vadd.f32 %v864_v28, %v816_v40 }
 0x12b   :  { %1528 = vst [vmem:[%s2050_s4 + $0x28] sm:$0xff] %v1505_v41   ;;  %v941_v54 = vadd.f32 %v1968_v58, %v865_v45 }
 0x12c   :  { %v768_v50 = vpop.f32.mrf.mxu2 }
 0x12d   :  { %v769_v51 = vadd.f32 %v768_v50, %v720_v48  ;;  %v989_v59 = vadd.f32 %v1471_v55, %v941_v54 }
 0x12e   :  { %v817_v52 = vpop.f32.mrf.mxu3  ;;  %v722_v53 = vpop.f32.mrf.mxu1 }
 0x12f   :  { %v818_v56 = vadd.f32 %v817_v52, %v769_v51  ;;  %v723_v35 = vadd.f32 %v722_v53, %v1957_v43  ;;  %v1005_v1 = vmax.f32 %v989_v59, 0.0  ;;  %v1523_v43 = vld [vmem:[%s2049_s3 + $0x38] sm:$0xff]  }
 0x130   :  { %v869_v0 = vpop.f32.mrf.mxu0  ;;  %v1475_v10 = vunpack.c.l.bf16 %v1523_v43  ;;  %v1476_v14 = vunpack.c.h.bf16 %v1523_v43 }
 0x131   :  { %v867_v22 = vadd.f32 %v866_v49, %v818_v56 }
 0x133   :  { %v942_v60 = vadd.f32 %v1968_v58, %v867_v22 }
 0x134   :  { %v771_v18 = vpop.f32.mrf.mxu2 }
 0x135   :  { %v990_v61 = vadd.f32 %v1472_v57, %v942_v60  ;;  %v772_v62 = vadd.f32 %v771_v18, %v723_v35 }
 0x136   :  { %v820_v63 = vpop.f32.mrf.mxu3  ;;  %v724_v4 = vpop.f32.mrf.mxu1 }
 0x137   :  { %v1006_v2 = vmax.f32 %v990_v61, 0.0  ;;  %v821_v3 = vadd.f32 %v820_v63, %v772_v62  ;;  %v725_v6 = vadd.f32 %v724_v4, %v1963_v47 }
 0x138   :  { %v871_v12 = vpop.f32.mrf.mxu0 }
 0x139   :  { %v1510_v34 = vpack.c.bf16 %v1006_v2, %v1005_v1  ;;  %v870_v5 = vadd.f32 %v869_v0, %v821_v3 }
 0x13b   :  { %1529 = vst [vmem:[%s2050_s4 + $0x30] sm:$0xff] %v1510_v34   ;;  %v943_v9 = vadd.f32 %v1968_v58, %v870_v5 }
 0x13c   :  { %v773_v7 = vpop.f32.mrf.mxu2 }
 0x13d   :  { %v774_v8 = vadd.f32 %v773_v7, %v725_v6  ;;  %v991_v15 = vadd.f32 %v1475_v10, %v943_v9 }
 0x13e   :  { %v822_v24 = vpop.f32.mrf.mxu3 }
 0x13f   :  { %v823_v11 = vadd.f32 %v822_v24, %v774_v8  ;;  %v1007_v17 = vmax.f32 %v991_v15, 0.0 }
 0x141   :  { %v872_v13 = vadd.f32 %v871_v12, %v823_v11 }
 0x143   :  { %v944_v42 = vadd.f32 %v1968_v58, %v872_v13 }
 0x145   :  { %v992_v16 = vadd.f32 %v1476_v14, %v944_v42 }
 0x147   :  { %v1008_v47 = vmax.f32 %v992_v16, 0.0 }
 0x149   :  { %v1515_v19 = vpack.c.bf16 %v1008_v47, %v1007_v17 }
 0x14b   :  { %1530 = vst [vmem:[%s2050_s4 + $0x38] sm:$0xff] %v1515_v19  }

// kernel: _lambda_.19
= control target key start
LH: loop header
LB: loop body
LE: loop exit
PB: predicated region body
PF: predicated region fallthrough
CT: control target
= control target key end

     0   :  { %s1023_s1 = inlined_call_operand.vmem [shape: bf16[640,128], index: 1, kind: input, shape index: {}]   ;;  %s1024_s0 = inlined_call_operand.vmem [shape: bf16[32,640], index: 0, kind: input, shape index: {}]   ;;  %s1025_s2 = inlined_call_operand.vmem [shape: f32[1,128], index: 2, kind: input, shape index: {}]   ;;  %s1026_s3 = inlined_call_operand.vmem [shape: bf16[32,128], index: 3, kind: output, shape index: {}]  }
   0x1   :  { %v761_v0 = vld [vmem:[%s1023_s1 + $0x38] sm:$0xff]  ;;  %v760_v4 = vld [vmem:[%s1023_s1 + $0x30] sm:$0xff]  ;;  %v759_v8 = vld [vmem:[%s1023_s1 + $0x28] sm:$0xff] }
   0x2   :  { %v769_v1 = vld [vmem:[%s1023_s1 + $0x78] sm:$0xff]  ;;  %410 = vmatpush.bf16.msra.mxu0 %v761_v0  ;;  %v768_v5 = vld [vmem:[%s1023_s1 + $0x70] sm:$0xff]  ;;  %v767_v9 = vld [vmem:[%s1023_s1 + $0x68] sm:$0xff] }
   0x3   :  { %v777_v2 = vld [vmem:[%s1023_s1 + $0xb8] sm:$0xff]  ;;  %429 = vmatpush.bf16.msra.mxu1 %v769_v1  ;;  %v776_v6 = vld [vmem:[%s1023_s1 + $0xb0] sm:$0xff]  ;;  %v775_v10 = vld [vmem:[%s1023_s1 + $0xa8] sm:$0xff] }
   0x4   :  { %v785_v3 = vld [vmem:[%s1023_s1 + $0xf8] sm:$0xff]  ;;  %448 = vmatpush.bf16.msra.mxu2 %v777_v2  ;;  %v784_v7 = vld [vmem:[%s1023_s1 + $0xf0] sm:$0xff]  ;;  %v783_v11 = vld [vmem:[%s1023_s1 + $0xe8] sm:$0xff] }
   0x5   :  { %467 = vmatpush.bf16.msra.mxu3 %v785_v3  ;;  %v758_v12 = vld [vmem:[%s1023_s1 + $0x20] sm:$0xff]  ;;  %v757_v16 = vld [vmem:[%s1023_s1 + $0x18] sm:$0xff]  ;;  %v756_v20 = vld [vmem:[%s1023_s1 + $0x10] sm:$0xff] }
   0x6   :  { %411 = vmatpush.bf16.msra.mxu0 %v760_v4  ;;  %v766_v13 = vld [vmem:[%s1023_s1 + $0x60] sm:$0xff]  ;;  %v765_v17 = vld [vmem:[%s1023_s1 + $0x58] sm:$0xff]  ;;  %v764_v21 = vld [vmem:[%s1023_s1 + $0x50] sm:$0xff] }
   0x7   :  { %430 = vmatpush.bf16.msra.mxu1 %v768_v5  ;;  %v774_v14 = vld [vmem:[%s1023_s1 + $0xa0] sm:$0xff]  ;;  %v773_v18 = vld [vmem:[%s1023_s1 + $0x98] sm:$0xff]  ;;  %v772_v22 = vld [vmem:[%s1023_s1 + $0x90] sm:$0xff] }
   0x8   :  { %449 = vmatpush.bf16.msra.mxu2 %v776_v6  ;;  %v782_v15 = vld [vmem:[%s1023_s1 + $0xe0] sm:$0xff]  ;;  %v781_v19 = vld [vmem:[%s1023_s1 + $0xd8] sm:$0xff]  ;;  %v780_v23 = vld [vmem:[%s1023_s1 + $0xd0] sm:$0xff] }
   0x9   :  { %468 = vmatpush.bf16.msra.mxu3 %v784_v7  ;;  %v755_v24 = vld [vmem:[%s1023_s1 + $0x8] sm:$0xff]  ;;  %v754_v28 = vld [vmem:[%s1023_s1] sm:$0xff]  ;;  %v746_v33 = vld [vmem:[%s1024_s0 + $0x10] sm:$0xf0] }
   0xa   :  { %412 = vmatpush.bf16.msra.mxu0 %v759_v8  ;;  %v763_v25 = vld [vmem:[%s1023_s1 + $0x48] sm:$0xff]  ;;  %v762_v29 = vld [vmem:[%s1023_s1 + $0x40] sm:$0xff]  ;;  %v548_v35 = vld [vmem:[%s1024_s0 + $0x14] sm:$0xf0] }
   0xb   :  { %431 = vmatpush.bf16.msra.mxu1 %v767_v9  ;;  %v771_v26 = vld [vmem:[%s1023_s1 + $0x88] sm:$0xff]  ;;  %v770_v30 = vld [vmem:[%s1023_s1 + $0x80] sm:$0xff]  ;;  %v747_v37 = vld [vmem:[%s1024_s0 + $0x18] sm:$0xf0] }
   0xc   :  { %450 = vmatpush.bf16.msra.mxu2 %v775_v10  ;;  %v779_v27 = vld [vmem:[%s1023_s1 + $0xc8] sm:$0xff]  ;;  %v778_v31 = vld [vmem:[%s1023_s1 + $0xc0] sm:$0xff]  ;;  %v793_v40 = vld [vmem:[%s1023_s1 + $0x138] sm:$0xff] }
   0xd   :  { %469 = vmatpush.bf16.msra.mxu3 %v783_v11  ;;  %v546_v32 = vld [vmem:[%s1024_s0] sm:$0xf]  ;;  %v744_v34 = vld [vmem:[%s1024_s0 + $0x4] sm:$0xf]  ;;  %v554_v36 = vld [vmem:[%s1024_s0 + $0x8] sm:$0xf] }
   0xe   :  { %413 = vmatpush.bf16.msra.mxu0 %v758_v12  ;;  %v745_v38 = vld [vmem:[%s1024_s0 + $0xc] sm:$0xf]  ;;  %v556_v39 = vld [vmem:[%s1024_s0 + $0x1c] sm:$0xf0]  ;;  %v547_v41 = vor.u32 %v746_v33, %v546_v32  ;;  %v551_v42 = vor.u32 %v744_v34, %v548_v35  ;;  %v555_v43 = vor.u32 %v747_v37, %v554_v36  ;;  %v792_v45 = vld [vmem:[%s1023_s1 + $0x130] sm:$0xff] }
   0xf   :  { %432 = vmatpush.bf16.msra.mxu1 %v766_v13  ;;  %v559_v44 = vor.u32 %v745_v38, %v556_v39  ;;  %v791_v46 = vld [vmem:[%s1023_s1 + $0x128] sm:$0xff]  ;;  %v790_v47 = vld [vmem:[%s1023_s1 + $0x120] sm:$0xff]  ;;  %v751_v49 = vld [vmem:[%s1024_s0 + $0x38] sm:$0xf0] }
  0x10   :  { %451 = vmatpush.bf16.msra.mxu2 %v774_v14  ;;  %v566_v48 = vld [vmem:[%s1024_s0 + $0x28] sm:$0xf]  ;;  %v749_v50 = vld [vmem:[%s1024_s0 + $0x2c] sm:$0xf]  ;;  %v568_v51 = vld [vmem:[%s1024_s0 + $0x3c] sm:$0xf0] }
  0x11   :  { %470 = vmatpush.bf16.msra.mxu3 %v782_v15  ;;  %v574_v52 = vld [vmem:[%s1024_s0 + $0x30] sm:$0xf]  ;;  %v752_v53 = vld [vmem:[%s1024_s0 + $0x40] sm:$0xf0]  ;;  %v750_v54 = vld [vmem:[%s1024_s0 + $0x34] sm:$0xf]  ;;  %v567_v57 = vor.u32 %v751_v49, %v566_v48  ;;  %v571_v58 = vor.u32 %v749_v50, %v568_v51 }
  0x12   :  { %414 = vmatpush.bf16.msra.mxu0 %v757_v16  ;;  %v576_v55 = vld [vmem:[%s1024_s0 + $0x44] sm:$0xf0]  ;;  %v789_v56 = vld [vmem:[%s1023_s1 + $0x118] sm:$0xff]  ;;  %v575_v59 = vor.u32 %v752_v53, %v574_v52  ;;  %v788_v61 = vld [vmem:[%s1023_s1 + $0x110] sm:$0xff] }
  0x13   :  { %433 = vmatpush.bf16.msra.mxu1 %v765_v17  ;;  %v579_v60 = vor.u32 %v750_v54, %v576_v55  ;;  %v787_v62 = vld [vmem:[%s1023_s1 + $0x108] sm:$0xff]  ;;  %v786_v63 = vld [vmem:[%s1023_s1 + $0x100] sm:$0xff]  ;;  %v562_v0 = vld [vmem:[%s1024_s0 + $0x10] sm:$0xf] }
  0x14   :  { %452 = vmatpush.bf16.msra.mxu2 %v773_v18  ;;  %v748_v1 = vld [vmem:[%s1024_s0 + $0x20] sm:$0xf0]  ;;  %v582_v2 = vld [vmem:[%s1024_s0 + $0x38] sm:$0xf]  ;;  %v753_v3 = vld [vmem:[%s1024_s0 + $0x48] sm:$0xf0] }
  0x15   :  { %471 = vmatpush.bf16.msra.mxu3 %v781_v19  ;;  %v563_v4 = vor.u32 %v748_v1, %v562_v0  ;;  %v583_v5 = vor.u32 %v753_v3, %v582_v2  ;;  %v813_v34 = vld [vmem:[%s1025_s2] ss:$0 sm:$0xff] }
  0x16   :  { %415 = vmatpush.bf16.msra.mxu0 %v756_v20 }
  0x17   :  { %434 = vmatpush.bf16.msra.mxu1 %v764_v21 }
  0x18   :  { %453 = vmatpush.bf16.msra.mxu2 %v772_v22 }
  0x19   :  { %472 = vmatpush.bf16.msra.mxu3 %v780_v23 }
  0x1a   :  { %416 = vmatpush.bf16.msra.mxu0 %v755_v24 }
  0x1b   :  { %435 = vmatpush.bf16.msra.mxu1 %v763_v25 }
  0x1c   :  { %454 = vmatpush.bf16.msra.mxu2 %v771_v26 }
  0x1d   :  { %473 = vmatpush.bf16.msra.mxu3 %v779_v27 }
  0x1e   :  { %417 = vmatpush.bf16.msra.mxu0 %v754_v28 }
  0x1f   :  { %436 = vmatpush.bf16.msra.mxu1 %v762_v29 }
  0x20   :  { %455 = vmatpush.bf16.msra.mxu2 %v770_v30 }
  0x21   :  { %474 = vmatpush.bf16.msra.mxu3 %v778_v31  ;;  %418 = vmatmul.bf16.vlgmr.msra.gmra.mxu0 %v547_v41 }
  0x22   :  { %486 = vmatpush.bf16.msrb.mxu0 %v793_v40  ;;  %437 = vmatmul.bf16.vlgmr.msra.gmra.mxu1 %v551_v42 }
  0x23   :  { %805 = vmatpush.bf16.msrb.mxu1 %v793_v40  ;;  %456 = vmatmul.bf16.vlgmr.msra.gmra.mxu2 %v555_v43 }
  0x24   :  { %475 = vmatmul.bf16.vlgmr.msra.gmra.mxu3 %v559_v44 }
  0x26   :  { %487 = vmatpush.bf16.msrb.mxu0 %v792_v45 }
  0x27   :  { %806 = vmatpush.bf16.msrb.mxu1 %v792_v45 }
  0x2a   :  { %488 = vmatpush.bf16.msrb.mxu0 %v791_v46 }
  0x2b   :  { %807 = vmatpush.bf16.msrb.mxu1 %v791_v46 }
  0x2e   :  { %489 = vmatpush.bf16.msrb.mxu0 %v790_v47 }
  0x2f   :  { %808 = vmatpush.bf16.msrb.mxu1 %v790_v47 }
  0x31   :  { %423 = vmatmul.bf16.gmra.mxu0 %v567_v57 }
  0x32   :  { %490 = vmatpush.bf16.msrb.mxu0 %v789_v56  ;;  %442 = vmatmul.bf16.gmra.mxu1 %v571_v58 }
  0x33   :  { %809 = vmatpush.bf16.msrb.mxu1 %v789_v56  ;;  %461 = vmatmul.bf16.gmra.mxu2 %v575_v59 }
  0x34   :  { %480 = vmatmul.bf16.gmra.mxu3 %v579_v60 }
  0x36   :  { %491 = vmatpush.bf16.msrb.mxu0 %v788_v61 }
  0x37   :  { %810 = vmatpush.bf16.msrb.mxu1 %v788_v61 }
  0x3a   :  { %492 = vmatpush.bf16.msrb.mxu0 %v787_v62 }
  0x3b   :  { %811 = vmatpush.bf16.msrb.mxu1 %v787_v62 }
  0x3e   :  { %493 = vmatpush.bf16.msrb.mxu0 %v786_v63 }
  0x3f   :  { %812 = vmatpush.bf16.msrb.mxu1 %v786_v63 }
  0x41   :  { %494 = vmatmul.bf16.vlgmr.msrb.gmra.mxu0 %v563_v4 }
  0x42   :  { %499 = vmatmul.bf16.vlgmr.msrb.gmra.mxu1 %v583_v5 }
  0x9e   :  { %v419_v6 = vpop.f32.mrf.mxu0 }
  0x9f   :  { %v438_v7 = vpop.f32.mrf.mxu1 }
  0xa0   :  { %v439_v20 = vadd.f32 %v438_v7, %v419_v6 }
  0xa6   :  { %v457_v8 = vpop.f32.mrf.mxu2  ;;  %v421_v10 = vpop.f32.mrf.mxu0 }
  0xa7   :  { %v476_v9 = vpop.f32.mrf.mxu3  ;;  %v440_v11 = vpop.f32.mrf.mxu1  ;;  %v458_v22 = vadd.f32 %v457_v8, %v439_v20 }
  0xa8   :  { %v441_v27 = vadd.f32 %v440_v11, %v421_v10 }
  0xa9   :  { %v477_v29 = vadd.f32 %v476_v9, %v458_v22 }
  0xae   :  { %v459_v12 = vpop.f32.mrf.mxu2  ;;  %v424_v13 = vpop.f32.mrf.mxu0 }
  0xaf   :  { %v443_v14 = vpop.f32.mrf.mxu1  ;;  %v478_v15 = vpop.f32.mrf.mxu3  ;;  %v460_v30 = vadd.f32 %v459_v12, %v441_v27 }
  0xb0   :  { %v444_v21 = vadd.f32 %v443_v14, %v424_v13 }
  0xb1   :  { %v479_v37 = vadd.f32 %v478_v15, %v460_v30 }
  0xb6   :  { %v462_v16 = vpop.f32.mrf.mxu2  ;;  %v426_v17 = vpop.f32.mrf.mxu0 }
  0xb7   :  { %v445_v18 = vpop.f32.mrf.mxu1  ;;  %v481_v19 = vpop.f32.mrf.mxu3  ;;  %v463_v23 = vadd.f32 %v462_v16, %v444_v21 }
  0xb8   :  { %v446_v28 = vadd.f32 %v445_v18, %v426_v17 }
  0xb9   :  { %v482_v31 = vadd.f32 %v481_v19, %v463_v23 }
  0xbe   :  { %v464_v24 = vpop.f32.mrf.mxu2  ;;  %v495_v25 = vpop.f32.mrf.mxu0 }
  0xbf   :  { %v500_v26 = vpop.f32.mrf.mxu1  ;;  %v465_v32 = vadd.f32 %v464_v24, %v446_v28  ;;  %v496_v33 = vadd.f32 %v495_v25, %v477_v29  ;;  %v483_v36 = vpop.f32.mrf.mxu3 }
  0xc0   :  { %v501_v35 = vadd.f32 %v500_v26, %v482_v31 }
  0xc1   :  { %v484_v38 = vadd.f32 %v483_v36, %v465_v32  ;;  %v524_v41 = vadd.f32 %v813_v34, %v496_v33 }
  0xc2   :  { %v526_v42 = vadd.f32 %v813_v34, %v501_v35 }
  0xc3   :  { %v528_v47 = vmax.f32 %v524_v41, 0.0 }
  0xc4   :  { %v530_v48 = vmax.f32 %v526_v42, 0.0 }
  0xc6   :  { %v497_v39 = vpop.f32.mrf.mxu0 }
  0xc7   :  { %v502_v40 = vpop.f32.mrf.mxu1  ;;  %v498_v43 = vadd.f32 %v497_v39, %v479_v37 }
  0xc8   :  { %v503_v44 = vadd.f32 %v502_v40, %v484_v38 }
  0xc9   :  { %v525_v45 = vadd.f32 %v813_v34, %v498_v43 }
  0xca   :  { %v527_v46 = vadd.f32 %v813_v34, %v503_v44 }
  0xcb   :  { %v529_v49 = vmax.f32 %v525_v45, 0.0 }
  0xcc   :  { %v531_v50 = vmax.f32 %v527_v46, 0.0 }
  0xcd   :  { %v797_v51 = vpack.c.bf16 %v529_v49, %v528_v47 }
  0xce   :  { %v802_v52 = vpack.c.bf16 %v531_v50, %v530_v48 }
  0xcf   :  { %798 = vst [vmem:[%s1026_s3] sm:$0xff] %v797_v51  }
  0xd0   :  { %804 = vst [vmem:[%s1026_s3 + $0x8] sm:$0xff] %v802_v52  }

// kernel: _lambda_.20
= control target key start
LH: loop header
LB: loop body
LE: loop exit
PB: predicated region body
PF: predicated region fallthrough
CT: control target
= control target key end

     0   :  { %s289_s1 = inlined_call_operand.vmem [shape: bf16[128,128], index: 1, kind: input, shape index: {}]   ;;  %s290_s2 = inlined_call_operand.vmem [shape: f32[1,128], index: 2, kind: input, shape index: {}]   ;;  %s291_s0 = inlined_call_operand.vmem [shape: bf16[32,128], index: 0, kind: input, shape index: {}]   ;;  %s292_s3 = inlined_call_operand.vmem [shape: bf16[32,128], index: 3, kind: output, shape index: {}]  }
   0x1   :  { %v209_v0 = vld [vmem:[%s289_s1 + $0x38] sm:$0xff]  ;;  %v208_v1 = vld [vmem:[%s289_s1 + $0x30] sm:$0xff]  ;;  %v207_v2 = vld [vmem:[%s289_s1 + $0x28] sm:$0xff] }
   0x2   :  { %106 = vmatpush.bf16.msra.mxu0 %v209_v0  ;;  %221 = vmatpush.bf16.msra.mxu1 %v209_v0  ;;  %v206_v3 = vld [vmem:[%s289_s1 + $0x20] sm:$0xff]  ;;  %v205_v4 = vld [vmem:[%s289_s1 + $0x18] sm:$0xff]  ;;  %v204_v5 = vld [vmem:[%s289_s1 + $0x10] sm:$0xff] }
   0x3   :  { %v203_v6 = vld [vmem:[%s289_s1 + $0x8] sm:$0xff]  ;;  %v202_v7 = vld [vmem:[%s289_s1] sm:$0xff] }
   0x4   :  { %v200_v8 = vld [vmem:[%s291_s0] sm:$0xff]  ;;  %v201_v9 = vld [vmem:[%s291_s0 + $0x8] sm:$0xff] }
   0x5   :  { %v229_v12 = vld [vmem:[%s290_s2] ss:$0 sm:$0xff] }
   0x6   :  { %107 = vmatpush.bf16.msra.mxu0 %v208_v1  ;;  %222 = vmatpush.bf16.msra.mxu1 %v208_v1 }
   0xa   :  { %108 = vmatpush.bf16.msra.mxu0 %v207_v2  ;;  %223 = vmatpush.bf16.msra.mxu1 %v207_v2 }
   0xe   :  { %109 = vmatpush.bf16.msra.mxu0 %v206_v3  ;;  %224 = vmatpush.bf16.msra.mxu1 %v206_v3 }
  0x12   :  { %110 = vmatpush.bf16.msra.mxu0 %v205_v4  ;;  %225 = vmatpush.bf16.msra.mxu1 %v205_v4 }
  0x16   :  { %111 = vmatpush.bf16.msra.mxu0 %v204_v5  ;;  %226 = vmatpush.bf16.msra.mxu1 %v204_v5 }
  0x1a   :  { %112 = vmatpush.bf16.msra.mxu0 %v203_v6  ;;  %227 = vmatpush.bf16.msra.mxu1 %v203_v6 }
  0x1e   :  { %113 = vmatpush.bf16.msra.mxu0 %v202_v7  ;;  %228 = vmatpush.bf16.msra.mxu1 %v202_v7 }
  0x21   :  { %114 = vmatmul.bf16.vlgmr.msra.gmra.mxu0 %v200_v8  ;;  %119 = vmatmul.bf16.vlgmr.msra.gmra.mxu1 %v201_v9 }
  0x9e   :  { %v115_v10 = vpop.f32.mrf.mxu0  ;;  %v120_v11 = vpop.f32.mrf.mxu1 }
  0x9f   :  { %v144_v15 = vadd.f32 %v229_v12, %v115_v10  ;;  %v146_v16 = vadd.f32 %v229_v12, %v120_v11 }
  0xa6   :  { %v117_v13 = vpop.f32.mrf.mxu0  ;;  %v122_v14 = vpop.f32.mrf.mxu1 }
  0xa7   :  { %v145_v17 = vadd.f32 %v229_v12, %v117_v13  ;;  %v147_v18 = vadd.f32 %v229_v12, %v122_v14 }
  0xa9   :  { %v213_v19 = vpack.c.bf16 %v145_v17, %v144_v15  ;;  %v218_v20 = vpack.c.bf16 %v147_v18, %v146_v16 }
  0xab   :  { %214 = vst [vmem:[%s292_s3] sm:$0xff] %v213_v19  }
  0xac   :  { %220 = vst [vmem:[%s292_s3 + $0x8] sm:$0xff] %v218_v20  }

// kernel: _lambda_.21
= control target key start
LH: loop header
LB: loop body
LE: loop exit
PB: predicated region body
PF: predicated region fallthrough
CT: control target
= control target key end

     0   :  { %s1150_s15 = smov 0   ;;  %s1152_s16 = smov 0   ;;  %s1272_s0 = inlined_call_operand.vmem [shape: bf16[32,1152], index: 0, kind: input, shape index: {}]   ;;  %s1273_s1 = inlined_call_operand.vmem [shape: bf16[1152,128], index: 1, kind: input, shape index: {}]   ;;  %s1274_s2 = inlined_call_operand.vmem [shape: f32[1,128], index: 2, kind: input, shape index: {}]   ;;  %s1275_s3 = inlined_call_operand.vmem [shape: bf16[32,128], index: 3, kind: input, shape index: {}]   ;;  %s1276_s4 = inlined_call_operand.vmem [shape: bf16[32,128], index: 4, kind: output, shape index: {}]  }
   0x1   :  { %s1154_s17 = smov 0   ;;  %s1156_s18 = smov 0  }
   0x2   :  { %s1158_s19 = smov 0  }
   0x3 LB: > { %s26_s20 = sadd.s32 1, %s1118_s18  ;;  %p49_p1 = scmp.ne.s32.totalorder %s1110_s16, %s1106_s15  ;;  %s1122_s19 = sphi %s1158_s19, %s14_s19   ;;  %s1118_s18 = sphi %s1156_s18, %s1280_s18   ;;  %s1114_s17 = sphi %s1154_s17, %s1279_s17   ;;  %s1110_s16 = sphi %s1152_s16, %s1278_s16   ;;  %s1106_s15 = sphi %s1150_s15, %s1277_s15  }
   0x4   : > { %p27_p0 = scmp.ge.s32.totalorder %s26_s20, 3  ;;  %p50_p2 = scmp.eq.s32.totalorder %s1122_s19, 0 }
   0x5   : > { %s42_s22 = sadd.s32 1, %s1110_s16  ;;  %p843_p5 = scmp.ge.s32.totalorder %s1122_s19, 3 }
   0x6   : > { %s1282_s20 = smov (%p27_p0, %s26_s20), 0  ;;  %p51_p3 = por %p50_p2, %p49_p1 }
   0x7   : > { %s38_s21 = ssub.s32 %s1118_s18, %s1282_s20  ;;  %203 = sbr.rel (%p843_p5) target bundleno = 25 (0x19), region = 24 }
   0x8   : > { %p40_p4 = scmp.eq.s32.totalorder %s38_s21, 0 }
   0xa   : > { %s1185_s23 = scalar_select %p40_p4, %s1110_s16, %s42_s22  }
   0xc   : > { %206 = sbr.rel (!%p51_p3) target bundleno = 25 (0x19), region = 28  ;;  %s208_s24 = sand.u32 (%p51_p3), 1, %s1110_s16  }
   0xd   : > { %s981_s25 = smul.u32 (%p51_p3), 12, %s1118_s18 }
   0xe   : > { %s1040_s26 = smul.u32 (%p51_p3), 48, %s208_s24 }
   0xf   : > { %s216_s29 = scalar_lea.vmem (%p51_p3), %s1272_s0, %s981_s25 }
  0x10   : > { %v231_v0 = vld [vmem:[%s216_s29] sm:$0xff] (%p51_p3)  ;;  %v235_v2 = vld [vmem:[%s216_s29 + $0x48] sm:$0xff] (%p51_p3)  ;;  %s210_s30 = scalar_lea.vmem (%p51_p3), [#allocation3], %s1040_s26  ;;  %v849_v6 = vld [vmem:[%s216_s29 + $0x50] sm:$0xf] (%p51_p3) }
  0x11   : > { %v233_v1 = vld [vmem:[%s216_s29 + $0x24] sm:$0xff]  ;;  %232 = vst [vmem:[%s210_s30] sm:$0xff] %v231_v0  ;;  %v237_v3 = vld [vmem:[%s216_s29 + $0x6c] sm:$0xff]  ;;  %v851_v7 = vld [vmem:[%s216_s29 + $0x74] sm:$0xf] }
  0x12   : > { %234 = vst [vmem:[%s210_s30 + $0xc] sm:$0xff] %v233_v1  ;;  %v845_v4 = vld [vmem:[%s216_s29 + $0x8] sm:$0xf]  ;;  %v847_v5 = vld [vmem:[%s216_s29 + $0x2c] sm:$0xf] }
  0x13   : > { %236 = vst [vmem:[%s210_s30 + $0x18] sm:$0xff] %v235_v2 }
  0x14   : > { %238 = vst [vmem:[%s210_s30 + $0x24] sm:$0xff] %v237_v3 }
  0x15   : > { %846 = vst [vmem:[%s210_s30 + $0x8] sm:$0xf] %v845_v4 }
  0x16   : > { %848 = vst [vmem:[%s210_s30 + $0x14] sm:$0xf] %v847_v5 }
  0x17   : > { %850 = vst [vmem:[%s210_s30 + $0x20] sm:$0xf] %v849_v6 }
  0x18   : > { %852 = vst [vmem:[%s210_s30 + $0x2c] sm:$0xf] %v851_v7 }
  0x19 PF: > { %p853_p6 = scmp.ge.s32.totalorder %s1122_s19, 1  ;;  %p271_p7 = scmp.lt.s32.totalorder %s1122_s19, 4 }
  0x1b   : > { %p272_p8 = pnand %p853_p6, %p271_p7 }
  0x1c   : > { %s278_s5 = sand.u32 (!%p272_p8), 1, %s1106_s15   ;;  %s327_s6 = smul.u32 (!%p272_p8), 48, %s1114_s17 }
  0x1d   : > { %275 = sbr.rel (%p272_p8) target bundleno = 255 (0xff), region = 58  ;;  %p855_p10 = scmp.ne.s32.totalorder (!%p272_p8), %s1114_s17, 0 }
  0x1e   : > { %s1041_s7 = smul.u32 (!%p272_p8), 48, %s278_s5  ;;  %p328_p9 = scmp.lt.s32.totalorder (!%p272_p8), %s327_s6, 143 }
  0x20   : > { %s1202_s12 = scalar_lea.vmem (!%p272_p8), [#allocation3], %s1041_s7 }
  0x22   : > { %s1284_s6 = smov (!%p328_p9, %s327_s6), 143  ;;  %360 = sbr.rel (%p855_p10) target bundleno = 44 (0x2c), region = 66 }
  0x23   : > { %s854_s8 = sshll.u32 %s1284_s6, 2 }
  0x24   : > { %s1200_s11 = scalar_lea.vmem %s1273_s1, %s854_s8 }
  0x27   : > { %v1124_v8 = vmov 0.0  }
  0x28   : > { %361 = vst [vmem:[#allocation2 + $0x10] sm:$0xff] %v1124_v8 }
  0x29   : > { %362 = vst [vmem:[#allocation2] sm:$0xff] %v1124_v8 }
  0x2a   : > { %363 = vst [vmem:[#allocation2 + $0x18] sm:$0xff] %v1124_v8 }
  0x2b   : > { %364 = vst [vmem:[#allocation2 + $0x8] sm:$0xff] %v1124_v8 }
  0x2c PF: > { %v995_v9 = vld [vmem:[%s1200_s11 + $0x38] sm:$0xff]  ;;  %v994_v12 = vld [vmem:[%s1200_s11 + $0x30] sm:$0xff]  ;;  %v993_v15 = vld [vmem:[%s1200_s11 + $0x28] sm:$0xff]  ;;  %p976_p11 = scmp.ne.s32.totalorder %s1114_s17, 2 }
  0x2d   : > { %v1003_v10 = vld [vmem:[%s1200_s11 + $0x78] sm:$0xff]  ;;  %601 = vmatpush.bf16.msra.mxu0 %v995_v9  ;;  %v1002_v13 = vld [vmem:[%s1200_s11 + $0x70] sm:$0xff]  ;;  %1032 = vmatpush.bf16.msra.mxu3 %v995_v9  ;;  %v1001_v16 = vld [vmem:[%s1200_s11 + $0x68] sm:$0xff] }
  0x2e   : > { %v1011_v11 = vld [vmem:[%s1200_s11 + $0xb8] sm:$0xff]  ;;  %620 = vmatpush.bf16.msra.mxu1 %v1003_v10  ;;  %v1010_v14 = vld [vmem:[%s1200_s11 + $0xb0] sm:$0xff]  ;;  %v1009_v17 = vld [vmem:[%s1200_s11 + $0xa8] sm:$0xff] }
  0x2f   : > { %639 = vmatpush.bf16.msra.mxu2 %v1011_v11  ;;  %v992_v18 = vld [vmem:[%s1200_s11 + $0x20] sm:$0xff]  ;;  %v991_v21 = vld [vmem:[%s1200_s11 + $0x18] sm:$0xff]  ;;  %v990_v24 = vld [vmem:[%s1200_s11 + $0x10] sm:$0xff] }
  0x30   : > { %v1000_v19 = vld [vmem:[%s1200_s11 + $0x60] sm:$0xff]  ;;  %v999_v22 = vld [vmem:[%s1200_s11 + $0x58] sm:$0xff]  ;;  %v998_v25 = vld [vmem:[%s1200_s11 + $0x50] sm:$0xff] }
  0x31   : > { %602 = vmatpush.bf16.msra.mxu0 %v994_v12  ;;  %1033 = vmatpush.bf16.msra.mxu3 %v994_v12  ;;  %v1008_v20 = vld [vmem:[%s1200_s11 + $0xa0] sm:$0xff]  ;;  %v1007_v23 = vld [vmem:[%s1200_s11 + $0x98] sm:$0xff]  ;;  %v1006_v26 = vld [vmem:[%s1200_s11 + $0x90] sm:$0xff] }
  0x32   : > { %621 = vmatpush.bf16.msra.mxu1 %v1002_v13  ;;  %v989_v27 = vld [vmem:[%s1200_s11 + $0x8] sm:$0xff]  ;;  %v988_v30 = vld [vmem:[%s1200_s11] sm:$0xff]  ;;  %v365_v54 = vld [vmem:[#allocation2 + $0x10] sm:$0xff] }
  0x33   : > { %640 = vmatpush.bf16.msra.mxu2 %v1010_v14  ;;  %v997_v28 = vld [vmem:[%s1200_s11 + $0x48] sm:$0xff]  ;;  %v996_v31 = vld [vmem:[%s1200_s11 + $0x40] sm:$0xff]  ;;  %v367_v4 = vld [vmem:[#allocation2 + $0x18] sm:$0xff] }
  0x34   : > { %v1005_v29 = vld [vmem:[%s1200_s11 + $0x88] sm:$0xff]  ;;  %v1004_v32 = vld [vmem:[%s1200_s11 + $0x80] sm:$0xff] }
  0x35   : > { %603 = vmatpush.bf16.msra.mxu0 %v993_v15  ;;  %1034 = vmatpush.bf16.msra.mxu3 %v993_v15  ;;  %v858_v33 = vld [vmem:[%s1202_s12] sm:$0xf]  ;;  %v983_v34 = vld [vmem:[%s1202_s12 + $0x8] sm:$0xf0]  ;;  %v982_v35 = vld [vmem:[%s1202_s12 + $0x4] sm:$0xf] }
  0x36   : > { %622 = vmatpush.bf16.msra.mxu1 %v1001_v16  ;;  %v860_v36 = vld [vmem:[%s1202_s12 + $0xc] sm:$0xf0]  ;;  %v866_v37 = vld [vmem:[%s1202_s12 + $0x8] sm:$0xf]  ;;  %v984_v38 = vld [vmem:[%s1202_s12 + $0x10] sm:$0xf0]  ;;  %v859_v41 = vor.u32 %v983_v34, %v858_v33 }
  0x37   : > { %641 = vmatpush.bf16.msra.mxu2 %v1009_v17  ;;  %v870_v39 = vld [vmem:[%s1202_s12 + $0x18] sm:$0xf]  ;;  %v986_v40 = vld [vmem:[%s1202_s12 + $0x20] sm:$0xf0]  ;;  %v863_v42 = vor.u32 %v982_v35, %v860_v36  ;;  %v867_v43 = vor.u32 %v984_v38, %v866_v37  ;;  %v985_v45 = vld [vmem:[%s1202_s12 + $0x1c] sm:$0xf] }
  0x38   : > { %v871_v44 = vor.u32 %v986_v40, %v870_v39  ;;  %v872_v46 = vld [vmem:[%s1202_s12 + $0x24] sm:$0xf0]  ;;  %v878_v47 = vld [vmem:[%s1202_s12 + $0x20] sm:$0xf]  ;;  %v987_v48 = vld [vmem:[%s1202_s12 + $0x28] sm:$0xf0] }
  0x39   : > { %604 = vmatpush.bf16.msra.mxu0 %v992_v18  ;;  %1035 = vmatpush.bf16.msra.mxu3 %v992_v18  ;;  %v875_v49 = vor.u32 %v985_v45, %v872_v46  ;;  %v879_v50 = vor.u32 %v987_v48, %v878_v47  ;;  %v366_v61 = vld [vmem:[#allocation2] sm:$0xff]  ;;  %v368_v11 = vld [vmem:[#allocation2 + $0x8] sm:$0xff] }
  0x3a   : > { %623 = vmatpush.bf16.msra.mxu1 %v1000_v19 }
  0x3b   : > { %642 = vmatpush.bf16.msra.mxu2 %v1008_v20 }
  0x3d   : > { %605 = vmatpush.bf16.msra.mxu0 %v991_v21  ;;  %1036 = vmatpush.bf16.msra.mxu3 %v991_v21 }
  0x3e   : > { %624 = vmatpush.bf16.msra.mxu1 %v999_v22 }
  0x3f   : > { %643 = vmatpush.bf16.msra.mxu2 %v1007_v23 }
  0x41   : > { %606 = vmatpush.bf16.msra.mxu0 %v990_v24  ;;  %1037 = vmatpush.bf16.msra.mxu3 %v990_v24 }
  0x42   : > { %625 = vmatpush.bf16.msra.mxu1 %v998_v25 }
  0x43   : > { %644 = vmatpush.bf16.msra.mxu2 %v1006_v26 }
  0x45   : > { %607 = vmatpush.bf16.msra.mxu0 %v989_v27  ;;  %1038 = vmatpush.bf16.msra.mxu3 %v989_v27 }
  0x46   : > { %626 = vmatpush.bf16.msra.mxu1 %v997_v28 }
  0x47   : > { %645 = vmatpush.bf16.msra.mxu2 %v1005_v29 }
  0x49   : > { %608 = vmatpush.bf16.msra.mxu0 %v988_v30  ;;  %1039 = vmatpush.bf16.msra.mxu3 %v988_v30 }
  0x4a   : > { %627 = vmatpush.bf16.msra.mxu1 %v996_v31 }
  0x4b   : > { %646 = vmatpush.bf16.msra.mxu2 %v1004_v32 }
  0x4c   : > { %609 = vmatmul.bf16.vlgmr.msra.gmra.mxu0 %v859_v41  ;;  %614 = vmatmul.bf16.vlgmr.msra.gmra.mxu3 %v871_v44 }
  0x4d   : > { %628 = vmatmul.bf16.vlgmr.msra.gmra.mxu1 %v863_v42 }
  0x4e   : > { %647 = vmatmul.bf16.vlgmr.msra.gmra.mxu2 %v867_v43 }
  0x5d   : > { %633 = vmatmul.bf16.gmra.mxu1 %v875_v49 }
  0x5e   : > { %652 = vmatmul.bf16.gmra.mxu2 %v879_v50 }
  0xc9   : > { %v610_v52 = vpop.f32.mrf.mxu0 }
  0xca   : > { %v629_v51 = vpop.f32.mrf.mxu1 }
  0xcb   : > { %v630_v53 = vadd.f32 %v629_v51, %v610_v52 }
  0xcf   : > { %v615_v2 = vpop.f32.mrf.mxu3 }
  0xd1   : > { %v648_v55 = vpop.f32.mrf.mxu2  ;;  %v612_v59 = vpop.f32.mrf.mxu0 }
  0xd2   : > { %v649_v56 = vadd.f32 %v648_v55, %v630_v53  ;;  %v631_v57 = vpop.f32.mrf.mxu1 }
  0xd3   : > { %v632_v60 = vadd.f32 %v631_v57, %v612_v59 }
  0xd4   : > { %v658_v58 = vadd.f32 %v649_v56, %v365_v54 }
  0xd6   : > { %662 = vst [vmem:[#allocation2 + $0x10] sm:$0xff] %v658_v58 }
  0xd7   : > { %v617_v9 = vpop.f32.mrf.mxu3 }
  0xd9   : > { %v650_v62 = vpop.f32.mrf.mxu2 }
  0xda   : > { %v651_v63 = vadd.f32 %v650_v62, %v632_v60  ;;  %v634_v0 = vpop.f32.mrf.mxu1 }
  0xdb   : > { %v635_v3 = vadd.f32 %v634_v0, %v615_v2 }
  0xdc   : > { %v659_v1 = vadd.f32 %v651_v63, %v366_v61 }
  0xde   : > { %663 = vst [vmem:[#allocation2] sm:$0xff] %v659_v1 }
  0xe1   : > { %v653_v5 = vpop.f32.mrf.mxu2 }
  0xe2   : > { %v654_v6 = vadd.f32 %v653_v5, %v635_v3  ;;  %v636_v8 = vpop.f32.mrf.mxu1 }
  0xe3   : > { %v637_v10 = vadd.f32 %v636_v8, %v617_v9 }
  0xe4   : > { %v660_v7 = vadd.f32 %v654_v6, %v367_v4 }
  0xe6   : > { %664 = vst [vmem:[#allocation2 + $0x18] sm:$0xff] %v660_v7 }
  0xe9   : > { %v655_v12 = vpop.f32.mrf.mxu2 }
  0xea   : > { %v656_v13 = vadd.f32 %v655_v12, %v637_v10  ;;  %669 = sbr.rel (%p976_p11) target bundleno = 255 (0xff), region = 70 }
  0xec   : > { %v661_v14 = vadd.f32 %v656_v13, %v368_v11 }
  0xee   : > { %665 = vst [vmem:[#allocation2 + $0x8] sm:$0xff] %v661_v14 }
  0xef   : > { %v670_v15 = vld [vmem:[#allocation2 + $0x10] sm:$0xff]  ;;  %v671_v16 = vld [vmem:[#allocation2] sm:$0xff]  ;;  %v672_v19 = vld [vmem:[#allocation2 + $0x18] sm:$0xff] }
  0xf0   : > { %v1083_v17 = vld [vmem:[%s1274_s2] ss:$0 sm:$0xff]  ;;  %v1030_v23 = vld [vmem:[%s1275_s3 + $0x8] sm:$0xff]  }
  0xf1   : > { %v1013_v18 = vld [vmem:[%s1275_s3] sm:$0xff]   ;;  %v678_v24 = vadd.f32 %v1083_v17, %v670_v15  ;;  %v679_v25 = vadd.f32 %v1083_v17, %v671_v16  ;;  %v680_v26 = vadd.f32 %v1083_v17, %v672_v19  ;;  %v1018_v28 = vunpack.c.l.bf16 %v1030_v23 }
  0xf2   : > { %v1014_v20 = vunpack.c.l.bf16 %v1013_v18  ;;  %v1015_v21 = vunpack.c.h.bf16 %v1013_v18  ;;  %v1019_v29 = vunpack.c.h.bf16 %v1030_v23 }
  0xf3   : > { %v692_v32 = vadd.f32 %v1018_v28, %v680_v26 }
  0xf4   : > { %v690_v30 = vadd.f32 %v1014_v20, %v678_v24  ;;  %v691_v31 = vadd.f32 %v1015_v21, %v679_v25 }
  0xf5   : > { %v673_v22 = vld [vmem:[#allocation2 + $0x8] sm:$0xff]  ;;  %v696_v36 = vmax.f32 %v692_v32, 0.0 }
  0xf6   : > { %v681_v27 = vadd.f32 %v1083_v17, %v673_v22  ;;  %v694_v34 = vmax.f32 %v690_v30, 0.0  ;;  %v695_v35 = vmax.f32 %v691_v31, 0.0 }
  0xf8   : > { %v693_v33 = vadd.f32 %v1019_v29, %v681_v27  ;;  %v1023_v38 = vpack.c.bf16 %v695_v35, %v694_v34 }
  0xfa   : > { %v697_v37 = vmax.f32 %v693_v33, 0.0  ;;  %1024 = vst [vmem:[%s1276_s4] sm:$0xff] %v1023_v38  }
  0xfc   : > { %v1028_v39 = vpack.c.bf16 %v697_v37, %v696_v36 }
  0xfe   : > { %1031 = vst [vmem:[%s1276_s4 + $0x8] sm:$0xff] %v1028_v39  }
  0xff PF: > { %s14_s19 = sadd.s32 1, %s1122_s19   ;;  %s1277_s15 = smov %s1110_s16 }
 0x100   : > { %p11_p12 = scmp.ge.s32.totalorder %s14_s19, 5   ;;  %s1278_s16 = smov %s1185_s23 }
 0x101   : > { %s1279_s17 = smov %s1118_s18  ;;  %s1280_s18 = smov %s1282_s20 }
 0x102   :  { %13 = sbr.rel (!%p11_p12) target bundleno = 3 (0x3), region = 120 }

// kernel: _lambda_.22
= control target key start
LH: loop header
LB: loop body
LE: loop exit
PB: predicated region body
PF: predicated region fallthrough
CT: control target
= control target key end

     0   :  { %s1251_s12 = smov 0   ;;  %s1253_s13 = smov 0   ;;  %s1441_s0 = inlined_call_operand.vmem [shape: bf16[16,1152], index: 0, kind: input, shape index: {}]   ;;  %s1442_s1 = inlined_call_operand.vmem [shape: bf16[1152,256], index: 1, kind: input, shape index: {}]   ;;  %s1443_s2 = inlined_call_operand.vmem [shape: f32[1,256], index: 2, kind: input, shape index: {}]   ;;  %s1444_s3 = inlined_call_operand.vmem [shape: bf16[16,256], index: 3, kind: output, shape index: {}]  }
   0x1   :  { %s1255_s14 = smov 0   ;;  %s1257_s15 = smov 0  }
   0x2   :  { %s1259_s16 = smov 0  }
   0x3 LB: > { %s25_s17 = sadd.s32 1, %s1224_s15  ;;  %p48_p1 = scmp.ne.s32.totalorder %s1216_s13, %s1212_s12  ;;  %s1228_s16 = sphi %s1259_s16, %s13_s16   ;;  %s1224_s15 = sphi %s1257_s15, %s1448_s15   ;;  %s1220_s14 = sphi %s1255_s14, %s1447_s14   ;;  %s1216_s13 = sphi %s1253_s13, %s1446_s13   ;;  %s1212_s12 = sphi %s1251_s12, %s1445_s12  }
   0x4   : > { %p26_p0 = scmp.ge.s32.totalorder %s25_s17, 3  ;;  %p49_p2 = scmp.eq.s32.totalorder %s1228_s16, 0 }
   0x5   : > { %s41_s19 = sadd.s32 1, %s1216_s13  ;;  %p875_p5 = scmp.ge.s32.totalorder %s1228_s16, 3 }
   0x6   : > { %s1450_s17 = smov (%p26_p0, %s25_s17), 0  ;;  %p50_p3 = por %p49_p2, %p48_p1 }
   0x7   : > { %s37_s18 = ssub.s32 %s1224_s15, %s1450_s17  ;;  %164 = sbr.rel (%p875_p5) target bundleno = 21 (0x15), region = 20 }
   0x8   : > { %p39_p4 = scmp.eq.s32.totalorder %s37_s18, 0 }
   0xa   : > { %s1286_s20 = scalar_select %p39_p4, %s1216_s13, %s41_s19  }
   0xc   : > { %167 = sbr.rel (!%p50_p3) target bundleno = 21 (0x15), region = 24  ;;  %s169_s21 = sand.u32 (%p50_p3), 1, %s1216_s13  }
   0xd   : > { %s1094_s22 = smul.u32 (%p50_p3), 12, %s1224_s15 }
   0xe   : > { %s1147_s23 = smul.u32 (%p50_p3), 24, %s169_s21 }
   0xf   : > { %s177_s26 = scalar_lea.vmem (%p50_p3), %s1441_s0, %s1094_s22 }
  0x10   : > { %v192_v0 = vld [vmem:[%s177_s26] sm:$0xff] (%p50_p3)  ;;  %v877_v2 = vld [vmem:[%s177_s26 + $0x8] sm:$0xf] (%p50_p3)  ;;  %s171_s27 = scalar_lea.vmem (%p50_p3), [#allocation3], %s1147_s23  ;;  %v879_v3 = vld [vmem:[%s177_s26 + $0x2c] sm:$0xf] (%p50_p3) }
  0x11   : > { %v194_v1 = vld [vmem:[%s177_s26 + $0x24] sm:$0xff]  ;;  %193 = vst [vmem:[%s171_s27] sm:$0xff] %v192_v0 }
  0x12   : > { %195 = vst [vmem:[%s171_s27 + $0xc] sm:$0xff] %v194_v1 }
  0x13   : > { %878 = vst [vmem:[%s171_s27 + $0x8] sm:$0xf] %v877_v2 }
  0x14   : > { %880 = vst [vmem:[%s171_s27 + $0x14] sm:$0xf] %v879_v3 }
  0x15 PF: > { %p881_p6 = scmp.ge.s32.totalorder %s1228_s16, 1  ;;  %p227_p7 = scmp.lt.s32.totalorder %s1228_s16, 4 }
  0x17   : > { %p228_p8 = pnand %p881_p6, %p227_p7 }
  0x18   : > { %s234_s28 = sand.u32 (!%p228_p8), 1, %s1212_s12   ;;  %s278_s29 = smul.u32 (!%p228_p8), 48, %s1220_s14 }
  0x19   : > { %231 = sbr.rel (%p228_p8) target bundleno = 261 (0x105), region = 54  ;;  %p884_p10 = scmp.ne.s32.totalorder (!%p228_p8), %s1220_s14, 0 }
  0x1a   : > { %s1148_s30 = smul.u32 (!%p228_p8), 24, %s234_s28  ;;  %p280_p9 = scmp.lt.s32.totalorder (!%p228_p8), %s278_s29, 143 }
  0x1c   : > { %s1303_s8 = scalar_lea.vmem (!%p228_p8), [#allocation3], %s1148_s30 }
  0x1e   : > { %s1452_s29 = smov (!%p280_p9, %s278_s29), 143  ;;  %310 = sbr.rel (%p884_p10) target bundleno = 40 (0x28), region = 62 }
  0x1f   : > { %s1095_s4 = sshll.u32 %s1452_s29, 3 }
  0x20   : > { %s1301_s7 = scalar_lea.vmem %s1442_s1, %s1095_s4 }
  0x23   : > { %v1230_v4 = vmov 0.0  }
  0x24   : > { %311 = vst [vmem:[#allocation2 + $0x10] sm:$0xff] %v1230_v4 }
  0x25   : > { %312 = vst [vmem:[#allocation2] sm:$0xff] %v1230_v4 }
  0x26   : > { %313 = vst [vmem:[#allocation2 + $0x18] sm:$0xff] %v1230_v4 }
  0x27   : > { %314 = vst [vmem:[#allocation2 + $0x8] sm:$0xff] %v1230_v4 }
  0x28 PF: > { %v955_v5 = vld [vmem:[%s1301_s7 + $0x70] sm:$0xf]  ;;  %v1114_v6 = vld [vmem:[%s1301_s7 + $0x74] sm:$0xf0]  ;;  %v947_v14 = vld [vmem:[%s1301_s7 + $0x60] sm:$0xf] }
  0x29   : > { %v1019_v7 = vld [vmem:[%s1301_s7 + $0xf0] sm:$0xf]  ;;  %v956_v8 = vor.u32 %v1114_v6, %v955_v5  ;;  %v1130_v9 = vld [vmem:[%s1301_s7 + $0xf4] sm:$0xf0]  ;;  %v1112_v15 = vld [vmem:[%s1301_s7 + $0x64] sm:$0xf0] }
  0x2a   : > { %v1083_v10 = vld [vmem:[%s1301_s7 + $0x170] sm:$0xf]  ;;  %v1146_v11 = vld [vmem:[%s1301_s7 + $0x174] sm:$0xf0]  ;;  %v1020_v12 = vor.u32 %v1130_v9, %v1019_v7  ;;  %v1011_v16 = vld [vmem:[%s1301_s7 + $0xe0] sm:$0xf]  ;;  %v948_v17 = vor.u32 %v1112_v15, %v947_v14 }
  0x2b   : > { %v1084_v13 = vor.u32 %v1146_v11, %v1083_v10  ;;  %627 = vmatpush.bf16.msra.mxu0 %v956_v8  ;;  %v1128_v18 = vld [vmem:[%s1301_s7 + $0xe4] sm:$0xf0]  ;;  %v1075_v19 = vld [vmem:[%s1301_s7 + $0x160] sm:$0xf]  ;;  %v939_v23 = vld [vmem:[%s1301_s7 + $0x50] sm:$0xf] }
  0x2c   : > { %v1144_v20 = vld [vmem:[%s1301_s7 + $0x164] sm:$0xf0]  ;;  %641 = vmatpush.bf16.msra.mxu1 %v1020_v12  ;;  %v1012_v21 = vor.u32 %v1128_v18, %v1011_v16  ;;  %v1110_v24 = vld [vmem:[%s1301_s7 + $0x54] sm:$0xf0]  ;;  %v1003_v25 = vld [vmem:[%s1301_s7 + $0xd0] sm:$0xf] }
  0x2d   : > { %655 = vmatpush.bf16.msra.mxu2 %v1084_v13  ;;  %v1076_v22 = vor.u32 %v1144_v20, %v1075_v19  ;;  %v1126_v26 = vld [vmem:[%s1301_s7 + $0xd4] sm:$0xf0]  ;;  %v1067_v27 = vld [vmem:[%s1301_s7 + $0x150] sm:$0xf]  ;;  %v940_v29 = vor.u32 %v1110_v24, %v939_v23  ;;  %v931_v30 = vld [vmem:[%s1301_s7 + $0x40] sm:$0xf] }
  0x2e   : > { %v1142_v28 = vld [vmem:[%s1301_s7 + $0x154] sm:$0xf0]  ;;  %v1108_v31 = vld [vmem:[%s1301_s7 + $0x44] sm:$0xf0]  ;;  %v1004_v32 = vor.u32 %v1126_v26, %v1003_v25  ;;  %v995_v34 = vld [vmem:[%s1301_s7 + $0xc0] sm:$0xf] }
  0x2f   : > { %628 = vmatpush.bf16.msra.mxu0 %v948_v17  ;;  %v1068_v33 = vor.u32 %v1142_v28, %v1067_v27  ;;  %v1113_v35 = vld [vmem:[%s1301_s7 + $0x74] sm:$0xf]  ;;  %v957_v36 = vld [vmem:[%s1301_s7 + $0x78] sm:$0xf0]  ;;  %v1124_v37 = vld [vmem:[%s1301_s7 + $0xc4] sm:$0xf0]  ;;  %v932_v42 = vor.u32 %v1108_v31, %v931_v30 }
  0x30   : > { %642 = vmatpush.bf16.msra.mxu1 %v1012_v21  ;;  %v1059_v38 = vld [vmem:[%s1301_s7 + $0x140] sm:$0xf]  ;;  %v1140_v39 = vld [vmem:[%s1301_s7 + $0x144] sm:$0xf0]  ;;  %v960_v40 = vor.u32 %v1113_v35, %v957_v36  ;;  %v1111_v41 = vld [vmem:[%s1301_s7 + $0x64] sm:$0xf]  ;;  %v996_v46 = vor.u32 %v1124_v37, %v995_v34 }
  0x31   : > { %656 = vmatpush.bf16.msra.mxu2 %v1076_v22  ;;  %v923_v43 = vld [vmem:[%s1301_s7 + $0x30] sm:$0xf]  ;;  %v1106_v44 = vld [vmem:[%s1301_s7 + $0x34] sm:$0xf0]  ;;  %v949_v45 = vld [vmem:[%s1301_s7 + $0x68] sm:$0xf0]  ;;  %v1060_v47 = vor.u32 %v1140_v39, %v1059_v38 }
  0x32   : > { %669 = vmatpush.bf16.msra.mxu3 %v960_v40  ;;  %v987_v48 = vld [vmem:[%s1301_s7 + $0xb0] sm:$0xf]  ;;  %v1122_v49 = vld [vmem:[%s1301_s7 + $0xb4] sm:$0xf0]  ;;  %v952_v51 = vor.u32 %v1111_v41, %v949_v45  ;;  %v1109_v53 = vld [vmem:[%s1301_s7 + $0x54] sm:$0xf]  ;;  %v924_v55 = vor.u32 %v1106_v44, %v923_v43 }
  0x33   : > { %629 = vmatpush.bf16.msra.mxu0 %v940_v29  ;;  %v1051_v50 = vld [vmem:[%s1301_s7 + $0x130] sm:$0xf]  ;;  %v1138_v52 = vld [vmem:[%s1301_s7 + $0x134] sm:$0xf0]  ;;  %v941_v54 = vld [vmem:[%s1301_s7 + $0x58] sm:$0xf0]  ;;  %v988_v59 = vor.u32 %v1122_v49, %v987_v48 }
  0x34   : > { %643 = vmatpush.bf16.msra.mxu1 %v1004_v32  ;;  %v915_v56 = vld [vmem:[%s1301_s7 + $0x20] sm:$0xf]  ;;  %v1104_v57 = vld [vmem:[%s1301_s7 + $0x24] sm:$0xf0]  ;;  %v944_v58 = vor.u32 %v1109_v53, %v941_v54  ;;  %v1052_v60 = vor.u32 %v1138_v52, %v1051_v50  ;;  %v1107_v62 = vld [vmem:[%s1301_s7 + $0x44] sm:$0xf] }
  0x35   : > { %657 = vmatpush.bf16.msra.mxu2 %v1068_v33  ;;  %v979_v61 = vld [vmem:[%s1301_s7 + $0xa0] sm:$0xf]  ;;  %v933_v63 = vld [vmem:[%s1301_s7 + $0x48] sm:$0xf0]  ;;  %v1120_v0 = vld [vmem:[%s1301_s7 + $0xa4] sm:$0xf0]  ;;  %v916_v3 = vor.u32 %v1104_v57, %v915_v56 }
  0x36   : > { %670 = vmatpush.bf16.msra.mxu3 %v952_v51  ;;  %v1043_v1 = vld [vmem:[%s1301_s7 + $0x120] sm:$0xf]  ;;  %v1136_v2 = vld [vmem:[%s1301_s7 + $0x124] sm:$0xf0]  ;;  %v907_v4 = vld [vmem:[%s1301_s7 + $0x10] sm:$0xf]  ;;  %v936_v6 = vor.u32 %v1107_v62, %v933_v63  ;;  %v980_v7 = vor.u32 %v1120_v0, %v979_v61 }
  0x37   : > { %630 = vmatpush.bf16.msra.mxu0 %v932_v42  ;;  %v1102_v5 = vld [vmem:[%s1301_s7 + $0x14] sm:$0xf0]  ;;  %v1044_v8 = vor.u32 %v1136_v2, %v1043_v1  ;;  %v971_v9 = vld [vmem:[%s1301_s7 + $0x90] sm:$0xf]  ;;  %v1105_v10 = vld [vmem:[%s1301_s7 + $0x34] sm:$0xf] }
  0x38   : > { %644 = vmatpush.bf16.msra.mxu1 %v996_v46  ;;  %v925_v11 = vld [vmem:[%s1301_s7 + $0x38] sm:$0xf0]  ;;  %v1118_v12 = vld [vmem:[%s1301_s7 + $0x94] sm:$0xf0]  ;;  %v1035_v13 = vld [vmem:[%s1301_s7 + $0x110] sm:$0xf]  ;;  %v908_v15 = vor.u32 %v1102_v5, %v907_v4 }
  0x39   : > { %658 = vmatpush.bf16.msra.mxu2 %v1060_v47  ;;  %v1134_v14 = vld [vmem:[%s1301_s7 + $0x114] sm:$0xf0]  ;;  %v899_v16 = vld [vmem:[%s1301_s7] sm:$0xf]  ;;  %v1100_v17 = vld [vmem:[%s1301_s7 + $0x4] sm:$0xf0]  ;;  %v928_v19 = vor.u32 %v1105_v10, %v925_v11  ;;  %v972_v20 = vor.u32 %v1118_v12, %v971_v9 }
  0x3a   : > { %671 = vmatpush.bf16.msra.mxu3 %v944_v58  ;;  %v963_v18 = vld [vmem:[%s1301_s7 + $0x80] sm:$0xf]  ;;  %v1036_v21 = vor.u32 %v1134_v14, %v1035_v13  ;;  %v1116_v22 = vld [vmem:[%s1301_s7 + $0x84] sm:$0xf0]  ;;  %v1103_v23 = vld [vmem:[%s1301_s7 + $0x24] sm:$0xf]  ;;  %v900_v31 = vor.u32 %v1100_v17, %v899_v16 }
  0x3b   : > { %631 = vmatpush.bf16.msra.mxu0 %v924_v55  ;;  %v917_v24 = vld [vmem:[%s1301_s7 + $0x28] sm:$0xf0]  ;;  %v1027_v25 = vld [vmem:[%s1301_s7 + $0x100] sm:$0xf]  ;;  %v1132_v26 = vld [vmem:[%s1301_s7 + $0x104] sm:$0xf0]  ;;  %v964_v36 = vor.u32 %v1116_v22, %v963_v18 }
  0x3c   : > { %645 = vmatpush.bf16.msra.mxu1 %v988_v59  ;;  %v1129_v27 = vld [vmem:[%s1301_s7 + $0xf4] sm:$0xf]  ;;  %v1021_v28 = vld [vmem:[%s1301_s7 + $0xf8] sm:$0xf0]  ;;  %v895_v32 = vld [vmem:[%s1303_s8 + $0x8] sm:$0xf]  ;;  %v920_v33 = vor.u32 %v1103_v23, %v917_v24  ;;  %v1028_v37 = vor.u32 %v1132_v26, %v1027_v25 }
  0x3d   : > { %659 = vmatpush.bf16.msra.mxu2 %v1052_v60  ;;  %v1145_v29 = vld [vmem:[%s1301_s7 + $0x174] sm:$0xf]  ;;  %v1085_v30 = vld [vmem:[%s1301_s7 + $0x178] sm:$0xf0]  ;;  %v887_v34 = vld [vmem:[%s1303_s8] sm:$0xf]  ;;  %v1024_v41 = vor.u32 %v1129_v27, %v1021_v28 }
  0x3e   : > { %672 = vmatpush.bf16.msra.mxu3 %v936_v6  ;;  %v1097_v35 = vld [vmem:[%s1303_s8 + $0x8] sm:$0xf0]  ;;  %v1098_v38 = vld [vmem:[%s1303_s8 + $0x10] sm:$0xf0]  ;;  %v1096_v39 = vld [vmem:[%s1303_s8 + $0x4] sm:$0xf]  ;;  %v1088_v42 = vor.u32 %v1145_v29, %v1085_v30 }
  0x3f   : > { %632 = vmatpush.bf16.msra.mxu0 %v916_v3  ;;  %v889_v40 = vld [vmem:[%s1303_s8 + $0xc] sm:$0xf0]  ;;  %v1127_v43 = vld [vmem:[%s1301_s7 + $0xe4] sm:$0xf]  ;;  %v1101_v44 = vld [vmem:[%s1301_s7 + $0x14] sm:$0xf]  ;;  %v888_v49 = vor.u32 %v1097_v35, %v887_v34  ;;  %v1382_v50 = vor.u32 %v1098_v38, %v895_v32 }
  0x40   : > { %646 = vmatpush.bf16.msra.mxu1 %v980_v7  ;;  %v909_v45 = vld [vmem:[%s1301_s7 + $0x18] sm:$0xf0]  ;;  %v1013_v46 = vld [vmem:[%s1301_s7 + $0xe8] sm:$0xf0]  ;;  %v1143_v47 = vld [vmem:[%s1301_s7 + $0x164] sm:$0xf]  ;;  %v1384_v51 = vor.u32 %v1096_v39, %v889_v40 }
  0x41   : > { %660 = vmatpush.bf16.msra.mxu2 %v1044_v8  ;;  %v1077_v48 = vld [vmem:[%s1301_s7 + $0x168] sm:$0xf0]  ;;  %v912_v52 = vor.u32 %v1101_v44, %v909_v45  ;;  %v1016_v53 = vor.u32 %v1127_v43, %v1013_v46  ;;  %v1125_v55 = vld [vmem:[%s1301_s7 + $0xd4] sm:$0xf]  ;;  %v1099_v56 = vld [vmem:[%s1301_s7 + $0x4] sm:$0xf] }
  0x42   : > { %673 = vmatpush.bf16.msra.mxu3 %v928_v19  ;;  %v1080_v54 = vor.u32 %v1143_v47, %v1077_v48  ;;  %v901_v57 = vld [vmem:[%s1301_s7 + $0x8] sm:$0xf0]  ;;  %v1005_v58 = vld [vmem:[%s1301_s7 + $0xd8] sm:$0xf0]  ;;  %v1141_v59 = vld [vmem:[%s1301_s7 + $0x154] sm:$0xf] }
  0x43   : > { %633 = vmatpush.bf16.msra.mxu0 %v908_v15  ;;  %v1069_v60 = vld [vmem:[%s1301_s7 + $0x158] sm:$0xf0]  ;;  %v904_v61 = vor.u32 %v1099_v56, %v901_v57  ;;  %v1008_v62 = vor.u32 %v1125_v55, %v1005_v58  ;;  %v1123_v0 = vld [vmem:[%s1301_s7 + $0xc4] sm:$0xf]  ;;  %v997_v1 = vld [vmem:[%s1301_s7 + $0xc8] sm:$0xf0] }
  0x44   : > { %647 = vmatpush.bf16.msra.mxu1 %v972_v20  ;;  %v1072_v63 = vor.u32 %v1141_v59, %v1069_v60  ;;  %v1139_v2 = vld [vmem:[%s1301_s7 + $0x144] sm:$0xf]  ;;  %v1061_v3 = vld [vmem:[%s1301_s7 + $0x148] sm:$0xf0]  ;;  %v1000_v4 = vor.u32 %v1123_v0, %v997_v1  ;;  %v1121_v6 = vld [vmem:[%s1301_s7 + $0xb4] sm:$0xf] }
  0x45   : > { %661 = vmatpush.bf16.msra.mxu2 %v1036_v21  ;;  %v1064_v5 = vor.u32 %v1139_v2, %v1061_v3  ;;  %v989_v7 = vld [vmem:[%s1301_s7 + $0xb8] sm:$0xf0]  ;;  %v1137_v8 = vld [vmem:[%s1301_s7 + $0x134] sm:$0xf]  ;;  %v1119_v12 = vld [vmem:[%s1301_s7 + $0xa4] sm:$0xf] }
  0x46   : > { %674 = vmatpush.bf16.msra.mxu3 %v920_v33  ;;  %v1053_v9 = vld [vmem:[%s1301_s7 + $0x138] sm:$0xf0]  ;;  %v992_v10 = vor.u32 %v1121_v6, %v989_v7  ;;  %v981_v13 = vld [vmem:[%s1301_s7 + $0xa8] sm:$0xf0]  ;;  %v1135_v14 = vld [vmem:[%s1301_s7 + $0x124] sm:$0xf] }
  0x47   : > { %634 = vmatpush.bf16.msra.mxu0 %v900_v31  ;;  %v1056_v11 = vor.u32 %v1137_v8, %v1053_v9  ;;  %v1045_v15 = vld [vmem:[%s1301_s7 + $0x128] sm:$0xf0]  ;;  %v984_v16 = vor.u32 %v1119_v12, %v981_v13  ;;  %v1117_v18 = vld [vmem:[%s1301_s7 + $0x94] sm:$0xf]  ;;  %v973_v19 = vld [vmem:[%s1301_s7 + $0x98] sm:$0xf0] }
  0x48   : > { %648 = vmatpush.bf16.msra.mxu1 %v964_v36  ;;  %v1048_v17 = vor.u32 %v1135_v14, %v1045_v15  ;;  %v1133_v20 = vld [vmem:[%s1301_s7 + $0x114] sm:$0xf]  ;;  %v1037_v21 = vld [vmem:[%s1301_s7 + $0x118] sm:$0xf0]  ;;  %v976_v22 = vor.u32 %v1117_v18, %v973_v19  ;;  %v1115_v24 = vld [vmem:[%s1301_s7 + $0x84] sm:$0xf] }
  0x49   : > { %662 = vmatpush.bf16.msra.mxu2 %v1028_v37  ;;  %v1040_v23 = vor.u32 %v1133_v20, %v1037_v21  ;;  %v965_v25 = vld [vmem:[%s1301_s7 + $0x88] sm:$0xf0]  ;;  %v1131_v26 = vld [vmem:[%s1301_s7 + $0x104] sm:$0xf]  ;;  %v315_v33 = vld [vmem:[#allocation2 + $0x10] sm:$0xff]  ;;  %p1089_p11 = scmp.ne.s32.totalorder %s1220_s14, 2 }
  0x4a   : > { %635 = vmatmul.bf16.vlgmr.msra.gmra.mxu0 %v888_v49  ;;  %675 = vmatpush.bf16.msra.mxu3 %v912_v52  ;;  %v1029_v27 = vld [vmem:[%s1301_s7 + $0x108] sm:$0xf0]  ;;  %v968_v28 = vor.u32 %v1115_v24, %v965_v25  ;;  %v317_v40 = vld [vmem:[#allocation2 + $0x18] sm:$0xff]  ;;  %v316_v48 = vld [vmem:[#allocation2] sm:$0xff] }
  0x4b   : > { %683 = vmatpush.bf16.msrb.mxu0 %v1024_v41  ;;  %649 = vmatmul.bf16.vlgmr.msra.gmra.mxu1 %v1384_v51  ;;  %v1032_v29 = vor.u32 %v1131_v26, %v1029_v27 }
  0x4c   : > { %697 = vmatpush.bf16.msrb.mxu1 %v1088_v42  ;;  %663 = vmatmul.bf16.vlgmr.msra.gmra.mxu2 %v1382_v50 }
  0x4e   : > { %676 = vmatpush.bf16.msra.mxu3 %v904_v61 }
  0x4f   : > { %684 = vmatpush.bf16.msrb.mxu0 %v1016_v53 }
  0x50   : > { %698 = vmatpush.bf16.msrb.mxu1 %v1080_v54  ;;  %v318_v54 = vld [vmem:[#allocation2 + $0x8] sm:$0xff] }
  0x51   : > { %677 = vmatmul.bf16.vlgmr.msra.gmra.mxu3 %v888_v49 }
  0x53   : > { %685 = vmatpush.bf16.msrb.mxu0 %v1008_v62 }
  0x54   : > { %699 = vmatpush.bf16.msrb.mxu1 %v1072_v63 }
  0x57   : > { %686 = vmatpush.bf16.msrb.mxu0 %v1000_v4 }
  0x58   : > { %700 = vmatpush.bf16.msrb.mxu1 %v1064_v5 }
  0x5b   : > { %687 = vmatpush.bf16.msrb.mxu0 %v992_v10 }
  0x5c   : > { %701 = vmatpush.bf16.msrb.mxu1 %v1056_v11 }
  0x5f   : > { %688 = vmatpush.bf16.msrb.mxu0 %v984_v16 }
  0x60   : > { %702 = vmatpush.bf16.msrb.mxu1 %v1048_v17 }
  0x63   : > { %689 = vmatpush.bf16.msrb.mxu0 %v976_v22 }
  0x64   : > { %703 = vmatpush.bf16.msrb.mxu1 %v1040_v23 }
  0x67   : > { %690 = vmatpush.bf16.msrb.mxu0 %v968_v28 }
  0x68   : > { %704 = vmatpush.bf16.msrb.mxu1 %v1032_v29 }
  0x6a   : > { %691 = vmatmul.bf16.vlgmr.msrb.gmra.mxu0 %v1384_v51 }
  0x6b   : > { %705 = vmatmul.bf16.vlgmr.msrb.gmra.mxu1 %v1382_v50 }
  0xc7   : > { %v636_v30 = vpop.f32.mrf.mxu0 }
  0xc8   : > { %v650_v31 = vpop.f32.mrf.mxu1 }
  0xc9   : > { %v651_v32 = vadd.f32 %v650_v31, %v636_v30 }
  0xcf   : > { %v664_v34 = vpop.f32.mrf.mxu2  ;;  %v638_v36 = vpop.f32.mrf.mxu0 }
  0xd0   : > { %v665_v35 = vadd.f32 %v664_v34, %v651_v32  ;;  %v652_v37 = vpop.f32.mrf.mxu1 }
  0xd1   : > { %v653_v39 = vadd.f32 %v652_v37, %v638_v36 }
  0xd2   : > { %v711_v38 = vadd.f32 %v665_v35, %v315_v33 }
  0xd4   : > { %715 = vst [vmem:[#allocation2 + $0x10] sm:$0xff] %v711_v38  ;;  %v678_v44 = vpop.f32.mrf.mxu3 }
  0xd7   : > { %v666_v41 = vpop.f32.mrf.mxu2 }
  0xd8   : > { %v667_v42 = vadd.f32 %v666_v41, %v653_v39 }
  0xda   : > { %v713_v43 = vadd.f32 %v667_v42, %v317_v40 }
  0xdc   : > { %717 = vst [vmem:[#allocation2 + $0x18] sm:$0xff] %v713_v43  ;;  %v680_v51 = vpop.f32.mrf.mxu3 }
  0xe7   : > { %v692_v45 = vpop.f32.mrf.mxu0 }
  0xe8   : > { %v706_v46 = vpop.f32.mrf.mxu1  ;;  %v693_v47 = vadd.f32 %v692_v45, %v678_v44 }
  0xea   : > { %v707_v49 = vadd.f32 %v706_v46, %v693_v47 }
  0xec   : > { %v712_v50 = vadd.f32 %v707_v49, %v316_v48 }
  0xee   : > { %716 = vst [vmem:[#allocation2] sm:$0xff] %v712_v50 }
  0xef   : > { %v694_v52 = vpop.f32.mrf.mxu0 }
  0xf0   : > { %v695_v53 = vadd.f32 %v694_v52, %v680_v51  ;;  %v708_v55 = vpop.f32.mrf.mxu1 }
  0xf2   : > { %v709_v56 = vadd.f32 %v708_v55, %v695_v53  ;;  %722 = sbr.rel (%p1089_p11) target bundleno = 261 (0x105), region = 66 }
  0xf4   : > { %v714_v57 = vadd.f32 %v709_v56, %v318_v54 }
  0xf6   : > { %718 = vst [vmem:[#allocation2 + $0x8] sm:$0xff] %v714_v57 }
  0xf7   : > { %v723_v58 = vld [vmem:[#allocation2 + $0x10] sm:$0xff]  ;;  %v724_v59 = vld [vmem:[#allocation2] sm:$0xff]  ;;  %v725_v63 = vld [vmem:[#allocation2 + $0x18] sm:$0xff] }
  0xf8   : > { %v727_v60 = vld [vmem:[%s1443_s2] sm:$0x3] }
  0xf9   : > { %v729_v61 = vperm.slane %v727_v60, 0  ;;  %v730_v62 = vperm.slane %v727_v60, 1 }
  0xfb   : > { %v733_v1 = vadd.f32 %v729_v61, %v723_v58  ;;  %v734_v2 = vadd.f32 %v730_v62, %v724_v59  ;;  %v735_v3 = vadd.f32 %v729_v61, %v725_v63 }
  0xfd   : > { %v726_v0 = vld [vmem:[#allocation2 + $0x8] sm:$0xff]  ;;  %v737_v5 = vmax.f32 %v733_v1, 0.0  ;;  %v738_v6 = vmax.f32 %v734_v2, 0.0  ;;  %v739_v7 = vmax.f32 %v735_v3, 0.0 }
  0xfe   : > { %v736_v4 = vadd.f32 %v730_v62, %v726_v0 }
  0xff   : > { %v741_v9 = vpack.c.bf16 %v738_v6, %v737_v5 }
 0x100   : > { %v740_v8 = vmax.f32 %v736_v4, 0.0 }
 0x101   : > { %743 = vst [vmem:[%s1444_s3] sm:$0xff] %v741_v9 }
 0x102   : > { %v742_v10 = vpack.c.bf16 %v740_v8, %v739_v7 }
 0x104   : > { %744 = vst [vmem:[%s1444_s3 + $0x8] sm:$0xff] %v742_v10 }
 0x105 PF: > { %s13_s16 = sadd.s32 1, %s1228_s16   ;;  %s1445_s12 = smov %s1216_s13 }
 0x106   : > { %p10_p12 = scmp.ge.s32.totalorder %s13_s16, 5   ;;  %s1446_s13 = smov %s1286_s20 }
 0x107   : > { %s1447_s14 = smov %s1224_s15  ;;  %s1448_s15 = smov %s1450_s17 }
 0x108   :  { %12 = sbr.rel (!%p10_p12) target bundleno = 3 (0x3), region = 113 }

// kernel: _lambda_.23
= control target key start
LH: loop header
LB: loop body
LE: loop exit
PB: predicated region body
PF: predicated region fallthrough
CT: control target
= control target key end

     0   :  { %s404_s1 = inlined_call_operand.vmem [shape: bf16[128,256], index: 1, kind: input, shape index: {}]   ;;  %s405_s0 = inlined_call_operand.vmem [shape: bf16[16,128], index: 0, kind: input, shape index: {}]   ;;  %s406_s2 = inlined_call_operand.vmem [shape: f32[1,256], index: 2, kind: input, shape index: {}]   ;;  %s407_s3 = inlined_call_operand.vmem [shape: bf16[16,256], index: 3, kind: output, shape index: {}]  }
   0x1   :  { %v253_v0 = vld [vmem:[%s404_s1 + $0x70] sm:$0xf]  ;;  %v275_v1 = vld [vmem:[%s404_s1 + $0x74] sm:$0xf0]  ;;  %v274_v2 = vld [vmem:[%s404_s1 + $0x74] sm:$0xf] }
   0x2   :  { %v254_v3 = vor.u32 %v275_v1, %v253_v0  ;;  %v255_v4 = vld [vmem:[%s404_s1 + $0x78] sm:$0xf0]  ;;  %v245_v5 = vld [vmem:[%s404_s1 + $0x60] sm:$0xf]  ;;  %v273_v6 = vld [vmem:[%s404_s1 + $0x64] sm:$0xf0] }
   0x3   :  { %v258_v7 = vor.u32 %v274_v2, %v255_v4  ;;  %v272_v8 = vld [vmem:[%s404_s1 + $0x64] sm:$0xf]  ;;  %v247_v9 = vld [vmem:[%s404_s1 + $0x68] sm:$0xf0]  ;;  %v246_v10 = vor.u32 %v273_v6, %v245_v5  ;;  %v237_v12 = vld [vmem:[%s404_s1 + $0x50] sm:$0xf] }
   0x4   :  { %130 = vmatpush.bf16.msra.mxu0 %v254_v3  ;;  %v250_v11 = vor.u32 %v272_v8, %v247_v9  ;;  %v271_v13 = vld [vmem:[%s404_s1 + $0x54] sm:$0xf0]  ;;  %v270_v14 = vld [vmem:[%s404_s1 + $0x54] sm:$0xf]  ;;  %v239_v15 = vld [vmem:[%s404_s1 + $0x58] sm:$0xf0] }
   0x5   :  { %144 = vmatpush.bf16.msra.mxu1 %v258_v7  ;;  %v238_v16 = vor.u32 %v271_v13, %v237_v12  ;;  %v242_v17 = vor.u32 %v270_v14, %v239_v15  ;;  %v229_v18 = vld [vmem:[%s404_s1 + $0x40] sm:$0xf]  ;;  %v269_v19 = vld [vmem:[%s404_s1 + $0x44] sm:$0xf0]  ;;  %v268_v20 = vld [vmem:[%s404_s1 + $0x44] sm:$0xf] }
   0x6   :  { %v231_v21 = vld [vmem:[%s404_s1 + $0x48] sm:$0xf0]  ;;  %v230_v22 = vor.u32 %v269_v19, %v229_v18  ;;  %v221_v24 = vld [vmem:[%s404_s1 + $0x30] sm:$0xf]  ;;  %v267_v25 = vld [vmem:[%s404_s1 + $0x34] sm:$0xf0] }
   0x7   :  { %v234_v23 = vor.u32 %v268_v20, %v231_v21  ;;  %v266_v26 = vld [vmem:[%s404_s1 + $0x34] sm:$0xf]  ;;  %v223_v27 = vld [vmem:[%s404_s1 + $0x38] sm:$0xf0]  ;;  %v222_v28 = vor.u32 %v267_v25, %v221_v24  ;;  %v213_v30 = vld [vmem:[%s404_s1 + $0x20] sm:$0xf] }
   0x8   :  { %131 = vmatpush.bf16.msra.mxu0 %v246_v10  ;;  %v226_v29 = vor.u32 %v266_v26, %v223_v27  ;;  %v265_v31 = vld [vmem:[%s404_s1 + $0x24] sm:$0xf0]  ;;  %v264_v32 = vld [vmem:[%s404_s1 + $0x24] sm:$0xf]  ;;  %v215_v33 = vld [vmem:[%s404_s1 + $0x28] sm:$0xf0] }
   0x9   :  { %145 = vmatpush.bf16.msra.mxu1 %v250_v11  ;;  %v214_v34 = vor.u32 %v265_v31, %v213_v30  ;;  %v218_v35 = vor.u32 %v264_v32, %v215_v33  ;;  %v205_v36 = vld [vmem:[%s404_s1 + $0x10] sm:$0xf]  ;;  %v263_v37 = vld [vmem:[%s404_s1 + $0x14] sm:$0xf0]  ;;  %v262_v38 = vld [vmem:[%s404_s1 + $0x14] sm:$0xf] }
   0xa   :  { %v207_v39 = vld [vmem:[%s404_s1 + $0x18] sm:$0xf0]  ;;  %v206_v40 = vor.u32 %v263_v37, %v205_v36  ;;  %v197_v42 = vld [vmem:[%s404_s1] sm:$0xf]  ;;  %v261_v43 = vld [vmem:[%s404_s1 + $0x4] sm:$0xf0] }
   0xb   :  { %v210_v41 = vor.u32 %v262_v38, %v207_v39  ;;  %v260_v44 = vld [vmem:[%s404_s1 + $0x4] sm:$0xf]  ;;  %v199_v45 = vld [vmem:[%s404_s1 + $0x8] sm:$0xf0]  ;;  %v198_v46 = vor.u32 %v261_v43, %v197_v42  ;;  %v173_v49 = vld [vmem:[%s406_s2] sm:$0x3] }
   0xc   :  { %132 = vmatpush.bf16.msra.mxu0 %v238_v16  ;;  %v202_v47 = vor.u32 %v260_v44, %v199_v45  ;;  %v259_v48 = vld [vmem:[%s405_s0] sm:$0xff]  ;;  %v175_v50 = vperm.slane %v173_v49, 0  ;;  %v176_v51 = vperm.slane %v173_v49, 1 }
   0xd   :  { %146 = vmatpush.bf16.msra.mxu1 %v242_v17 }
  0x10   :  { %133 = vmatpush.bf16.msra.mxu0 %v230_v22 }
  0x11   :  { %147 = vmatpush.bf16.msra.mxu1 %v234_v23 }
  0x14   :  { %134 = vmatpush.bf16.msra.mxu0 %v222_v28 }
  0x15   :  { %148 = vmatpush.bf16.msra.mxu1 %v226_v29 }
  0x18   :  { %135 = vmatpush.bf16.msra.mxu0 %v214_v34 }
  0x19   :  { %149 = vmatpush.bf16.msra.mxu1 %v218_v35 }
  0x1c   :  { %136 = vmatpush.bf16.msra.mxu0 %v206_v40 }
  0x1d   :  { %150 = vmatpush.bf16.msra.mxu1 %v210_v41 }
  0x20   :  { %137 = vmatpush.bf16.msra.mxu0 %v198_v46 }
  0x21   :  { %151 = vmatpush.bf16.msra.mxu1 %v202_v47 }
  0x23   :  { %138 = vmatmul.bf16.vlgmr.msra.gmra.mxu0 %v259_v48 }
  0x24   :  { %152 = vmatmul.bf16.vlgmr.msra.gmra.mxu1 %v259_v48 }
  0xa0   :  { %v139_v52 = vpop.f32.mrf.mxu0 }
  0xa1   :  { %v179_v53 = vadd.f32 %v175_v50, %v139_v52  ;;  %v153_v54 = vpop.f32.mrf.mxu1 }
  0xa2   :  { %v180_v55 = vadd.f32 %v176_v51, %v153_v54 }
  0xa4   :  { %v183_v56 = vpack.c.bf16 %v180_v55, %v179_v53 }
  0xa6   :  { %185 = vst [vmem:[%s407_s3] sm:$0xff] %v183_v56 }
  0xa8   :  { %v141_v57 = vpop.f32.mrf.mxu0 }
  0xa9   :  { %v181_v58 = vadd.f32 %v175_v50, %v141_v57  ;;  %v155_v59 = vpop.f32.mrf.mxu1 }
  0xaa   :  { %v182_v60 = vadd.f32 %v176_v51, %v155_v59 }
  0xac   :  { %v184_v61 = vpack.c.bf16 %v182_v60, %v181_v58 }
  0xae   :  { %186 = vst [vmem:[%s407_s3 + $0x8] sm:$0xff] %v184_v61 }

// kernel: _lambda_.24
= control target key start
LH: loop header
LB: loop body
LE: loop exit
PB: predicated region body
PF: predicated region fallthrough
CT: control target
= control target key end

     0   :  { %s1985_s15 = smov 0   ;;  %s1987_s16 = smov 0   ;;  %s2299_s0 = inlined_call_operand.vmem [shape: bf16[16,2304], index: 0, kind: input, shape index: {}]   ;;  %s2300_s1 = inlined_call_operand.vmem [shape: bf16[2304,256], index: 1, kind: input, shape index: {}]   ;;  %s2301_s2 = inlined_call_operand.vmem [shape: f32[1,256], index: 2, kind: input, shape index: {}]   ;;  %s2302_s3 = inlined_call_operand.vmem [shape: bf16[16,256], index: 3, kind: input, shape index: {}]   ;;  %s2303_s4 = inlined_call_operand.vmem [shape: bf16[16,256], index: 4, kind: output, shape index: {}]  }
   0x1   :  { %s1989_s17 = smov 0   ;;  %s1991_s18 = smov 0  }
   0x2   :  { %s1993_s19 = smov 0  }
   0x3 LB: > { %s26_s20 = sadd.s32 1, %s1953_s18  ;;  %p49_p1 = scmp.ne.s32.totalorder %s1945_s16, %s1941_s15  ;;  %s1957_s19 = sphi %s1993_s19, %s14_s19   ;;  %s1953_s18 = sphi %s1991_s18, %s2307_s18   ;;  %s1949_s17 = sphi %s1989_s17, %s2306_s17   ;;  %s1945_s16 = sphi %s1987_s16, %s2305_s16   ;;  %s1941_s15 = sphi %s1985_s15, %s2304_s15  }
   0x4   : > { %p27_p0 = scmp.ge.s32.totalorder %s26_s20, 3  ;;  %p50_p2 = scmp.eq.s32.totalorder %s1957_s19, 0 }
   0x5   : > { %s42_s22 = sadd.s32 1, %s1945_s16  ;;  %p1353_p5 = scmp.ge.s32.totalorder %s1957_s19, 3 }
   0x6   : > { %s2309_s20 = smov (%p27_p0, %s26_s20), 0  ;;  %p51_p3 = por %p50_p2, %p49_p1 }
   0x7   : > { %s38_s21 = ssub.s32 %s1953_s18, %s2309_s20  ;;  %208 = sbr.rel (%p1353_p5) target bundleno = 23 (0x17), region = 24 }
   0x8   : > { %p40_p4 = scmp.eq.s32.totalorder %s38_s21, 0 }
   0xa   : > { %s2020_s23 = scalar_select %p40_p4, %s1945_s16, %s42_s22  }
   0xc   : > { %211 = sbr.rel (!%p51_p3) target bundleno = 23 (0x17), region = 28  ;;  %s213_s24 = sand.u32 (%p51_p3), 1, %s1945_s16  }
   0xd   : > { %s1772_s25 = smul.u32 (%p51_p3), 24, %s1953_s18 }
   0xe   : > { %s1876_s26 = smul.u32 (%p51_p3), 48, %s213_s24 }
   0xf   : > { %s221_s29 = scalar_lea.vmem (%p51_p3), %s2299_s0, %s1772_s25 }
  0x10   : > { %v234_v0 = vld [vmem:[%s221_s29] sm:$0xff] (%p51_p3)  ;;  %v236_v1 = vld [vmem:[%s221_s29 + $0x8] sm:$0xff] (%p51_p3)  ;;  %v238_v2 = vld [vmem:[%s221_s29 + $0x10] sm:$0xff] (%p51_p3)  ;;  %s215_s30 = scalar_lea.vmem (%p51_p3), [#allocation3], %s1876_s26 }
  0x11   : > { %235 = vst [vmem:[%s215_s30] sm:$0xff] %v234_v0  ;;  %v240_v3 = vld [vmem:[%s221_s29 + $0x48] sm:$0xff]  ;;  %v242_v4 = vld [vmem:[%s221_s29 + $0x50] sm:$0xff]  ;;  %v244_v5 = vld [vmem:[%s221_s29 + $0x58] sm:$0xff] }
  0x12   : > { %237 = vst [vmem:[%s215_s30 + $0x8] sm:$0xff] %v236_v1 }
  0x13   : > { %239 = vst [vmem:[%s215_s30 + $0x10] sm:$0xff] %v238_v2 }
  0x14   : > { %241 = vst [vmem:[%s215_s30 + $0x18] sm:$0xff] %v240_v3 }
  0x15   : > { %243 = vst [vmem:[%s215_s30 + $0x20] sm:$0xff] %v242_v4 }
  0x16   : > { %245 = vst [vmem:[%s215_s30 + $0x28] sm:$0xff] %v244_v5 }
  0x17 PF: > { %p1355_p6 = scmp.ge.s32.totalorder %s1957_s19, 1  ;;  %p265_p7 = scmp.lt.s32.totalorder %s1957_s19, 4 }
  0x19   : > { %p266_p8 = pnand %p1355_p6, %p265_p7 }
  0x1a   : > { %s272_s5 = sand.u32 (!%p266_p8), 1, %s1941_s15   ;;  %s328_s6 = smul.u32 (!%p266_p8), 96, %s1949_s17 }
  0x1b   : > { %269 = sbr.rel (%p266_p8) target bundleno = 305 (0x131), region = 55  ;;  %p1358_p10 = scmp.ne.s32.totalorder (!%p266_p8), %s1949_s17, 0 }
  0x1c   : > { %s1877_s7 = smul.u32 (!%p266_p8), 48, %s272_s5  ;;  %p330_p9 = scmp.lt.s32.totalorder (!%p266_p8), %s328_s6, 287 }
  0x1e   : > { %s2037_s12 = scalar_lea.vmem (!%p266_p8), [#allocation3], %s1877_s7 }
  0x20   : > { %s2311_s6 = smov (!%p330_p9, %s328_s6), 287  ;;  %372 = sbr.rel (%p1358_p10) target bundleno = 42 (0x2a), region = 63 }
  0x21   : > { %s1773_s8 = sshll.u32 %s2311_s6, 3 }
  0x22   : > { %s2035_s11 = scalar_lea.vmem %s2300_s1, %s1773_s8 }
  0x25   : > { %v1959_v6 = vmov 0.0  }
  0x26   : > { %373 = vst [vmem:[#allocation2 + $0x10] sm:$0xff] %v1959_v6 }
  0x27   : > { %374 = vst [vmem:[#allocation2] sm:$0xff] %v1959_v6 }
  0x28   : > { %375 = vst [vmem:[#allocation2 + $0x18] sm:$0xff] %v1959_v6 }
  0x29   : > { %376 = vst [vmem:[#allocation2 + $0x8] sm:$0xff] %v1959_v6 }
  0x2a PF: > { %v1441_v7 = vld [vmem:[%s2035_s11 + $0x70] sm:$0xf]  ;;  %v1795_v8 = vld [vmem:[%s2035_s11 + $0x74] sm:$0xf0]  ;;  %v1433_v18 = vld [vmem:[%s2035_s11 + $0x60] sm:$0xf] }
  0x2b   : > { %v1505_v9 = vld [vmem:[%s2035_s11 + $0xf0] sm:$0xf]  ;;  %v1442_v10 = vor.u32 %v1795_v8, %v1441_v7  ;;  %v1811_v11 = vld [vmem:[%s2035_s11 + $0xf4] sm:$0xf0]  ;;  %v1793_v20 = vld [vmem:[%s2035_s11 + $0x64] sm:$0xf0] }
  0x2c   : > { %v1569_v12 = vld [vmem:[%s2035_s11 + $0x170] sm:$0xf]  ;;  %v1827_v13 = vld [vmem:[%s2035_s11 + $0x174] sm:$0xf0]  ;;  %v1506_v14 = vor.u32 %v1811_v11, %v1505_v9  ;;  %v1497_v21 = vld [vmem:[%s2035_s11 + $0xe0] sm:$0xf]  ;;  %v1434_v23 = vor.u32 %v1793_v20, %v1433_v18 }
  0x2d   : > { %v1570_v15 = vor.u32 %v1827_v13, %v1569_v12  ;;  %v1633_v16 = vld [vmem:[%s2035_s11 + $0x1f0] sm:$0xf]  ;;  %v1843_v17 = vld [vmem:[%s2035_s11 + $0x1f4] sm:$0xf0]  ;;  %993 = vmatpush.bf16.msra.mxu0 %v1442_v10  ;;  %v1809_v22 = vld [vmem:[%s2035_s11 + $0xe4] sm:$0xf0] }
  0x2e   : > { %v1634_v19 = vor.u32 %v1843_v17, %v1633_v16  ;;  %1007 = vmatpush.bf16.msra.mxu1 %v1506_v14  ;;  %v1498_v24 = vor.u32 %v1809_v22, %v1497_v21  ;;  %v1561_v25 = vld [vmem:[%s2035_s11 + $0x160] sm:$0xf]  ;;  %v1825_v26 = vld [vmem:[%s2035_s11 + $0x164] sm:$0xf0]  ;;  %v1425_v30 = vld [vmem:[%s2035_s11 + $0x50] sm:$0xf] }
  0x2f   : > { %1021 = vmatpush.bf16.msra.mxu2 %v1570_v15  ;;  %v1625_v27 = vld [vmem:[%s2035_s11 + $0x1e0] sm:$0xf]  ;;  %v1562_v28 = vor.u32 %v1825_v26, %v1561_v25  ;;  %v1841_v29 = vld [vmem:[%s2035_s11 + $0x1e4] sm:$0xf0]  ;;  %v1791_v31 = vld [vmem:[%s2035_s11 + $0x54] sm:$0xf0] }
  0x30   : > { %1035 = vmatpush.bf16.msra.mxu3 %v1634_v19  ;;  %v1626_v32 = vor.u32 %v1841_v29, %v1625_v27  ;;  %v1489_v33 = vld [vmem:[%s2035_s11 + $0xd0] sm:$0xf]  ;;  %v1807_v34 = vld [vmem:[%s2035_s11 + $0xd4] sm:$0xf0]  ;;  %v1426_v36 = vor.u32 %v1791_v31, %v1425_v30  ;;  %v1417_v42 = vld [vmem:[%s2035_s11 + $0x40] sm:$0xf] }
  0x31   : > { %v1553_v35 = vld [vmem:[%s2035_s11 + $0x150] sm:$0xf]  ;;  %994 = vmatpush.bf16.msra.mxu0 %v1434_v23  ;;  %v1823_v37 = vld [vmem:[%s2035_s11 + $0x154] sm:$0xf0]  ;;  %v1490_v40 = vor.u32 %v1807_v34, %v1489_v33  ;;  %v1789_v43 = vld [vmem:[%s2035_s11 + $0x44] sm:$0xf0] }
  0x32   : > { %v1617_v38 = vld [vmem:[%s2035_s11 + $0x1d0] sm:$0xf]  ;;  %v1839_v39 = vld [vmem:[%s2035_s11 + $0x1d4] sm:$0xf0]  ;;  %1008 = vmatpush.bf16.msra.mxu1 %v1498_v24  ;;  %v1554_v41 = vor.u32 %v1823_v37, %v1553_v35  ;;  %v1481_v44 = vld [vmem:[%s2035_s11 + $0xc0] sm:$0xf]  ;;  %v1418_v51 = vor.u32 %v1789_v43, %v1417_v42 }
  0x33   : > { %1022 = vmatpush.bf16.msra.mxu2 %v1562_v28  ;;  %v1618_v45 = vor.u32 %v1839_v39, %v1617_v38  ;;  %v1805_v46 = vld [vmem:[%s2035_s11 + $0xc4] sm:$0xf0]  ;;  %v1545_v47 = vld [vmem:[%s2035_s11 + $0x140] sm:$0xf]  ;;  %v1409_v54 = vld [vmem:[%s2035_s11 + $0x30] sm:$0xf] }
  0x34   : > { %1036 = vmatpush.bf16.msra.mxu3 %v1626_v32  ;;  %v1821_v48 = vld [vmem:[%s2035_s11 + $0x144] sm:$0xf0]  ;;  %v1609_v49 = vld [vmem:[%s2035_s11 + $0x1c0] sm:$0xf]  ;;  %v1482_v52 = vor.u32 %v1805_v46, %v1481_v44  ;;  %v1787_v55 = vld [vmem:[%s2035_s11 + $0x34] sm:$0xf0] }
  0x35   : > { %v1837_v50 = vld [vmem:[%s2035_s11 + $0x1c4] sm:$0xf0]  ;;  %995 = vmatpush.bf16.msra.mxu0 %v1426_v36  ;;  %v1546_v53 = vor.u32 %v1821_v48, %v1545_v47  ;;  %v1473_v56 = vld [vmem:[%s2035_s11 + $0xb0] sm:$0xf]  ;;  %v1803_v58 = vld [vmem:[%s2035_s11 + $0xb4] sm:$0xf0]  ;;  %v1410_v63 = vor.u32 %v1787_v55, %v1409_v54 }
  0x36   : > { %1009 = vmatpush.bf16.msra.mxu1 %v1490_v40  ;;  %v1610_v57 = vor.u32 %v1837_v50, %v1609_v49  ;;  %v1537_v59 = vld [vmem:[%s2035_s11 + $0x130] sm:$0xf]  ;;  %v1819_v60 = vld [vmem:[%s2035_s11 + $0x134] sm:$0xf0]  ;;  %v1474_v0 = vor.u32 %v1803_v58, %v1473_v56  ;;  %v1401_v2 = vld [vmem:[%s2035_s11 + $0x20] sm:$0xf] }
  0x37   : > { %1023 = vmatpush.bf16.msra.mxu2 %v1554_v41  ;;  %v1601_v61 = vld [vmem:[%s2035_s11 + $0x1b0] sm:$0xf]  ;;  %v1835_v62 = vld [vmem:[%s2035_s11 + $0x1b4] sm:$0xf0]  ;;  %v1538_v1 = vor.u32 %v1819_v60, %v1537_v59  ;;  %v1785_v3 = vld [vmem:[%s2035_s11 + $0x24] sm:$0xf0] }
  0x38   : > { %1037 = vmatpush.bf16.msra.mxu3 %v1618_v45  ;;  %v1465_v4 = vld [vmem:[%s2035_s11 + $0xa0] sm:$0xf]  ;;  %v1602_v5 = vor.u32 %v1835_v62, %v1601_v61  ;;  %v1801_v6 = vld [vmem:[%s2035_s11 + $0xa4] sm:$0xf0]  ;;  %v1402_v11 = vor.u32 %v1785_v3, %v1401_v2  ;;  %v1393_v14 = vld [vmem:[%s2035_s11 + $0x10] sm:$0xf] }
  0x39   : > { %996 = vmatpush.bf16.msra.mxu0 %v1418_v51  ;;  %v1529_v7 = vld [vmem:[%s2035_s11 + $0x120] sm:$0xf]  ;;  %v1817_v8 = vld [vmem:[%s2035_s11 + $0x124] sm:$0xf0]  ;;  %v1466_v12 = vor.u32 %v1801_v6, %v1465_v4  ;;  %v1783_v15 = vld [vmem:[%s2035_s11 + $0x14] sm:$0xf0] }
  0x3a   : > { %1010 = vmatpush.bf16.msra.mxu1 %v1482_v52  ;;  %v1593_v9 = vld [vmem:[%s2035_s11 + $0x1a0] sm:$0xf]  ;;  %v1833_v10 = vld [vmem:[%s2035_s11 + $0x1a4] sm:$0xf0]  ;;  %v1530_v13 = vor.u32 %v1817_v8, %v1529_v7  ;;  %v1457_v16 = vld [vmem:[%s2035_s11 + $0x90] sm:$0xf]  ;;  %v1394_v23 = vor.u32 %v1783_v15, %v1393_v14 }
  0x3b   : > { %1024 = vmatpush.bf16.msra.mxu2 %v1546_v53  ;;  %v1594_v17 = vor.u32 %v1833_v10, %v1593_v9  ;;  %v1799_v18 = vld [vmem:[%s2035_s11 + $0x94] sm:$0xf0]  ;;  %v1521_v19 = vld [vmem:[%s2035_s11 + $0x110] sm:$0xf]  ;;  %v1385_v24 = vld [vmem:[%s2035_s11] sm:$0xf] }
  0x3c   : > { %1038 = vmatpush.bf16.msra.mxu3 %v1610_v57  ;;  %v1815_v20 = vld [vmem:[%s2035_s11 + $0x114] sm:$0xf0]  ;;  %v1585_v21 = vld [vmem:[%s2035_s11 + $0x190] sm:$0xf]  ;;  %v1781_v25 = vld [vmem:[%s2035_s11 + $0x4] sm:$0xf0]  ;;  %v1458_v26 = vor.u32 %v1799_v18, %v1457_v16 }
  0x3d   : > { %997 = vmatpush.bf16.msra.mxu0 %v1410_v63  ;;  %v1831_v22 = vld [vmem:[%s2035_s11 + $0x194] sm:$0xf0]  ;;  %v1522_v27 = vor.u32 %v1815_v20, %v1521_v19  ;;  %v1449_v28 = vld [vmem:[%s2035_s11 + $0x80] sm:$0xf]  ;;  %v1797_v29 = vld [vmem:[%s2035_s11 + $0x84] sm:$0xf0]  ;;  %v1386_v38 = vor.u32 %v1781_v25, %v1385_v24 }
  0x3e   : > { %1011 = vmatpush.bf16.msra.mxu1 %v1474_v0  ;;  %v1513_v30 = vld [vmem:[%s2035_s11 + $0x100] sm:$0xf]  ;;  %v1586_v31 = vor.u32 %v1831_v22, %v1585_v21  ;;  %v1813_v32 = vld [vmem:[%s2035_s11 + $0x104] sm:$0xf0]  ;;  %v1697_v35 = vld [vmem:[%s2035_s11 + $0x270] sm:$0xf]  ;;  %v1450_v42 = vor.u32 %v1797_v29, %v1449_v28 }
  0x3f   : > { %1025 = vmatpush.bf16.msra.mxu2 %v1538_v1  ;;  %v1577_v33 = vld [vmem:[%s2035_s11 + $0x180] sm:$0xf]  ;;  %v1829_v34 = vld [vmem:[%s2035_s11 + $0x184] sm:$0xf0]  ;;  %v1859_v36 = vld [vmem:[%s2035_s11 + $0x274] sm:$0xf0]  ;;  %v1514_v43 = vor.u32 %v1813_v32, %v1513_v30 }
  0x40   : > { %1039 = vmatpush.bf16.msra.mxu3 %v1602_v5  ;;  %v1761_v37 = vld [vmem:[%s2035_s11 + $0x2f0] sm:$0xf]  ;;  %v1875_v39 = vld [vmem:[%s2035_s11 + $0x2f4] sm:$0xf0]  ;;  %v1794_v40 = vld [vmem:[%s2035_s11 + $0x74] sm:$0xf]  ;;  %v1578_v46 = vor.u32 %v1829_v34, %v1577_v33  ;;  %v1698_v47 = vor.u32 %v1859_v36, %v1697_v35 }
  0x41   : > { %998 = vmatpush.bf16.msra.mxu0 %v1402_v11  ;;  %v1443_v41 = vld [vmem:[%s2035_s11 + $0x78] sm:$0xf0]  ;;  %v1810_v44 = vld [vmem:[%s2035_s11 + $0xf4] sm:$0xf]  ;;  %v1689_v48 = vld [vmem:[%s2035_s11 + $0x260] sm:$0xf]  ;;  %v1762_v50 = vor.u32 %v1875_v39, %v1761_v37 }
  0x42   : > { %1012 = vmatpush.bf16.msra.mxu1 %v1466_v12  ;;  %v1507_v45 = vld [vmem:[%s2035_s11 + $0xf8] sm:$0xf0]  ;;  %v1857_v49 = vld [vmem:[%s2035_s11 + $0x264] sm:$0xf0]  ;;  %v1446_v51 = vor.u32 %v1794_v40, %v1443_v41  ;;  %v1753_v52 = vld [vmem:[%s2035_s11 + $0x2e0] sm:$0xf] }
  0x43   : > { %1026 = vmatpush.bf16.msra.mxu2 %v1530_v13  ;;  %v1873_v53 = vld [vmem:[%s2035_s11 + $0x2e4] sm:$0xf0]  ;;  %v1792_v54 = vld [vmem:[%s2035_s11 + $0x64] sm:$0xf]  ;;  %v1510_v55 = vor.u32 %v1810_v44, %v1507_v45  ;;  %v1435_v56 = vld [vmem:[%s2035_s11 + $0x68] sm:$0xf0]  ;;  %v1690_v62 = vor.u32 %v1857_v49, %v1689_v48 }
  0x44   : > { %1040 = vmatpush.bf16.msra.mxu3 %v1594_v17  ;;  %v1808_v57 = vld [vmem:[%s2035_s11 + $0xe4] sm:$0xf]  ;;  %v1499_v58 = vld [vmem:[%s2035_s11 + $0xe8] sm:$0xf0]  ;;  %v1681_v59 = vld [vmem:[%s2035_s11 + $0x250] sm:$0xf]  ;;  %v1754_v3 = vor.u32 %v1873_v53, %v1753_v52  ;;  %v1438_v4 = vor.u32 %v1792_v54, %v1435_v56 }
  0x45   : > { %999 = vmatpush.bf16.msra.mxu0 %v1394_v23  ;;  %v1361_v60 = vld [vmem:[%s2037_s12] sm:$0xf]  ;;  %v1777_v61 = vld [vmem:[%s2037_s12 + $0x14] sm:$0xf0]  ;;  %v1790_v5 = vld [vmem:[%s2035_s11 + $0x54] sm:$0xf]  ;;  %v1502_v8 = vor.u32 %v1808_v57, %v1499_v58 }
  0x46   : > { %1013 = vmatpush.bf16.msra.mxu1 %v1458_v26  ;;  %v1855_v63 = vld [vmem:[%s2035_s11 + $0x254] sm:$0xf0]  ;;  %v1745_v0 = vld [vmem:[%s2035_s11 + $0x2d0] sm:$0xf]  ;;  %v2126_v2 = vor.u32 %v1777_v61, %v1361_v60  ;;  %v1427_v6 = vld [vmem:[%s2035_s11 + $0x58] sm:$0xf0] }
  0x47   : > { %1027 = vmatpush.bf16.msra.mxu2 %v1522_v27  ;;  %v1871_v1 = vld [vmem:[%s2035_s11 + $0x2d4] sm:$0xf0]  ;;  %v1806_v7 = vld [vmem:[%s2035_s11 + $0xd4] sm:$0xf]  ;;  %v1491_v9 = vld [vmem:[%s2035_s11 + $0xd8] sm:$0xf0]  ;;  %v1682_v16 = vor.u32 %v1855_v63, %v1681_v59  ;;  %v1430_v20 = vor.u32 %v1790_v5, %v1427_v6 }
  0x48   : > { %1041 = vmatpush.bf16.msra.mxu3 %v1586_v31  ;;  %v1774_v10 = vld [vmem:[%s2037_s12 + $0x4] sm:$0xf]  ;;  %v1363_v11 = vld [vmem:[%s2037_s12 + $0x18] sm:$0xf0]  ;;  %v1369_v13 = vld [vmem:[%s2037_s12 + $0x8] sm:$0xf]  ;;  %v1746_v19 = vor.u32 %v1871_v1, %v1745_v0  ;;  %v1494_v25 = vor.u32 %v1806_v7, %v1491_v9 }
  0x49   : > { %1000 = vmatpush.bf16.msra.mxu0 %v1386_v38  ;;  %v2135_v12 = vor.u32 %v1774_v10, %v1363_v11  ;;  %v1778_v14 = vld [vmem:[%s2037_s12 + $0x1c] sm:$0xf0]  ;;  %v1775_v15 = vld [vmem:[%s2037_s12 + $0xc] sm:$0xf]  ;;  %v1371_v18 = vld [vmem:[%s2037_s12 + $0x20] sm:$0xf0] }
  0x4a   : > { %1014 = vmatpush.bf16.msra.mxu1 %v1450_v42  ;;  %v2140_v17 = vor.u32 %v1778_v14, %v1369_v13  ;;  %v1673_v21 = vld [vmem:[%s2035_s11 + $0x240] sm:$0xf]  ;;  %v1853_v22 = vld [vmem:[%s2035_s11 + $0x244] sm:$0xf0]  ;;  %v2146_v24 = vor.u32 %v1775_v15, %v1371_v18  ;;  %v1788_v27 = vld [vmem:[%s2035_s11 + $0x44] sm:$0xf] }
  0x4b   : > { %1028 = vmatpush.bf16.msra.mxu2 %v1514_v43  ;;  %v1737_v23 = vld [vmem:[%s2035_s11 + $0x2c0] sm:$0xf]  ;;  %v1869_v26 = vld [vmem:[%s2035_s11 + $0x2c4] sm:$0xf0]  ;;  %v1419_v28 = vld [vmem:[%s2035_s11 + $0x48] sm:$0xf0]  ;;  %v1674_v31 = vor.u32 %v1853_v22, %v1673_v21 }
  0x4c   : > { %1042 = vmatpush.bf16.msra.mxu3 %v1578_v46  ;;  %1001 = vmatmul.bf16.vlgmr.msra.gmra.mxu0 %v2126_v2  ;;  %v1804_v29 = vld [vmem:[%s2035_s11 + $0xc4] sm:$0xf]  ;;  %v1483_v30 = vld [vmem:[%s2035_s11 + $0xc8] sm:$0xf0]  ;;  %v1738_v32 = vor.u32 %v1869_v26, %v1737_v23  ;;  %v1422_v33 = vor.u32 %v1788_v27, %v1419_v28  ;;  %v1665_v34 = vld [vmem:[%s2035_s11 + $0x230] sm:$0xf] }
  0x4d   : > { %1049 = vmatpush.bf16.msrb.mxu0 %v1698_v47  ;;  %1015 = vmatmul.bf16.vlgmr.msra.gmra.mxu1 %v2135_v12  ;;  %v1851_v35 = vld [vmem:[%s2035_s11 + $0x234] sm:$0xf0]  ;;  %v1729_v36 = vld [vmem:[%s2035_s11 + $0x2b0] sm:$0xf]  ;;  %v1486_v37 = vor.u32 %v1804_v29, %v1483_v30  ;;  %v1786_v39 = vld [vmem:[%s2035_s11 + $0x34] sm:$0xf] }
  0x4e   : > { %1063 = vmatpush.bf16.msrb.mxu1 %v1762_v50  ;;  %1029 = vmatmul.bf16.vlgmr.msra.gmra.mxu2 %v2140_v17  ;;  %v1867_v38 = vld [vmem:[%s2035_s11 + $0x2b4] sm:$0xf0]  ;;  %v1411_v40 = vld [vmem:[%s2035_s11 + $0x38] sm:$0xf0]  ;;  %v1802_v41 = vld [vmem:[%s2035_s11 + $0xb4] sm:$0xf]  ;;  %v1666_v43 = vor.u32 %v1851_v35, %v1665_v34 }
  0x4f   : > { %1077 = vmatpush.bf16.msrb.mxu2 %v1446_v51  ;;  %1043 = vmatmul.bf16.vlgmr.msra.gmra.mxu3 %v2146_v24  ;;  %v1475_v42 = vld [vmem:[%s2035_s11 + $0xb8] sm:$0xf0]  ;;  %v1730_v44 = vor.u32 %v1867_v38, %v1729_v36  ;;  %v1414_v45 = vor.u32 %v1786_v39, %v1411_v40  ;;  %v1657_v46 = vld [vmem:[%s2035_s11 + $0x220] sm:$0xf]  ;;  %v1849_v47 = vld [vmem:[%s2035_s11 + $0x224] sm:$0xf0] }
  0x50   : > { %1091 = vmatpush.bf16.msrb.mxu3 %v1510_v55  ;;  %v1721_v48 = vld [vmem:[%s2035_s11 + $0x2a0] sm:$0xf]  ;;  %v1478_v49 = vor.u32 %v1802_v41, %v1475_v42  ;;  %v1865_v50 = vld [vmem:[%s2035_s11 + $0x2a4] sm:$0xf0]  ;;  %v1784_v51 = vld [vmem:[%s2035_s11 + $0x24] sm:$0xf]  ;;  %v1658_v55 = vor.u32 %v1849_v47, %v1657_v46 }
  0x51   : > { %1050 = vmatpush.bf16.msrb.mxu0 %v1690_v62  ;;  %v1403_v52 = vld [vmem:[%s2035_s11 + $0x28] sm:$0xf0]  ;;  %v1800_v53 = vld [vmem:[%s2035_s11 + $0xa4] sm:$0xf]  ;;  %v1722_v56 = vor.u32 %v1865_v50, %v1721_v48  ;;  %v1649_v58 = vld [vmem:[%s2035_s11 + $0x210] sm:$0xf] }
  0x52   : > { %1064 = vmatpush.bf16.msrb.mxu1 %v1754_v3  ;;  %v1467_v54 = vld [vmem:[%s2035_s11 + $0xa8] sm:$0xf0]  ;;  %v1406_v57 = vor.u32 %v1784_v51, %v1403_v52  ;;  %v1847_v59 = vld [vmem:[%s2035_s11 + $0x214] sm:$0xf0]  ;;  %v1713_v60 = vld [vmem:[%s2035_s11 + $0x290] sm:$0xf] }
  0x53   : > { %1078 = vmatpush.bf16.msrb.mxu2 %v1438_v4  ;;  %v1470_v61 = vor.u32 %v1800_v53, %v1467_v54  ;;  %v1863_v62 = vld [vmem:[%s2035_s11 + $0x294] sm:$0xf0]  ;;  %v1782_v63 = vld [vmem:[%s2035_s11 + $0x14] sm:$0xf]  ;;  %v1395_v0 = vld [vmem:[%s2035_s11 + $0x18] sm:$0xf0]  ;;  %v1650_v4 = vor.u32 %v1847_v59, %v1649_v58 }
  0x54   : > { %1092 = vmatpush.bf16.msrb.mxu3 %v1502_v8  ;;  %v1798_v1 = vld [vmem:[%s2035_s11 + $0x94] sm:$0xf]  ;;  %v1459_v3 = vld [vmem:[%s2035_s11 + $0x98] sm:$0xf0]  ;;  %v1641_v5 = vld [vmem:[%s2035_s11 + $0x200] sm:$0xf]  ;;  %v1714_v8 = vor.u32 %v1863_v62, %v1713_v60  ;;  %v1398_v9 = vor.u32 %v1782_v63, %v1395_v0 }
  0x55   : > { %1051 = vmatpush.bf16.msrb.mxu0 %v1682_v16  ;;  %v1845_v6 = vld [vmem:[%s2035_s11 + $0x204] sm:$0xf0]  ;;  %v1705_v7 = vld [vmem:[%s2035_s11 + $0x280] sm:$0xf]  ;;  %v1780_v11 = vld [vmem:[%s2035_s11 + $0x4] sm:$0xf]  ;;  %v1462_v14 = vor.u32 %v1798_v1, %v1459_v3 }
  0x56   : > { %1065 = vmatpush.bf16.msrb.mxu1 %v1746_v19  ;;  %v1861_v10 = vld [vmem:[%s2035_s11 + $0x284] sm:$0xf0]  ;;  %v1387_v13 = vld [vmem:[%s2035_s11 + $0x8] sm:$0xf0]  ;;  %v1796_v15 = vld [vmem:[%s2035_s11 + $0x84] sm:$0xf]  ;;  %v1642_v22 = vor.u32 %v1845_v6, %v1641_v5 }
  0x57   : > { %1079 = vmatpush.bf16.msrb.mxu2 %v1430_v20  ;;  %v1451_v16 = vld [vmem:[%s2035_s11 + $0x88] sm:$0xf0]  ;;  %v1826_v18 = vld [vmem:[%s2035_s11 + $0x174] sm:$0xf]  ;;  %v1571_v19 = vld [vmem:[%s2035_s11 + $0x178] sm:$0xf0]  ;;  %v1706_v27 = vor.u32 %v1861_v10, %v1705_v7  ;;  %v1390_v28 = vor.u32 %v1780_v11, %v1387_v13 }
  0x58   : > { %1093 = vmatpush.bf16.msrb.mxu3 %v1494_v25  ;;  %v1842_v20 = vld [vmem:[%s2035_s11 + $0x1f4] sm:$0xf]  ;;  %v1635_v21 = vld [vmem:[%s2035_s11 + $0x1f8] sm:$0xf0]  ;;  %v1377_v30 = vld [vmem:[%s2037_s12 + $0x10] sm:$0xf] }
  0x59   : > { %1052 = vmatpush.bf16.msrb.mxu0 %v1674_v31  ;;  %v1858_v23 = vld [vmem:[%s2035_s11 + $0x274] sm:$0xf]  ;;  %v1699_v25 = vld [vmem:[%s2035_s11 + $0x278] sm:$0xf0]  ;;  %v1779_v31 = vld [vmem:[%s2037_s12 + $0x24] sm:$0xf0]  ;;  %v1638_v36 = vor.u32 %v1842_v20, %v1635_v21 }
  0x5a   : > { %1066 = vmatpush.bf16.msrb.mxu1 %v1738_v32  ;;  %v1874_v26 = vld [vmem:[%s2035_s11 + $0x2f4] sm:$0xf]  ;;  %v1763_v29 = vld [vmem:[%s2035_s11 + $0x2f8] sm:$0xf0]  ;;  %v1454_v32 = vor.u32 %v1796_v15, %v1451_v16  ;;  %v1824_v38 = vld [vmem:[%s2035_s11 + $0x164] sm:$0xf]  ;;  %v2203_v42 = vor.u32 %v1779_v31, %v1377_v30 }
  0x5b   : > { %1080 = vmatpush.bf16.msrb.mxu2 %v1422_v33  ;;  %v1574_v33 = vor.u32 %v1826_v18, %v1571_v19  ;;  %v1776_v34 = vld [vmem:[%s2037_s12 + $0x14] sm:$0xf]  ;;  %v1379_v35 = vld [vmem:[%s2037_s12 + $0x28] sm:$0xf0]  ;;  %v1766_v41 = vor.u32 %v1874_v26, %v1763_v29  ;;  %p1767_p11 = scmp.ne.s32.totalorder %s1949_s17, 2 }
  0x5c   : > { %1094 = vmatpush.bf16.msrb.mxu3 %v1486_v37  ;;  %v1702_v37 = vor.u32 %v1858_v23, %v1699_v25  ;;  %v1563_v39 = vld [vmem:[%s2035_s11 + $0x168] sm:$0xf0]  ;;  %v1840_v40 = vld [vmem:[%s2035_s11 + $0x1e4] sm:$0xf]  ;;  %v2208_v46 = vor.u32 %v1776_v34, %v1379_v35  ;;  %v1822_v52 = vld [vmem:[%s2035_s11 + $0x154] sm:$0xf] }
  0x5d   : > { %1053 = vmatpush.bf16.msrb.mxu0 %v1666_v43  ;;  %v1627_v43 = vld [vmem:[%s2035_s11 + $0x1e8] sm:$0xf0]  ;;  %v1872_v47 = vld [vmem:[%s2035_s11 + $0x2e4] sm:$0xf]  ;;  %v1555_v53 = vld [vmem:[%s2035_s11 + $0x158] sm:$0xf0] }
  0x5e   : > { %1067 = vmatpush.bf16.msrb.mxu1 %v1730_v44  ;;  %v1856_v44 = vld [vmem:[%s2035_s11 + $0x264] sm:$0xf]  ;;  %v1755_v48 = vld [vmem:[%s2035_s11 + $0x2e8] sm:$0xf0]  ;;  %v1630_v50 = vor.u32 %v1840_v40, %v1627_v43  ;;  %v1838_v54 = vld [vmem:[%s2035_s11 + $0x1d4] sm:$0xf] }
  0x5f   : > { %1081 = vmatpush.bf16.msrb.mxu2 %v1414_v45  ;;  %v1691_v45 = vld [vmem:[%s2035_s11 + $0x268] sm:$0xf0]  ;;  %v1683_v58 = vld [vmem:[%s2035_s11 + $0x258] sm:$0xf0]  ;;  %v1870_v59 = vld [vmem:[%s2035_s11 + $0x2d4] sm:$0xf] }
  0x60   : > { %1095 = vmatpush.bf16.msrb.mxu3 %v1478_v49  ;;  %v1566_v49 = vor.u32 %v1824_v38, %v1563_v39  ;;  %v1694_v51 = vor.u32 %v1856_v44, %v1691_v45  ;;  %v1747_v60 = vld [vmem:[%s2035_s11 + $0x2d8] sm:$0xf0]  ;;  %v1820_v0 = vld [vmem:[%s2035_s11 + $0x144] sm:$0xf]  ;;  %v1547_v1 = vld [vmem:[%s2035_s11 + $0x148] sm:$0xf0] }
  0x61   : > { %1054 = vmatpush.bf16.msrb.mxu0 %v1658_v55  ;;  %v1758_v55 = vor.u32 %v1872_v47, %v1755_v48  ;;  %v1836_v3 = vld [vmem:[%s2035_s11 + $0x1c4] sm:$0xf]  ;;  %v1675_v6 = vld [vmem:[%s2035_s11 + $0x248] sm:$0xf0]  ;;  %v1818_v11 = vld [vmem:[%s2035_s11 + $0x134] sm:$0xf] }
  0x62   : > { %1068 = vmatpush.bf16.msrb.mxu1 %v1722_v56  ;;  %v1619_v56 = vld [vmem:[%s2035_s11 + $0x1d8] sm:$0xf0]  ;;  %v1852_v5 = vld [vmem:[%s2035_s11 + $0x244] sm:$0xf]  ;;  %v1739_v7 = vld [vmem:[%s2035_s11 + $0x2c8] sm:$0xf0] }
  0x63   : > { %1082 = vmatpush.bf16.msrb.mxu2 %v1406_v57  ;;  %v1854_v57 = vld [vmem:[%s2035_s11 + $0x254] sm:$0xf]  ;;  %v1622_v62 = vor.u32 %v1838_v54, %v1619_v56  ;;  %v1678_v10 = vor.u32 %v1852_v5, %v1675_v6  ;;  %v1539_v13 = vld [vmem:[%s2035_s11 + $0x138] sm:$0xf0]  ;;  %v1816_v26 = vld [vmem:[%s2035_s11 + $0x124] sm:$0xf] }
  0x64   : > { %1096 = vmatpush.bf16.msrb.mxu3 %v1470_v61  ;;  %v1558_v61 = vor.u32 %v1822_v52, %v1555_v53  ;;  %v1686_v63 = vor.u32 %v1854_v57, %v1683_v58  ;;  %v1603_v16 = vld [vmem:[%s2035_s11 + $0x1b8] sm:$0xf0]  ;;  %v1850_v18 = vld [vmem:[%s2035_s11 + $0x234] sm:$0xf]  ;;  %v1595_v30 = vld [vmem:[%s2035_s11 + $0x1a8] sm:$0xf0] }
  0x65   : > { %1055 = vmatpush.bf16.msrb.mxu0 %v1650_v4  ;;  %v1611_v4 = vld [vmem:[%s2035_s11 + $0x1c8] sm:$0xf0]  ;;  %v1667_v19 = vld [vmem:[%s2035_s11 + $0x238] sm:$0xf0]  ;;  %v1866_v20 = vld [vmem:[%s2035_s11 + $0x2b4] sm:$0xf] }
  0x66   : > { %1069 = vmatpush.bf16.msrb.mxu1 %v1714_v8  ;;  %v1550_v8 = vor.u32 %v1820_v0, %v1547_v1  ;;  %v1731_v21 = vld [vmem:[%s2035_s11 + $0x2b8] sm:$0xf0]  ;;  %v1670_v25 = vor.u32 %v1850_v18, %v1667_v19  ;;  %v1848_v31 = vld [vmem:[%s2035_s11 + $0x224] sm:$0xf]  ;;  %v1723_v34 = vld [vmem:[%s2035_s11 + $0x2a8] sm:$0xf0] }
  0x67   : > { %1083 = vmatpush.bf16.msrb.mxu2 %v1398_v9  ;;  %v1614_v9 = vor.u32 %v1836_v3, %v1611_v4  ;;  %v1734_v29 = vor.u32 %v1866_v20, %v1731_v21  ;;  %v1814_v38 = vld [vmem:[%s2035_s11 + $0x114] sm:$0xf]  ;;  %v1523_v39 = vld [vmem:[%s2035_s11 + $0x118] sm:$0xf0]  ;;  %v1812_v52 = vld [vmem:[%s2035_s11 + $0x104] sm:$0xf] }
  0x68   : > { %1097 = vmatpush.bf16.msrb.mxu3 %v1462_v14  ;;  %v1834_v14 = vld [vmem:[%s2035_s11 + $0x1b4] sm:$0xf]  ;;  %v1587_v43 = vld [vmem:[%s2035_s11 + $0x198] sm:$0xf0]  ;;  %v1515_v53 = vld [vmem:[%s2035_s11 + $0x108] sm:$0xf0] }
  0x69   : > { %1056 = vmatpush.bf16.msrb.mxu0 %v1642_v22  ;;  %v1542_v22 = vor.u32 %v1818_v11, %v1539_v13  ;;  %v1606_v23 = vor.u32 %v1834_v14, %v1603_v16  ;;  %v1830_v40 = vld [vmem:[%s2035_s11 + $0x194] sm:$0xf]  ;;  %v1651_v45 = vld [vmem:[%s2035_s11 + $0x218] sm:$0xf0]  ;;  %v1828_v54 = vld [vmem:[%s2035_s11 + $0x184] sm:$0xf] }
  0x6a   : > { %1070 = vmatpush.bf16.msrb.mxu1 %v1706_v27  ;;  %v1531_v27 = vld [vmem:[%s2035_s11 + $0x128] sm:$0xf0]  ;;  %v1846_v44 = vld [vmem:[%s2035_s11 + $0x214] sm:$0xf]  ;;  %v1715_v48 = vld [vmem:[%s2035_s11 + $0x298] sm:$0xf0] }
  0x6b   : > { %1084 = vmatpush.bf16.msrb.mxu2 %v1390_v28  ;;  %v1832_v28 = vld [vmem:[%s2035_s11 + $0x1a4] sm:$0xf]  ;;  %v1534_v35 = vor.u32 %v1816_v26, %v1531_v27  ;;  %v1862_v47 = vld [vmem:[%s2035_s11 + $0x294] sm:$0xf]  ;;  %v1579_v56 = vld [vmem:[%s2035_s11 + $0x188] sm:$0xf0] }
  0x6c   : > { %1098 = vmatpush.bf16.msrb.mxu3 %v1454_v32  ;;  %1057 = vmatmul.bf16.vlgmr.msrb.gmra.mxu0 %v2203_v42  ;;  %v1659_v32 = vld [vmem:[%s2035_s11 + $0x228] sm:$0xf0]  ;;  %v1844_v57 = vld [vmem:[%s2035_s11 + $0x204] sm:$0xf]  ;;  %v377_v14 = vld [vmem:[#allocation2 + $0x10] sm:$0xff] }
  0x6d   : > { %1105 = vmatpush.bf16.msra.mxu0 %v1574_v33  ;;  %1071 = vmatmul.bf16.vlgmr.msrb.gmra.mxu1 %v2208_v46  ;;  %v1864_v33 = vld [vmem:[%s2035_s11 + $0x2a4] sm:$0xf]  ;;  %v1643_v58 = vld [vmem:[%s2035_s11 + $0x208] sm:$0xf0]  ;;  %v379_v21 = vld [vmem:[#allocation2 + $0x18] sm:$0xff] }
  0x6e   : > { %1119 = vmatpush.bf16.msra.mxu1 %v1638_v36  ;;  %1085 = vmatmul.bf16.vlgmr.msrb.gmra.mxu2 %v2126_v2  ;;  %v1750_v2 = vor.u32 %v1870_v59, %v1747_v60  ;;  %v1598_v36 = vor.u32 %v1832_v28, %v1595_v30  ;;  %v1860_v59 = vld [vmem:[%s2035_s11 + $0x284] sm:$0xf]  ;;  %v1707_v60 = vld [vmem:[%s2035_s11 + $0x288] sm:$0xf0] }
  0x6f   : > { %1133 = vmatpush.bf16.msra.mxu2 %v1702_v37  ;;  %1099 = vmatmul.bf16.vlgmr.msrb.gmra.mxu3 %v2135_v12  ;;  %v1868_v12 = vld [vmem:[%s2035_s11 + $0x2c4] sm:$0xf]  ;;  %v1662_v37 = vor.u32 %v1848_v31, %v1659_v32  ;;  %v1710_v0 = vor.u32 %v1860_v59, %v1707_v60 }
  0x70   : > { %1147 = vmatpush.bf16.msra.mxu3 %v1766_v41  ;;  %v1742_v15 = vor.u32 %v1868_v12, %v1739_v7  ;;  %v1726_v41 = vor.u32 %v1864_v33, %v1723_v34 }
  0x71   : > { %1106 = vmatpush.bf16.msra.mxu0 %v1566_v49  ;;  %v1526_v49 = vor.u32 %v1814_v38, %v1523_v39  ;;  %v378_v39 = vld [vmem:[#allocation2] sm:$0xff] }
  0x72   : > { %1120 = vmatpush.bf16.msra.mxu1 %v1630_v50  ;;  %v1590_v50 = vor.u32 %v1830_v40, %v1587_v43 }
  0x73   : > { %1134 = vmatpush.bf16.msra.mxu2 %v1694_v51  ;;  %v1654_v51 = vor.u32 %v1846_v44, %v1651_v45 }
  0x74   : > { %1148 = vmatpush.bf16.msra.mxu3 %v1758_v55  ;;  %v1718_v55 = vor.u32 %v1862_v47, %v1715_v48 }
  0x75   : > { %1107 = vmatpush.bf16.msra.mxu0 %v1558_v61  ;;  %v1518_v61 = vor.u32 %v1812_v52, %v1515_v53 }
  0x76   : > { %1121 = vmatpush.bf16.msra.mxu1 %v1622_v62  ;;  %v1582_v62 = vor.u32 %v1828_v54, %v1579_v56 }
  0x77   : > { %1135 = vmatpush.bf16.msra.mxu2 %v1686_v63  ;;  %v1646_v63 = vor.u32 %v1844_v57, %v1643_v58 }
  0x78   : > { %1149 = vmatpush.bf16.msra.mxu3 %v1750_v2 }
  0x79   : > { %1108 = vmatpush.bf16.msra.mxu0 %v1550_v8 }
  0x7a   : > { %1122 = vmatpush.bf16.msra.mxu1 %v1614_v9 }
  0x7b   : > { %1136 = vmatpush.bf16.msra.mxu2 %v1678_v10 }
  0x7c   : > { %1150 = vmatpush.bf16.msra.mxu3 %v1742_v15 }
  0x7d   : > { %1109 = vmatpush.bf16.msra.mxu0 %v1542_v22 }
  0x7e   : > { %1123 = vmatpush.bf16.msra.mxu1 %v1606_v23 }
  0x7f   : > { %1137 = vmatpush.bf16.msra.mxu2 %v1670_v25 }
  0x80   : > { %1151 = vmatpush.bf16.msra.mxu3 %v1734_v29 }
  0x81   : > { %1110 = vmatpush.bf16.msra.mxu0 %v1534_v35 }
  0x82   : > { %1124 = vmatpush.bf16.msra.mxu1 %v1598_v36 }
  0x83   : > { %1138 = vmatpush.bf16.msra.mxu2 %v1662_v37 }
  0x84   : > { %1152 = vmatpush.bf16.msra.mxu3 %v1726_v41 }
  0x85   : > { %1111 = vmatpush.bf16.msra.mxu0 %v1526_v49  ;;  %v380_v49 = vld [vmem:[#allocation2 + $0x8] sm:$0xff] }
  0x86   : > { %1125 = vmatpush.bf16.msra.mxu1 %v1590_v50 }
  0x87   : > { %1139 = vmatpush.bf16.msra.mxu2 %v1654_v51 }
  0x88   : > { %1153 = vmatpush.bf16.msra.mxu3 %v1718_v55 }
  0x89   : > { %1112 = vmatpush.bf16.msra.mxu0 %v1518_v61 }
  0x8a   : > { %1126 = vmatpush.bf16.msra.mxu1 %v1582_v62 }
  0x8b   : > { %1140 = vmatpush.bf16.msra.mxu2 %v1646_v63 }
  0x8c   : > { %1154 = vmatpush.bf16.msra.mxu3 %v1710_v0  ;;  %1113 = vmatmul.bf16.vlgmr.msra.gmra.mxu0 %v2140_v17 }
  0x8d   : > { %1127 = vmatmul.bf16.vlgmr.msra.gmra.mxu1 %v2146_v24 }
  0x8e   : > { %1141 = vmatmul.bf16.vlgmr.msra.gmra.mxu2 %v2203_v42 }
  0x8f   : > { %1155 = vmatmul.bf16.vlgmr.msra.gmra.mxu3 %v2208_v46 }
  0xc9   : > { %v1002_v1 = vpop.f32.mrf.mxu0 }
  0xca   : > { %v1016_v3 = vpop.f32.mrf.mxu1 }
  0xcb   : > { %v1017_v2 = vadd.f32 %v1016_v3, %v1002_v1 }
  0xd1   : > { %v1004_v4 = vpop.f32.mrf.mxu0  ;;  %v1030_v5 = vpop.f32.mrf.mxu2 }
  0xd2   : > { %v1018_v6 = vpop.f32.mrf.mxu1  ;;  %v1031_v12 = vadd.f32 %v1030_v5, %v1017_v2  ;;  %v1044_v7 = vpop.f32.mrf.mxu3 }
  0xd3   : > { %v1019_v9 = vadd.f32 %v1018_v6, %v1004_v4 }
  0xd4   : > { %v1045_v8 = vadd.f32 %v1044_v7, %v1031_v12 }
  0xd9   : > { %v1032_v11 = vpop.f32.mrf.mxu2 }
  0xda   : > { %v1033_v24 = vadd.f32 %v1032_v11, %v1019_v9  ;;  %v1046_v42 = vpop.f32.mrf.mxu3 }
  0xdc   : > { %v1047_v46 = vadd.f32 %v1046_v42, %v1033_v24 }
  0xe9   : > { %v1058_v10 = vpop.f32.mrf.mxu0 }
  0xea   : > { %v1059_v13 = vadd.f32 %v1058_v10, %v1045_v8  ;;  %v1072_v17 = vpop.f32.mrf.mxu1 }
  0xec   : > { %v1073_v15 = vadd.f32 %v1072_v17, %v1059_v13 }
  0xee   : > { %v1161_v16 = vadd.f32 %v1073_v15, %v377_v14 }
  0xf0   : > { %1165 = vst [vmem:[#allocation2 + $0x10] sm:$0xff] %v1161_v16 }
  0xf1   : > { %v1060_v18 = vpop.f32.mrf.mxu0  ;;  %v1086_v25 = vpop.f32.mrf.mxu2 }
  0xf2   : > { %v1061_v19 = vadd.f32 %v1060_v18, %v1047_v46  ;;  %v1074_v20 = vpop.f32.mrf.mxu1  ;;  %v1100_v26 = vpop.f32.mrf.mxu3 }
  0xf3   : > { %v1101_v28 = vadd.f32 %v1100_v26, %v1086_v25 }
  0xf4   : > { %v1075_v22 = vadd.f32 %v1074_v20, %v1061_v19 }
  0xf6   : > { %v1163_v23 = vadd.f32 %v1075_v22, %v379_v21 }
  0xf8   : > { %1167 = vst [vmem:[#allocation2 + $0x18] sm:$0xff] %v1163_v23 }
  0xf9   : > { %v1088_v27 = vpop.f32.mrf.mxu2 }
  0xfa   : > { %v1102_v29 = vpop.f32.mrf.mxu3 }
  0xfb   : > { %v1103_v35 = vadd.f32 %v1102_v29, %v1088_v27 }
 0x109   : > { %v1114_v30 = vpop.f32.mrf.mxu0 }
 0x10a   : > { %v1115_v31 = vadd.f32 %v1114_v30, %v1101_v28  ;;  %v1128_v32 = vpop.f32.mrf.mxu1 }
 0x10c   : > { %v1129_v33 = vadd.f32 %v1128_v32, %v1115_v31 }
 0x111   : > { %v1142_v34 = vpop.f32.mrf.mxu2  ;;  %v1116_v38 = vpop.f32.mrf.mxu0 }
 0x112   : > { %v1143_v36 = vadd.f32 %v1142_v34, %v1129_v33  ;;  %v1156_v37 = vpop.f32.mrf.mxu3  ;;  %v1117_v41 = vadd.f32 %v1116_v38, %v1103_v35  ;;  %v1130_v44 = vpop.f32.mrf.mxu1 }
 0x114   : > { %v1157_v40 = vadd.f32 %v1156_v37, %v1143_v36  ;;  %v1131_v45 = vadd.f32 %v1130_v44, %v1117_v41 }
 0x116   : > { %v1162_v43 = vadd.f32 %v1157_v40, %v378_v39 }
 0x118   : > { %1166 = vst [vmem:[#allocation2] sm:$0xff] %v1162_v43 }
 0x119   : > { %v1144_v47 = vpop.f32.mrf.mxu2 }
 0x11a   : > { %v1145_v48 = vadd.f32 %v1144_v47, %v1131_v45  ;;  %v1158_v50 = vpop.f32.mrf.mxu3 }
 0x11c   : > { %v1159_v51 = vadd.f32 %v1158_v50, %v1145_v48  ;;  %1172 = sbr.rel (%p1767_p11) target bundleno = 305 (0x131), region = 67 }
 0x11e   : > { %v1164_v52 = vadd.f32 %v1159_v51, %v380_v49 }
 0x120   : > { %1168 = vst [vmem:[#allocation2 + $0x8] sm:$0xff] %v1164_v52 }
 0x121   : > { %v1173_v53 = vld [vmem:[#allocation2 + $0x10] sm:$0xff]  ;;  %v1174_v54 = vld [vmem:[#allocation2] sm:$0xff]  ;;  %v1175_v59 = vld [vmem:[#allocation2 + $0x18] sm:$0xff] }
 0x122   : > { %v1177_v55 = vld [vmem:[%s2301_s2] sm:$0x3]  ;;  %v1188_v63 = vld [vmem:[%s2302_s3 + $0x8] sm:$0xff] }
 0x123   : > { %v1179_v56 = vperm.slane %v1177_v55, 0  ;;  %v1180_v57 = vperm.slane %v1177_v55, 1  ;;  %v1187_v58 = vld [vmem:[%s2302_s3] sm:$0xff]  ;;  %v1191_v4 = vunpack.c.l.bf16 %v1188_v63  ;;  %v1192_v5 = vunpack.c.h.bf16 %v1188_v63 }
 0x124   : > { %v1189_v61 = vunpack.c.l.bf16 %v1187_v58  ;;  %v1190_v62 = vunpack.c.h.bf16 %v1187_v58 }
 0x125   : > { %v1183_v0 = vadd.f32 %v1179_v56, %v1173_v53  ;;  %v1184_v1 = vadd.f32 %v1180_v57, %v1174_v54  ;;  %v1185_v3 = vadd.f32 %v1179_v56, %v1175_v59 }
 0x127   : > { %v1176_v60 = vld [vmem:[#allocation2 + $0x8] sm:$0xff]  ;;  %v1193_v6 = vadd.f32 %v1189_v61, %v1183_v0  ;;  %v1194_v12 = vadd.f32 %v1190_v62, %v1184_v1  ;;  %v1195_v7 = vadd.f32 %v1191_v4, %v1185_v3 }
 0x128   : > { %v1186_v2 = vadd.f32 %v1180_v57, %v1176_v60 }
 0x129   : > { %v1197_v9 = vmax.f32 %v1193_v6, 0.0  ;;  %v1198_v10 = vmax.f32 %v1194_v12, 0.0  ;;  %v1199_v11 = vmax.f32 %v1195_v7, 0.0 }
 0x12a   : > { %v1196_v8 = vadd.f32 %v1192_v5, %v1186_v2 }
 0x12b   : > { %v1201_v17 = vpack.c.bf16 %v1198_v10, %v1197_v9 }
 0x12c   : > { %v1200_v13 = vmax.f32 %v1196_v8, 0.0 }
 0x12d   : > { %1203 = vst [vmem:[%s2303_s4] sm:$0xff] %v1201_v17 }
 0x12e   : > { %v1202_v14 = vpack.c.bf16 %v1200_v13, %v1199_v11 }
 0x130   : > { %1204 = vst [vmem:[%s2303_s4 + $0x8] sm:$0xff] %v1202_v14 }
 0x131 PF: > { %s14_s19 = sadd.s32 1, %s1957_s19   ;;  %s2304_s15 = smov %s1945_s16 }
 0x132   : > { %p11_p12 = scmp.ge.s32.totalorder %s14_s19, 5   ;;  %s2305_s16 = smov %s2020_s23 }
 0x133   : > { %s2306_s17 = smov %s1953_s18  ;;  %s2307_s18 = smov %s2309_s20 }
 0x134   :  { %13 = sbr.rel (!%p11_p12) target bundleno = 3 (0x3), region = 111 }

// kernel: _lambda_.25
= control target key start
LH: loop header
LB: loop body
LE: loop exit
PB: predicated region body
PF: predicated region fallthrough
CT: control target
= control target key end

     0   :  { %s3009_s0 = inlined_call_operand.vmem [shape: bf16[16,2304], index: 0, kind: input, shape index: {}]   ;;  %s3010_s1 = inlined_call_operand.vmem [shape: bf16[2304,512], index: 1, kind: input, shape index: {}]   ;;  %s3011_s2 = inlined_call_operand.vmem [shape: f32[1,512], index: 2, kind: input, shape index: {}]   ;;  %s3012_s3 = inlined_call_operand.vmem [shape: bf16[16,512], index: 3, kind: output, shape index: {}]  }
   0x1   :  { %3014 = sst [smem:[#allocation7_spill]] %s3009_s0 }
   0x2   :  { %3015 = sst [smem:[#allocation8_spill]] %s3010_s1 }
   0x3   :  { %s2403_s12 = smov 0   ;;  %s2405_s13 = smov 0  }
   0x4   :  { %s2407_s14 = smov 0   ;;  %s2409_s15 = smov 0  }
   0x5   :  { %s2411_s16 = smov 0   ;;  %s2413_s17 = smov 0  }
   0x6   :  { %s2415_s18 = smov 0   ;;  %s2417_s19 = smov 0  }
   0x7   :  { %s2419_s20 = smov 0   ;;  %s2421_s21 = smov 0  }
   0x8   :  { %s2423_s22 = smov 0  }
   0x9 LB: > { %s1670_s23 = sadd.s32 4294967295, %s2380_s22   ;;  %s25_s24 = sadd.s32 1, %s2372_s20  ;;  %s2380_s22 = sphi %s2423_s22, %s13_s22   ;;  %s2376_s21 = sphi %s2421_s21, %s3032_s21   ;;  %s2372_s20 = sphi %s2419_s20, %s3031_s20   ;;  %s2368_s19 = sphi %s2417_s19, %s3030_s19   ;;  %s2364_s18 = sphi %s2415_s18, %s3029_s18   ;;  %s2360_s17 = sphi %s2413_s17, %s3028_s17   ;;  %s2356_s16 = sphi %s2411_s16, %s3027_s16   ;;  %s2352_s15 = sphi %s2409_s15, %s3026_s15   ;;  %s2348_s14 = sphi %s2407_s14, %s3025_s14   ;;  %s2344_s13 = sphi %s2405_s13, %s3024_s13   ;;  %s2340_s12 = sphi %s2403_s12, %s3023_s12  }
   0xa   : > { %p26_p0 = scmp.ge.s32.totalorder %s25_s24, 3  ;;  %s28_s25 = sadd.s32 1, %s2376_s21 }
   0xb   : > { %s41_s26 = sadd.s32 1, %s2360_s17  ;;  %p48_p1 = scmp.ne.s32.totalorder %s2360_s17, %s2356_s16 }
   0xc   : > { %s3034_s24 = smov (%p26_p0, %s25_s24), 0  ;;  %s3036_s25 = smov (!%p26_p0, %s28_s25), %s2376_s21 }
   0xd   : > { %s37_s27 = ssub.s32 %s2372_s20, %s3034_s24  ;;  %p49_p2 = scmp.eq.s32.totalorder %s2380_s22, 0 }
   0xe   : > { %p30_p3 = scmp.ge.s32.totalorder %s3036_s25, 2  ;;  %p39_p4 = scmp.eq.s32.totalorder %s37_s27, 0 }
   0xf   : > { %p2470_p5 = por %p49_p2, %p48_p1  ;;  %s69_s29 = sadd.s32 1, %s2352_s15 }
  0x10   : > { %s3038_s25 = smov (%p30_p3, %s3036_s25), 0  ;;  %p76_p6 = scmp.ne.s32.totalorder %s2352_s15, %s2348_s14 }
  0x11   : > { %3017 = sst [smem:[#allocation6_spill]] %s3038_s25  ;;  %s65_s4 = ssub.s32 %s2376_s21, %s3038_s25 }
  0x12   : > { %s2478_s30 = scalar_select %p39_p4, %s2360_s17, %s41_s26  }
  0x13   : > { %s66_s5 = sor.u32 %s65_s4, %s37_s27  ;;  %p121_p7 = scmp.eq.s32.totalorder %s65_s4, 0 }
  0x14   : > { %p67_p8 = scmp.eq.s32.totalorder %s66_s5, 0  ;;  %p2484_p9 = por %p76_p6, %p49_p2 }
  0x15   : > { %s123_s7 = sadd.s32 1, %s2344_s13  ;;  %p133_p10 = scmp.ne.s32.totalorder %s2344_s13, %s2340_s12 }
  0x16   : > { %s2492_s8 = scalar_select %p67_p8, %s2352_s15, %s69_s29  }
  0x17   : > { %s2495_s9 = scalar_select %p121_p7, %s2344_s13, %s123_s7  }
  0x18   : > { %p134_p11 = scmp.eq.s32.totalorder %s1670_s23, 5  ;;  %p1673_p13 = scmp.ge.s32.totalorder %s2380_s22, 6 }
  0x1a   : > { %p2497_p12 = por %p134_p11, %p133_p10  ;;  %156 = sbr.rel (%p1673_p13) target bundleno = 152 (0x98), region = 16 }
  0x1f   : > { %159 = sbr.rel (!%p2470_p5) target bundleno = 46 (0x2e), region = 20  ;;  %s161_s11 = sand.u32 (%p2470_p5), 1, %s2360_s17  }
  0x20   : > { %s2096_s26 = smul.u32 (%p2470_p5), 24, %s2372_s20  ;;  %s3020_s0 = sld [smem:[#allocation7_spill]] (%p2470_p5) }
  0x21   : > { %s2201_s27 = smul.u32 (%p2470_p5), 48, %s161_s11 }
  0x23   : > { %s163_s23 = scalar_lea.vmem (%p2470_p5), [#allocation3], %s2201_s27 }
  0x26   : > { %s169_s5 = scalar_lea.vmem %s3020_s0, %s2096_s26 }
  0x27   : > { %v182_v0 = vld [vmem:[%s169_s5] sm:$0xff]  ;;  %v184_v1 = vld [vmem:[%s169_s5 + $0x8] sm:$0xff]  ;;  %v186_v2 = vld [vmem:[%s169_s5 + $0x10] sm:$0xff] }
  0x28   : > { %183 = vst [vmem:[%s163_s23] sm:$0xff] %v182_v0  ;;  %v188_v3 = vld [vmem:[%s169_s5 + $0x48] sm:$0xff]  ;;  %v190_v4 = vld [vmem:[%s169_s5 + $0x50] sm:$0xff]  ;;  %v192_v5 = vld [vmem:[%s169_s5 + $0x58] sm:$0xff] }
  0x29   : > { %185 = vst [vmem:[%s163_s23 + $0x8] sm:$0xff] %v184_v1 }
  0x2a   : > { %187 = vst [vmem:[%s163_s23 + $0x10] sm:$0xff] %v186_v2 }
  0x2b   : > { %189 = vst [vmem:[%s163_s23 + $0x18] sm:$0xff] %v188_v3 }
  0x2c   : > { %191 = vst [vmem:[%s163_s23 + $0x20] sm:$0xff] %v190_v4 }
  0x2d   : > { %193 = vst [vmem:[%s163_s23 + $0x28] sm:$0xff] %v192_v5 }
  0x2e PF: > { %199 = sbr.rel (!%p2484_p9) target bundleno = 152 (0x98), region = 43  ;;  %s201_s28 = sand.u32 (%p2484_p9), 1, %s2352_s15  }
  0x2f   : > { %s2202_s7 = smul.u32 (%p2484_p9), 768, %s201_s28  ;;  %s1675_s11 = sshll.u32 (%p2484_p9), %s2376_s21, 1 }
  0x30   : > { %s2097_s26 = smul.u32 (%p2484_p9), 384, %s2372_s20  ;;  %s3021_s1 = sld [smem:[#allocation8_spill]] (%p2484_p9) }
  0x31   : > { %s2522_s6 = scalar_lea.vmem (%p2484_p9), [#allocation4], %s2202_s7 }
  0x32   : > { %s207_s27 = sadd.s32 (%p2484_p9), %s2097_s26, %s1675_s11 }
  0x33   : > { %s1677_s29 = sshll.u32 %s207_s27, 2 }
  0x36   : > { %s2517_s5 = scalar_lea.vmem %s3021_s1, %s1677_s29 }
  0x37   : > { %v428_v6 = vld [vmem:[%s2517_s5] sm:$0xff]  ;;  %v430_v7 = vld [vmem:[%s2517_s5 + $0x10] sm:$0xff] }
  0x38   : > { %v432_v8 = vld [vmem:[%s2517_s5 + $0x20] sm:$0xff]  ;;  %429 = vst [vmem:[%s2522_s6] sm:$0xff] %v428_v6  ;;  %v434_v9 = vld [vmem:[%s2517_s5 + $0x30] sm:$0xff] }
  0x39   : > { %431 = vst [vmem:[%s2522_s6 + $0x8] sm:$0xff] %v430_v7  ;;  %v436_v10 = vld [vmem:[%s2517_s5 + $0x40] sm:$0xff]  ;;  %v438_v11 = vld [vmem:[%s2517_s5 + $0x50] sm:$0xff] }
  0x3a   : > { %433 = vst [vmem:[%s2522_s6 + $0x10] sm:$0xff] %v432_v8  ;;  %v440_v12 = vld [vmem:[%s2517_s5 + $0x60] sm:$0xff]  ;;  %v442_v13 = vld [vmem:[%s2517_s5 + $0x70] sm:$0xff] }
  0x3b   : > { %435 = vst [vmem:[%s2522_s6 + $0x18] sm:$0xff] %v434_v9  ;;  %v444_v14 = vld [vmem:[%s2517_s5 + $0x80] sm:$0xff]  ;;  %v446_v15 = vld [vmem:[%s2517_s5 + $0x90] sm:$0xff] }
  0x3c   : > { %437 = vst [vmem:[%s2522_s6 + $0x20] sm:$0xff] %v436_v10  ;;  %v448_v16 = vld [vmem:[%s2517_s5 + $0xa0] sm:$0xff]  ;;  %v450_v17 = vld [vmem:[%s2517_s5 + $0xb0] sm:$0xff] }
  0x3d   : > { %439 = vst [vmem:[%s2522_s6 + $0x28] sm:$0xff] %v438_v11  ;;  %v452_v18 = vld [vmem:[%s2517_s5 + $0xc0] sm:$0xff]  ;;  %v454_v19 = vld [vmem:[%s2517_s5 + $0xd0] sm:$0xff] }
  0x3e   : > { %441 = vst [vmem:[%s2522_s6 + $0x30] sm:$0xff] %v440_v12  ;;  %v456_v20 = vld [vmem:[%s2517_s5 + $0xe0] sm:$0xff]  ;;  %v458_v21 = vld [vmem:[%s2517_s5 + $0xf0] sm:$0xff] }
  0x3f   : > { %443 = vst [vmem:[%s2522_s6 + $0x38] sm:$0xff] %v442_v13  ;;  %v460_v22 = vld [vmem:[%s2517_s5 + $0x100] sm:$0xff]  ;;  %v462_v23 = vld [vmem:[%s2517_s5 + $0x110] sm:$0xff] }
  0x40   : > { %445 = vst [vmem:[%s2522_s6 + $0x40] sm:$0xff] %v444_v14  ;;  %v464_v24 = vld [vmem:[%s2517_s5 + $0x120] sm:$0xff]  ;;  %v466_v25 = vld [vmem:[%s2517_s5 + $0x130] sm:$0xff] }
  0x41   : > { %447 = vst [vmem:[%s2522_s6 + $0x48] sm:$0xff] %v446_v15  ;;  %v468_v26 = vld [vmem:[%s2517_s5 + $0x140] sm:$0xff]  ;;  %v470_v27 = vld [vmem:[%s2517_s5 + $0x150] sm:$0xff] }
  0x42   : > { %449 = vst [vmem:[%s2522_s6 + $0x50] sm:$0xff] %v448_v16  ;;  %v472_v28 = vld [vmem:[%s2517_s5 + $0x160] sm:$0xff]  ;;  %v474_v29 = vld [vmem:[%s2517_s5 + $0x170] sm:$0xff] }
  0x43   : > { %451 = vst [vmem:[%s2522_s6 + $0x58] sm:$0xff] %v450_v17  ;;  %v476_v30 = vld [vmem:[%s2517_s5 + $0x180] sm:$0xff]  ;;  %v478_v31 = vld [vmem:[%s2517_s5 + $0x190] sm:$0xff] }
  0x44   : > { %453 = vst [vmem:[%s2522_s6 + $0x60] sm:$0xff] %v452_v18  ;;  %v480_v32 = vld [vmem:[%s2517_s5 + $0x1a0] sm:$0xff]  ;;  %v482_v33 = vld [vmem:[%s2517_s5 + $0x1b0] sm:$0xff] }
  0x45   : > { %455 = vst [vmem:[%s2522_s6 + $0x68] sm:$0xff] %v454_v19  ;;  %v484_v34 = vld [vmem:[%s2517_s5 + $0x1c0] sm:$0xff]  ;;  %v486_v35 = vld [vmem:[%s2517_s5 + $0x1d0] sm:$0xff] }
  0x46   : > { %457 = vst [vmem:[%s2522_s6 + $0x70] sm:$0xff] %v456_v20  ;;  %v488_v36 = vld [vmem:[%s2517_s5 + $0x1e0] sm:$0xff]  ;;  %v490_v37 = vld [vmem:[%s2517_s5 + $0x1f0] sm:$0xff] }
  0x47   : > { %459 = vst [vmem:[%s2522_s6 + $0x78] sm:$0xff] %v458_v21  ;;  %v492_v38 = vld [vmem:[%s2517_s5 + $0x200] sm:$0xff]  ;;  %v494_v39 = vld [vmem:[%s2517_s5 + $0x210] sm:$0xff] }
  0x48   : > { %461 = vst [vmem:[%s2522_s6 + $0x80] sm:$0xff] %v460_v22  ;;  %v496_v40 = vld [vmem:[%s2517_s5 + $0x220] sm:$0xff]  ;;  %v498_v41 = vld [vmem:[%s2517_s5 + $0x230] sm:$0xff] }
  0x49   : > { %463 = vst [vmem:[%s2522_s6 + $0x88] sm:$0xff] %v462_v23  ;;  %v500_v42 = vld [vmem:[%s2517_s5 + $0x240] sm:$0xff]  ;;  %v502_v43 = vld [vmem:[%s2517_s5 + $0x250] sm:$0xff] }
  0x4a   : > { %465 = vst [vmem:[%s2522_s6 + $0x90] sm:$0xff] %v464_v24  ;;  %v504_v44 = vld [vmem:[%s2517_s5 + $0x260] sm:$0xff]  ;;  %v506_v45 = vld [vmem:[%s2517_s5 + $0x270] sm:$0xff] }
  0x4b   : > { %467 = vst [vmem:[%s2522_s6 + $0x98] sm:$0xff] %v466_v25  ;;  %v508_v46 = vld [vmem:[%s2517_s5 + $0x280] sm:$0xff]  ;;  %v510_v47 = vld [vmem:[%s2517_s5 + $0x290] sm:$0xff] }
  0x4c   : > { %469 = vst [vmem:[%s2522_s6 + $0xa0] sm:$0xff] %v468_v26  ;;  %v512_v48 = vld [vmem:[%s2517_s5 + $0x2a0] sm:$0xff]  ;;  %v514_v49 = vld [vmem:[%s2517_s5 + $0x2b0] sm:$0xff] }
  0x4d   : > { %471 = vst [vmem:[%s2522_s6 + $0xa8] sm:$0xff] %v470_v27  ;;  %v516_v50 = vld [vmem:[%s2517_s5 + $0x2c0] sm:$0xff]  ;;  %v518_v51 = vld [vmem:[%s2517_s5 + $0x2d0] sm:$0xff] }
  0x4e   : > { %473 = vst [vmem:[%s2522_s6 + $0xb0] sm:$0xff] %v472_v28  ;;  %v520_v52 = vld [vmem:[%s2517_s5 + $0x2e0] sm:$0xff]  ;;  %v522_v53 = vld [vmem:[%s2517_s5 + $0x2f0] sm:$0xff] }
  0x4f   : > { %475 = vst [vmem:[%s2522_s6 + $0xb8] sm:$0xff] %v474_v29  ;;  %v524_v54 = vld [vmem:[%s2517_s5 + $0x300] sm:$0xff]  ;;  %v526_v55 = vld [vmem:[%s2517_s5 + $0x310] sm:$0xff] }
  0x50   : > { %477 = vst [vmem:[%s2522_s6 + $0xc0] sm:$0xff] %v476_v30  ;;  %v528_v56 = vld [vmem:[%s2517_s5 + $0x320] sm:$0xff]  ;;  %v530_v57 = vld [vmem:[%s2517_s5 + $0x330] sm:$0xff] }
  0x51   : > { %479 = vst [vmem:[%s2522_s6 + $0xc8] sm:$0xff] %v478_v31  ;;  %v532_v58 = vld [vmem:[%s2517_s5 + $0x340] sm:$0xff]  ;;  %v534_v59 = vld [vmem:[%s2517_s5 + $0x350] sm:$0xff] }
  0x52   : > { %481 = vst [vmem:[%s2522_s6 + $0xd0] sm:$0xff] %v480_v32  ;;  %v536_v60 = vld [vmem:[%s2517_s5 + $0x360] sm:$0xff]  ;;  %v538_v61 = vld [vmem:[%s2517_s5 + $0x370] sm:$0xff] }
  0x53   : > { %483 = vst [vmem:[%s2522_s6 + $0xd8] sm:$0xff] %v482_v33  ;;  %v540_v62 = vld [vmem:[%s2517_s5 + $0x380] sm:$0xff]  ;;  %v542_v63 = vld [vmem:[%s2517_s5 + $0x390] sm:$0xff] }
  0x54   : > { %485 = vst [vmem:[%s2522_s6 + $0xe0] sm:$0xff] %v484_v34  ;;  %v544_v0 = vld [vmem:[%s2517_s5 + $0x3a0] sm:$0xff]  ;;  %v546_v1 = vld [vmem:[%s2517_s5 + $0x3b0] sm:$0xff] }
  0x55   : > { %487 = vst [vmem:[%s2522_s6 + $0xe8] sm:$0xff] %v486_v35  ;;  %v548_v2 = vld [vmem:[%s2517_s5 + $0x3c0] sm:$0xff]  ;;  %v550_v3 = vld [vmem:[%s2517_s5 + $0x3d0] sm:$0xff] }
  0x56   : > { %489 = vst [vmem:[%s2522_s6 + $0xf0] sm:$0xff] %v488_v36  ;;  %v552_v4 = vld [vmem:[%s2517_s5 + $0x3e0] sm:$0xff]  ;;  %v554_v5 = vld [vmem:[%s2517_s5 + $0x3f0] sm:$0xff] }
  0x57   : > { %491 = vst [vmem:[%s2522_s6 + $0xf8] sm:$0xff] %v490_v37  ;;  %v556_v6 = vld [vmem:[%s2517_s5 + $0x400] sm:$0xff]  ;;  %v558_v7 = vld [vmem:[%s2517_s5 + $0x410] sm:$0xff] }
  0x58   : > { %493 = vst [vmem:[%s2522_s6 + $0x100] sm:$0xff] %v492_v38  ;;  %v560_v8 = vld [vmem:[%s2517_s5 + $0x420] sm:$0xff]  ;;  %v562_v9 = vld [vmem:[%s2517_s5 + $0x430] sm:$0xff] }
  0x59   : > { %495 = vst [vmem:[%s2522_s6 + $0x108] sm:$0xff] %v494_v39  ;;  %v564_v10 = vld [vmem:[%s2517_s5 + $0x440] sm:$0xff]  ;;  %v566_v11 = vld [vmem:[%s2517_s5 + $0x450] sm:$0xff] }
  0x5a   : > { %497 = vst [vmem:[%s2522_s6 + $0x110] sm:$0xff] %v496_v40  ;;  %v568_v12 = vld [vmem:[%s2517_s5 + $0x460] sm:$0xff]  ;;  %v570_v13 = vld [vmem:[%s2517_s5 + $0x470] sm:$0xff] }
  0x5b   : > { %499 = vst [vmem:[%s2522_s6 + $0x118] sm:$0xff] %v498_v41  ;;  %v572_v14 = vld [vmem:[%s2517_s5 + $0x480] sm:$0xff]  ;;  %v574_v15 = vld [vmem:[%s2517_s5 + $0x490] sm:$0xff] }
  0x5c   : > { %501 = vst [vmem:[%s2522_s6 + $0x120] sm:$0xff] %v500_v42  ;;  %v576_v16 = vld [vmem:[%s2517_s5 + $0x4a0] sm:$0xff]  ;;  %v578_v17 = vld [vmem:[%s2517_s5 + $0x4b0] sm:$0xff] }
  0x5d   : > { %503 = vst [vmem:[%s2522_s6 + $0x128] sm:$0xff] %v502_v43  ;;  %v580_v18 = vld [vmem:[%s2517_s5 + $0x4c0] sm:$0xff]  ;;  %v582_v19 = vld [vmem:[%s2517_s5 + $0x4d0] sm:$0xff] }
  0x5e   : > { %505 = vst [vmem:[%s2522_s6 + $0x130] sm:$0xff] %v504_v44  ;;  %v584_v20 = vld [vmem:[%s2517_s5 + $0x4e0] sm:$0xff]  ;;  %v586_v21 = vld [vmem:[%s2517_s5 + $0x4f0] sm:$0xff] }
  0x5f   : > { %507 = vst [vmem:[%s2522_s6 + $0x138] sm:$0xff] %v506_v45  ;;  %v588_v22 = vld [vmem:[%s2517_s5 + $0x500] sm:$0xff]  ;;  %v590_v23 = vld [vmem:[%s2517_s5 + $0x510] sm:$0xff] }
  0x60   : > { %509 = vst [vmem:[%s2522_s6 + $0x140] sm:$0xff] %v508_v46  ;;  %v592_v24 = vld [vmem:[%s2517_s5 + $0x520] sm:$0xff]  ;;  %v594_v25 = vld [vmem:[%s2517_s5 + $0x530] sm:$0xff] }
  0x61   : > { %511 = vst [vmem:[%s2522_s6 + $0x148] sm:$0xff] %v510_v47  ;;  %v596_v26 = vld [vmem:[%s2517_s5 + $0x540] sm:$0xff]  ;;  %v598_v27 = vld [vmem:[%s2517_s5 + $0x550] sm:$0xff] }
  0x62   : > { %513 = vst [vmem:[%s2522_s6 + $0x150] sm:$0xff] %v512_v48  ;;  %v600_v28 = vld [vmem:[%s2517_s5 + $0x560] sm:$0xff]  ;;  %v602_v29 = vld [vmem:[%s2517_s5 + $0x570] sm:$0xff] }
  0x63   : > { %515 = vst [vmem:[%s2522_s6 + $0x158] sm:$0xff] %v514_v49  ;;  %v604_v30 = vld [vmem:[%s2517_s5 + $0x580] sm:$0xff]  ;;  %v606_v31 = vld [vmem:[%s2517_s5 + $0x590] sm:$0xff] }
  0x64   : > { %517 = vst [vmem:[%s2522_s6 + $0x160] sm:$0xff] %v516_v50  ;;  %v608_v32 = vld [vmem:[%s2517_s5 + $0x5a0] sm:$0xff]  ;;  %v610_v33 = vld [vmem:[%s2517_s5 + $0x5b0] sm:$0xff] }
  0x65   : > { %519 = vst [vmem:[%s2522_s6 + $0x168] sm:$0xff] %v518_v51  ;;  %v612_v34 = vld [vmem:[%s2517_s5 + $0x5c0] sm:$0xff]  ;;  %v614_v35 = vld [vmem:[%s2517_s5 + $0x5d0] sm:$0xff] }
  0x66   : > { %521 = vst [vmem:[%s2522_s6 + $0x170] sm:$0xff] %v520_v52  ;;  %v616_v36 = vld [vmem:[%s2517_s5 + $0x5e0] sm:$0xff]  ;;  %v618_v37 = vld [vmem:[%s2517_s5 + $0x5f0] sm:$0xff] }
  0x67   : > { %523 = vst [vmem:[%s2522_s6 + $0x178] sm:$0xff] %v522_v53 }
  0x68   : > { %525 = vst [vmem:[%s2522_s6 + $0x180] sm:$0xff] %v524_v54 }
  0x69   : > { %527 = vst [vmem:[%s2522_s6 + $0x188] sm:$0xff] %v526_v55 }
  0x6a   : > { %529 = vst [vmem:[%s2522_s6 + $0x190] sm:$0xff] %v528_v56 }
  0x6b   : > { %531 = vst [vmem:[%s2522_s6 + $0x198] sm:$0xff] %v530_v57 }
  0x6c   : > { %533 = vst [vmem:[%s2522_s6 + $0x1a0] sm:$0xff] %v532_v58 }
  0x6d   : > { %535 = vst [vmem:[%s2522_s6 + $0x1a8] sm:$0xff] %v534_v59 }
  0x6e   : > { %537 = vst [vmem:[%s2522_s6 + $0x1b0] sm:$0xff] %v536_v60 }
  0x6f   : > { %539 = vst [vmem:[%s2522_s6 + $0x1b8] sm:$0xff] %v538_v61 }
  0x70   : > { %541 = vst [vmem:[%s2522_s6 + $0x1c0] sm:$0xff] %v540_v62 }
  0x71   : > { %543 = vst [vmem:[%s2522_s6 + $0x1c8] sm:$0xff] %v542_v63 }
  0x72   : > { %545 = vst [vmem:[%s2522_s6 + $0x1d0] sm:$0xff] %v544_v0 }
  0x73   : > { %547 = vst [vmem:[%s2522_s6 + $0x1d8] sm:$0xff] %v546_v1 }
  0x74   : > { %549 = vst [vmem:[%s2522_s6 + $0x1e0] sm:$0xff] %v548_v2 }
  0x75   : > { %551 = vst [vmem:[%s2522_s6 + $0x1e8] sm:$0xff] %v550_v3 }
  0x76   : > { %553 = vst [vmem:[%s2522_s6 + $0x1f0] sm:$0xff] %v552_v4 }
  0x77   : > { %555 = vst [vmem:[%s2522_s6 + $0x1f8] sm:$0xff] %v554_v5 }
  0x78   : > { %557 = vst [vmem:[%s2522_s6 + $0x200] sm:$0xff] %v556_v6 }
  0x79   : > { %559 = vst [vmem:[%s2522_s6 + $0x208] sm:$0xff] %v558_v7 }
  0x7a   : > { %561 = vst [vmem:[%s2522_s6 + $0x210] sm:$0xff] %v560_v8 }
  0x7b   : > { %563 = vst [vmem:[%s2522_s6 + $0x218] sm:$0xff] %v562_v9 }
  0x7c   : > { %565 = vst [vmem:[%s2522_s6 + $0x220] sm:$0xff] %v564_v10 }
  0x7d   : > { %567 = vst [vmem:[%s2522_s6 + $0x228] sm:$0xff] %v566_v11 }
  0x7e   : > { %569 = vst [vmem:[%s2522_s6 + $0x230] sm:$0xff] %v568_v12 }
  0x7f   : > { %571 = vst [vmem:[%s2522_s6 + $0x238] sm:$0xff] %v570_v13 }
  0x80   : > { %573 = vst [vmem:[%s2522_s6 + $0x240] sm:$0xff] %v572_v14 }
  0x81   : > { %575 = vst [vmem:[%s2522_s6 + $0x248] sm:$0xff] %v574_v15 }
  0x82   : > { %577 = vst [vmem:[%s2522_s6 + $0x250] sm:$0xff] %v576_v16 }
  0x83   : > { %579 = vst [vmem:[%s2522_s6 + $0x258] sm:$0xff] %v578_v17 }
  0x84   : > { %581 = vst [vmem:[%s2522_s6 + $0x260] sm:$0xff] %v580_v18 }
  0x85   : > { %583 = vst [vmem:[%s2522_s6 + $0x268] sm:$0xff] %v582_v19 }
  0x86   : > { %585 = vst [vmem:[%s2522_s6 + $0x270] sm:$0xff] %v584_v20 }
  0x87   : > { %587 = vst [vmem:[%s2522_s6 + $0x278] sm:$0xff] %v586_v21 }
  0x88   : > { %589 = vst [vmem:[%s2522_s6 + $0x280] sm:$0xff] %v588_v22 }
  0x89   : > { %591 = vst [vmem:[%s2522_s6 + $0x288] sm:$0xff] %v590_v23 }
  0x8a   : > { %593 = vst [vmem:[%s2522_s6 + $0x290] sm:$0xff] %v592_v24 }
  0x8b   : > { %595 = vst [vmem:[%s2522_s6 + $0x298] sm:$0xff] %v594_v25 }
  0x8c   : > { %597 = vst [vmem:[%s2522_s6 + $0x2a0] sm:$0xff] %v596_v26 }
  0x8d   : > { %599 = vst [vmem:[%s2522_s6 + $0x2a8] sm:$0xff] %v598_v27 }
  0x8e   : > { %601 = vst [vmem:[%s2522_s6 + $0x2b0] sm:$0xff] %v600_v28 }
  0x8f   : > { %603 = vst [vmem:[%s2522_s6 + $0x2b8] sm:$0xff] %v602_v29 }
  0x90   : > { %605 = vst [vmem:[%s2522_s6 + $0x2c0] sm:$0xff] %v604_v30 }
  0x91   : > { %607 = vst [vmem:[%s2522_s6 + $0x2c8] sm:$0xff] %v606_v31 }
  0x92   : > { %609 = vst [vmem:[%s2522_s6 + $0x2d0] sm:$0xff] %v608_v32 }
  0x93   : > { %611 = vst [vmem:[%s2522_s6 + $0x2d8] sm:$0xff] %v610_v33 }
  0x94   : > { %613 = vst [vmem:[%s2522_s6 + $0x2e0] sm:$0xff] %v612_v34 }
  0x95   : > { %615 = vst [vmem:[%s2522_s6 + $0x2e8] sm:$0xff] %v614_v35 }
  0x96   : > { %617 = vst [vmem:[%s2522_s6 + $0x2f0] sm:$0xff] %v616_v36 }
  0x97   : > { %619 = vst [vmem:[%s2522_s6 + $0x2f8] sm:$0xff] %v618_v37 }
  0x98 PF: > { %p1678_p0 = scmp.ge.s32.totalorder %s2380_s22, 1  ;;  %p632_p1 = scmp.lt.s32.totalorder %s2380_s22, 7 }
  0x9a   : > { %p633_p2 = pnand %p1678_p0, %p632_p1 }
  0x9b   : > { %s639_s0 = sand.u32 (!%p633_p2), 1, %s2356_s16   ;;  %s646_s23 = sand.u32 (!%p633_p2), 1, %s2348_s14  }
  0x9c   : > { %636 = sbr.rel (%p633_p2) target bundleno = 442 (0x1ba), region = 85  ;;  %s673_s7 = sand.u32 (!%p633_p2), 1, %s2340_s12  }
  0x9d   : > { %s2203_s28 = smul.u32 (!%p633_p2), 48, %s639_s0  ;;  %s1679_s26 = sshll.u32 (!%p633_p2), %s673_s7, 4 }
  0x9e   : > { %s2204_s11 = smul.u32 (!%p633_p2), 768, %s646_s23  ;;  %s1680_s27 = sshll.u32 (!%p633_p2), %s2368_s19, 1 }
  0x9f   : > { %p681_p3 = scmp.lt.s32.totalorder (!%p633_p2), %s1680_s27, 3  ;;  %s2725_s6 = scalar_lea.vmem (!%p633_p2), [#allocation3], %s2203_s28 }
  0xa0   : > { %s2727_s1 = scalar_lea.vmem (!%p633_p2), [#allocation4], %s2204_s11  ;;  %s2729_s25 = scalar_lea.vmem (!%p633_p2), [#allocation5], %s1679_s26 }
  0xa1   : > { %s3040_s27 = smov (!%p681_p3, %s1680_s27), 3  ;;  %p1681_p4 = scmp.ne.s32.totalorder %s2364_s18, 0 }
  0xa2   : > { %s683_s5 = scalar_lea.vmem %s3011_s2, %s3040_s27 }
  0xa3   : > { %690 = sbr.rel (%p1681_p4) target bundleno = 173 (0xad), region = 97 }
  0xa8   : > { %v2382_v38 = vmov 0.0  }
  0xa9   : > { %691 = vst [vmem:[#allocation2 + $0x10] sm:$0xff] %v2382_v38 }
  0xaa   : > { %692 = vst [vmem:[#allocation2] sm:$0xff] %v2382_v38 }
  0xab   : > { %693 = vst [vmem:[#allocation2 + $0x18] sm:$0xff] %v2382_v38 }
  0xac   : > { %694 = vst [vmem:[#allocation2 + $0x8] sm:$0xff] %v2382_v38 }
  0xad PF: > { %v1764_v39 = vld [vmem:[%s2727_s1 + $0x70] sm:$0xf]  ;;  %v2119_v40 = vld [vmem:[%s2727_s1 + $0x74] sm:$0xf0]  ;;  %v1756_v50 = vld [vmem:[%s2727_s1 + $0x60] sm:$0xf] }
  0xae   : > { %v1828_v41 = vld [vmem:[%s2727_s1 + $0xf0] sm:$0xf]  ;;  %v1765_v42 = vor.u32 %v2119_v40, %v1764_v39  ;;  %v2135_v43 = vld [vmem:[%s2727_s1 + $0xf4] sm:$0xf0]  ;;  %v2117_v52 = vld [vmem:[%s2727_s1 + $0x64] sm:$0xf0] }
  0xaf   : > { %v1892_v44 = vld [vmem:[%s2727_s1 + $0x170] sm:$0xf]  ;;  %v2151_v45 = vld [vmem:[%s2727_s1 + $0x174] sm:$0xf0]  ;;  %v1829_v46 = vor.u32 %v2135_v43, %v1828_v41  ;;  %v1820_v53 = vld [vmem:[%s2727_s1 + $0xe0] sm:$0xf]  ;;  %v1757_v55 = vor.u32 %v2117_v52, %v1756_v50 }
  0xb0   : > { %v1893_v47 = vor.u32 %v2151_v45, %v1892_v44  ;;  %v1956_v48 = vld [vmem:[%s2727_s1 + $0x1f0] sm:$0xf]  ;;  %v2167_v49 = vld [vmem:[%s2727_s1 + $0x1f4] sm:$0xf0]  ;;  %1311 = vmatpush.bf16.msra.mxu0 %v1765_v42  ;;  %v2133_v54 = vld [vmem:[%s2727_s1 + $0xe4] sm:$0xf0] }
  0xb1   : > { %v1957_v51 = vor.u32 %v2167_v49, %v1956_v48  ;;  %1325 = vmatpush.bf16.msra.mxu1 %v1829_v46  ;;  %v1821_v56 = vor.u32 %v2133_v54, %v1820_v53  ;;  %v1884_v57 = vld [vmem:[%s2727_s1 + $0x160] sm:$0xf]  ;;  %v2149_v58 = vld [vmem:[%s2727_s1 + $0x164] sm:$0xf0]  ;;  %v1748_v62 = vld [vmem:[%s2727_s1 + $0x50] sm:$0xf] }
  0xb2   : > { %1339 = vmatpush.bf16.msra.mxu2 %v1893_v47  ;;  %v1948_v59 = vld [vmem:[%s2727_s1 + $0x1e0] sm:$0xf]  ;;  %v1885_v60 = vor.u32 %v2149_v58, %v1884_v57  ;;  %v2165_v61 = vld [vmem:[%s2727_s1 + $0x1e4] sm:$0xf0]  ;;  %v2115_v63 = vld [vmem:[%s2727_s1 + $0x54] sm:$0xf0] }
  0xb3   : > { %1353 = vmatpush.bf16.msra.mxu3 %v1957_v51  ;;  %v1949_v0 = vor.u32 %v2165_v61, %v1948_v59  ;;  %v1812_v1 = vld [vmem:[%s2727_s1 + $0xd0] sm:$0xf]  ;;  %v2131_v2 = vld [vmem:[%s2727_s1 + $0xd4] sm:$0xf0]  ;;  %v1749_v4 = vor.u32 %v2115_v63, %v1748_v62  ;;  %v1740_v10 = vld [vmem:[%s2727_s1 + $0x40] sm:$0xf] }
  0xb4   : > { %v1876_v3 = vld [vmem:[%s2727_s1 + $0x150] sm:$0xf]  ;;  %1312 = vmatpush.bf16.msra.mxu0 %v1757_v55  ;;  %v2147_v5 = vld [vmem:[%s2727_s1 + $0x154] sm:$0xf0]  ;;  %v1813_v8 = vor.u32 %v2131_v2, %v1812_v1  ;;  %v2113_v11 = vld [vmem:[%s2727_s1 + $0x44] sm:$0xf0] }
  0xb5   : > { %v1940_v6 = vld [vmem:[%s2727_s1 + $0x1d0] sm:$0xf]  ;;  %v2163_v7 = vld [vmem:[%s2727_s1 + $0x1d4] sm:$0xf0]  ;;  %1326 = vmatpush.bf16.msra.mxu1 %v1821_v56  ;;  %v1877_v9 = vor.u32 %v2147_v5, %v1876_v3  ;;  %v1804_v12 = vld [vmem:[%s2727_s1 + $0xc0] sm:$0xf]  ;;  %v1741_v19 = vor.u32 %v2113_v11, %v1740_v10 }
  0xb6   : > { %1340 = vmatpush.bf16.msra.mxu2 %v1885_v60  ;;  %v1941_v13 = vor.u32 %v2163_v7, %v1940_v6  ;;  %v2129_v14 = vld [vmem:[%s2727_s1 + $0xc4] sm:$0xf0]  ;;  %v1868_v15 = vld [vmem:[%s2727_s1 + $0x140] sm:$0xf]  ;;  %v1732_v22 = vld [vmem:[%s2727_s1 + $0x30] sm:$0xf] }
  0xb7   : > { %1354 = vmatpush.bf16.msra.mxu3 %v1949_v0  ;;  %v2145_v16 = vld [vmem:[%s2727_s1 + $0x144] sm:$0xf0]  ;;  %v1932_v17 = vld [vmem:[%s2727_s1 + $0x1c0] sm:$0xf]  ;;  %v1805_v20 = vor.u32 %v2129_v14, %v1804_v12  ;;  %v2111_v23 = vld [vmem:[%s2727_s1 + $0x34] sm:$0xf0] }
  0xb8   : > { %v2161_v18 = vld [vmem:[%s2727_s1 + $0x1c4] sm:$0xf0]  ;;  %1313 = vmatpush.bf16.msra.mxu0 %v1749_v4  ;;  %v1869_v21 = vor.u32 %v2145_v16, %v1868_v15  ;;  %v1796_v24 = vld [vmem:[%s2727_s1 + $0xb0] sm:$0xf]  ;;  %v2127_v26 = vld [vmem:[%s2727_s1 + $0xb4] sm:$0xf0]  ;;  %v1733_v31 = vor.u32 %v2111_v23, %v1732_v22 }
  0xb9   : > { %1327 = vmatpush.bf16.msra.mxu1 %v1813_v8  ;;  %v1933_v25 = vor.u32 %v2161_v18, %v1932_v17  ;;  %v1860_v27 = vld [vmem:[%s2727_s1 + $0x130] sm:$0xf]  ;;  %v2143_v28 = vld [vmem:[%s2727_s1 + $0x134] sm:$0xf0]  ;;  %v1797_v32 = vor.u32 %v2127_v26, %v1796_v24  ;;  %v1724_v34 = vld [vmem:[%s2727_s1 + $0x20] sm:$0xf] }
  0xba   : > { %1341 = vmatpush.bf16.msra.mxu2 %v1877_v9  ;;  %v1924_v29 = vld [vmem:[%s2727_s1 + $0x1b0] sm:$0xf]  ;;  %v2159_v30 = vld [vmem:[%s2727_s1 + $0x1b4] sm:$0xf0]  ;;  %v1861_v33 = vor.u32 %v2143_v28, %v1860_v27  ;;  %v2109_v35 = vld [vmem:[%s2727_s1 + $0x24] sm:$0xf0] }
  0xbb   : > { %1355 = vmatpush.bf16.msra.mxu3 %v1941_v13  ;;  %v1788_v36 = vld [vmem:[%s2727_s1 + $0xa0] sm:$0xf]  ;;  %v1925_v37 = vor.u32 %v2159_v30, %v1924_v29  ;;  %v2125_v38 = vld [vmem:[%s2727_s1 + $0xa4] sm:$0xf0]  ;;  %v1725_v43 = vor.u32 %v2109_v35, %v1724_v34  ;;  %v1716_v46 = vld [vmem:[%s2727_s1 + $0x10] sm:$0xf] }
  0xbc   : > { %1314 = vmatpush.bf16.msra.mxu0 %v1741_v19  ;;  %v1852_v39 = vld [vmem:[%s2727_s1 + $0x120] sm:$0xf]  ;;  %v2141_v40 = vld [vmem:[%s2727_s1 + $0x124] sm:$0xf0]  ;;  %v1789_v44 = vor.u32 %v2125_v38, %v1788_v36  ;;  %v2107_v47 = vld [vmem:[%s2727_s1 + $0x14] sm:$0xf0] }
  0xbd   : > { %1328 = vmatpush.bf16.msra.mxu1 %v1805_v20  ;;  %v1916_v41 = vld [vmem:[%s2727_s1 + $0x1a0] sm:$0xf]  ;;  %v2157_v42 = vld [vmem:[%s2727_s1 + $0x1a4] sm:$0xf0]  ;;  %v1853_v45 = vor.u32 %v2141_v40, %v1852_v39  ;;  %v1780_v48 = vld [vmem:[%s2727_s1 + $0x90] sm:$0xf]  ;;  %v1717_v55 = vor.u32 %v2107_v47, %v1716_v46 }
  0xbe   : > { %1342 = vmatpush.bf16.msra.mxu2 %v1869_v21  ;;  %v1917_v49 = vor.u32 %v2157_v42, %v1916_v41  ;;  %v2123_v50 = vld [vmem:[%s2727_s1 + $0x94] sm:$0xf0]  ;;  %v1844_v51 = vld [vmem:[%s2727_s1 + $0x110] sm:$0xf]  ;;  %v1708_v56 = vld [vmem:[%s2727_s1] sm:$0xf] }
  0xbf   : > { %1356 = vmatpush.bf16.msra.mxu3 %v1933_v25  ;;  %v2139_v52 = vld [vmem:[%s2727_s1 + $0x114] sm:$0xf0]  ;;  %v1908_v53 = vld [vmem:[%s2727_s1 + $0x190] sm:$0xf]  ;;  %v2105_v57 = vld [vmem:[%s2727_s1 + $0x4] sm:$0xf0]  ;;  %v1781_v58 = vor.u32 %v2123_v50, %v1780_v48 }
  0xc0   : > { %1315 = vmatpush.bf16.msra.mxu0 %v1733_v31  ;;  %v2155_v54 = vld [vmem:[%s2727_s1 + $0x194] sm:$0xf0]  ;;  %v1845_v59 = vor.u32 %v2139_v52, %v1844_v51  ;;  %v1772_v60 = vld [vmem:[%s2727_s1 + $0x80] sm:$0xf]  ;;  %v2121_v61 = vld [vmem:[%s2727_s1 + $0x84] sm:$0xf0]  ;;  %v1709_v6 = vor.u32 %v2105_v57, %v1708_v56 }
  0xc1   : > { %1329 = vmatpush.bf16.msra.mxu1 %v1797_v32  ;;  %v1836_v62 = vld [vmem:[%s2727_s1 + $0x100] sm:$0xf]  ;;  %v1909_v63 = vor.u32 %v2155_v54, %v1908_v53  ;;  %v2137_v0 = vld [vmem:[%s2727_s1 + $0x104] sm:$0xf0]  ;;  %v2020_v3 = vld [vmem:[%s2727_s1 + $0x270] sm:$0xf]  ;;  %v1773_v10 = vor.u32 %v2121_v61, %v1772_v60 }
  0xc2   : > { %1343 = vmatpush.bf16.msra.mxu2 %v1861_v33  ;;  %v1900_v1 = vld [vmem:[%s2727_s1 + $0x180] sm:$0xf]  ;;  %v2153_v2 = vld [vmem:[%s2727_s1 + $0x184] sm:$0xf0]  ;;  %v2183_v4 = vld [vmem:[%s2727_s1 + $0x274] sm:$0xf0]  ;;  %v1837_v11 = vor.u32 %v2137_v0, %v1836_v62 }
  0xc3   : > { %1357 = vmatpush.bf16.msra.mxu3 %v1925_v37  ;;  %v2084_v5 = vld [vmem:[%s2727_s1 + $0x2f0] sm:$0xf]  ;;  %v2199_v7 = vld [vmem:[%s2727_s1 + $0x2f4] sm:$0xf0]  ;;  %v2118_v8 = vld [vmem:[%s2727_s1 + $0x74] sm:$0xf]  ;;  %v1901_v14 = vor.u32 %v2153_v2, %v1900_v1  ;;  %v2021_v15 = vor.u32 %v2183_v4, %v2020_v3 }
  0xc4   : > { %1316 = vmatpush.bf16.msra.mxu0 %v1725_v43  ;;  %v1766_v9 = vld [vmem:[%s2727_s1 + $0x78] sm:$0xf0]  ;;  %v2134_v12 = vld [vmem:[%s2727_s1 + $0xf4] sm:$0xf]  ;;  %v2012_v16 = vld [vmem:[%s2727_s1 + $0x260] sm:$0xf]  ;;  %v2085_v18 = vor.u32 %v2199_v7, %v2084_v5 }
  0xc5   : > { %1330 = vmatpush.bf16.msra.mxu1 %v1789_v44  ;;  %v1830_v13 = vld [vmem:[%s2727_s1 + $0xf8] sm:$0xf0]  ;;  %v2181_v17 = vld [vmem:[%s2727_s1 + $0x264] sm:$0xf0]  ;;  %v1769_v19 = vor.u32 %v2118_v8, %v1766_v9  ;;  %v2076_v20 = vld [vmem:[%s2727_s1 + $0x2e0] sm:$0xf] }
  0xc6   : > { %1344 = vmatpush.bf16.msra.mxu2 %v1853_v45  ;;  %v2197_v21 = vld [vmem:[%s2727_s1 + $0x2e4] sm:$0xf0]  ;;  %v2116_v22 = vld [vmem:[%s2727_s1 + $0x64] sm:$0xf]  ;;  %v1833_v23 = vor.u32 %v2134_v12, %v1830_v13  ;;  %v1758_v24 = vld [vmem:[%s2727_s1 + $0x68] sm:$0xf0]  ;;  %v2013_v30 = vor.u32 %v2181_v17, %v2012_v16 }
  0xc7   : > { %1358 = vmatpush.bf16.msra.mxu3 %v1917_v49  ;;  %v2132_v25 = vld [vmem:[%s2727_s1 + $0xe4] sm:$0xf]  ;;  %v1822_v26 = vld [vmem:[%s2727_s1 + $0xe8] sm:$0xf0]  ;;  %v2004_v27 = vld [vmem:[%s2727_s1 + $0x250] sm:$0xf]  ;;  %v2077_v35 = vor.u32 %v2197_v21, %v2076_v20  ;;  %v1761_v36 = vor.u32 %v2116_v22, %v1758_v24 }
  0xc8   : > { %1317 = vmatpush.bf16.msra.mxu0 %v1717_v55  ;;  %v1684_v28 = vld [vmem:[%s2725_s6] sm:$0xf]  ;;  %v2101_v29 = vld [vmem:[%s2725_s6 + $0x14] sm:$0xf0]  ;;  %v2114_v37 = vld [vmem:[%s2727_s1 + $0x54] sm:$0xf]  ;;  %v1825_v40 = vor.u32 %v2132_v25, %v1822_v26 }
  0xc9   : > { %1331 = vmatpush.bf16.msra.mxu1 %v1781_v58  ;;  %v2179_v31 = vld [vmem:[%s2727_s1 + $0x254] sm:$0xf0]  ;;  %v2068_v32 = vld [vmem:[%s2727_s1 + $0x2d0] sm:$0xf]  ;;  %v2818_v34 = vor.u32 %v2101_v29, %v1684_v28  ;;  %v1750_v38 = vld [vmem:[%s2727_s1 + $0x58] sm:$0xf0] }
  0xca   : > { %1345 = vmatpush.bf16.msra.mxu2 %v1845_v59  ;;  %v2195_v33 = vld [vmem:[%s2727_s1 + $0x2d4] sm:$0xf0]  ;;  %v2130_v39 = vld [vmem:[%s2727_s1 + $0xd4] sm:$0xf]  ;;  %v1814_v41 = vld [vmem:[%s2727_s1 + $0xd8] sm:$0xf0]  ;;  %v2005_v48 = vor.u32 %v2179_v31, %v2004_v27  ;;  %v1753_v52 = vor.u32 %v2114_v37, %v1750_v38 }
  0xcb   : > { %1359 = vmatpush.bf16.msra.mxu3 %v1909_v63  ;;  %v2098_v42 = vld [vmem:[%s2725_s6 + $0x4] sm:$0xf]  ;;  %v1686_v43 = vld [vmem:[%s2725_s6 + $0x18] sm:$0xf0]  ;;  %v1692_v45 = vld [vmem:[%s2725_s6 + $0x8] sm:$0xf]  ;;  %v2069_v51 = vor.u32 %v2195_v33, %v2068_v32  ;;  %v1817_v57 = vor.u32 %v2130_v39, %v1814_v41 }
  0xcc   : > { %1318 = vmatpush.bf16.msra.mxu0 %v1709_v6  ;;  %v2827_v44 = vor.u32 %v2098_v42, %v1686_v43  ;;  %v2102_v46 = vld [vmem:[%s2725_s6 + $0x1c] sm:$0xf0]  ;;  %v2099_v47 = vld [vmem:[%s2725_s6 + $0xc] sm:$0xf]  ;;  %v1694_v50 = vld [vmem:[%s2725_s6 + $0x20] sm:$0xf0] }
  0xcd   : > { %1332 = vmatpush.bf16.msra.mxu1 %v1773_v10  ;;  %v2832_v49 = vor.u32 %v2102_v46, %v1692_v45  ;;  %v1996_v53 = vld [vmem:[%s2727_s1 + $0x240] sm:$0xf]  ;;  %v2177_v54 = vld [vmem:[%s2727_s1 + $0x244] sm:$0xf0]  ;;  %v2838_v56 = vor.u32 %v2099_v47, %v1694_v50  ;;  %v2112_v59 = vld [vmem:[%s2727_s1 + $0x44] sm:$0xf] }
  0xce   : > { %1346 = vmatpush.bf16.msra.mxu2 %v1837_v11  ;;  %v2060_v55 = vld [vmem:[%s2727_s1 + $0x2c0] sm:$0xf]  ;;  %v2193_v58 = vld [vmem:[%s2727_s1 + $0x2c4] sm:$0xf0]  ;;  %v1742_v60 = vld [vmem:[%s2727_s1 + $0x48] sm:$0xf0]  ;;  %v1997_v63 = vor.u32 %v2177_v54, %v1996_v53 }
  0xcf   : > { %1360 = vmatpush.bf16.msra.mxu3 %v1901_v14  ;;  %1319 = vmatmul.bf16.vlgmr.msra.gmra.mxu0 %v2818_v34  ;;  %v2128_v61 = vld [vmem:[%s2727_s1 + $0xc4] sm:$0xf]  ;;  %v1806_v62 = vld [vmem:[%s2727_s1 + $0xc8] sm:$0xf0]  ;;  %v2061_v0 = vor.u32 %v2193_v58, %v2060_v55  ;;  %v1745_v1 = vor.u32 %v2112_v59, %v1742_v60  ;;  %v1988_v2 = vld [vmem:[%s2727_s1 + $0x230] sm:$0xf] }
  0xd0   : > { %1367 = vmatpush.bf16.msrb.mxu0 %v2021_v15  ;;  %1333 = vmatmul.bf16.vlgmr.msra.gmra.mxu1 %v2827_v44  ;;  %v2175_v3 = vld [vmem:[%s2727_s1 + $0x234] sm:$0xf0]  ;;  %v2052_v4 = vld [vmem:[%s2727_s1 + $0x2b0] sm:$0xf]  ;;  %v1809_v5 = vor.u32 %v2128_v61, %v1806_v62  ;;  %v2110_v7 = vld [vmem:[%s2727_s1 + $0x34] sm:$0xf] }
  0xd1   : > { %1381 = vmatpush.bf16.msrb.mxu1 %v2085_v18  ;;  %1347 = vmatmul.bf16.vlgmr.msra.gmra.mxu2 %v2832_v49  ;;  %v2191_v6 = vld [vmem:[%s2727_s1 + $0x2b4] sm:$0xf0]  ;;  %v1734_v8 = vld [vmem:[%s2727_s1 + $0x38] sm:$0xf0]  ;;  %v2126_v9 = vld [vmem:[%s2727_s1 + $0xb4] sm:$0xf]  ;;  %v1989_v11 = vor.u32 %v2175_v3, %v1988_v2 }
  0xd2   : > { %1395 = vmatpush.bf16.msrb.mxu2 %v1769_v19  ;;  %1361 = vmatmul.bf16.vlgmr.msra.gmra.mxu3 %v2838_v56  ;;  %v1798_v10 = vld [vmem:[%s2727_s1 + $0xb8] sm:$0xf0]  ;;  %v2053_v12 = vor.u32 %v2191_v6, %v2052_v4  ;;  %v1737_v13 = vor.u32 %v2110_v7, %v1734_v8  ;;  %v1980_v14 = vld [vmem:[%s2727_s1 + $0x220] sm:$0xf]  ;;  %v2173_v15 = vld [vmem:[%s2727_s1 + $0x224] sm:$0xf0] }
  0xd3   : > { %1409 = vmatpush.bf16.msrb.mxu3 %v1833_v23  ;;  %v2044_v16 = vld [vmem:[%s2727_s1 + $0x2a0] sm:$0xf]  ;;  %v1801_v17 = vor.u32 %v2126_v9, %v1798_v10  ;;  %v2189_v18 = vld [vmem:[%s2727_s1 + $0x2a4] sm:$0xf0]  ;;  %v2108_v19 = vld [vmem:[%s2727_s1 + $0x24] sm:$0xf]  ;;  %v1981_v23 = vor.u32 %v2173_v15, %v1980_v14 }
  0xd4   : > { %1368 = vmatpush.bf16.msrb.mxu0 %v2013_v30  ;;  %v1726_v20 = vld [vmem:[%s2727_s1 + $0x28] sm:$0xf0]  ;;  %v2124_v21 = vld [vmem:[%s2727_s1 + $0xa4] sm:$0xf]  ;;  %v2045_v24 = vor.u32 %v2189_v18, %v2044_v16  ;;  %v1972_v26 = vld [vmem:[%s2727_s1 + $0x210] sm:$0xf] }
  0xd5   : > { %1382 = vmatpush.bf16.msrb.mxu1 %v2077_v35  ;;  %v1790_v22 = vld [vmem:[%s2727_s1 + $0xa8] sm:$0xf0]  ;;  %v1729_v25 = vor.u32 %v2108_v19, %v1726_v20  ;;  %v2171_v27 = vld [vmem:[%s2727_s1 + $0x214] sm:$0xf0]  ;;  %v2036_v28 = vld [vmem:[%s2727_s1 + $0x290] sm:$0xf] }
  0xd6   : > { %1396 = vmatpush.bf16.msrb.mxu2 %v1761_v36  ;;  %v1793_v29 = vor.u32 %v2124_v21, %v1790_v22  ;;  %v2187_v30 = vld [vmem:[%s2727_s1 + $0x294] sm:$0xf0]  ;;  %v2106_v31 = vld [vmem:[%s2727_s1 + $0x14] sm:$0xf]  ;;  %v1718_v32 = vld [vmem:[%s2727_s1 + $0x18] sm:$0xf0]  ;;  %v1973_v36 = vor.u32 %v2171_v27, %v1972_v26 }
  0xd7   : > { %1410 = vmatpush.bf16.msrb.mxu3 %v1825_v40  ;;  %v2122_v33 = vld [vmem:[%s2727_s1 + $0x94] sm:$0xf]  ;;  %v1782_v35 = vld [vmem:[%s2727_s1 + $0x98] sm:$0xf0]  ;;  %v1964_v37 = vld [vmem:[%s2727_s1 + $0x200] sm:$0xf]  ;;  %v2037_v40 = vor.u32 %v2187_v30, %v2036_v28  ;;  %v1721_v41 = vor.u32 %v2106_v31, %v1718_v32 }
  0xd8   : > { %1369 = vmatpush.bf16.msrb.mxu0 %v2005_v48  ;;  %v2169_v38 = vld [vmem:[%s2727_s1 + $0x204] sm:$0xf0]  ;;  %v2028_v39 = vld [vmem:[%s2727_s1 + $0x280] sm:$0xf]  ;;  %v2104_v43 = vld [vmem:[%s2727_s1 + $0x4] sm:$0xf]  ;;  %v1785_v46 = vor.u32 %v2122_v33, %v1782_v35 }
  0xd9   : > { %1383 = vmatpush.bf16.msrb.mxu1 %v2069_v51  ;;  %v2185_v42 = vld [vmem:[%s2727_s1 + $0x284] sm:$0xf0]  ;;  %v1710_v45 = vld [vmem:[%s2727_s1 + $0x8] sm:$0xf0]  ;;  %v2120_v47 = vld [vmem:[%s2727_s1 + $0x84] sm:$0xf]  ;;  %v1965_v54 = vor.u32 %v2169_v38, %v1964_v37 }
  0xda   : > { %1397 = vmatpush.bf16.msrb.mxu2 %v1753_v52  ;;  %v1774_v48 = vld [vmem:[%s2727_s1 + $0x88] sm:$0xf0]  ;;  %v2150_v50 = vld [vmem:[%s2727_s1 + $0x174] sm:$0xf]  ;;  %v1894_v51 = vld [vmem:[%s2727_s1 + $0x178] sm:$0xf0]  ;;  %v2029_v59 = vor.u32 %v2185_v42, %v2028_v39  ;;  %v1713_v60 = vor.u32 %v2104_v43, %v1710_v45 }
  0xdb   : > { %1411 = vmatpush.bf16.msrb.mxu3 %v1817_v57  ;;  %v2166_v52 = vld [vmem:[%s2727_s1 + $0x1f4] sm:$0xf]  ;;  %v1958_v53 = vld [vmem:[%s2727_s1 + $0x1f8] sm:$0xf0]  ;;  %v1700_v62 = vld [vmem:[%s2725_s6 + $0x10] sm:$0xf] }
  0xdc   : > { %1370 = vmatpush.bf16.msrb.mxu0 %v1997_v63  ;;  %v2182_v55 = vld [vmem:[%s2727_s1 + $0x274] sm:$0xf]  ;;  %v2022_v57 = vld [vmem:[%s2727_s1 + $0x278] sm:$0xf0]  ;;  %v2103_v63 = vld [vmem:[%s2725_s6 + $0x24] sm:$0xf0]  ;;  %v1961_v4 = vor.u32 %v2166_v52, %v1958_v53 }
  0xdd   : > { %1384 = vmatpush.bf16.msrb.mxu1 %v2061_v0  ;;  %v2198_v58 = vld [vmem:[%s2727_s1 + $0x2f4] sm:$0xf]  ;;  %v2086_v61 = vld [vmem:[%s2727_s1 + $0x2f8] sm:$0xf0]  ;;  %v1777_v0 = vor.u32 %v2120_v47, %v1774_v48  ;;  %v2148_v6 = vld [vmem:[%s2727_s1 + $0x164] sm:$0xf]  ;;  %v2895_v10 = vor.u32 %v2103_v63, %v1700_v62 }
  0xde   : > { %1398 = vmatpush.bf16.msrb.mxu2 %v1745_v1  ;;  %v1897_v1 = vor.u32 %v2150_v50, %v1894_v51  ;;  %v2100_v2 = vld [vmem:[%s2725_s6 + $0x14] sm:$0xf]  ;;  %v1702_v3 = vld [vmem:[%s2725_s6 + $0x28] sm:$0xf0]  ;;  %v2089_v9 = vor.u32 %v2198_v58, %v2086_v61  ;;  %p2090_p5 = scmp.ne.s32.totalorder %s2364_s18, 2 }
  0xdf   : > { %1412 = vmatpush.bf16.msrb.mxu3 %v1809_v5  ;;  %v2025_v5 = vor.u32 %v2182_v55, %v2022_v57  ;;  %v1886_v7 = vld [vmem:[%s2727_s1 + $0x168] sm:$0xf0]  ;;  %v2164_v8 = vld [vmem:[%s2727_s1 + $0x1e4] sm:$0xf]  ;;  %v2900_v14 = vor.u32 %v2100_v2, %v1702_v3  ;;  %v2146_v20 = vld [vmem:[%s2727_s1 + $0x154] sm:$0xf] }
  0xe0   : > { %1371 = vmatpush.bf16.msrb.mxu0 %v1989_v11  ;;  %v1950_v11 = vld [vmem:[%s2727_s1 + $0x1e8] sm:$0xf0]  ;;  %v2196_v15 = vld [vmem:[%s2727_s1 + $0x2e4] sm:$0xf]  ;;  %v1878_v21 = vld [vmem:[%s2727_s1 + $0x158] sm:$0xf0] }
  0xe1   : > { %1385 = vmatpush.bf16.msrb.mxu1 %v2053_v12  ;;  %v2180_v12 = vld [vmem:[%s2727_s1 + $0x264] sm:$0xf]  ;;  %v2078_v16 = vld [vmem:[%s2727_s1 + $0x2e8] sm:$0xf0]  ;;  %v1953_v18 = vor.u32 %v2164_v8, %v1950_v11  ;;  %v2162_v22 = vld [vmem:[%s2727_s1 + $0x1d4] sm:$0xf] }
  0xe2   : > { %1399 = vmatpush.bf16.msrb.mxu2 %v1737_v13  ;;  %v2014_v13 = vld [vmem:[%s2727_s1 + $0x268] sm:$0xf0]  ;;  %v2006_v26 = vld [vmem:[%s2727_s1 + $0x258] sm:$0xf0]  ;;  %v2194_v27 = vld [vmem:[%s2727_s1 + $0x2d4] sm:$0xf] }
  0xe3   : > { %1413 = vmatpush.bf16.msrb.mxu3 %v1801_v17  ;;  %v1889_v17 = vor.u32 %v2148_v6, %v1886_v7  ;;  %v2017_v19 = vor.u32 %v2180_v12, %v2014_v13  ;;  %v2070_v28 = vld [vmem:[%s2727_s1 + $0x2d8] sm:$0xf0]  ;;  %v2144_v32 = vld [vmem:[%s2727_s1 + $0x144] sm:$0xf]  ;;  %v1870_v33 = vld [vmem:[%s2727_s1 + $0x148] sm:$0xf0] }
  0xe4   : > { %1372 = vmatpush.bf16.msrb.mxu0 %v1981_v23  ;;  %v2081_v23 = vor.u32 %v2196_v15, %v2078_v16  ;;  %v2160_v35 = vld [vmem:[%s2727_s1 + $0x1c4] sm:$0xf]  ;;  %v1998_v38 = vld [vmem:[%s2727_s1 + $0x248] sm:$0xf0]  ;;  %v2142_v43 = vld [vmem:[%s2727_s1 + $0x134] sm:$0xf] }
  0xe5   : > { %1386 = vmatpush.bf16.msrb.mxu1 %v2045_v24  ;;  %v1942_v24 = vld [vmem:[%s2727_s1 + $0x1d8] sm:$0xf0]  ;;  %v2176_v37 = vld [vmem:[%s2727_s1 + $0x244] sm:$0xf]  ;;  %v2062_v39 = vld [vmem:[%s2727_s1 + $0x2c8] sm:$0xf0] }
  0xe6   : > { %1400 = vmatpush.bf16.msrb.mxu2 %v1729_v25  ;;  %v2178_v25 = vld [vmem:[%s2727_s1 + $0x254] sm:$0xf]  ;;  %v1945_v30 = vor.u32 %v2162_v22, %v1942_v24  ;;  %v2001_v42 = vor.u32 %v2176_v37, %v1998_v38  ;;  %v1862_v45 = vld [vmem:[%s2727_s1 + $0x138] sm:$0xf0]  ;;  %v2140_v58 = vld [vmem:[%s2727_s1 + $0x124] sm:$0xf] }
  0xe7   : > { %1414 = vmatpush.bf16.msrb.mxu3 %v1793_v29  ;;  %v1881_v29 = vor.u32 %v2146_v20, %v1878_v21  ;;  %v2009_v31 = vor.u32 %v2178_v25, %v2006_v26  ;;  %v1926_v48 = vld [vmem:[%s2727_s1 + $0x1b8] sm:$0xf0]  ;;  %v2174_v50 = vld [vmem:[%s2727_s1 + $0x234] sm:$0xf]  ;;  %v1918_v62 = vld [vmem:[%s2727_s1 + $0x1a8] sm:$0xf0] }
  0xe8   : > { %1373 = vmatpush.bf16.msrb.mxu0 %v1973_v36  ;;  %v1934_v36 = vld [vmem:[%s2727_s1 + $0x1c8] sm:$0xf0]  ;;  %v1990_v51 = vld [vmem:[%s2727_s1 + $0x238] sm:$0xf0]  ;;  %v2190_v52 = vld [vmem:[%s2727_s1 + $0x2b4] sm:$0xf] }
  0xe9   : > { %1387 = vmatpush.bf16.msrb.mxu1 %v2037_v40  ;;  %v1873_v40 = vor.u32 %v2144_v32, %v1870_v33  ;;  %v2054_v53 = vld [vmem:[%s2727_s1 + $0x2b8] sm:$0xf0]  ;;  %v1993_v57 = vor.u32 %v2174_v50, %v1990_v51  ;;  %v2172_v63 = vld [vmem:[%s2727_s1 + $0x224] sm:$0xf]  ;;  %v2046_v2 = vld [vmem:[%s2727_s1 + $0x2a8] sm:$0xf0] }
  0xea   : > { %1401 = vmatpush.bf16.msrb.mxu2 %v1721_v41  ;;  %v1937_v41 = vor.u32 %v2160_v35, %v1934_v36  ;;  %v2057_v61 = vor.u32 %v2190_v52, %v2054_v53  ;;  %v2138_v6 = vld [vmem:[%s2727_s1 + $0x114] sm:$0xf]  ;;  %v1846_v7 = vld [vmem:[%s2727_s1 + $0x118] sm:$0xf0]  ;;  %v2136_v20 = vld [vmem:[%s2727_s1 + $0x104] sm:$0xf] }
  0xeb   : > { %1415 = vmatpush.bf16.msrb.mxu3 %v1785_v46  ;;  %v2158_v46 = vld [vmem:[%s2727_s1 + $0x1b4] sm:$0xf]  ;;  %v1910_v11 = vld [vmem:[%s2727_s1 + $0x198] sm:$0xf0]  ;;  %v1838_v21 = vld [vmem:[%s2727_s1 + $0x108] sm:$0xf0] }
  0xec   : > { %1374 = vmatpush.bf16.msrb.mxu0 %v1965_v54  ;;  %v1865_v54 = vor.u32 %v2142_v43, %v1862_v45  ;;  %v1929_v55 = vor.u32 %v2158_v46, %v1926_v48  ;;  %v2154_v8 = vld [vmem:[%s2727_s1 + $0x194] sm:$0xf]  ;;  %v1974_v13 = vld [vmem:[%s2727_s1 + $0x218] sm:$0xf0]  ;;  %v2152_v22 = vld [vmem:[%s2727_s1 + $0x184] sm:$0xf] }
  0xed   : > { %1388 = vmatpush.bf16.msrb.mxu1 %v2029_v59  ;;  %v1854_v59 = vld [vmem:[%s2727_s1 + $0x128] sm:$0xf0]  ;;  %v2170_v12 = vld [vmem:[%s2727_s1 + $0x214] sm:$0xf]  ;;  %v2038_v16 = vld [vmem:[%s2727_s1 + $0x298] sm:$0xf0] }
  0xee   : > { %1402 = vmatpush.bf16.msrb.mxu2 %v1713_v60  ;;  %v2156_v60 = vld [vmem:[%s2727_s1 + $0x1a4] sm:$0xf]  ;;  %v1857_v3 = vor.u32 %v2140_v58, %v1854_v59  ;;  %v2186_v15 = vld [vmem:[%s2727_s1 + $0x294] sm:$0xf]  ;;  %v1902_v24 = vld [vmem:[%s2727_s1 + $0x188] sm:$0xf0] }
  0xef   : > { %1416 = vmatpush.bf16.msrb.mxu3 %v1777_v0  ;;  %1375 = vmatmul.bf16.vlgmr.msrb.gmra.mxu0 %v2895_v10  ;;  %v1982_v0 = vld [vmem:[%s2727_s1 + $0x228] sm:$0xf0]  ;;  %v2168_v25 = vld [vmem:[%s2727_s1 + $0x204] sm:$0xf]  ;;  %v695_v46 = vld [vmem:[#allocation2 + $0x10] sm:$0xff] }
  0xf0   : > { %1423 = vmatpush.bf16.msra.mxu0 %v1897_v1  ;;  %1389 = vmatmul.bf16.vlgmr.msrb.gmra.mxu1 %v2900_v14  ;;  %v2188_v1 = vld [vmem:[%s2727_s1 + $0x2a4] sm:$0xf]  ;;  %v1966_v26 = vld [vmem:[%s2727_s1 + $0x208] sm:$0xf0]  ;;  %v697_v53 = vld [vmem:[#allocation2 + $0x18] sm:$0xff] }
  0xf1   : > { %1437 = vmatpush.bf16.msra.mxu1 %v1961_v4  ;;  %1403 = vmatmul.bf16.vlgmr.msrb.gmra.mxu2 %v2818_v34  ;;  %v2073_v34 = vor.u32 %v2194_v27, %v2070_v28  ;;  %v1921_v4 = vor.u32 %v2156_v60, %v1918_v62  ;;  %v2184_v27 = vld [vmem:[%s2727_s1 + $0x284] sm:$0xf]  ;;  %v2030_v28 = vld [vmem:[%s2727_s1 + $0x288] sm:$0xf0] }
  0xf2   : > { %1451 = vmatpush.bf16.msra.mxu2 %v2025_v5  ;;  %1417 = vmatmul.bf16.vlgmr.msrb.gmra.mxu3 %v2827_v44  ;;  %v2192_v44 = vld [vmem:[%s2727_s1 + $0x2c4] sm:$0xf]  ;;  %v1985_v5 = vor.u32 %v2172_v63, %v1982_v0  ;;  %v2033_v32 = vor.u32 %v2184_v27, %v2030_v28 }
  0xf3   : > { %1465 = vmatpush.bf16.msra.mxu3 %v2089_v9  ;;  %v2065_v47 = vor.u32 %v2192_v44, %v2062_v39  ;;  %v2049_v9 = vor.u32 %v2188_v1, %v2046_v2 }
  0xf4   : > { %1424 = vmatpush.bf16.msra.mxu0 %v1889_v17  ;;  %v1849_v17 = vor.u32 %v2138_v6, %v1846_v7  ;;  %v696_v7 = vld [vmem:[#allocation2] sm:$0xff] }
  0xf5   : > { %1438 = vmatpush.bf16.msra.mxu1 %v1953_v18  ;;  %v1913_v18 = vor.u32 %v2154_v8, %v1910_v11 }
  0xf6   : > { %1452 = vmatpush.bf16.msra.mxu2 %v2017_v19  ;;  %v1977_v19 = vor.u32 %v2170_v12, %v1974_v13 }
  0xf7   : > { %1466 = vmatpush.bf16.msra.mxu3 %v2081_v23  ;;  %v2041_v23 = vor.u32 %v2186_v15, %v2038_v16 }
  0xf8   : > { %1425 = vmatpush.bf16.msra.mxu0 %v1881_v29  ;;  %v1841_v29 = vor.u32 %v2136_v20, %v1838_v21 }
  0xf9   : > { %1439 = vmatpush.bf16.msra.mxu1 %v1945_v30  ;;  %v1905_v30 = vor.u32 %v2152_v22, %v1902_v24 }
  0xfa   : > { %1453 = vmatpush.bf16.msra.mxu2 %v2009_v31  ;;  %v1969_v31 = vor.u32 %v2168_v25, %v1966_v26 }
  0xfb   : > { %1467 = vmatpush.bf16.msra.mxu3 %v2073_v34 }
  0xfc   : > { %1426 = vmatpush.bf16.msra.mxu0 %v1873_v40 }
  0xfd   : > { %1440 = vmatpush.bf16.msra.mxu1 %v1937_v41 }
  0xfe   : > { %1454 = vmatpush.bf16.msra.mxu2 %v2001_v42 }
  0xff   : > { %1468 = vmatpush.bf16.msra.mxu3 %v2065_v47 }
 0x100   : > { %1427 = vmatpush.bf16.msra.mxu0 %v1865_v54 }
 0x101   : > { %1441 = vmatpush.bf16.msra.mxu1 %v1929_v55 }
 0x102   : > { %1455 = vmatpush.bf16.msra.mxu2 %v1993_v57 }
 0x103   : > { %1469 = vmatpush.bf16.msra.mxu3 %v2057_v61 }
 0x104   : > { %1428 = vmatpush.bf16.msra.mxu0 %v1857_v3 }
 0x105   : > { %1442 = vmatpush.bf16.msra.mxu1 %v1921_v4 }
 0x106   : > { %1456 = vmatpush.bf16.msra.mxu2 %v1985_v5 }
 0x107   : > { %1470 = vmatpush.bf16.msra.mxu3 %v2049_v9 }
 0x108   : > { %1429 = vmatpush.bf16.msra.mxu0 %v1849_v17  ;;  %v698_v17 = vld [vmem:[#allocation2 + $0x8] sm:$0xff] }
 0x109   : > { %1443 = vmatpush.bf16.msra.mxu1 %v1913_v18 }
 0x10a   : > { %1457 = vmatpush.bf16.msra.mxu2 %v1977_v19 }
 0x10b   : > { %1471 = vmatpush.bf16.msra.mxu3 %v2041_v23 }
 0x10c   : > { %1430 = vmatpush.bf16.msra.mxu0 %v1841_v29 }
 0x10d   : > { %1444 = vmatpush.bf16.msra.mxu1 %v1905_v30 }
 0x10e   : > { %1458 = vmatpush.bf16.msra.mxu2 %v1969_v31 }
 0x10f   : > { %1472 = vmatpush.bf16.msra.mxu3 %v2033_v32  ;;  %1431 = vmatmul.bf16.vlgmr.msra.gmra.mxu0 %v2832_v49 }
 0x110   : > { %1445 = vmatmul.bf16.vlgmr.msra.gmra.mxu1 %v2838_v56 }
 0x111   : > { %1459 = vmatmul.bf16.vlgmr.msra.gmra.mxu2 %v2895_v10 }
 0x112   : > { %1473 = vmatmul.bf16.vlgmr.msra.gmra.mxu3 %v2900_v14 }
 0x14c   : > { %v1320_v33 = vpop.f32.mrf.mxu0 }
 0x14d   : > { %v1334_v35 = vpop.f32.mrf.mxu1 }
 0x14e   : > { %v1335_v34 = vadd.f32 %v1334_v35, %v1320_v33 }
 0x154   : > { %v1322_v36 = vpop.f32.mrf.mxu0  ;;  %v1348_v37 = vpop.f32.mrf.mxu2 }
 0x155   : > { %v1336_v38 = vpop.f32.mrf.mxu1  ;;  %v1349_v44 = vadd.f32 %v1348_v37, %v1335_v34  ;;  %v1362_v39 = vpop.f32.mrf.mxu3 }
 0x156   : > { %v1337_v41 = vadd.f32 %v1336_v38, %v1322_v36 }
 0x157   : > { %v1363_v40 = vadd.f32 %v1362_v39, %v1349_v44 }
 0x15c   : > { %v1350_v43 = vpop.f32.mrf.mxu2 }
 0x15d   : > { %v1351_v56 = vadd.f32 %v1350_v43, %v1337_v41  ;;  %v1364_v10 = vpop.f32.mrf.mxu3 }
 0x15f   : > { %v1365_v14 = vadd.f32 %v1364_v10, %v1351_v56 }
 0x16c   : > { %v1376_v42 = vpop.f32.mrf.mxu0 }
 0x16d   : > { %v1377_v45 = vadd.f32 %v1376_v42, %v1363_v40  ;;  %v1390_v49 = vpop.f32.mrf.mxu1 }
 0x16f   : > { %v1391_v47 = vadd.f32 %v1390_v49, %v1377_v45 }
 0x171   : > { %v1479_v48 = vadd.f32 %v1391_v47, %v695_v46 }
 0x173   : > { %1483 = vst [vmem:[#allocation2 + $0x10] sm:$0xff] %v1479_v48 }
 0x174   : > { %v1378_v50 = vpop.f32.mrf.mxu0  ;;  %v1404_v57 = vpop.f32.mrf.mxu2 }
 0x175   : > { %v1379_v51 = vadd.f32 %v1378_v50, %v1365_v14  ;;  %v1392_v52 = vpop.f32.mrf.mxu1  ;;  %v1418_v58 = vpop.f32.mrf.mxu3 }
 0x176   : > { %v1419_v60 = vadd.f32 %v1418_v58, %v1404_v57 }
 0x177   : > { %v1393_v54 = vadd.f32 %v1392_v52, %v1379_v51 }
 0x179   : > { %v1481_v55 = vadd.f32 %v1393_v54, %v697_v53 }
 0x17b   : > { %1485 = vst [vmem:[#allocation2 + $0x18] sm:$0xff] %v1481_v55 }
 0x17c   : > { %v1406_v59 = vpop.f32.mrf.mxu2 }
 0x17d   : > { %v1420_v61 = vpop.f32.mrf.mxu3 }
 0x17e   : > { %v1421_v3 = vadd.f32 %v1420_v61, %v1406_v59 }
 0x18c   : > { %v1432_v62 = vpop.f32.mrf.mxu0 }
 0x18d   : > { %v1433_v63 = vadd.f32 %v1432_v62, %v1419_v60  ;;  %v1446_v0 = vpop.f32.mrf.mxu1 }
 0x18f   : > { %v1447_v1 = vadd.f32 %v1446_v0, %v1433_v63 }
 0x194   : > { %v1460_v2 = vpop.f32.mrf.mxu2  ;;  %v1434_v6 = vpop.f32.mrf.mxu0 }
 0x195   : > { %v1461_v4 = vadd.f32 %v1460_v2, %v1447_v1  ;;  %v1474_v5 = vpop.f32.mrf.mxu3  ;;  %v1435_v9 = vadd.f32 %v1434_v6, %v1421_v3  ;;  %v1448_v12 = vpop.f32.mrf.mxu1 }
 0x197   : > { %v1475_v8 = vadd.f32 %v1474_v5, %v1461_v4  ;;  %v1449_v13 = vadd.f32 %v1448_v12, %v1435_v9 }
 0x199   : > { %v1480_v11 = vadd.f32 %v1475_v8, %v696_v7 }
 0x19b   : > { %1484 = vst [vmem:[#allocation2] sm:$0xff] %v1480_v11 }
 0x19c   : > { %v1462_v15 = vpop.f32.mrf.mxu2 }
 0x19d   : > { %v1463_v16 = vadd.f32 %v1462_v15, %v1449_v13  ;;  %v1476_v18 = vpop.f32.mrf.mxu3 }
 0x19f   : > { %v1477_v19 = vadd.f32 %v1476_v18, %v1463_v16  ;;  %1490 = sbr.rel (%p2090_p5) target bundleno = 434 (0x1b2), region = 101 }
 0x1a1   : > { %v1482_v20 = vadd.f32 %v1477_v19, %v698_v17 }
 0x1a3   : > { %1486 = vst [vmem:[#allocation2 + $0x8] sm:$0xff] %v1482_v20 }
 0x1a4   : > { %v1491_v21 = vld [vmem:[#allocation2 + $0x10] sm:$0xff]  ;;  %v1492_v22 = vld [vmem:[#allocation2] sm:$0xff]  ;;  %v1493_v26 = vld [vmem:[#allocation2 + $0x18] sm:$0xff] }
 0x1a5   : > { %v1495_v23 = vld [vmem:[%s683_s5] sm:$0x3] }
 0x1a6   : > { %v1497_v24 = vperm.slane %v1495_v23, 0  ;;  %v1498_v25 = vperm.slane %v1495_v23, 1 }
 0x1a8   : > { %v1501_v28 = vadd.f32 %v1497_v24, %v1491_v21  ;;  %v1502_v29 = vadd.f32 %v1498_v25, %v1492_v22  ;;  %v1503_v30 = vadd.f32 %v1497_v24, %v1493_v26 }
 0x1aa   : > { %v1494_v27 = vld [vmem:[#allocation2 + $0x8] sm:$0xff]  ;;  %v1505_v32 = vmax.f32 %v1501_v28, 0.0  ;;  %v1506_v33 = vmax.f32 %v1502_v29, 0.0  ;;  %v1507_v35 = vmax.f32 %v1503_v30, 0.0 }
 0x1ab   : > { %v1504_v31 = vadd.f32 %v1498_v25, %v1494_v27 }
 0x1ac   : > { %v1509_v36 = vpack.c.bf16 %v1506_v33, %v1505_v32 }
 0x1ad   : > { %v1508_v34 = vmax.f32 %v1504_v31, 0.0 }
 0x1ae   : > { %1511 = vst [vmem:[%s2729_s25] sm:$0xff] %v1509_v36 }
 0x1af   : > { %v1510_v37 = vpack.c.bf16 %v1508_v34, %v1507_v35 }
 0x1b1   : > { %1512 = vst [vmem:[%s2729_s25 + $0x8] sm:$0xff] %v1510_v37 }
 0x1b2 PF: > { %1519 = sbr.rel (!%p2497_p12) target bundleno = 442 (0x1ba), region = 105  ;;  %s2200_s14 = sshll.u32 (%p2497_p12), %s2368_s19, 3 }
 0x1b3   : > { %s1525_s0 = scalar_lea.vmem (%p2497_p12), %s3012_s3, %s2200_s14 }
 0x1b5   : > { %v1556_v38 = vld [vmem:[%s2729_s25] sm:$0xff] (%p2497_p12) }
 0x1b6   : > { %1557 = vst [vmem:[%s1525_s0] sm:$0xff] (%p2497_p12), %v1556_v38 }
 0x1b8   : > { %v1558_v44 = vld [vmem:[%s2729_s25 + $0x8] sm:$0xff] }
 0x1b9   : > { %1559 = vst [vmem:[%s1525_s0 + $0x10] sm:$0xff] %v1558_v44 }
 0x1ba PF: > { %s13_s22 = sadd.s32 1, %s2380_s22   ;;  %s3022_s25 = sld [smem:[#allocation6_spill]] }
 0x1bb   : > { %p10_p6 = scmp.ge.s32.totalorder %s13_s22, 8   ;;  %s3023_s12 = smov %s2344_s13 }
 0x1bc   : > { %s3024_s13 = smov %s2495_s9  ;;  %s3025_s14 = smov %s2352_s15 }
 0x1bd   : > { %s3026_s15 = smov %s2492_s8  ;;  %s3027_s16 = smov %s2360_s17 }
 0x1be   : > { %s3028_s17 = smov %s2478_s30  ;;  %s3029_s18 = smov %s2372_s20 }
 0x1bf   : > { %s3030_s19 = smov %s2376_s21  ;;  %s3031_s20 = smov %s3034_s24 }
 0x1c0   : > { %s3032_s21 = smov %s3022_s25  ;;  %12 = sbr.rel (!%p10_p6) target bundleno = 9 (0x9), region = 185 }

// kernel: _lambda_.26
= control target key start
LH: loop header
LB: loop body
LE: loop exit
PB: predicated region body
PF: predicated region fallthrough
CT: control target
= control target key end

     0   :  { %s1159_s12 = smov 0   ;;  %s1161_s13 = smov 0   ;;  %s1385_s0 = inlined_call_operand.vmem [shape: bf16[16,256], index: 0, kind: input, shape index: {}]   ;;  %s1386_s1 = inlined_call_operand.vmem [shape: bf16[256,512], index: 1, kind: input, shape index: {}]   ;;  %s1387_s2 = inlined_call_operand.vmem [shape: f32[1,512], index: 2, kind: input, shape index: {}]   ;;  %s1388_s3 = inlined_call_operand.vmem [shape: bf16[16,512], index: 3, kind: output, shape index: {}]  }
   0x1   :  { %s1163_s14 = smov 0   ;;  %s1165_s15 = smov 0  }
   0x2   :  { %s1167_s16 = smov 0  }
   0x3 LB: > { %s28_s17 = sadd.s32 1, %s1133_s15  ;;  %s870_s18 = sadd.s32 4294967295, %s1137_s16   ;;  %s1137_s16 = sphi %s1167_s16, %s13_s16   ;;  %s1133_s15 = sphi %s1165_s15, %s1393_s15   ;;  %s1129_s14 = sphi %s1163_s14, %s1392_s14   ;;  %s1125_s13 = sphi %s1161_s13, %s1391_s13   ;;  %s1121_s12 = sphi %s1159_s12, %s1390_s12  }
   0x4   : > { %p30_p0 = scmp.ge.s32.totalorder %s28_s17, 2  ;;  %p76_p1 = scmp.ne.s32.totalorder %s1125_s13, %s1121_s12 }
   0x5   : > { %p77_p2 = scmp.eq.s32.totalorder %s1137_s16, 0  ;;  %p134_p4 = scmp.eq.s32.totalorder %s870_s18, 1 }
   0x6   : > { %s1395_s17 = smov (%p30_p0, %s28_s17), 0  ;;  %s69_s20 = sadd.s32 1, %s1125_s13 }
   0x7   : > { %p78_p3 = por %p77_p2, %p76_p1  ;;  %s65_s19 = ssub.s32 %s1133_s15, %s1395_s17 }
   0x8   : > { %p67_p5 = scmp.eq.s32.totalorder %s65_s19, 0  ;;  %p1194_p6 = por %p134_p4, %p76_p1 }
   0x9   : > { %p874_p7 = scmp.ge.s32.totalorder %s1137_s16, 2 }
   0xa   : > { %s1199_s22 = scalar_select %p67_p5, %s1125_s13, %s69_s20  }
   0xb   : > { %171 = sbr.rel (%p874_p7) target bundleno = 52 (0x34), region = 20 }
  0x10   : > { %174 = sbr.rel (!%p78_p3) target bundleno = 52 (0x34), region = 24  ;;  %s176_s23 = sand.u32 (%p78_p3), 1, %s1125_s13  }
  0x11   : > { %s1023_s24 = sshll.u32 (%p78_p3), %s1133_s15, 3  ;;  %s875_s25 = sshll.u32 (%p78_p3), %s176_s23, 8 }
  0x12   : > { %s1207_s28 = scalar_lea.vmem (%p78_p3), %s1386_s1, %s1023_s24  ;;  %s1212_s29 = scalar_lea.vmem (%p78_p3), [#allocation3], %s875_s25 }
  0x13   : > { %v275_v0 = vld [vmem:[%s1207_s28] sm:$0xff] (%p78_p3)  ;;  %v277_v1 = vld [vmem:[%s1207_s28 + $0x10] sm:$0xff] (%p78_p3) }
  0x14   : > { %v279_v2 = vld [vmem:[%s1207_s28 + $0x20] sm:$0xff] (%p78_p3)  ;;  %276 = vst [vmem:[%s1212_s29] sm:$0xff] (%p78_p3), %v275_v0  ;;  %v281_v3 = vld [vmem:[%s1207_s28 + $0x30] sm:$0xff] (%p78_p3) }
  0x15   : > { %278 = vst [vmem:[%s1212_s29 + $0x8] sm:$0xff] %v277_v1  ;;  %v283_v4 = vld [vmem:[%s1207_s28 + $0x40] sm:$0xff]  ;;  %v285_v5 = vld [vmem:[%s1207_s28 + $0x50] sm:$0xff] }
  0x16   : > { %280 = vst [vmem:[%s1212_s29 + $0x10] sm:$0xff] %v279_v2  ;;  %v287_v6 = vld [vmem:[%s1207_s28 + $0x60] sm:$0xff]  ;;  %v289_v7 = vld [vmem:[%s1207_s28 + $0x70] sm:$0xff] }
  0x17   : > { %282 = vst [vmem:[%s1212_s29 + $0x18] sm:$0xff] %v281_v3  ;;  %v291_v8 = vld [vmem:[%s1207_s28 + $0x80] sm:$0xff]  ;;  %v293_v9 = vld [vmem:[%s1207_s28 + $0x90] sm:$0xff] }
  0x18   : > { %284 = vst [vmem:[%s1212_s29 + $0x20] sm:$0xff] %v283_v4  ;;  %v295_v10 = vld [vmem:[%s1207_s28 + $0xa0] sm:$0xff]  ;;  %v297_v11 = vld [vmem:[%s1207_s28 + $0xb0] sm:$0xff] }
  0x19   : > { %286 = vst [vmem:[%s1212_s29 + $0x28] sm:$0xff] %v285_v5  ;;  %v299_v12 = vld [vmem:[%s1207_s28 + $0xc0] sm:$0xff]  ;;  %v301_v13 = vld [vmem:[%s1207_s28 + $0xd0] sm:$0xff] }
  0x1a   : > { %288 = vst [vmem:[%s1212_s29 + $0x30] sm:$0xff] %v287_v6  ;;  %v303_v14 = vld [vmem:[%s1207_s28 + $0xe0] sm:$0xff]  ;;  %v305_v15 = vld [vmem:[%s1207_s28 + $0xf0] sm:$0xff] }
  0x1b   : > { %290 = vst [vmem:[%s1212_s29 + $0x38] sm:$0xff] %v289_v7  ;;  %v307_v16 = vld [vmem:[%s1207_s28 + $0x100] sm:$0xff]  ;;  %v309_v17 = vld [vmem:[%s1207_s28 + $0x110] sm:$0xff] }
  0x1c   : > { %292 = vst [vmem:[%s1212_s29 + $0x40] sm:$0xff] %v291_v8  ;;  %v311_v18 = vld [vmem:[%s1207_s28 + $0x120] sm:$0xff]  ;;  %v313_v19 = vld [vmem:[%s1207_s28 + $0x130] sm:$0xff] }
  0x1d   : > { %294 = vst [vmem:[%s1212_s29 + $0x48] sm:$0xff] %v293_v9  ;;  %v315_v20 = vld [vmem:[%s1207_s28 + $0x140] sm:$0xff]  ;;  %v317_v21 = vld [vmem:[%s1207_s28 + $0x150] sm:$0xff] }
  0x1e   : > { %296 = vst [vmem:[%s1212_s29 + $0x50] sm:$0xff] %v295_v10  ;;  %v319_v22 = vld [vmem:[%s1207_s28 + $0x160] sm:$0xff]  ;;  %v321_v23 = vld [vmem:[%s1207_s28 + $0x170] sm:$0xff] }
  0x1f   : > { %298 = vst [vmem:[%s1212_s29 + $0x58] sm:$0xff] %v297_v11  ;;  %v323_v24 = vld [vmem:[%s1207_s28 + $0x180] sm:$0xff]  ;;  %v325_v25 = vld [vmem:[%s1207_s28 + $0x190] sm:$0xff] }
  0x20   : > { %300 = vst [vmem:[%s1212_s29 + $0x60] sm:$0xff] %v299_v12  ;;  %v327_v26 = vld [vmem:[%s1207_s28 + $0x1a0] sm:$0xff]  ;;  %v329_v27 = vld [vmem:[%s1207_s28 + $0x1b0] sm:$0xff] }
  0x21   : > { %302 = vst [vmem:[%s1212_s29 + $0x68] sm:$0xff] %v301_v13  ;;  %v331_v28 = vld [vmem:[%s1207_s28 + $0x1c0] sm:$0xff]  ;;  %v333_v29 = vld [vmem:[%s1207_s28 + $0x1d0] sm:$0xff] }
  0x22   : > { %304 = vst [vmem:[%s1212_s29 + $0x70] sm:$0xff] %v303_v14  ;;  %v335_v30 = vld [vmem:[%s1207_s28 + $0x1e0] sm:$0xff]  ;;  %v337_v31 = vld [vmem:[%s1207_s28 + $0x1f0] sm:$0xff] }
  0x23   : > { %306 = vst [vmem:[%s1212_s29 + $0x78] sm:$0xff] %v305_v15 }
  0x24   : > { %308 = vst [vmem:[%s1212_s29 + $0x80] sm:$0xff] %v307_v16 }
  0x25   : > { %310 = vst [vmem:[%s1212_s29 + $0x88] sm:$0xff] %v309_v17 }
  0x26   : > { %312 = vst [vmem:[%s1212_s29 + $0x90] sm:$0xff] %v311_v18 }
  0x27   : > { %314 = vst [vmem:[%s1212_s29 + $0x98] sm:$0xff] %v313_v19 }
  0x28   : > { %316 = vst [vmem:[%s1212_s29 + $0xa0] sm:$0xff] %v315_v20 }
  0x29   : > { %318 = vst [vmem:[%s1212_s29 + $0xa8] sm:$0xff] %v317_v21 }
  0x2a   : > { %320 = vst [vmem:[%s1212_s29 + $0xb0] sm:$0xff] %v319_v22 }
  0x2b   : > { %322 = vst [vmem:[%s1212_s29 + $0xb8] sm:$0xff] %v321_v23 }
  0x2c   : > { %324 = vst [vmem:[%s1212_s29 + $0xc0] sm:$0xff] %v323_v24 }
  0x2d   : > { %326 = vst [vmem:[%s1212_s29 + $0xc8] sm:$0xff] %v325_v25 }
  0x2e   : > { %328 = vst [vmem:[%s1212_s29 + $0xd0] sm:$0xff] %v327_v26 }
  0x2f   : > { %330 = vst [vmem:[%s1212_s29 + $0xd8] sm:$0xff] %v329_v27 }
  0x30   : > { %332 = vst [vmem:[%s1212_s29 + $0xe0] sm:$0xff] %v331_v28 }
  0x31   : > { %334 = vst [vmem:[%s1212_s29 + $0xe8] sm:$0xff] %v333_v29 }
  0x32   : > { %336 = vst [vmem:[%s1212_s29 + $0xf0] sm:$0xff] %v335_v30 }
  0x33   : > { %338 = vst [vmem:[%s1212_s29 + $0xf8] sm:$0xff] %v337_v31 }
  0x34 PF: > { %p878_p8 = scmp.ge.s32.totalorder %s1137_s16, 1  ;;  %p351_p9 = scmp.lt.s32.totalorder %s1137_s16, 3 }
  0x36   : > { %p352_p10 = pnand %p878_p8, %p351_p9 }
  0x37   : > { %s358_s30 = sand.u32 (!%p352_p10), 1, %s1121_s12   ;;  %s881_s20 = sshll.u32 (!%p352_p10), %s1129_s14, 1 }
  0x38   : > { %355 = sbr.rel (%p352_p10) target bundleno = 252 (0xfc), region = 66  ;;  %s879_s4 = sshll.u32 (!%p352_p10), %s358_s30, 8 }
  0x39   : > { %s1280_s5 = scalar_lea.vmem (!%p352_p10), [#allocation3], %s879_s4  ;;  %p409_p11 = scmp.lt.s32.totalorder (!%p352_p10), %s881_s20, 3 }
  0x3a   : > { %s880_s26 = sshll.u32 (!%p352_p10), %s358_s30, 4 }
  0x3b   : > { %s393_s27 = scalar_lea.vmem (!%p352_p10), [#allocation4], %s880_s26 }
  0x3d   : > { %v948_v32 = vld [vmem:[%s1280_s5 + $0x70] sm:$0xf]  ;;  %v1041_v33 = vld [vmem:[%s1280_s5 + $0x74] sm:$0xf0]  ;;  %v1040_v37 = vld [vmem:[%s1280_s5 + $0x74] sm:$0xf] }
  0x3e   : > { %v1012_v34 = vld [vmem:[%s1280_s5 + $0xf0] sm:$0xf]  ;;  %v949_v35 = vor.u32 %v1041_v33, %v948_v32  ;;  %v1057_v36 = vld [vmem:[%s1280_s5 + $0xf4] sm:$0xf0]  ;;  %v950_v38 = vld [vmem:[%s1280_s5 + $0x78] sm:$0xf0] }
  0x3f   : > { %v1013_v39 = vor.u32 %v1057_v36, %v1012_v34  ;;  %v953_v40 = vor.u32 %v1040_v37, %v950_v38  ;;  %v1056_v41 = vld [vmem:[%s1280_s5 + $0xf4] sm:$0xf]  ;;  %v1014_v42 = vld [vmem:[%s1280_s5 + $0xf8] sm:$0xf0]  ;;  %v940_v43 = vld [vmem:[%s1280_s5 + $0x60] sm:$0xf] }
  0x40   : > { %631 = vmatpush.bf16.msra.mxu0 %v949_v35  ;;  %v1017_v44 = vor.u32 %v1056_v41, %v1014_v42  ;;  %v1039_v45 = vld [vmem:[%s1280_s5 + $0x64] sm:$0xf0]  ;;  %v1004_v46 = vld [vmem:[%s1280_s5 + $0xe0] sm:$0xf]  ;;  %v1038_v50 = vld [vmem:[%s1280_s5 + $0x64] sm:$0xf] }
  0x41   : > { %v1055_v47 = vld [vmem:[%s1280_s5 + $0xe4] sm:$0xf0]  ;;  %645 = vmatpush.bf16.msra.mxu1 %v1013_v39  ;;  %659 = vmatpush.bf16.msra.mxu2 %v953_v40  ;;  %v941_v48 = vor.u32 %v1039_v45, %v940_v43  ;;  %v942_v51 = vld [vmem:[%s1280_s5 + $0x68] sm:$0xf0]  ;;  %v1054_v52 = vld [vmem:[%s1280_s5 + $0xe4] sm:$0xf] }
  0x42   : > { %v1005_v49 = vor.u32 %v1055_v47, %v1004_v46  ;;  %673 = vmatpush.bf16.msra.mxu3 %v1017_v44  ;;  %v945_v53 = vor.u32 %v1038_v50, %v942_v51  ;;  %v1006_v54 = vld [vmem:[%s1280_s5 + $0xe8] sm:$0xf0]  ;;  %v932_v55 = vld [vmem:[%s1280_s5 + $0x50] sm:$0xf]  ;;  %v1037_v56 = vld [vmem:[%s1280_s5 + $0x54] sm:$0xf0] }
  0x43   : > { %v1009_v57 = vor.u32 %v1054_v52, %v1006_v54  ;;  %v996_v58 = vld [vmem:[%s1280_s5 + $0xd0] sm:$0xf]  ;;  %v1053_v59 = vld [vmem:[%s1280_s5 + $0xd4] sm:$0xf0]  ;;  %v1036_v60 = vld [vmem:[%s1280_s5 + $0x54] sm:$0xf]  ;;  %v933_v61 = vor.u32 %v1037_v56, %v932_v55 }
  0x44   : > { %632 = vmatpush.bf16.msra.mxu0 %v941_v48  ;;  %v934_v62 = vld [vmem:[%s1280_s5 + $0x58] sm:$0xf0]  ;;  %v1052_v63 = vld [vmem:[%s1280_s5 + $0xd4] sm:$0xf]  ;;  %v997_v1 = vor.u32 %v1053_v59, %v996_v58  ;;  %v924_v3 = vld [vmem:[%s1280_s5 + $0x40] sm:$0xf] }
  0x45   : > { %v998_v0 = vld [vmem:[%s1280_s5 + $0xd8] sm:$0xf0]  ;;  %646 = vmatpush.bf16.msra.mxu1 %v1005_v49  ;;  %660 = vmatpush.bf16.msra.mxu2 %v945_v53  ;;  %v937_v2 = vor.u32 %v1036_v60, %v934_v62  ;;  %v1035_v4 = vld [vmem:[%s1280_s5 + $0x44] sm:$0xf0]  ;;  %v988_v5 = vld [vmem:[%s1280_s5 + $0xc0] sm:$0xf] }
  0x46   : > { %674 = vmatpush.bf16.msra.mxu3 %v1009_v57  ;;  %v1001_v6 = vor.u32 %v1052_v63, %v998_v0  ;;  %v1051_v7 = vld [vmem:[%s1280_s5 + $0xc4] sm:$0xf0]  ;;  %v1034_v8 = vld [vmem:[%s1280_s5 + $0x44] sm:$0xf]  ;;  %v926_v9 = vld [vmem:[%s1280_s5 + $0x48] sm:$0xf0]  ;;  %v925_v12 = vor.u32 %v1035_v4, %v924_v3 }
  0x47   : > { %v1050_v10 = vld [vmem:[%s1280_s5 + $0xc4] sm:$0xf]  ;;  %v990_v11 = vld [vmem:[%s1280_s5 + $0xc8] sm:$0xf0]  ;;  %v989_v13 = vor.u32 %v1051_v7, %v988_v5  ;;  %v929_v14 = vor.u32 %v1034_v8, %v926_v9  ;;  %v916_v15 = vld [vmem:[%s1280_s5 + $0x30] sm:$0xf] }
  0x48   : > { %633 = vmatpush.bf16.msra.mxu0 %v933_v61  ;;  %v1033_v16 = vld [vmem:[%s1280_s5 + $0x34] sm:$0xf0]  ;;  %v980_v17 = vld [vmem:[%s1280_s5 + $0xb0] sm:$0xf]  ;;  %v993_v18 = vor.u32 %v1050_v10, %v990_v11  ;;  %v1032_v20 = vld [vmem:[%s1280_s5 + $0x34] sm:$0xf] }
  0x49   : > { %647 = vmatpush.bf16.msra.mxu1 %v997_v1  ;;  %661 = vmatpush.bf16.msra.mxu2 %v937_v2  ;;  %v1049_v19 = vld [vmem:[%s1280_s5 + $0xb4] sm:$0xf0]  ;;  %v918_v21 = vld [vmem:[%s1280_s5 + $0x38] sm:$0xf0]  ;;  %v1048_v22 = vld [vmem:[%s1280_s5 + $0xb4] sm:$0xf]  ;;  %v917_v24 = vor.u32 %v1033_v16, %v916_v15 }
  0x4a   : > { %675 = vmatpush.bf16.msra.mxu3 %v1001_v6  ;;  %v982_v23 = vld [vmem:[%s1280_s5 + $0xb8] sm:$0xf0]  ;;  %v981_v25 = vor.u32 %v1049_v19, %v980_v17  ;;  %v921_v26 = vor.u32 %v1032_v20, %v918_v21  ;;  %v908_v27 = vld [vmem:[%s1280_s5 + $0x20] sm:$0xf]  ;;  %v1031_v28 = vld [vmem:[%s1280_s5 + $0x24] sm:$0xf0] }
  0x4b   : > { %v972_v29 = vld [vmem:[%s1280_s5 + $0xa0] sm:$0xf]  ;;  %v985_v30 = vor.u32 %v1048_v22, %v982_v23  ;;  %v1047_v31 = vld [vmem:[%s1280_s5 + $0xa4] sm:$0xf0]  ;;  %v1030_v32 = vld [vmem:[%s1280_s5 + $0x24] sm:$0xf]  ;;  %v909_v36 = vor.u32 %v1031_v28, %v908_v27 }
  0x4c   : > { %634 = vmatpush.bf16.msra.mxu0 %v925_v12  ;;  %v910_v33 = vld [vmem:[%s1280_s5 + $0x28] sm:$0xf0]  ;;  %v1046_v34 = vld [vmem:[%s1280_s5 + $0xa4] sm:$0xf]  ;;  %v973_v37 = vor.u32 %v1047_v31, %v972_v29  ;;  %v900_v39 = vld [vmem:[%s1280_s5 + $0x10] sm:$0xf] }
  0x4d   : > { %648 = vmatpush.bf16.msra.mxu1 %v989_v13  ;;  %662 = vmatpush.bf16.msra.mxu2 %v929_v14  ;;  %v974_v35 = vld [vmem:[%s1280_s5 + $0xa8] sm:$0xf0]  ;;  %v913_v38 = vor.u32 %v1030_v32, %v910_v33  ;;  %v1029_v40 = vld [vmem:[%s1280_s5 + $0x14] sm:$0xf0]  ;;  %v964_v41 = vld [vmem:[%s1280_s5 + $0x90] sm:$0xf] }
  0x4e   : > { %676 = vmatpush.bf16.msra.mxu3 %v993_v18  ;;  %v977_v42 = vor.u32 %v1046_v34, %v974_v35  ;;  %v1045_v43 = vld [vmem:[%s1280_s5 + $0x94] sm:$0xf0]  ;;  %v1028_v44 = vld [vmem:[%s1280_s5 + $0x14] sm:$0xf]  ;;  %v902_v45 = vld [vmem:[%s1280_s5 + $0x18] sm:$0xf0]  ;;  %v901_v48 = vor.u32 %v1029_v40, %v900_v39 }
  0x4f   : > { %v1044_v46 = vld [vmem:[%s1280_s5 + $0x94] sm:$0xf]  ;;  %v966_v47 = vld [vmem:[%s1280_s5 + $0x98] sm:$0xf0]  ;;  %v965_v49 = vor.u32 %v1045_v43, %v964_v41  ;;  %v905_v50 = vor.u32 %v1028_v44, %v902_v45  ;;  %v892_v51 = vld [vmem:[%s1280_s5] sm:$0xf] }
  0x50   : > { %635 = vmatpush.bf16.msra.mxu0 %v917_v24  ;;  %v1027_v52 = vld [vmem:[%s1280_s5 + $0x4] sm:$0xf0]  ;;  %v956_v53 = vld [vmem:[%s1280_s5 + $0x80] sm:$0xf]  ;;  %v969_v54 = vor.u32 %v1044_v46, %v966_v47  ;;  %v1026_v56 = vld [vmem:[%s1280_s5 + $0x4] sm:$0xf] }
  0x51   : > { %649 = vmatpush.bf16.msra.mxu1 %v981_v25  ;;  %663 = vmatpush.bf16.msra.mxu2 %v921_v26  ;;  %v1043_v55 = vld [vmem:[%s1280_s5 + $0x84] sm:$0xf0]  ;;  %v894_v57 = vld [vmem:[%s1280_s5 + $0x8] sm:$0xf0]  ;;  %v1042_v58 = vld [vmem:[%s1280_s5 + $0x84] sm:$0xf]  ;;  %v893_v60 = vor.u32 %v1027_v52, %v892_v51 }
  0x52   : > { %677 = vmatpush.bf16.msra.mxu3 %v985_v30  ;;  %v958_v59 = vld [vmem:[%s1280_s5 + $0x88] sm:$0xf0]  ;;  %v884_v61 = vld [vmem:[%s1385_s0] sm:$0xf]  ;;  %v1025_v62 = vld [vmem:[%s1385_s0 + $0x4] sm:$0xf0]  ;;  %v957_v63 = vor.u32 %v1043_v55, %v956_v53  ;;  %v897_v0 = vor.u32 %v1026_v56, %v894_v57 }
  0x53   : > { %v1024_v1 = vld [vmem:[%s1385_s0 + $0x4] sm:$0xf]  ;;  %v886_v2 = vld [vmem:[%s1385_s0 + $0x8] sm:$0xf0]  ;;  %v961_v3 = vor.u32 %v1042_v58, %v958_v59  ;;  %v885_v4 = vor.u32 %v1025_v62, %v884_v61  ;;  %s1397_s20 = smov (!%p409_p11, %s881_s20), 3  ;;  %s1058_s12 = sshll.u32 (%p1194_p6), %s1129_s14, 3 }
  0x54   : > { %636 = vmatpush.bf16.msra.mxu0 %v909_v36  ;;  %v889_v5 = vor.u32 %v1024_v1, %v886_v2  ;;  %s411_s25 = scalar_lea.vmem %s1387_s2, %s1397_s20  ;;  %s728_s30 = scalar_lea.vmem (%p1194_p6), %s1388_s3, %s1058_s12 }
  0x55   : > { %650 = vmatpush.bf16.msra.mxu1 %v973_v37  ;;  %664 = vmatpush.bf16.msra.mxu2 %v913_v38  ;;  %v702_v8 = vld [vmem:[%s411_s25] sm:$0x3] }
  0x56   : > { %678 = vmatpush.bf16.msra.mxu3 %v977_v42  ;;  %v704_v10 = vperm.slane %v702_v8, 0  ;;  %v705_v12 = vperm.slane %v702_v8, 1 }
  0x58   : > { %637 = vmatpush.bf16.msra.mxu0 %v901_v48 }
  0x59   : > { %651 = vmatpush.bf16.msra.mxu1 %v965_v49  ;;  %665 = vmatpush.bf16.msra.mxu2 %v905_v50 }
  0x5a   : > { %679 = vmatpush.bf16.msra.mxu3 %v969_v54 }
  0x5c   : > { %638 = vmatpush.bf16.msra.mxu0 %v893_v60 }
  0x5d   : > { %652 = vmatpush.bf16.msra.mxu1 %v957_v63  ;;  %666 = vmatpush.bf16.msra.mxu2 %v897_v0 }
  0x5e   : > { %680 = vmatpush.bf16.msra.mxu3 %v961_v3 }
  0x5f   : > { %639 = vmatmul.bf16.vlgmr.msra.gmra.mxu0 %v885_v4 }
  0x60   : > { %653 = vmatmul.bf16.vlgmr.msra.gmra.mxu1 %v889_v5  ;;  %667 = vmatmul.bf16.vlgmr.msra.gmra.mxu2 %v885_v4 }
  0x61   : > { %681 = vmatmul.bf16.vlgmr.msra.gmra.mxu3 %v889_v5 }
  0xdc   : > { %v640_v6 = vpop.f32.mrf.mxu0 }
  0xdd   : > { %v654_v7 = vpop.f32.mrf.mxu1 }
  0xde   : > { %v655_v9 = vadd.f32 %v654_v7, %v640_v6 }
  0xe0   : > { %v708_v14 = vadd.f32 %v704_v10, %v655_v9 }
  0xe3   : > { %v668_v11 = vpop.f32.mrf.mxu2 }
  0xe4   : > { %v682_v13 = vpop.f32.mrf.mxu3  ;;  %v642_v17 = vpop.f32.mrf.mxu0 }
  0xe5   : > { %v683_v15 = vadd.f32 %v682_v13, %v668_v11  ;;  %v656_v18 = vpop.f32.mrf.mxu1 }
  0xe6   : > { %v657_v20 = vadd.f32 %v656_v18, %v642_v17 }
  0xe7   : > { %v709_v16 = vadd.f32 %v705_v12, %v683_v15 }
  0xe8   : > { %v710_v24 = vadd.f32 %v704_v10, %v657_v20 }
  0xe9   : > { %v712_v19 = vpack.c.bf16 %v709_v16, %v708_v14 }
  0xeb   : > { %714 = vst [vmem:[%s393_s27] sm:$0xff] %v712_v19  ;;  %v670_v21 = vpop.f32.mrf.mxu2 }
  0xec   : > { %v684_v22 = vpop.f32.mrf.mxu3 }
  0xed   : > { %v685_v23 = vadd.f32 %v684_v22, %v670_v21 }
  0xef   : > { %v711_v25 = vadd.f32 %v705_v12, %v685_v23  ;;  %722 = sbr.rel (!%p1194_p6) target bundleno = 252 (0xfc), region = 82 }
  0xf1   : > { %v713_v26 = vpack.c.bf16 %v711_v25, %v710_v24 }
  0xf2   : > { %v759_v27 = vld [vmem:[%s393_s27] sm:$0xff] (%p1194_p6) }
  0xf3   : > { %715 = vst [vmem:[%s393_s27 + $0x8] sm:$0xff] %v713_v26 }
  0xf4   : > { %760 = vst [vmem:[%s728_s30] sm:$0xff] %v759_v27 }
  0xfa   : > { %v761_v28 = vld [vmem:[%s393_s27 + $0x8] sm:$0xff] }
  0xfb   : > { %762 = vst [vmem:[%s728_s30 + $0x10] sm:$0xff] %v761_v28 }
  0xfc PF: > { %s13_s16 = sadd.s32 1, %s1137_s16   ;;  %s1390_s12 = smov %s1125_s13 }
  0xfd   : > { %p10_p12 = scmp.ge.s32.totalorder %s13_s16, 4   ;;  %s1391_s13 = smov %s1199_s22 }
  0xfe   : > { %s1392_s14 = smov %s1133_s15  ;;  %s1393_s15 = smov %s1395_s17 }
  0xff   :  { %12 = sbr.rel (!%p10_p12) target bundleno = 3 (0x3), region = 157 }

// kernel: _lambda_.27
= control target key start
LH: loop header
LB: loop body
LE: loop exit
PB: predicated region body
PF: predicated region fallthrough
CT: control target
= control target key end

     0   :  { %s3169_s0 = inlined_call_operand.vmem [shape: bf16[16,4608], index: 0, kind: input, shape index: {}]   ;;  %s3170_s1 = inlined_call_operand.vmem [shape: bf16[4608,512], index: 1, kind: input, shape index: {}]   ;;  %s3171_s2 = inlined_call_operand.vmem [shape: f32[1,512], index: 2, kind: input, shape index: {}]   ;;  %s3172_s3 = inlined_call_operand.vmem [shape: bf16[16,512], index: 3, kind: input, shape index: {}]   ;;  %s3173_s4 = inlined_call_operand.vmem [shape: bf16[16,512], index: 4, kind: output, shape index: {}]  }
   0x1   :  { %3176 = sst [smem:[#allocation9_spill]] %s3169_s0 }
   0x2   :  { %s2538_s15 = smov 0   ;;  %s2540_s16 = smov 0  }
   0x3   :  { %s2542_s17 = smov 0   ;;  %s2544_s18 = smov 0  }
   0x4   :  { %s2546_s19 = smov 0   ;;  %s2548_s20 = smov 0  }
   0x5   :  { %s2550_s21 = smov 0   ;;  %s2552_s22 = smov 0  }
   0x6   :  { %s2554_s23 = smov 0   ;;  %s2556_s24 = smov 0  }
   0x7   :  { %s2558_s25 = smov 0  }
   0x8 LB: > { %s1795_s26 = sadd.s32 4294967295, %s2510_s25   ;;  %s26_s27 = sadd.s32 1, %s2502_s23  ;;  %s2510_s25 = sphi %s2558_s25, %s14_s25   ;;  %s2506_s24 = sphi %s2556_s24, %s3195_s24   ;;  %s2502_s23 = sphi %s2554_s23, %s3194_s23   ;;  %s2498_s22 = sphi %s2552_s22, %s3193_s22   ;;  %s2494_s21 = sphi %s2550_s21, %s3192_s21   ;;  %s2490_s20 = sphi %s2548_s20, %s3191_s20   ;;  %s2486_s19 = sphi %s2546_s19, %s3190_s19   ;;  %s2482_s18 = sphi %s2544_s18, %s3189_s18   ;;  %s2478_s17 = sphi %s2542_s17, %s3188_s17   ;;  %s2474_s16 = sphi %s2540_s16, %s3187_s16   ;;  %s2470_s15 = sphi %s2538_s15, %s3186_s15  }
   0x9   : > { %p27_p0 = scmp.ge.s32.totalorder %s26_s27, 6  ;;  %s29_s28 = sadd.s32 1, %s2506_s24 }
   0xa   : > { %s42_s29 = sadd.s32 1, %s2490_s20  ;;  %p49_p1 = scmp.ne.s32.totalorder %s2490_s20, %s2486_s19 }
   0xb   : > { %s3197_s27 = smov (%p27_p0, %s26_s27), 0  ;;  %s3199_s28 = smov (!%p27_p0, %s29_s28), %s2506_s24 }
   0xc   : > { %3177 = sst [smem:[#allocation7_spill]] %s3197_s27  ;;  %s38_s30 = ssub.s32 %s2502_s23, %s3197_s27 }
   0xd   : > { %p50_p2 = scmp.eq.s32.totalorder %s2510_s25, 0  ;;  %p31_p3 = scmp.ge.s32.totalorder %s3199_s28, 2 }
   0xe   : > { %p40_p4 = scmp.eq.s32.totalorder %s38_s30, 0  ;;  %s70_s6 = sadd.s32 1, %s2482_s18 }
   0xf   : > { %p2607_p5 = por %p50_p2, %p49_p1  ;;  %s3201_s28 = smov (%p31_p3, %s3199_s28), 0 }
  0x10   : > { %3179 = sst [smem:[#allocation8_spill]] %s3201_s28  ;;  %s66_s8 = ssub.s32 %s2506_s24, %s3201_s28 }
  0x11   : > { %s2615_s7 = scalar_select %p40_p4, %s2490_s20, %s42_s29  }
  0x12   : > { %p77_p6 = scmp.ne.s32.totalorder %s2482_s18, %s2478_s17  ;;  %s67_s9 = sor.u32 %s66_s8, %s38_s30 }
  0x13   : > { %p122_p7 = scmp.eq.s32.totalorder %s66_s8, 0  ;;  %p68_p8 = scmp.eq.s32.totalorder %s67_s9, 0 }
  0x14   : > { %p2623_p9 = por %p77_p6, %p50_p2  ;;  %s124_s11 = sadd.s32 1, %s2474_s16 }
  0x15   : > { %p131_p10 = scmp.ne.s32.totalorder %s2474_s16, %s2470_s15  ;;  %p163_p12 = scmp.eq.s32.totalorder %s1795_s26, 11 }
  0x16   : > { %s2631_s12 = scalar_select %p68_p8, %s2482_s18, %s70_s6  }
  0x17   : > { %s2634_s13 = scalar_select %p122_p7, %s2474_s16, %s124_s11  }
  0x18   : > { %p2638_p11 = por %p131_p10, %p50_p2  ;;  %p2642_p13 = por %p163_p12, %p131_p10 }
  0x19   : > { %p1798_p0 = scmp.ge.s32.totalorder %s2510_s25, 12 }
  0x1b   : > { %185 = sbr.rel (%p1798_p0) target bundleno = 157 (0x9d), region = 16 }
  0x20   : > { %188 = sbr.rel (!%p2607_p5) target bundleno = 47 (0x2f), region = 20  ;;  %s190_s30 = sand.u32 (%p2607_p5), 1, %s2490_s20  }
  0x21   : > { %s2225_s6 = smul.u32 (%p2607_p5), 24, %s2502_s23  ;;  %s3183_s0 = sld [smem:[#allocation9_spill]] (%p2607_p5) }
  0x22   : > { %s2331_s8 = smul.u32 (%p2607_p5), 48, %s190_s30 }
  0x24   : > { %s192_s26 = scalar_lea.vmem (%p2607_p5), [#allocation3], %s2331_s8 }
  0x27   : > { %s198_s28 = scalar_lea.vmem %s3183_s0, %s2225_s6 }
  0x28   : > { %v211_v0 = vld [vmem:[%s198_s28] sm:$0xff]  ;;  %v213_v1 = vld [vmem:[%s198_s28 + $0x8] sm:$0xff]  ;;  %v215_v2 = vld [vmem:[%s198_s28 + $0x10] sm:$0xff] }
  0x29   : > { %212 = vst [vmem:[%s192_s26] sm:$0xff] %v211_v0  ;;  %v217_v3 = vld [vmem:[%s198_s28 + $0x90] sm:$0xff]  ;;  %v219_v4 = vld [vmem:[%s198_s28 + $0x98] sm:$0xff]  ;;  %v221_v5 = vld [vmem:[%s198_s28 + $0xa0] sm:$0xff] }
  0x2a   : > { %214 = vst [vmem:[%s192_s26 + $0x8] sm:$0xff] %v213_v1 }
  0x2b   : > { %216 = vst [vmem:[%s192_s26 + $0x10] sm:$0xff] %v215_v2 }
  0x2c   : > { %218 = vst [vmem:[%s192_s26 + $0x18] sm:$0xff] %v217_v3 }
  0x2d   : > { %220 = vst [vmem:[%s192_s26 + $0x20] sm:$0xff] %v219_v4 }
  0x2e   : > { %222 = vst [vmem:[%s192_s26 + $0x28] sm:$0xff] %v221_v5 }
  0x2f PF: > { %228 = sbr.rel (!%p2623_p9) target bundleno = 151 (0x97), region = 43  ;;  %s230_s5 = sand.u32 (%p2623_p9), 1, %s2482_s18  }
  0x30   : > { %s2332_s30 = smul.u32 (%p2623_p9), 768, %s230_s5  ;;  %s1800_s6 = sshll.u32 (%p2623_p9), %s2506_s24, 1 }
  0x31   : > { %s2226_s8 = smul.u32 (%p2623_p9), 384, %s2502_s23 }
  0x32   : > { %s2667_s10 = scalar_lea.vmem (%p2623_p9), [#allocation4], %s2332_s30 }
  0x33   : > { %s236_s9 = sadd.s32 (%p2623_p9), %s2226_s8, %s1800_s6 }
  0x34   : > { %s1802_s11 = sshll.u32 %s236_s9, 2 }
  0x35   : > { %s2662_s28 = scalar_lea.vmem %s3170_s1, %s1802_s11 }
  0x36   : > { %v457_v6 = vld [vmem:[%s2662_s28] sm:$0xff]  ;;  %v459_v7 = vld [vmem:[%s2662_s28 + $0x10] sm:$0xff] }
  0x37   : > { %v461_v8 = vld [vmem:[%s2662_s28 + $0x20] sm:$0xff]  ;;  %458 = vst [vmem:[%s2667_s10] sm:$0xff] %v457_v6  ;;  %v463_v9 = vld [vmem:[%s2662_s28 + $0x30] sm:$0xff] }
  0x38   : > { %460 = vst [vmem:[%s2667_s10 + $0x8] sm:$0xff] %v459_v7  ;;  %v465_v10 = vld [vmem:[%s2662_s28 + $0x40] sm:$0xff]  ;;  %v467_v11 = vld [vmem:[%s2662_s28 + $0x50] sm:$0xff] }
  0x39   : > { %462 = vst [vmem:[%s2667_s10 + $0x10] sm:$0xff] %v461_v8  ;;  %v469_v12 = vld [vmem:[%s2662_s28 + $0x60] sm:$0xff]  ;;  %v471_v13 = vld [vmem:[%s2662_s28 + $0x70] sm:$0xff] }
  0x3a   : > { %464 = vst [vmem:[%s2667_s10 + $0x18] sm:$0xff] %v463_v9  ;;  %v473_v14 = vld [vmem:[%s2662_s28 + $0x80] sm:$0xff]  ;;  %v475_v15 = vld [vmem:[%s2662_s28 + $0x90] sm:$0xff] }
  0x3b   : > { %466 = vst [vmem:[%s2667_s10 + $0x20] sm:$0xff] %v465_v10  ;;  %v477_v16 = vld [vmem:[%s2662_s28 + $0xa0] sm:$0xff]  ;;  %v479_v17 = vld [vmem:[%s2662_s28 + $0xb0] sm:$0xff] }
  0x3c   : > { %468 = vst [vmem:[%s2667_s10 + $0x28] sm:$0xff] %v467_v11  ;;  %v481_v18 = vld [vmem:[%s2662_s28 + $0xc0] sm:$0xff]  ;;  %v483_v19 = vld [vmem:[%s2662_s28 + $0xd0] sm:$0xff] }
  0x3d   : > { %470 = vst [vmem:[%s2667_s10 + $0x30] sm:$0xff] %v469_v12  ;;  %v485_v20 = vld [vmem:[%s2662_s28 + $0xe0] sm:$0xff]  ;;  %v487_v21 = vld [vmem:[%s2662_s28 + $0xf0] sm:$0xff] }
  0x3e   : > { %472 = vst [vmem:[%s2667_s10 + $0x38] sm:$0xff] %v471_v13  ;;  %v489_v22 = vld [vmem:[%s2662_s28 + $0x100] sm:$0xff]  ;;  %v491_v23 = vld [vmem:[%s2662_s28 + $0x110] sm:$0xff] }
  0x3f   : > { %474 = vst [vmem:[%s2667_s10 + $0x40] sm:$0xff] %v473_v14  ;;  %v493_v24 = vld [vmem:[%s2662_s28 + $0x120] sm:$0xff]  ;;  %v495_v25 = vld [vmem:[%s2662_s28 + $0x130] sm:$0xff] }
  0x40   : > { %476 = vst [vmem:[%s2667_s10 + $0x48] sm:$0xff] %v475_v15  ;;  %v497_v26 = vld [vmem:[%s2662_s28 + $0x140] sm:$0xff]  ;;  %v499_v27 = vld [vmem:[%s2662_s28 + $0x150] sm:$0xff] }
  0x41   : > { %478 = vst [vmem:[%s2667_s10 + $0x50] sm:$0xff] %v477_v16  ;;  %v501_v28 = vld [vmem:[%s2662_s28 + $0x160] sm:$0xff]  ;;  %v503_v29 = vld [vmem:[%s2662_s28 + $0x170] sm:$0xff] }
  0x42   : > { %480 = vst [vmem:[%s2667_s10 + $0x58] sm:$0xff] %v479_v17  ;;  %v505_v30 = vld [vmem:[%s2662_s28 + $0x180] sm:$0xff]  ;;  %v507_v31 = vld [vmem:[%s2662_s28 + $0x190] sm:$0xff] }
  0x43   : > { %482 = vst [vmem:[%s2667_s10 + $0x60] sm:$0xff] %v481_v18  ;;  %v509_v32 = vld [vmem:[%s2662_s28 + $0x1a0] sm:$0xff]  ;;  %v511_v33 = vld [vmem:[%s2662_s28 + $0x1b0] sm:$0xff] }
  0x44   : > { %484 = vst [vmem:[%s2667_s10 + $0x68] sm:$0xff] %v483_v19  ;;  %v513_v34 = vld [vmem:[%s2662_s28 + $0x1c0] sm:$0xff]  ;;  %v515_v35 = vld [vmem:[%s2662_s28 + $0x1d0] sm:$0xff] }
  0x45   : > { %486 = vst [vmem:[%s2667_s10 + $0x70] sm:$0xff] %v485_v20  ;;  %v517_v36 = vld [vmem:[%s2662_s28 + $0x1e0] sm:$0xff]  ;;  %v519_v37 = vld [vmem:[%s2662_s28 + $0x1f0] sm:$0xff] }
  0x46   : > { %488 = vst [vmem:[%s2667_s10 + $0x78] sm:$0xff] %v487_v21  ;;  %v521_v38 = vld [vmem:[%s2662_s28 + $0x200] sm:$0xff]  ;;  %v523_v39 = vld [vmem:[%s2662_s28 + $0x210] sm:$0xff] }
  0x47   : > { %490 = vst [vmem:[%s2667_s10 + $0x80] sm:$0xff] %v489_v22  ;;  %v525_v40 = vld [vmem:[%s2662_s28 + $0x220] sm:$0xff]  ;;  %v527_v41 = vld [vmem:[%s2662_s28 + $0x230] sm:$0xff] }
  0x48   : > { %492 = vst [vmem:[%s2667_s10 + $0x88] sm:$0xff] %v491_v23  ;;  %v529_v42 = vld [vmem:[%s2662_s28 + $0x240] sm:$0xff]  ;;  %v531_v43 = vld [vmem:[%s2662_s28 + $0x250] sm:$0xff] }
  0x49   : > { %494 = vst [vmem:[%s2667_s10 + $0x90] sm:$0xff] %v493_v24  ;;  %v533_v44 = vld [vmem:[%s2662_s28 + $0x260] sm:$0xff]  ;;  %v535_v45 = vld [vmem:[%s2662_s28 + $0x270] sm:$0xff] }
  0x4a   : > { %496 = vst [vmem:[%s2667_s10 + $0x98] sm:$0xff] %v495_v25  ;;  %v537_v46 = vld [vmem:[%s2662_s28 + $0x280] sm:$0xff]  ;;  %v539_v47 = vld [vmem:[%s2662_s28 + $0x290] sm:$0xff] }
  0x4b   : > { %498 = vst [vmem:[%s2667_s10 + $0xa0] sm:$0xff] %v497_v26  ;;  %v541_v48 = vld [vmem:[%s2662_s28 + $0x2a0] sm:$0xff]  ;;  %v543_v49 = vld [vmem:[%s2662_s28 + $0x2b0] sm:$0xff] }
  0x4c   : > { %500 = vst [vmem:[%s2667_s10 + $0xa8] sm:$0xff] %v499_v27  ;;  %v545_v50 = vld [vmem:[%s2662_s28 + $0x2c0] sm:$0xff]  ;;  %v547_v51 = vld [vmem:[%s2662_s28 + $0x2d0] sm:$0xff] }
  0x4d   : > { %502 = vst [vmem:[%s2667_s10 + $0xb0] sm:$0xff] %v501_v28  ;;  %v549_v52 = vld [vmem:[%s2662_s28 + $0x2e0] sm:$0xff]  ;;  %v551_v53 = vld [vmem:[%s2662_s28 + $0x2f0] sm:$0xff] }
  0x4e   : > { %504 = vst [vmem:[%s2667_s10 + $0xb8] sm:$0xff] %v503_v29  ;;  %v553_v54 = vld [vmem:[%s2662_s28 + $0x300] sm:$0xff]  ;;  %v555_v55 = vld [vmem:[%s2662_s28 + $0x310] sm:$0xff] }
  0x4f   : > { %506 = vst [vmem:[%s2667_s10 + $0xc0] sm:$0xff] %v505_v30  ;;  %v557_v56 = vld [vmem:[%s2662_s28 + $0x320] sm:$0xff]  ;;  %v559_v57 = vld [vmem:[%s2662_s28 + $0x330] sm:$0xff] }
  0x50   : > { %508 = vst [vmem:[%s2667_s10 + $0xc8] sm:$0xff] %v507_v31  ;;  %v561_v58 = vld [vmem:[%s2662_s28 + $0x340] sm:$0xff]  ;;  %v563_v59 = vld [vmem:[%s2662_s28 + $0x350] sm:$0xff] }
  0x51   : > { %510 = vst [vmem:[%s2667_s10 + $0xd0] sm:$0xff] %v509_v32  ;;  %v565_v60 = vld [vmem:[%s2662_s28 + $0x360] sm:$0xff]  ;;  %v567_v61 = vld [vmem:[%s2662_s28 + $0x370] sm:$0xff] }
  0x52   : > { %512 = vst [vmem:[%s2667_s10 + $0xd8] sm:$0xff] %v511_v33  ;;  %v569_v62 = vld [vmem:[%s2662_s28 + $0x380] sm:$0xff]  ;;  %v571_v63 = vld [vmem:[%s2662_s28 + $0x390] sm:$0xff] }
  0x53   : > { %514 = vst [vmem:[%s2667_s10 + $0xe0] sm:$0xff] %v513_v34  ;;  %v573_v0 = vld [vmem:[%s2662_s28 + $0x3a0] sm:$0xff]  ;;  %v575_v1 = vld [vmem:[%s2662_s28 + $0x3b0] sm:$0xff] }
  0x54   : > { %516 = vst [vmem:[%s2667_s10 + $0xe8] sm:$0xff] %v515_v35  ;;  %v577_v2 = vld [vmem:[%s2662_s28 + $0x3c0] sm:$0xff]  ;;  %v579_v3 = vld [vmem:[%s2662_s28 + $0x3d0] sm:$0xff] }
  0x55   : > { %518 = vst [vmem:[%s2667_s10 + $0xf0] sm:$0xff] %v517_v36  ;;  %v581_v4 = vld [vmem:[%s2662_s28 + $0x3e0] sm:$0xff]  ;;  %v583_v5 = vld [vmem:[%s2662_s28 + $0x3f0] sm:$0xff] }
  0x56   : > { %520 = vst [vmem:[%s2667_s10 + $0xf8] sm:$0xff] %v519_v37  ;;  %v585_v6 = vld [vmem:[%s2662_s28 + $0x400] sm:$0xff]  ;;  %v587_v7 = vld [vmem:[%s2662_s28 + $0x410] sm:$0xff] }
  0x57   : > { %522 = vst [vmem:[%s2667_s10 + $0x100] sm:$0xff] %v521_v38  ;;  %v589_v8 = vld [vmem:[%s2662_s28 + $0x420] sm:$0xff]  ;;  %v591_v9 = vld [vmem:[%s2662_s28 + $0x430] sm:$0xff] }
  0x58   : > { %524 = vst [vmem:[%s2667_s10 + $0x108] sm:$0xff] %v523_v39  ;;  %v593_v10 = vld [vmem:[%s2662_s28 + $0x440] sm:$0xff]  ;;  %v595_v11 = vld [vmem:[%s2662_s28 + $0x450] sm:$0xff] }
  0x59   : > { %526 = vst [vmem:[%s2667_s10 + $0x110] sm:$0xff] %v525_v40  ;;  %v597_v12 = vld [vmem:[%s2662_s28 + $0x460] sm:$0xff]  ;;  %v599_v13 = vld [vmem:[%s2662_s28 + $0x470] sm:$0xff] }
  0x5a   : > { %528 = vst [vmem:[%s2667_s10 + $0x118] sm:$0xff] %v527_v41  ;;  %v601_v14 = vld [vmem:[%s2662_s28 + $0x480] sm:$0xff]  ;;  %v603_v15 = vld [vmem:[%s2662_s28 + $0x490] sm:$0xff] }
  0x5b   : > { %530 = vst [vmem:[%s2667_s10 + $0x120] sm:$0xff] %v529_v42  ;;  %v605_v16 = vld [vmem:[%s2662_s28 + $0x4a0] sm:$0xff]  ;;  %v607_v17 = vld [vmem:[%s2662_s28 + $0x4b0] sm:$0xff] }
  0x5c   : > { %532 = vst [vmem:[%s2667_s10 + $0x128] sm:$0xff] %v531_v43  ;;  %v609_v18 = vld [vmem:[%s2662_s28 + $0x4c0] sm:$0xff]  ;;  %v611_v19 = vld [vmem:[%s2662_s28 + $0x4d0] sm:$0xff] }
  0x5d   : > { %534 = vst [vmem:[%s2667_s10 + $0x130] sm:$0xff] %v533_v44  ;;  %v613_v20 = vld [vmem:[%s2662_s28 + $0x4e0] sm:$0xff]  ;;  %v615_v21 = vld [vmem:[%s2662_s28 + $0x4f0] sm:$0xff] }
  0x5e   : > { %536 = vst [vmem:[%s2667_s10 + $0x138] sm:$0xff] %v535_v45  ;;  %v617_v22 = vld [vmem:[%s2662_s28 + $0x500] sm:$0xff]  ;;  %v619_v23 = vld [vmem:[%s2662_s28 + $0x510] sm:$0xff] }
  0x5f   : > { %538 = vst [vmem:[%s2667_s10 + $0x140] sm:$0xff] %v537_v46  ;;  %v621_v24 = vld [vmem:[%s2662_s28 + $0x520] sm:$0xff]  ;;  %v623_v25 = vld [vmem:[%s2662_s28 + $0x530] sm:$0xff] }
  0x60   : > { %540 = vst [vmem:[%s2667_s10 + $0x148] sm:$0xff] %v539_v47  ;;  %v625_v26 = vld [vmem:[%s2662_s28 + $0x540] sm:$0xff]  ;;  %v627_v27 = vld [vmem:[%s2662_s28 + $0x550] sm:$0xff] }
  0x61   : > { %542 = vst [vmem:[%s2667_s10 + $0x150] sm:$0xff] %v541_v48  ;;  %v629_v28 = vld [vmem:[%s2662_s28 + $0x560] sm:$0xff]  ;;  %v631_v29 = vld [vmem:[%s2662_s28 + $0x570] sm:$0xff] }
  0x62   : > { %544 = vst [vmem:[%s2667_s10 + $0x158] sm:$0xff] %v543_v49  ;;  %v633_v30 = vld [vmem:[%s2662_s28 + $0x580] sm:$0xff]  ;;  %v635_v31 = vld [vmem:[%s2662_s28 + $0x590] sm:$0xff] }
  0x63   : > { %546 = vst [vmem:[%s2667_s10 + $0x160] sm:$0xff] %v545_v50  ;;  %v637_v32 = vld [vmem:[%s2662_s28 + $0x5a0] sm:$0xff]  ;;  %v639_v33 = vld [vmem:[%s2662_s28 + $0x5b0] sm:$0xff] }
  0x64   : > { %548 = vst [vmem:[%s2667_s10 + $0x168] sm:$0xff] %v547_v51  ;;  %v641_v34 = vld [vmem:[%s2662_s28 + $0x5c0] sm:$0xff]  ;;  %v643_v35 = vld [vmem:[%s2662_s28 + $0x5d0] sm:$0xff] }
  0x65   : > { %550 = vst [vmem:[%s2667_s10 + $0x170] sm:$0xff] %v549_v52  ;;  %v645_v36 = vld [vmem:[%s2662_s28 + $0x5e0] sm:$0xff]  ;;  %v647_v37 = vld [vmem:[%s2662_s28 + $0x5f0] sm:$0xff] }
  0x66   : > { %552 = vst [vmem:[%s2667_s10 + $0x178] sm:$0xff] %v551_v53 }
  0x67   : > { %554 = vst [vmem:[%s2667_s10 + $0x180] sm:$0xff] %v553_v54 }
  0x68   : > { %556 = vst [vmem:[%s2667_s10 + $0x188] sm:$0xff] %v555_v55 }
  0x69   : > { %558 = vst [vmem:[%s2667_s10 + $0x190] sm:$0xff] %v557_v56 }
  0x6a   : > { %560 = vst [vmem:[%s2667_s10 + $0x198] sm:$0xff] %v559_v57 }
  0x6b   : > { %562 = vst [vmem:[%s2667_s10 + $0x1a0] sm:$0xff] %v561_v58 }
  0x6c   : > { %564 = vst [vmem:[%s2667_s10 + $0x1a8] sm:$0xff] %v563_v59 }
  0x6d   : > { %566 = vst [vmem:[%s2667_s10 + $0x1b0] sm:$0xff] %v565_v60 }
  0x6e   : > { %568 = vst [vmem:[%s2667_s10 + $0x1b8] sm:$0xff] %v567_v61 }
  0x6f   : > { %570 = vst [vmem:[%s2667_s10 + $0x1c0] sm:$0xff] %v569_v62 }
  0x70   : > { %572 = vst [vmem:[%s2667_s10 + $0x1c8] sm:$0xff] %v571_v63 }
  0x71   : > { %574 = vst [vmem:[%s2667_s10 + $0x1d0] sm:$0xff] %v573_v0 }
  0x72   : > { %576 = vst [vmem:[%s2667_s10 + $0x1d8] sm:$0xff] %v575_v1 }
  0x73   : > { %578 = vst [vmem:[%s2667_s10 + $0x1e0] sm:$0xff] %v577_v2 }
  0x74   : > { %580 = vst [vmem:[%s2667_s10 + $0x1e8] sm:$0xff] %v579_v3 }
  0x75   : > { %582 = vst [vmem:[%s2667_s10 + $0x1f0] sm:$0xff] %v581_v4 }
  0x76   : > { %584 = vst [vmem:[%s2667_s10 + $0x1f8] sm:$0xff] %v583_v5 }
  0x77   : > { %586 = vst [vmem:[%s2667_s10 + $0x200] sm:$0xff] %v585_v6 }
  0x78   : > { %588 = vst [vmem:[%s2667_s10 + $0x208] sm:$0xff] %v587_v7 }
  0x79   : > { %590 = vst [vmem:[%s2667_s10 + $0x210] sm:$0xff] %v589_v8 }
  0x7a   : > { %592 = vst [vmem:[%s2667_s10 + $0x218] sm:$0xff] %v591_v9 }
  0x7b   : > { %594 = vst [vmem:[%s2667_s10 + $0x220] sm:$0xff] %v593_v10 }
  0x7c   : > { %596 = vst [vmem:[%s2667_s10 + $0x228] sm:$0xff] %v595_v11 }
  0x7d   : > { %598 = vst [vmem:[%s2667_s10 + $0x230] sm:$0xff] %v597_v12 }
  0x7e   : > { %600 = vst [vmem:[%s2667_s10 + $0x238] sm:$0xff] %v599_v13 }
  0x7f   : > { %602 = vst [vmem:[%s2667_s10 + $0x240] sm:$0xff] %v601_v14 }
  0x80   : > { %604 = vst [vmem:[%s2667_s10 + $0x248] sm:$0xff] %v603_v15 }
  0x81   : > { %606 = vst [vmem:[%s2667_s10 + $0x250] sm:$0xff] %v605_v16 }
  0x82   : > { %608 = vst [vmem:[%s2667_s10 + $0x258] sm:$0xff] %v607_v17 }
  0x83   : > { %610 = vst [vmem:[%s2667_s10 + $0x260] sm:$0xff] %v609_v18 }
  0x84   : > { %612 = vst [vmem:[%s2667_s10 + $0x268] sm:$0xff] %v611_v19 }
  0x85   : > { %614 = vst [vmem:[%s2667_s10 + $0x270] sm:$0xff] %v613_v20 }
  0x86   : > { %616 = vst [vmem:[%s2667_s10 + $0x278] sm:$0xff] %v615_v21 }
  0x87   : > { %618 = vst [vmem:[%s2667_s10 + $0x280] sm:$0xff] %v617_v22 }
  0x88   : > { %620 = vst [vmem:[%s2667_s10 + $0x288] sm:$0xff] %v619_v23 }
  0x89   : > { %622 = vst [vmem:[%s2667_s10 + $0x290] sm:$0xff] %v621_v24 }
  0x8a   : > { %624 = vst [vmem:[%s2667_s10 + $0x298] sm:$0xff] %v623_v25 }
  0x8b   : > { %626 = vst [vmem:[%s2667_s10 + $0x2a0] sm:$0xff] %v625_v26 }
  0x8c   : > { %628 = vst [vmem:[%s2667_s10 + $0x2a8] sm:$0xff] %v627_v27 }
  0x8d   : > { %630 = vst [vmem:[%s2667_s10 + $0x2b0] sm:$0xff] %v629_v28 }
  0x8e   : > { %632 = vst [vmem:[%s2667_s10 + $0x2b8] sm:$0xff] %v631_v29 }
  0x8f   : > { %634 = vst [vmem:[%s2667_s10 + $0x2c0] sm:$0xff] %v633_v30 }
  0x90   : > { %636 = vst [vmem:[%s2667_s10 + $0x2c8] sm:$0xff] %v635_v31 }
  0x91   : > { %638 = vst [vmem:[%s2667_s10 + $0x2d0] sm:$0xff] %v637_v32 }
  0x92   : > { %640 = vst [vmem:[%s2667_s10 + $0x2d8] sm:$0xff] %v639_v33 }
  0x93   : > { %642 = vst [vmem:[%s2667_s10 + $0x2e0] sm:$0xff] %v641_v34 }
  0x94   : > { %644 = vst [vmem:[%s2667_s10 + $0x2e8] sm:$0xff] %v643_v35 }
  0x95   : > { %646 = vst [vmem:[%s2667_s10 + $0x2f0] sm:$0xff] %v645_v36 }
  0x96   : > { %648 = vst [vmem:[%s2667_s10 + $0x2f8] sm:$0xff] %v647_v37 }
  0x97 PF: > { %662 = sbr.rel (!%p2638_p11) target bundleno = 157 (0x9d), region = 85  ;;  %s664_s0 = sand.u32 (%p2638_p11), 1, %s2474_s16  }
  0x98   : > { %s2227_s27 = sshll.u32 (%p2638_p11), %s2506_s24, 3  ;;  %s1803_s26 = sshll.u32 (%p2638_p11), %s664_s0, 4 }
  0x99   : > { %s672_s6 = scalar_lea.vmem (%p2638_p11), %s3172_s3, %s2227_s27  ;;  %s666_s8 = scalar_lea.vmem (%p2638_p11), [#allocation5], %s1803_s26 }
  0x9a   : > { %v703_v38 = vld [vmem:[%s672_s6] sm:$0xff] (%p2638_p11)  ;;  %v705_v39 = vld [vmem:[%s672_s6 + $0x10] sm:$0xff] (%p2638_p11) }
  0x9b   : > { %704 = vst [vmem:[%s666_s8] sm:$0xff] (%p2638_p11), %v703_v38 }
  0x9c   : > { %706 = vst [vmem:[%s666_s8 + $0x8] sm:$0xff] %v705_v39 }
  0x9d PF: > { %p1806_p1 = scmp.ge.s32.totalorder %s2510_s25, 1  ;;  %p711_p2 = scmp.lt.s32.totalorder %s2510_s25, 13 }
  0x9f   : > { %p712_p3 = pnand %p1806_p1, %p711_p2 }
  0xa0   : > { %s718_s14 = sand.u32 (!%p712_p3), 1, %s2486_s19   ;;  %s725_s9 = sand.u32 (!%p712_p3), 1, %s2478_s17  }
  0xa1   : > { %715 = sbr.rel (%p712_p3) target bundleno = 450 (0x1c2), region = 123  ;;  %s732_s28 = sand.u32 (!%p712_p3), 1, %s2470_s15  }
  0xa2   : > { %s2333_s11 = smul.u32 (!%p712_p3), 48, %s718_s14  ;;  %s2870_s0 = sshll.u32 (!%p712_p3), %s732_s28, 4 }
  0xa3   : > { %s2334_s10 = smul.u32 (!%p712_p3), 768, %s725_s9  ;;  %s1809_s27 = sshll.u32 (!%p712_p3), %s2498_s22, 1 }
  0xa4   : > { %p773_p4 = scmp.lt.s32.totalorder (!%p712_p3), %s1809_s27, 3  ;;  %s2879_s6 = scalar_lea.vmem (!%p712_p3), [#allocation3], %s2333_s11 }
  0xa5   : > { %s2881_s19 = scalar_lea.vmem (!%p712_p3), [#allocation4], %s2334_s10  ;;  %s734_s17 = scalar_lea.vmem (!%p712_p3), [#allocation5], %s2870_s0 }
  0xa6   : > { %s3203_s27 = smov (!%p773_p4, %s1809_s27), 3  ;;  %s2885_s15 = scalar_lea.vmem [#allocation6], %s2870_s0 }
  0xa7   : > { %s775_s30 = scalar_lea.vmem %s3171_s2, %s3203_s27  ;;  %p1810_p5 = scmp.ne.s32.totalorder %s2494_s21, 0 }
  0xa9   : > { %784 = sbr.rel (%p1810_p5) target bundleno = 179 (0xb3), region = 139 }
  0xae   : > { %v2512_v40 = vmov 0.0  }
  0xaf   : > { %785 = vst [vmem:[#allocation2 + $0x10] sm:$0xff] %v2512_v40 }
  0xb0   : > { %786 = vst [vmem:[#allocation2] sm:$0xff] %v2512_v40 }
  0xb1   : > { %787 = vst [vmem:[#allocation2 + $0x18] sm:$0xff] %v2512_v40 }
  0xb2   : > { %788 = vst [vmem:[#allocation2 + $0x8] sm:$0xff] %v2512_v40 }
  0xb3 PF: > { %v1893_v41 = vld [vmem:[%s2881_s19 + $0x70] sm:$0xf]  ;;  %v2249_v42 = vld [vmem:[%s2881_s19 + $0x74] sm:$0xf0]  ;;  %v1885_v52 = vld [vmem:[%s2881_s19 + $0x60] sm:$0xf] }
  0xb4   : > { %v1957_v43 = vld [vmem:[%s2881_s19 + $0xf0] sm:$0xf]  ;;  %v1894_v44 = vor.u32 %v2249_v42, %v1893_v41  ;;  %v2265_v45 = vld [vmem:[%s2881_s19 + $0xf4] sm:$0xf0]  ;;  %v2247_v54 = vld [vmem:[%s2881_s19 + $0x64] sm:$0xf0] }
  0xb5   : > { %v2021_v46 = vld [vmem:[%s2881_s19 + $0x170] sm:$0xf]  ;;  %v2281_v47 = vld [vmem:[%s2881_s19 + $0x174] sm:$0xf0]  ;;  %v1958_v48 = vor.u32 %v2265_v45, %v1957_v43  ;;  %v1949_v55 = vld [vmem:[%s2881_s19 + $0xe0] sm:$0xf]  ;;  %v1886_v57 = vor.u32 %v2247_v54, %v1885_v52 }
  0xb6   : > { %v2022_v49 = vor.u32 %v2281_v47, %v2021_v46  ;;  %v2085_v50 = vld [vmem:[%s2881_s19 + $0x1f0] sm:$0xf]  ;;  %v2297_v51 = vld [vmem:[%s2881_s19 + $0x1f4] sm:$0xf0]  ;;  %1405 = vmatpush.bf16.msra.mxu0 %v1894_v44  ;;  %v2263_v56 = vld [vmem:[%s2881_s19 + $0xe4] sm:$0xf0] }
  0xb7   : > { %v2086_v53 = vor.u32 %v2297_v51, %v2085_v50  ;;  %1419 = vmatpush.bf16.msra.mxu1 %v1958_v48  ;;  %v1950_v58 = vor.u32 %v2263_v56, %v1949_v55  ;;  %v2013_v59 = vld [vmem:[%s2881_s19 + $0x160] sm:$0xf]  ;;  %v2279_v60 = vld [vmem:[%s2881_s19 + $0x164] sm:$0xf0]  ;;  %v1877_v0 = vld [vmem:[%s2881_s19 + $0x50] sm:$0xf] }
  0xb8   : > { %1433 = vmatpush.bf16.msra.mxu2 %v2022_v49  ;;  %v2077_v61 = vld [vmem:[%s2881_s19 + $0x1e0] sm:$0xf]  ;;  %v2014_v62 = vor.u32 %v2279_v60, %v2013_v59  ;;  %v2295_v63 = vld [vmem:[%s2881_s19 + $0x1e4] sm:$0xf0]  ;;  %v2245_v1 = vld [vmem:[%s2881_s19 + $0x54] sm:$0xf0] }
  0xb9   : > { %1447 = vmatpush.bf16.msra.mxu3 %v2086_v53  ;;  %v2078_v2 = vor.u32 %v2295_v63, %v2077_v61  ;;  %v1941_v3 = vld [vmem:[%s2881_s19 + $0xd0] sm:$0xf]  ;;  %v2261_v4 = vld [vmem:[%s2881_s19 + $0xd4] sm:$0xf0]  ;;  %v1878_v6 = vor.u32 %v2245_v1, %v1877_v0  ;;  %v1869_v12 = vld [vmem:[%s2881_s19 + $0x40] sm:$0xf] }
  0xba   : > { %v2005_v5 = vld [vmem:[%s2881_s19 + $0x150] sm:$0xf]  ;;  %1406 = vmatpush.bf16.msra.mxu0 %v1886_v57  ;;  %v2277_v7 = vld [vmem:[%s2881_s19 + $0x154] sm:$0xf0]  ;;  %v1942_v10 = vor.u32 %v2261_v4, %v1941_v3  ;;  %v2243_v13 = vld [vmem:[%s2881_s19 + $0x44] sm:$0xf0] }
  0xbb   : > { %v2069_v8 = vld [vmem:[%s2881_s19 + $0x1d0] sm:$0xf]  ;;  %v2293_v9 = vld [vmem:[%s2881_s19 + $0x1d4] sm:$0xf0]  ;;  %1420 = vmatpush.bf16.msra.mxu1 %v1950_v58  ;;  %v2006_v11 = vor.u32 %v2277_v7, %v2005_v5  ;;  %v1933_v14 = vld [vmem:[%s2881_s19 + $0xc0] sm:$0xf]  ;;  %v1870_v21 = vor.u32 %v2243_v13, %v1869_v12 }
  0xbc   : > { %1434 = vmatpush.bf16.msra.mxu2 %v2014_v62  ;;  %v2070_v15 = vor.u32 %v2293_v9, %v2069_v8  ;;  %v2259_v16 = vld [vmem:[%s2881_s19 + $0xc4] sm:$0xf0]  ;;  %v1997_v17 = vld [vmem:[%s2881_s19 + $0x140] sm:$0xf]  ;;  %v1861_v24 = vld [vmem:[%s2881_s19 + $0x30] sm:$0xf] }
  0xbd   : > { %1448 = vmatpush.bf16.msra.mxu3 %v2078_v2  ;;  %v2275_v18 = vld [vmem:[%s2881_s19 + $0x144] sm:$0xf0]  ;;  %v2061_v19 = vld [vmem:[%s2881_s19 + $0x1c0] sm:$0xf]  ;;  %v1934_v22 = vor.u32 %v2259_v16, %v1933_v14  ;;  %v2241_v25 = vld [vmem:[%s2881_s19 + $0x34] sm:$0xf0] }
  0xbe   : > { %v2291_v20 = vld [vmem:[%s2881_s19 + $0x1c4] sm:$0xf0]  ;;  %1407 = vmatpush.bf16.msra.mxu0 %v1878_v6  ;;  %v1998_v23 = vor.u32 %v2275_v18, %v1997_v17  ;;  %v1925_v26 = vld [vmem:[%s2881_s19 + $0xb0] sm:$0xf]  ;;  %v2257_v28 = vld [vmem:[%s2881_s19 + $0xb4] sm:$0xf0]  ;;  %v1862_v33 = vor.u32 %v2241_v25, %v1861_v24 }
  0xbf   : > { %1421 = vmatpush.bf16.msra.mxu1 %v1942_v10  ;;  %v2062_v27 = vor.u32 %v2291_v20, %v2061_v19  ;;  %v1989_v29 = vld [vmem:[%s2881_s19 + $0x130] sm:$0xf]  ;;  %v2273_v30 = vld [vmem:[%s2881_s19 + $0x134] sm:$0xf0]  ;;  %v1926_v34 = vor.u32 %v2257_v28, %v1925_v26  ;;  %v1853_v36 = vld [vmem:[%s2881_s19 + $0x20] sm:$0xf] }
  0xc0   : > { %1435 = vmatpush.bf16.msra.mxu2 %v2006_v11  ;;  %v2053_v31 = vld [vmem:[%s2881_s19 + $0x1b0] sm:$0xf]  ;;  %v2289_v32 = vld [vmem:[%s2881_s19 + $0x1b4] sm:$0xf0]  ;;  %v1990_v35 = vor.u32 %v2273_v30, %v1989_v29  ;;  %v2239_v37 = vld [vmem:[%s2881_s19 + $0x24] sm:$0xf0] }
  0xc1   : > { %1449 = vmatpush.bf16.msra.mxu3 %v2070_v15  ;;  %v1917_v38 = vld [vmem:[%s2881_s19 + $0xa0] sm:$0xf]  ;;  %v2054_v39 = vor.u32 %v2289_v32, %v2053_v31  ;;  %v2255_v40 = vld [vmem:[%s2881_s19 + $0xa4] sm:$0xf0]  ;;  %v1854_v45 = vor.u32 %v2239_v37, %v1853_v36  ;;  %v1845_v48 = vld [vmem:[%s2881_s19 + $0x10] sm:$0xf] }
  0xc2   : > { %1408 = vmatpush.bf16.msra.mxu0 %v1870_v21  ;;  %v1981_v41 = vld [vmem:[%s2881_s19 + $0x120] sm:$0xf]  ;;  %v2271_v42 = vld [vmem:[%s2881_s19 + $0x124] sm:$0xf0]  ;;  %v1918_v46 = vor.u32 %v2255_v40, %v1917_v38  ;;  %v2237_v49 = vld [vmem:[%s2881_s19 + $0x14] sm:$0xf0] }
  0xc3   : > { %1422 = vmatpush.bf16.msra.mxu1 %v1934_v22  ;;  %v2045_v43 = vld [vmem:[%s2881_s19 + $0x1a0] sm:$0xf]  ;;  %v2287_v44 = vld [vmem:[%s2881_s19 + $0x1a4] sm:$0xf0]  ;;  %v1982_v47 = vor.u32 %v2271_v42, %v1981_v41  ;;  %v1909_v50 = vld [vmem:[%s2881_s19 + $0x90] sm:$0xf]  ;;  %v1846_v57 = vor.u32 %v2237_v49, %v1845_v48 }
  0xc4   : > { %1436 = vmatpush.bf16.msra.mxu2 %v1998_v23  ;;  %v2046_v51 = vor.u32 %v2287_v44, %v2045_v43  ;;  %v2253_v52 = vld [vmem:[%s2881_s19 + $0x94] sm:$0xf0]  ;;  %v1973_v53 = vld [vmem:[%s2881_s19 + $0x110] sm:$0xf]  ;;  %v1837_v58 = vld [vmem:[%s2881_s19] sm:$0xf] }
  0xc5   : > { %1450 = vmatpush.bf16.msra.mxu3 %v2062_v27  ;;  %v2269_v54 = vld [vmem:[%s2881_s19 + $0x114] sm:$0xf0]  ;;  %v2037_v55 = vld [vmem:[%s2881_s19 + $0x190] sm:$0xf]  ;;  %v2235_v59 = vld [vmem:[%s2881_s19 + $0x4] sm:$0xf0]  ;;  %v1910_v60 = vor.u32 %v2253_v52, %v1909_v50 }
  0xc6   : > { %1409 = vmatpush.bf16.msra.mxu0 %v1862_v33  ;;  %v2285_v56 = vld [vmem:[%s2881_s19 + $0x194] sm:$0xf0]  ;;  %v1974_v61 = vor.u32 %v2269_v54, %v1973_v53  ;;  %v1901_v62 = vld [vmem:[%s2881_s19 + $0x80] sm:$0xf]  ;;  %v2251_v63 = vld [vmem:[%s2881_s19 + $0x84] sm:$0xf0]  ;;  %v1838_v8 = vor.u32 %v2235_v59, %v1837_v58 }
  0xc7   : > { %1423 = vmatpush.bf16.msra.mxu1 %v1926_v34  ;;  %v1965_v0 = vld [vmem:[%s2881_s19 + $0x100] sm:$0xf]  ;;  %v2038_v1 = vor.u32 %v2285_v56, %v2037_v55  ;;  %v2267_v2 = vld [vmem:[%s2881_s19 + $0x104] sm:$0xf0]  ;;  %v2149_v5 = vld [vmem:[%s2881_s19 + $0x270] sm:$0xf]  ;;  %v1902_v12 = vor.u32 %v2251_v63, %v1901_v62 }
  0xc8   : > { %1437 = vmatpush.bf16.msra.mxu2 %v1990_v35  ;;  %v2029_v3 = vld [vmem:[%s2881_s19 + $0x180] sm:$0xf]  ;;  %v2283_v4 = vld [vmem:[%s2881_s19 + $0x184] sm:$0xf0]  ;;  %v2313_v6 = vld [vmem:[%s2881_s19 + $0x274] sm:$0xf0]  ;;  %v1966_v13 = vor.u32 %v2267_v2, %v1965_v0 }
  0xc9   : > { %1451 = vmatpush.bf16.msra.mxu3 %v2054_v39  ;;  %v2213_v7 = vld [vmem:[%s2881_s19 + $0x2f0] sm:$0xf]  ;;  %v2329_v9 = vld [vmem:[%s2881_s19 + $0x2f4] sm:$0xf0]  ;;  %v2248_v10 = vld [vmem:[%s2881_s19 + $0x74] sm:$0xf]  ;;  %v2030_v16 = vor.u32 %v2283_v4, %v2029_v3  ;;  %v2150_v17 = vor.u32 %v2313_v6, %v2149_v5 }
  0xca   : > { %1410 = vmatpush.bf16.msra.mxu0 %v1854_v45  ;;  %v1895_v11 = vld [vmem:[%s2881_s19 + $0x78] sm:$0xf0]  ;;  %v2264_v14 = vld [vmem:[%s2881_s19 + $0xf4] sm:$0xf]  ;;  %v2141_v18 = vld [vmem:[%s2881_s19 + $0x260] sm:$0xf]  ;;  %v2214_v20 = vor.u32 %v2329_v9, %v2213_v7 }
  0xcb   : > { %1424 = vmatpush.bf16.msra.mxu1 %v1918_v46  ;;  %v1959_v15 = vld [vmem:[%s2881_s19 + $0xf8] sm:$0xf0]  ;;  %v2311_v19 = vld [vmem:[%s2881_s19 + $0x264] sm:$0xf0]  ;;  %v1898_v21 = vor.u32 %v2248_v10, %v1895_v11  ;;  %v2205_v22 = vld [vmem:[%s2881_s19 + $0x2e0] sm:$0xf] }
  0xcc   : > { %1438 = vmatpush.bf16.msra.mxu2 %v1982_v47  ;;  %v2327_v23 = vld [vmem:[%s2881_s19 + $0x2e4] sm:$0xf0]  ;;  %v2246_v24 = vld [vmem:[%s2881_s19 + $0x64] sm:$0xf]  ;;  %v1962_v25 = vor.u32 %v2264_v14, %v1959_v15  ;;  %v1887_v26 = vld [vmem:[%s2881_s19 + $0x68] sm:$0xf0]  ;;  %v2142_v32 = vor.u32 %v2311_v19, %v2141_v18 }
  0xcd   : > { %1452 = vmatpush.bf16.msra.mxu3 %v2046_v51  ;;  %v2262_v27 = vld [vmem:[%s2881_s19 + $0xe4] sm:$0xf]  ;;  %v1951_v28 = vld [vmem:[%s2881_s19 + $0xe8] sm:$0xf0]  ;;  %v2133_v29 = vld [vmem:[%s2881_s19 + $0x250] sm:$0xf]  ;;  %v2206_v37 = vor.u32 %v2327_v23, %v2205_v22  ;;  %v1890_v38 = vor.u32 %v2246_v24, %v1887_v26 }
  0xce   : > { %1411 = vmatpush.bf16.msra.mxu0 %v1846_v57  ;;  %v1813_v30 = vld [vmem:[%s2879_s6] sm:$0xf]  ;;  %v2231_v31 = vld [vmem:[%s2879_s6 + $0x14] sm:$0xf0]  ;;  %v2244_v39 = vld [vmem:[%s2881_s19 + $0x54] sm:$0xf]  ;;  %v1954_v42 = vor.u32 %v2262_v27, %v1951_v28 }
  0xcf   : > { %1425 = vmatpush.bf16.msra.mxu1 %v1910_v60  ;;  %v2309_v33 = vld [vmem:[%s2881_s19 + $0x254] sm:$0xf0]  ;;  %v2197_v34 = vld [vmem:[%s2881_s19 + $0x2d0] sm:$0xf]  ;;  %v2974_v36 = vor.u32 %v2231_v31, %v1813_v30  ;;  %v1879_v40 = vld [vmem:[%s2881_s19 + $0x58] sm:$0xf0] }
  0xd0   : > { %1439 = vmatpush.bf16.msra.mxu2 %v1974_v61  ;;  %v2325_v35 = vld [vmem:[%s2881_s19 + $0x2d4] sm:$0xf0]  ;;  %v2260_v41 = vld [vmem:[%s2881_s19 + $0xd4] sm:$0xf]  ;;  %v1943_v43 = vld [vmem:[%s2881_s19 + $0xd8] sm:$0xf0]  ;;  %v2134_v50 = vor.u32 %v2309_v33, %v2133_v29  ;;  %v1882_v54 = vor.u32 %v2244_v39, %v1879_v40 }
  0xd1   : > { %1453 = vmatpush.bf16.msra.mxu3 %v2038_v1  ;;  %v2228_v44 = vld [vmem:[%s2879_s6 + $0x4] sm:$0xf]  ;;  %v1815_v45 = vld [vmem:[%s2879_s6 + $0x18] sm:$0xf0]  ;;  %v1821_v47 = vld [vmem:[%s2879_s6 + $0x8] sm:$0xf]  ;;  %v2198_v53 = vor.u32 %v2325_v35, %v2197_v34  ;;  %v1946_v59 = vor.u32 %v2260_v41, %v1943_v43 }
  0xd2   : > { %1412 = vmatpush.bf16.msra.mxu0 %v1838_v8  ;;  %v2983_v46 = vor.u32 %v2228_v44, %v1815_v45  ;;  %v2232_v48 = vld [vmem:[%s2879_s6 + $0x1c] sm:$0xf0]  ;;  %v2229_v49 = vld [vmem:[%s2879_s6 + $0xc] sm:$0xf]  ;;  %v1823_v52 = vld [vmem:[%s2879_s6 + $0x20] sm:$0xf0] }
  0xd3   : > { %1426 = vmatpush.bf16.msra.mxu1 %v1902_v12  ;;  %v2988_v51 = vor.u32 %v2232_v48, %v1821_v47  ;;  %v2125_v55 = vld [vmem:[%s2881_s19 + $0x240] sm:$0xf]  ;;  %v2307_v56 = vld [vmem:[%s2881_s19 + $0x244] sm:$0xf0]  ;;  %v2994_v58 = vor.u32 %v2229_v49, %v1823_v52  ;;  %v2242_v61 = vld [vmem:[%s2881_s19 + $0x44] sm:$0xf] }
  0xd4   : > { %1440 = vmatpush.bf16.msra.mxu2 %v1966_v13  ;;  %v2189_v57 = vld [vmem:[%s2881_s19 + $0x2c0] sm:$0xf]  ;;  %v2323_v60 = vld [vmem:[%s2881_s19 + $0x2c4] sm:$0xf0]  ;;  %v1871_v62 = vld [vmem:[%s2881_s19 + $0x48] sm:$0xf0]  ;;  %v2126_v1 = vor.u32 %v2307_v56, %v2125_v55 }
  0xd5   : > { %1454 = vmatpush.bf16.msra.mxu3 %v2030_v16  ;;  %1413 = vmatmul.bf16.vlgmr.msra.gmra.mxu0 %v2974_v36  ;;  %v2258_v63 = vld [vmem:[%s2881_s19 + $0xc4] sm:$0xf]  ;;  %v1935_v0 = vld [vmem:[%s2881_s19 + $0xc8] sm:$0xf0]  ;;  %v2190_v2 = vor.u32 %v2323_v60, %v2189_v57  ;;  %v1874_v3 = vor.u32 %v2242_v61, %v1871_v62  ;;  %v2117_v4 = vld [vmem:[%s2881_s19 + $0x230] sm:$0xf] }
  0xd6   : > { %1461 = vmatpush.bf16.msrb.mxu0 %v2150_v17  ;;  %1427 = vmatmul.bf16.vlgmr.msra.gmra.mxu1 %v2983_v46  ;;  %v2305_v5 = vld [vmem:[%s2881_s19 + $0x234] sm:$0xf0]  ;;  %v2181_v6 = vld [vmem:[%s2881_s19 + $0x2b0] sm:$0xf]  ;;  %v1938_v7 = vor.u32 %v2258_v63, %v1935_v0  ;;  %v2240_v9 = vld [vmem:[%s2881_s19 + $0x34] sm:$0xf] }
  0xd7   : > { %1475 = vmatpush.bf16.msrb.mxu1 %v2214_v20  ;;  %1441 = vmatmul.bf16.vlgmr.msra.gmra.mxu2 %v2988_v51  ;;  %v2321_v8 = vld [vmem:[%s2881_s19 + $0x2b4] sm:$0xf0]  ;;  %v1863_v10 = vld [vmem:[%s2881_s19 + $0x38] sm:$0xf0]  ;;  %v2256_v11 = vld [vmem:[%s2881_s19 + $0xb4] sm:$0xf]  ;;  %v2118_v13 = vor.u32 %v2305_v5, %v2117_v4 }
  0xd8   : > { %1489 = vmatpush.bf16.msrb.mxu2 %v1898_v21  ;;  %1455 = vmatmul.bf16.vlgmr.msra.gmra.mxu3 %v2994_v58  ;;  %v1927_v12 = vld [vmem:[%s2881_s19 + $0xb8] sm:$0xf0]  ;;  %v2182_v14 = vor.u32 %v2321_v8, %v2181_v6  ;;  %v1866_v15 = vor.u32 %v2240_v9, %v1863_v10  ;;  %v2109_v16 = vld [vmem:[%s2881_s19 + $0x220] sm:$0xf]  ;;  %v2303_v17 = vld [vmem:[%s2881_s19 + $0x224] sm:$0xf0] }
  0xd9   : > { %1503 = vmatpush.bf16.msrb.mxu3 %v1962_v25  ;;  %v2173_v18 = vld [vmem:[%s2881_s19 + $0x2a0] sm:$0xf]  ;;  %v1930_v19 = vor.u32 %v2256_v11, %v1927_v12  ;;  %v2319_v20 = vld [vmem:[%s2881_s19 + $0x2a4] sm:$0xf0]  ;;  %v2238_v21 = vld [vmem:[%s2881_s19 + $0x24] sm:$0xf]  ;;  %v2110_v25 = vor.u32 %v2303_v17, %v2109_v16 }
  0xda   : > { %1462 = vmatpush.bf16.msrb.mxu0 %v2142_v32  ;;  %v1855_v22 = vld [vmem:[%s2881_s19 + $0x28] sm:$0xf0]  ;;  %v2254_v23 = vld [vmem:[%s2881_s19 + $0xa4] sm:$0xf]  ;;  %v2174_v26 = vor.u32 %v2319_v20, %v2173_v18  ;;  %v2101_v28 = vld [vmem:[%s2881_s19 + $0x210] sm:$0xf] }
  0xdb   : > { %1476 = vmatpush.bf16.msrb.mxu1 %v2206_v37  ;;  %v1919_v24 = vld [vmem:[%s2881_s19 + $0xa8] sm:$0xf0]  ;;  %v1858_v27 = vor.u32 %v2238_v21, %v1855_v22  ;;  %v2301_v29 = vld [vmem:[%s2881_s19 + $0x214] sm:$0xf0]  ;;  %v2165_v30 = vld [vmem:[%s2881_s19 + $0x290] sm:$0xf] }
  0xdc   : > { %1490 = vmatpush.bf16.msrb.mxu2 %v1890_v38  ;;  %v1922_v31 = vor.u32 %v2254_v23, %v1919_v24  ;;  %v2317_v32 = vld [vmem:[%s2881_s19 + $0x294] sm:$0xf0]  ;;  %v2236_v33 = vld [vmem:[%s2881_s19 + $0x14] sm:$0xf]  ;;  %v1847_v34 = vld [vmem:[%s2881_s19 + $0x18] sm:$0xf0]  ;;  %v2102_v38 = vor.u32 %v2301_v29, %v2101_v28 }
  0xdd   : > { %1504 = vmatpush.bf16.msrb.mxu3 %v1954_v42  ;;  %v2252_v35 = vld [vmem:[%s2881_s19 + $0x94] sm:$0xf]  ;;  %v1911_v37 = vld [vmem:[%s2881_s19 + $0x98] sm:$0xf0]  ;;  %v2093_v39 = vld [vmem:[%s2881_s19 + $0x200] sm:$0xf]  ;;  %v2166_v42 = vor.u32 %v2317_v32, %v2165_v30  ;;  %v1850_v43 = vor.u32 %v2236_v33, %v1847_v34 }
  0xde   : > { %1463 = vmatpush.bf16.msrb.mxu0 %v2134_v50  ;;  %v2299_v40 = vld [vmem:[%s2881_s19 + $0x204] sm:$0xf0]  ;;  %v2157_v41 = vld [vmem:[%s2881_s19 + $0x280] sm:$0xf]  ;;  %v2234_v45 = vld [vmem:[%s2881_s19 + $0x4] sm:$0xf]  ;;  %v1914_v48 = vor.u32 %v2252_v35, %v1911_v37 }
  0xdf   : > { %1477 = vmatpush.bf16.msrb.mxu1 %v2198_v53  ;;  %v2315_v44 = vld [vmem:[%s2881_s19 + $0x284] sm:$0xf0]  ;;  %v1839_v47 = vld [vmem:[%s2881_s19 + $0x8] sm:$0xf0]  ;;  %v2250_v49 = vld [vmem:[%s2881_s19 + $0x84] sm:$0xf]  ;;  %v2094_v56 = vor.u32 %v2299_v40, %v2093_v39 }
  0xe0   : > { %1491 = vmatpush.bf16.msrb.mxu2 %v1882_v54  ;;  %v1903_v50 = vld [vmem:[%s2881_s19 + $0x88] sm:$0xf0]  ;;  %v2280_v52 = vld [vmem:[%s2881_s19 + $0x174] sm:$0xf]  ;;  %v2023_v53 = vld [vmem:[%s2881_s19 + $0x178] sm:$0xf0]  ;;  %v2158_v61 = vor.u32 %v2315_v44, %v2157_v41  ;;  %v1842_v62 = vor.u32 %v2234_v45, %v1839_v47 }
  0xe1   : > { %1505 = vmatpush.bf16.msrb.mxu3 %v1946_v59  ;;  %v2296_v54 = vld [vmem:[%s2881_s19 + $0x1f4] sm:$0xf]  ;;  %v2087_v55 = vld [vmem:[%s2881_s19 + $0x1f8] sm:$0xf0]  ;;  %v1829_v0 = vld [vmem:[%s2879_s6 + $0x10] sm:$0xf] }
  0xe2   : > { %1464 = vmatpush.bf16.msrb.mxu0 %v2126_v1  ;;  %v2312_v57 = vld [vmem:[%s2881_s19 + $0x274] sm:$0xf]  ;;  %v2151_v59 = vld [vmem:[%s2881_s19 + $0x278] sm:$0xf0]  ;;  %v2233_v1 = vld [vmem:[%s2879_s6 + $0x24] sm:$0xf0]  ;;  %v2090_v6 = vor.u32 %v2296_v54, %v2087_v55 }
  0xe3   : > { %1478 = vmatpush.bf16.msrb.mxu1 %v2190_v2  ;;  %v2328_v60 = vld [vmem:[%s2881_s19 + $0x2f4] sm:$0xf]  ;;  %v2215_v63 = vld [vmem:[%s2881_s19 + $0x2f8] sm:$0xf0]  ;;  %v1906_v2 = vor.u32 %v2250_v49, %v1903_v50  ;;  %v2278_v8 = vld [vmem:[%s2881_s19 + $0x164] sm:$0xf]  ;;  %v3051_v12 = vor.u32 %v2233_v1, %v1829_v0 }
  0xe4   : > { %1492 = vmatpush.bf16.msrb.mxu2 %v1874_v3  ;;  %v2026_v3 = vor.u32 %v2280_v52, %v2023_v53  ;;  %v2230_v4 = vld [vmem:[%s2879_s6 + $0x14] sm:$0xf]  ;;  %v1831_v5 = vld [vmem:[%s2879_s6 + $0x28] sm:$0xf0]  ;;  %v2218_v11 = vor.u32 %v2328_v60, %v2215_v63  ;;  %p2219_p6 = scmp.ne.s32.totalorder %s2494_s21, 5 }
  0xe5   : > { %1506 = vmatpush.bf16.msrb.mxu3 %v1938_v7  ;;  %v2154_v7 = vor.u32 %v2312_v57, %v2151_v59  ;;  %v2015_v9 = vld [vmem:[%s2881_s19 + $0x168] sm:$0xf0]  ;;  %v2294_v10 = vld [vmem:[%s2881_s19 + $0x1e4] sm:$0xf]  ;;  %v3056_v16 = vor.u32 %v2230_v4, %v1831_v5  ;;  %v2276_v22 = vld [vmem:[%s2881_s19 + $0x154] sm:$0xf] }
  0xe6   : > { %1465 = vmatpush.bf16.msrb.mxu0 %v2118_v13  ;;  %v2079_v13 = vld [vmem:[%s2881_s19 + $0x1e8] sm:$0xf0]  ;;  %v2326_v17 = vld [vmem:[%s2881_s19 + $0x2e4] sm:$0xf]  ;;  %v2007_v23 = vld [vmem:[%s2881_s19 + $0x158] sm:$0xf0] }
  0xe7   : > { %1479 = vmatpush.bf16.msrb.mxu1 %v2182_v14  ;;  %v2310_v14 = vld [vmem:[%s2881_s19 + $0x264] sm:$0xf]  ;;  %v2207_v18 = vld [vmem:[%s2881_s19 + $0x2e8] sm:$0xf0]  ;;  %v2082_v20 = vor.u32 %v2294_v10, %v2079_v13  ;;  %v2292_v24 = vld [vmem:[%s2881_s19 + $0x1d4] sm:$0xf] }
  0xe8   : > { %1493 = vmatpush.bf16.msrb.mxu2 %v1866_v15  ;;  %v2143_v15 = vld [vmem:[%s2881_s19 + $0x268] sm:$0xf0]  ;;  %v2135_v28 = vld [vmem:[%s2881_s19 + $0x258] sm:$0xf0]  ;;  %v2324_v29 = vld [vmem:[%s2881_s19 + $0x2d4] sm:$0xf] }
  0xe9   : > { %1507 = vmatpush.bf16.msrb.mxu3 %v1930_v19  ;;  %v2018_v19 = vor.u32 %v2278_v8, %v2015_v9  ;;  %v2146_v21 = vor.u32 %v2310_v14, %v2143_v15  ;;  %v2199_v30 = vld [vmem:[%s2881_s19 + $0x2d8] sm:$0xf0]  ;;  %v2274_v34 = vld [vmem:[%s2881_s19 + $0x144] sm:$0xf]  ;;  %v1999_v35 = vld [vmem:[%s2881_s19 + $0x148] sm:$0xf0] }
  0xea   : > { %1466 = vmatpush.bf16.msrb.mxu0 %v2110_v25  ;;  %v2210_v25 = vor.u32 %v2326_v17, %v2207_v18  ;;  %v2290_v37 = vld [vmem:[%s2881_s19 + $0x1c4] sm:$0xf]  ;;  %v2127_v40 = vld [vmem:[%s2881_s19 + $0x248] sm:$0xf0]  ;;  %v2272_v45 = vld [vmem:[%s2881_s19 + $0x134] sm:$0xf] }
  0xeb   : > { %1480 = vmatpush.bf16.msrb.mxu1 %v2174_v26  ;;  %v2071_v26 = vld [vmem:[%s2881_s19 + $0x1d8] sm:$0xf0]  ;;  %v2306_v39 = vld [vmem:[%s2881_s19 + $0x244] sm:$0xf]  ;;  %v2191_v41 = vld [vmem:[%s2881_s19 + $0x2c8] sm:$0xf0] }
  0xec   : > { %1494 = vmatpush.bf16.msrb.mxu2 %v1858_v27  ;;  %v2308_v27 = vld [vmem:[%s2881_s19 + $0x254] sm:$0xf]  ;;  %v2074_v32 = vor.u32 %v2292_v24, %v2071_v26  ;;  %v2130_v44 = vor.u32 %v2306_v39, %v2127_v40  ;;  %v1991_v47 = vld [vmem:[%s2881_s19 + $0x138] sm:$0xf0]  ;;  %v2270_v60 = vld [vmem:[%s2881_s19 + $0x124] sm:$0xf] }
  0xed   : > { %1508 = vmatpush.bf16.msrb.mxu3 %v1922_v31  ;;  %v2010_v31 = vor.u32 %v2276_v22, %v2007_v23  ;;  %v2138_v33 = vor.u32 %v2308_v27, %v2135_v28  ;;  %v2055_v50 = vld [vmem:[%s2881_s19 + $0x1b8] sm:$0xf0]  ;;  %v2304_v52 = vld [vmem:[%s2881_s19 + $0x234] sm:$0xf]  ;;  %v2047_v0 = vld [vmem:[%s2881_s19 + $0x1a8] sm:$0xf0] }
  0xee   : > { %1467 = vmatpush.bf16.msrb.mxu0 %v2102_v38  ;;  %v2063_v38 = vld [vmem:[%s2881_s19 + $0x1c8] sm:$0xf0]  ;;  %v2119_v53 = vld [vmem:[%s2881_s19 + $0x238] sm:$0xf0]  ;;  %v2320_v54 = vld [vmem:[%s2881_s19 + $0x2b4] sm:$0xf] }
  0xef   : > { %1481 = vmatpush.bf16.msrb.mxu1 %v2166_v42  ;;  %v2002_v42 = vor.u32 %v2274_v34, %v1999_v35  ;;  %v2183_v55 = vld [vmem:[%s2881_s19 + $0x2b8] sm:$0xf0]  ;;  %v2122_v59 = vor.u32 %v2304_v52, %v2119_v53  ;;  %v2302_v1 = vld [vmem:[%s2881_s19 + $0x224] sm:$0xf]  ;;  %v2175_v4 = vld [vmem:[%s2881_s19 + $0x2a8] sm:$0xf0] }
  0xf0   : > { %1495 = vmatpush.bf16.msrb.mxu2 %v1850_v43  ;;  %v2066_v43 = vor.u32 %v2290_v37, %v2063_v38  ;;  %v2186_v63 = vor.u32 %v2320_v54, %v2183_v55  ;;  %v2268_v8 = vld [vmem:[%s2881_s19 + $0x114] sm:$0xf]  ;;  %v1975_v9 = vld [vmem:[%s2881_s19 + $0x118] sm:$0xf0]  ;;  %v2266_v22 = vld [vmem:[%s2881_s19 + $0x104] sm:$0xf] }
  0xf1   : > { %1509 = vmatpush.bf16.msrb.mxu3 %v1914_v48  ;;  %v2288_v48 = vld [vmem:[%s2881_s19 + $0x1b4] sm:$0xf]  ;;  %v2039_v13 = vld [vmem:[%s2881_s19 + $0x198] sm:$0xf0]  ;;  %v1967_v23 = vld [vmem:[%s2881_s19 + $0x108] sm:$0xf0] }
  0xf2   : > { %1468 = vmatpush.bf16.msrb.mxu0 %v2094_v56  ;;  %v1994_v56 = vor.u32 %v2272_v45, %v1991_v47  ;;  %v2058_v57 = vor.u32 %v2288_v48, %v2055_v50  ;;  %v2284_v10 = vld [vmem:[%s2881_s19 + $0x194] sm:$0xf]  ;;  %v2103_v15 = vld [vmem:[%s2881_s19 + $0x218] sm:$0xf0]  ;;  %v2282_v24 = vld [vmem:[%s2881_s19 + $0x184] sm:$0xf] }
  0xf3   : > { %1482 = vmatpush.bf16.msrb.mxu1 %v2158_v61  ;;  %v1983_v61 = vld [vmem:[%s2881_s19 + $0x128] sm:$0xf0]  ;;  %v2300_v14 = vld [vmem:[%s2881_s19 + $0x214] sm:$0xf]  ;;  %v2167_v18 = vld [vmem:[%s2881_s19 + $0x298] sm:$0xf0] }
  0xf4   : > { %1496 = vmatpush.bf16.msrb.mxu2 %v1842_v62  ;;  %v2286_v62 = vld [vmem:[%s2881_s19 + $0x1a4] sm:$0xf]  ;;  %v1986_v5 = vor.u32 %v2270_v60, %v1983_v61  ;;  %v2316_v17 = vld [vmem:[%s2881_s19 + $0x294] sm:$0xf]  ;;  %v2031_v26 = vld [vmem:[%s2881_s19 + $0x188] sm:$0xf0] }
  0xf5   : > { %1510 = vmatpush.bf16.msrb.mxu3 %v1906_v2  ;;  %1469 = vmatmul.bf16.vlgmr.msrb.gmra.mxu0 %v3051_v12  ;;  %v2111_v2 = vld [vmem:[%s2881_s19 + $0x228] sm:$0xf0]  ;;  %v2298_v27 = vld [vmem:[%s2881_s19 + $0x204] sm:$0xf]  ;;  %v789_v48 = vld [vmem:[#allocation2 + $0x10] sm:$0xff] }
  0xf6   : > { %1517 = vmatpush.bf16.msra.mxu0 %v2026_v3  ;;  %1483 = vmatmul.bf16.vlgmr.msrb.gmra.mxu1 %v3056_v16  ;;  %v2318_v3 = vld [vmem:[%s2881_s19 + $0x2a4] sm:$0xf]  ;;  %v2095_v28 = vld [vmem:[%s2881_s19 + $0x208] sm:$0xf0]  ;;  %v791_v55 = vld [vmem:[#allocation2 + $0x18] sm:$0xff] }
  0xf7   : > { %1531 = vmatpush.bf16.msra.mxu1 %v2090_v6  ;;  %1497 = vmatmul.bf16.vlgmr.msrb.gmra.mxu2 %v2974_v36  ;;  %v2202_v36 = vor.u32 %v2324_v29, %v2199_v30  ;;  %v2050_v6 = vor.u32 %v2286_v62, %v2047_v0  ;;  %v2314_v29 = vld [vmem:[%s2881_s19 + $0x284] sm:$0xf]  ;;  %v2159_v30 = vld [vmem:[%s2881_s19 + $0x288] sm:$0xf0] }
  0xf8   : > { %1545 = vmatpush.bf16.msra.mxu2 %v2154_v7  ;;  %1511 = vmatmul.bf16.vlgmr.msrb.gmra.mxu3 %v2983_v46  ;;  %v2322_v46 = vld [vmem:[%s2881_s19 + $0x2c4] sm:$0xf]  ;;  %v2114_v7 = vor.u32 %v2302_v1, %v2111_v2  ;;  %v2162_v34 = vor.u32 %v2314_v29, %v2159_v30 }
  0xf9   : > { %1559 = vmatpush.bf16.msra.mxu3 %v2218_v11  ;;  %v2194_v49 = vor.u32 %v2322_v46, %v2191_v41  ;;  %v2178_v11 = vor.u32 %v2318_v3, %v2175_v4 }
  0xfa   : > { %1518 = vmatpush.bf16.msra.mxu0 %v2018_v19  ;;  %v1978_v19 = vor.u32 %v2268_v8, %v1975_v9  ;;  %v790_v9 = vld [vmem:[#allocation2] sm:$0xff] }
  0xfb   : > { %1532 = vmatpush.bf16.msra.mxu1 %v2082_v20  ;;  %v2042_v20 = vor.u32 %v2284_v10, %v2039_v13 }
  0xfc   : > { %1546 = vmatpush.bf16.msra.mxu2 %v2146_v21  ;;  %v2106_v21 = vor.u32 %v2300_v14, %v2103_v15 }
  0xfd   : > { %1560 = vmatpush.bf16.msra.mxu3 %v2210_v25  ;;  %v2170_v25 = vor.u32 %v2316_v17, %v2167_v18 }
  0xfe   : > { %1519 = vmatpush.bf16.msra.mxu0 %v2010_v31  ;;  %v1970_v31 = vor.u32 %v2266_v22, %v1967_v23 }
  0xff   : > { %1533 = vmatpush.bf16.msra.mxu1 %v2074_v32  ;;  %v2034_v32 = vor.u32 %v2282_v24, %v2031_v26 }
 0x100   : > { %1547 = vmatpush.bf16.msra.mxu2 %v2138_v33  ;;  %v2098_v33 = vor.u32 %v2298_v27, %v2095_v28 }
 0x101   : > { %1561 = vmatpush.bf16.msra.mxu3 %v2202_v36 }
 0x102   : > { %1520 = vmatpush.bf16.msra.mxu0 %v2002_v42 }
 0x103   : > { %1534 = vmatpush.bf16.msra.mxu1 %v2066_v43 }
 0x104   : > { %1548 = vmatpush.bf16.msra.mxu2 %v2130_v44 }
 0x105   : > { %1562 = vmatpush.bf16.msra.mxu3 %v2194_v49 }
 0x106   : > { %1521 = vmatpush.bf16.msra.mxu0 %v1994_v56 }
 0x107   : > { %1535 = vmatpush.bf16.msra.mxu1 %v2058_v57 }
 0x108   : > { %1549 = vmatpush.bf16.msra.mxu2 %v2122_v59 }
 0x109   : > { %1563 = vmatpush.bf16.msra.mxu3 %v2186_v63 }
 0x10a   : > { %1522 = vmatpush.bf16.msra.mxu0 %v1986_v5 }
 0x10b   : > { %1536 = vmatpush.bf16.msra.mxu1 %v2050_v6 }
 0x10c   : > { %1550 = vmatpush.bf16.msra.mxu2 %v2114_v7 }
 0x10d   : > { %1564 = vmatpush.bf16.msra.mxu3 %v2178_v11 }
 0x10e   : > { %1523 = vmatpush.bf16.msra.mxu0 %v1978_v19  ;;  %v792_v19 = vld [vmem:[#allocation2 + $0x8] sm:$0xff] }
 0x10f   : > { %1537 = vmatpush.bf16.msra.mxu1 %v2042_v20 }
 0x110   : > { %1551 = vmatpush.bf16.msra.mxu2 %v2106_v21 }
 0x111   : > { %1565 = vmatpush.bf16.msra.mxu3 %v2170_v25 }
 0x112   : > { %1524 = vmatpush.bf16.msra.mxu0 %v1970_v31 }
 0x113   : > { %1538 = vmatpush.bf16.msra.mxu1 %v2034_v32 }
 0x114   : > { %1552 = vmatpush.bf16.msra.mxu2 %v2098_v33 }
 0x115   : > { %1566 = vmatpush.bf16.msra.mxu3 %v2162_v34  ;;  %1525 = vmatmul.bf16.vlgmr.msra.gmra.mxu0 %v2988_v51 }
 0x116   : > { %1539 = vmatmul.bf16.vlgmr.msra.gmra.mxu1 %v2994_v58 }
 0x117   : > { %1553 = vmatmul.bf16.vlgmr.msra.gmra.mxu2 %v3051_v12 }
 0x118   : > { %1567 = vmatmul.bf16.vlgmr.msra.gmra.mxu3 %v3056_v16 }
 0x152   : > { %v1414_v35 = vpop.f32.mrf.mxu0 }
 0x153   : > { %v1428_v37 = vpop.f32.mrf.mxu1 }
 0x154   : > { %v1429_v36 = vadd.f32 %v1428_v37, %v1414_v35 }
 0x15a   : > { %v1416_v38 = vpop.f32.mrf.mxu0  ;;  %v1442_v39 = vpop.f32.mrf.mxu2 }
 0x15b   : > { %v1430_v40 = vpop.f32.mrf.mxu1  ;;  %v1443_v46 = vadd.f32 %v1442_v39, %v1429_v36  ;;  %v1456_v41 = vpop.f32.mrf.mxu3 }
 0x15c   : > { %v1431_v43 = vadd.f32 %v1430_v40, %v1416_v38 }
 0x15d   : > { %v1457_v42 = vadd.f32 %v1456_v41, %v1443_v46 }
 0x162   : > { %v1444_v45 = vpop.f32.mrf.mxu2 }
 0x163   : > { %v1445_v58 = vadd.f32 %v1444_v45, %v1431_v43  ;;  %v1458_v12 = vpop.f32.mrf.mxu3 }
 0x165   : > { %v1459_v16 = vadd.f32 %v1458_v12, %v1445_v58 }
 0x172   : > { %v1470_v44 = vpop.f32.mrf.mxu0 }
 0x173   : > { %v1471_v47 = vadd.f32 %v1470_v44, %v1457_v42  ;;  %v1484_v51 = vpop.f32.mrf.mxu1 }
 0x175   : > { %v1485_v49 = vadd.f32 %v1484_v51, %v1471_v47 }
 0x177   : > { %v1573_v50 = vadd.f32 %v1485_v49, %v789_v48 }
 0x179   : > { %1577 = vst [vmem:[#allocation2 + $0x10] sm:$0xff] %v1573_v50 }
 0x17a   : > { %v1472_v52 = vpop.f32.mrf.mxu0  ;;  %v1498_v59 = vpop.f32.mrf.mxu2 }
 0x17b   : > { %v1473_v53 = vadd.f32 %v1472_v52, %v1459_v16  ;;  %v1486_v54 = vpop.f32.mrf.mxu1  ;;  %v1512_v60 = vpop.f32.mrf.mxu3 }
 0x17c   : > { %v1513_v62 = vadd.f32 %v1512_v60, %v1498_v59 }
 0x17d   : > { %v1487_v56 = vadd.f32 %v1486_v54, %v1473_v53 }
 0x17f   : > { %v1575_v57 = vadd.f32 %v1487_v56, %v791_v55 }
 0x181   : > { %1579 = vst [vmem:[#allocation2 + $0x18] sm:$0xff] %v1575_v57 }
 0x182   : > { %v1500_v61 = vpop.f32.mrf.mxu2 }
 0x183   : > { %v1514_v63 = vpop.f32.mrf.mxu3 }
 0x184   : > { %v1515_v5 = vadd.f32 %v1514_v63, %v1500_v61 }
 0x192   : > { %v1526_v0 = vpop.f32.mrf.mxu0 }
 0x193   : > { %v1527_v1 = vadd.f32 %v1526_v0, %v1513_v62  ;;  %v1540_v2 = vpop.f32.mrf.mxu1 }
 0x195   : > { %v1541_v3 = vadd.f32 %v1540_v2, %v1527_v1 }
 0x19a   : > { %v1554_v4 = vpop.f32.mrf.mxu2  ;;  %v1528_v8 = vpop.f32.mrf.mxu0 }
 0x19b   : > { %v1555_v6 = vadd.f32 %v1554_v4, %v1541_v3  ;;  %v1568_v7 = vpop.f32.mrf.mxu3  ;;  %v1529_v11 = vadd.f32 %v1528_v8, %v1515_v5  ;;  %v1542_v14 = vpop.f32.mrf.mxu1 }
 0x19d   : > { %v1569_v10 = vadd.f32 %v1568_v7, %v1555_v6  ;;  %v1543_v15 = vadd.f32 %v1542_v14, %v1529_v11 }
 0x19f   : > { %v1574_v13 = vadd.f32 %v1569_v10, %v790_v9 }
 0x1a1   : > { %1578 = vst [vmem:[#allocation2] sm:$0xff] %v1574_v13 }
 0x1a2   : > { %v1556_v17 = vpop.f32.mrf.mxu2 }
 0x1a3   : > { %v1557_v18 = vadd.f32 %v1556_v17, %v1543_v15  ;;  %v1570_v20 = vpop.f32.mrf.mxu3 }
 0x1a5   : > { %v1571_v21 = vadd.f32 %v1570_v20, %v1557_v18  ;;  %1584 = sbr.rel (%p2219_p6) target bundleno = 442 (0x1ba), region = 143 }
 0x1a7   : > { %v1576_v22 = vadd.f32 %v1571_v21, %v792_v19 }
 0x1a9   : > { %1580 = vst [vmem:[#allocation2 + $0x8] sm:$0xff] %v1576_v22 }
 0x1aa   : > { %v1585_v23 = vld [vmem:[#allocation2 + $0x10] sm:$0xff]  ;;  %v1586_v24 = vld [vmem:[#allocation2] sm:$0xff]  ;;  %v1587_v29 = vld [vmem:[#allocation2 + $0x18] sm:$0xff] }
 0x1ab   : > { %v1589_v25 = vld [vmem:[%s775_s30] sm:$0x3]  ;;  %v1600_v33 = vld [vmem:[%s734_s17 + $0x8] sm:$0xff] }
 0x1ac   : > { %v1591_v26 = vperm.slane %v1589_v25, 0  ;;  %v1592_v27 = vperm.slane %v1589_v25, 1  ;;  %v1599_v28 = vld [vmem:[%s734_s17] sm:$0xff]  ;;  %v1603_v38 = vunpack.c.l.bf16 %v1600_v33  ;;  %v1604_v39 = vunpack.c.h.bf16 %v1600_v33 }
 0x1ad   : > { %v1601_v31 = vunpack.c.l.bf16 %v1599_v28  ;;  %v1602_v32 = vunpack.c.h.bf16 %v1599_v28 }
 0x1ae   : > { %v1595_v34 = vadd.f32 %v1591_v26, %v1585_v23  ;;  %v1596_v35 = vadd.f32 %v1592_v27, %v1586_v24  ;;  %v1597_v37 = vadd.f32 %v1591_v26, %v1587_v29 }
 0x1b0   : > { %v1588_v30 = vld [vmem:[#allocation2 + $0x8] sm:$0xff]  ;;  %v1605_v40 = vadd.f32 %v1601_v31, %v1595_v34  ;;  %v1606_v46 = vadd.f32 %v1602_v32, %v1596_v35  ;;  %v1607_v41 = vadd.f32 %v1603_v38, %v1597_v37 }
 0x1b1   : > { %v1598_v36 = vadd.f32 %v1592_v27, %v1588_v30 }
 0x1b2   : > { %v1609_v43 = vmax.f32 %v1605_v40, 0.0  ;;  %v1610_v44 = vmax.f32 %v1606_v46, 0.0  ;;  %v1611_v45 = vmax.f32 %v1607_v41, 0.0 }
 0x1b3   : > { %v1608_v42 = vadd.f32 %v1604_v39, %v1598_v36 }
 0x1b4   : > { %v1613_v51 = vpack.c.bf16 %v1610_v44, %v1609_v43 }
 0x1b5   : > { %v1612_v47 = vmax.f32 %v1608_v42, 0.0 }
 0x1b6   : > { %1615 = vst [vmem:[%s2885_s15] sm:$0xff] %v1613_v51 }
 0x1b7   : > { %v1614_v48 = vpack.c.bf16 %v1612_v47, %v1611_v45 }
 0x1b9   : > { %1616 = vst [vmem:[%s2885_s15 + $0x8] sm:$0xff] %v1614_v48 }
 0x1ba PF: > { %1623 = sbr.rel (!%p2642_p13) target bundleno = 450 (0x1c2), region = 147  ;;  %s2330_s21 = sshll.u32 (%p2642_p13), %s2498_s22, 3 }
 0x1bb   : > { %s1629_s28 = scalar_lea.vmem (%p2642_p13), %s3173_s4, %s2330_s21 }
 0x1bd   : > { %v1660_v58 = vld [vmem:[%s2885_s15] sm:$0xff] (%p2642_p13) }
 0x1be   : > { %1661 = vst [vmem:[%s1629_s28] sm:$0xff] (%p2642_p13), %v1660_v58 }
 0x1c0   : > { %v1662_v49 = vld [vmem:[%s2885_s15 + $0x8] sm:$0xff] }
 0x1c1   : > { %1663 = vst [vmem:[%s1629_s28 + $0x10] sm:$0xff] %v1662_v49 }
 0x1c2 PF: > { %s14_s25 = sadd.s32 1, %s2510_s25   ;;  %s3184_s29 = sld [smem:[#allocation7_spill]] }
 0x1c3   : > { %p11_p7 = scmp.ge.s32.totalorder %s14_s25, 14   ;;  %s3185_s10 = sld [smem:[#allocation8_spill]] }
 0x1c4   : > { %s3186_s15 = smov %s2474_s16  ;;  %s3187_s16 = smov %s2634_s13 }
 0x1c5   : > { %s3188_s17 = smov %s2482_s18  ;;  %s3189_s18 = smov %s2631_s12 }
 0x1c6   : > { %s3190_s19 = smov %s2490_s20  ;;  %s3191_s20 = smov %s2615_s7 }
 0x1c7   : > { %s3192_s21 = smov %s2502_s23  ;;  %s3193_s22 = smov %s2506_s24 }
 0x1c8   : > { %s3194_s23 = smov %s3184_s29  ;;  %13 = sbr.rel (!%p11_p7) target bundleno = 8 (0x8), region = 235 }
 0x1c9   : > { %s3195_s24 = smov %s3185_s10 }

// kernel: _lambda_.28
= control target key start
LH: loop header
LB: loop body
LE: loop exit
PB: predicated region body
PF: predicated region fallthrough
CT: control target
= control target key end

     0   :  { %s219_s6 = smov 0   ;;  %s230_s0 = inlined_call_operand.vmem [shape: bf16[2,1,512], index: 0, kind: input, shape index: {}]   ;;  %s231_s1 = inlined_call_operand.vmem [shape: f32[2,1,512], index: 1, kind: output, shape index: {}]  }
   0x1 LB: > { %s184_s7 = sadd.s32 4294967295, %s207_s6   ;;  %p188_p0 = scmp.ge.s32.totalorder %s207_s6, 1  ;;  %s207_s6 = sphi %s219_s6, %s11_s6  }
   0x2   : > { %p86_p1 = scmp.lt.s32.totalorder %s207_s6, 3 }
   0x4   : > { %p87_p2 = pnand %p188_p0, %p86_p1 }
   0x5   : > { %p104_p3 = scmp.lt.s32.totalorder (!%p87_p2), %s184_s7, 1 }
   0x6   : > { %90 = sbr.rel (%p87_p2) target bundleno = 22 (0x16), region = 24 }
   0xb   : > { %s233_s7 = smov (!%p104_p3, %s184_s7), 1  ;;  %v126_v1 = vlaneseq  ;;  %vm119_vm0 = vcmask 1040384   ;;  %vm121_vm1 = vcmask 1042434   ;;  %vm123_vm2 = vcmask 1041408  }
   0xc   : > { %s189_s8 = sshll.u32 %s233_s7, 2 }
   0xd   : > { %s107_s11 = scalar_lea.vmem %s230_s0, %s189_s8  ;;  %s111_s14 = scalar_lea.vmem %s231_s1, %s189_s8  ;;  %vm128_vm3 = vcmp.lt.s32.totalorder %v126_v1, 512 }
   0xe   : > { %v112_v0 = vld [vmem:[%s107_s11] sm:$0xf] }
   0xf   : > { %v113_v2 = vunpack.c.l.bf16 %v112_v0 }
  0x11   : > { %v116_v3 = vrot.slane %v113_v2, 1  ;;  %v117_v4 = vrot.slane %v113_v2, 2  ;;  %v118_v5 = vrot.slane %v113_v2, 3 }
  0x13   : > { %v120_v6 = vsel %vm119_vm0, %v113_v2, %v116_v3  ;;  %v122_v7 = vsel %vm121_vm1, %v117_v4, %v118_v5 }
  0x14   : > { %v124_v8 = vsel %vm123_vm2, %v120_v6, %v122_v7 }
  0x15   : > { %130 = vst.msk [vmem:[%s111_s14] sm:$0xf] %vm128_vm3, %v124_v8 }
  0x16 PF: > { %s11_s6 = sadd.s32 1, %s207_s6  }
  0x17   : > { %p8_p4 = scmp.ge.s32.totalorder %s11_s6, 4  }
  0x19   :  { %10 = sbr.rel (!%p8_p4) target bundleno = 1 (0x1), region = 54 }

// kernel: _lambda_.29
= control target key start
LH: loop header
LB: loop body
LE: loop exit
PB: predicated region body
PF: predicated region fallthrough
CT: control target
= control target key end

     0   :  { %s709_s1 = inlined_call_operand.vmem [shape: bf16[512,128], index: 1, kind: input, shape index: {}]   ;;  %s710_s0 = inlined_call_operand.vmem [shape: bf16[16,512], index: 0, kind: input, shape index: {}]   ;;  %s711_s2 = inlined_call_operand.vmem [shape: f32[1,128], index: 2, kind: input, shape index: {}]   ;;  %s712_s3 = inlined_call_operand.vmem [shape: f32[16,128], index: 3, kind: output, shape index: {}]  }
   0x1   :  { %v534_v0 = vld [vmem:[%s709_s1 + $0x38] sm:$0xff]  ;;  %v533_v4 = vld [vmem:[%s709_s1 + $0x30] sm:$0xff]  ;;  %v532_v8 = vld [vmem:[%s709_s1 + $0x28] sm:$0xff] }
   0x2   :  { %v542_v1 = vld [vmem:[%s709_s1 + $0x78] sm:$0xff]  ;;  %302 = vmatpush.bf16.msra.mxu0 %v534_v0  ;;  %v541_v5 = vld [vmem:[%s709_s1 + $0x70] sm:$0xff]  ;;  %v540_v9 = vld [vmem:[%s709_s1 + $0x68] sm:$0xff] }
   0x3   :  { %v550_v2 = vld [vmem:[%s709_s1 + $0xb8] sm:$0xff]  ;;  %316 = vmatpush.bf16.msra.mxu1 %v542_v1  ;;  %v549_v6 = vld [vmem:[%s709_s1 + $0xb0] sm:$0xff]  ;;  %v548_v10 = vld [vmem:[%s709_s1 + $0xa8] sm:$0xff] }
   0x4   :  { %v558_v3 = vld [vmem:[%s709_s1 + $0xf8] sm:$0xff]  ;;  %330 = vmatpush.bf16.msra.mxu2 %v550_v2  ;;  %v557_v7 = vld [vmem:[%s709_s1 + $0xf0] sm:$0xff]  ;;  %v556_v11 = vld [vmem:[%s709_s1 + $0xe8] sm:$0xff] }
   0x5   :  { %344 = vmatpush.bf16.msra.mxu3 %v558_v3  ;;  %v531_v12 = vld [vmem:[%s709_s1 + $0x20] sm:$0xff]  ;;  %v530_v16 = vld [vmem:[%s709_s1 + $0x18] sm:$0xff]  ;;  %v529_v20 = vld [vmem:[%s709_s1 + $0x10] sm:$0xff] }
   0x6   :  { %303 = vmatpush.bf16.msra.mxu0 %v533_v4  ;;  %v539_v13 = vld [vmem:[%s709_s1 + $0x60] sm:$0xff]  ;;  %v538_v17 = vld [vmem:[%s709_s1 + $0x58] sm:$0xff]  ;;  %v537_v21 = vld [vmem:[%s709_s1 + $0x50] sm:$0xff] }
   0x7   :  { %317 = vmatpush.bf16.msra.mxu1 %v541_v5  ;;  %v547_v14 = vld [vmem:[%s709_s1 + $0xa0] sm:$0xff]  ;;  %v546_v18 = vld [vmem:[%s709_s1 + $0x98] sm:$0xff]  ;;  %v545_v22 = vld [vmem:[%s709_s1 + $0x90] sm:$0xff] }
   0x8   :  { %331 = vmatpush.bf16.msra.mxu2 %v549_v6  ;;  %v555_v15 = vld [vmem:[%s709_s1 + $0xe0] sm:$0xff]  ;;  %v554_v19 = vld [vmem:[%s709_s1 + $0xd8] sm:$0xff]  ;;  %v553_v23 = vld [vmem:[%s709_s1 + $0xd0] sm:$0xff] }
   0x9   :  { %345 = vmatpush.bf16.msra.mxu3 %v557_v7  ;;  %v528_v24 = vld [vmem:[%s709_s1 + $0x8] sm:$0xff]  ;;  %v527_v28 = vld [vmem:[%s709_s1] sm:$0xff]  ;;  %v525_v33 = vld [vmem:[%s710_s0 + $0xc] sm:$0xf0] }
   0xa   :  { %304 = vmatpush.bf16.msra.mxu0 %v532_v8  ;;  %v536_v25 = vld [vmem:[%s709_s1 + $0x48] sm:$0xff]  ;;  %v535_v29 = vld [vmem:[%s709_s1 + $0x40] sm:$0xff]  ;;  %v383_v35 = vld [vmem:[%s710_s0 + $0x10] sm:$0xf0] }
   0xb   :  { %318 = vmatpush.bf16.msra.mxu1 %v540_v9  ;;  %v544_v26 = vld [vmem:[%s709_s1 + $0x88] sm:$0xff]  ;;  %v543_v30 = vld [vmem:[%s709_s1 + $0x80] sm:$0xff]  ;;  %v526_v37 = vld [vmem:[%s710_s0 + $0x14] sm:$0xf0] }
   0xc   :  { %332 = vmatpush.bf16.msra.mxu2 %v548_v10  ;;  %v552_v27 = vld [vmem:[%s709_s1 + $0xc8] sm:$0xff]  ;;  %v551_v31 = vld [vmem:[%s709_s1 + $0xc0] sm:$0xff]  ;;  %v391_v39 = vld [vmem:[%s710_s0 + $0x18] sm:$0xf0] }
   0xd   :  { %346 = vmatpush.bf16.msra.mxu3 %v556_v11  ;;  %v381_v32 = vld [vmem:[%s710_s0] sm:$0xf]  ;;  %v523_v34 = vld [vmem:[%s710_s0 + $0x4] sm:$0xf]  ;;  %v389_v36 = vld [vmem:[%s710_s0 + $0x8] sm:$0xf] }
   0xe   :  { %305 = vmatpush.bf16.msra.mxu0 %v531_v12  ;;  %v524_v38 = vld [vmem:[%s710_s0 + $0xc] sm:$0xf]  ;;  %v382_v40 = vor.u32 %v525_v33, %v381_v32  ;;  %v386_v41 = vor.u32 %v523_v34, %v383_v35  ;;  %v390_v42 = vor.u32 %v526_v37, %v389_v36  ;;  %v559_v50 = vld [vmem:[%s711_s2] ss:$0 sm:$0xff] }
   0xf   :  { %319 = vmatpush.bf16.msra.mxu1 %v539_v13  ;;  %v394_v43 = vor.u32 %v524_v38, %v391_v39 }
  0x10   :  { %333 = vmatpush.bf16.msra.mxu2 %v547_v14 }
  0x11   :  { %347 = vmatpush.bf16.msra.mxu3 %v555_v15 }
  0x12   :  { %306 = vmatpush.bf16.msra.mxu0 %v530_v16 }
  0x13   :  { %320 = vmatpush.bf16.msra.mxu1 %v538_v17 }
  0x14   :  { %334 = vmatpush.bf16.msra.mxu2 %v546_v18 }
  0x15   :  { %348 = vmatpush.bf16.msra.mxu3 %v554_v19 }
  0x16   :  { %307 = vmatpush.bf16.msra.mxu0 %v529_v20 }
  0x17   :  { %321 = vmatpush.bf16.msra.mxu1 %v537_v21 }
  0x18   :  { %335 = vmatpush.bf16.msra.mxu2 %v545_v22 }
  0x19   :  { %349 = vmatpush.bf16.msra.mxu3 %v553_v23 }
  0x1a   :  { %308 = vmatpush.bf16.msra.mxu0 %v528_v24 }
  0x1b   :  { %322 = vmatpush.bf16.msra.mxu1 %v536_v25 }
  0x1c   :  { %336 = vmatpush.bf16.msra.mxu2 %v544_v26 }
  0x1d   :  { %350 = vmatpush.bf16.msra.mxu3 %v552_v27 }
  0x1e   :  { %309 = vmatpush.bf16.msra.mxu0 %v527_v28 }
  0x1f   :  { %323 = vmatpush.bf16.msra.mxu1 %v535_v29 }
  0x20   :  { %337 = vmatpush.bf16.msra.mxu2 %v543_v30 }
  0x21   :  { %351 = vmatpush.bf16.msra.mxu3 %v551_v31  ;;  %310 = vmatmul.bf16.vlgmr.msra.gmra.mxu0 %v382_v40 }
  0x22   :  { %324 = vmatmul.bf16.vlgmr.msra.gmra.mxu1 %v386_v41 }
  0x23   :  { %338 = vmatmul.bf16.vlgmr.msra.gmra.mxu2 %v390_v42 }
  0x24   :  { %352 = vmatmul.bf16.vlgmr.msra.gmra.mxu3 %v394_v43 }
  0x9e   :  { %v311_v44 = vpop.f32.mrf.mxu0 }
  0x9f   :  { %v325_v45 = vpop.f32.mrf.mxu1 }
  0xa0   :  { %v326_v46 = vadd.f32 %v325_v45, %v311_v44 }
  0xa6   :  { %v339_v47 = vpop.f32.mrf.mxu2  ;;  %v313_v52 = vpop.f32.mrf.mxu0 }
  0xa7   :  { %v353_v48 = vpop.f32.mrf.mxu3  ;;  %v340_v49 = vadd.f32 %v339_v47, %v326_v46  ;;  %v327_v53 = vpop.f32.mrf.mxu1 }
  0xa8   :  { %v328_v55 = vadd.f32 %v327_v53, %v313_v52 }
  0xa9   :  { %v354_v51 = vadd.f32 %v353_v48, %v340_v49 }
  0xab   :  { %v371_v54 = vadd.f32 %v559_v50, %v354_v51 }
  0xad   :  { %373 = vst [vmem:[%s712_s3] sm:$0xff] %v371_v54 }
  0xae   :  { %v341_v56 = vpop.f32.mrf.mxu2 }
  0xaf   :  { %v342_v57 = vadd.f32 %v341_v56, %v328_v55  ;;  %v355_v58 = vpop.f32.mrf.mxu3 }
  0xb1   :  { %v356_v59 = vadd.f32 %v355_v58, %v342_v57 }
  0xb3   :  { %v372_v60 = vadd.f32 %v559_v50, %v356_v59 }
  0xb5   :  { %374 = vst [vmem:[%s712_s3 + $0x8] sm:$0xff] %v372_v60 }

</bundles_post_ra>
